<compile_context>
chip_gen: v7x
topology: tpu7x:2x2x1
jax: 0.10.0
libtpu: 0.0.40
codegen_flags: <defaults>
</compile_context>

<pallas_src>
import functools

import jax
import jax.numpy as jnp
from jax.experimental import pallas as pl
from jax.experimental.pallas import tpu as pltpu


# ------------------------------ small helpers -------------------------------

def _round_up(x, m):
    return (x + m - 1) // m * m


def _pick_tile(total, target, unit):
    """Largest multiple of `unit` that divides `total` and is <= target."""
    q = total // unit
    best = 1
    for d in range(1, q + 1):
        if q % d == 0 and d * unit <= target:
            best = d
    return best * unit


def _m_tiling(m):
    """(padded M, row tile). Rows padded with zeros; exact for matmul."""
    if m > 512:
        m_pad = _round_up(m, 512)
        return m_pad, 512
    m_pad = _round_up(m, 8)
    return m_pad, m_pad


def _default_vmem_limit():
    """Generation-aware scoped-VMEM budget (v7x has only 64 MiB per TC)."""
    cap = 64 * 1024 * 1024
    try:
        info = pltpu.get_tpu_info()
        cap = getattr(info, "vmem_capacity_bytes", cap) or cap
    except Exception:
        pass
    return int(min(cap * 3 // 4, 96 * 1024 * 1024))


_VMEM_LIMIT = _default_vmem_limit()
_VMEM_SPEC = pl.BlockSpec(memory_space=pltpu.MemorySpace.VMEM)


# ----------------------------- Pallas kernels ------------------------------

def _conv_matmul_kernel(x_ref, w_ref, shift_ref, o_ref, acc_ref, *, relu):
    # Tiled (tm, tk) @ (tk, tn) bf16 matmul, f32 accumulation, fused BN shift
    # (+ optional ReLU).  K axis (grid axis 3) is the reduction axis.
    @pl.when(pl.program_id(3) == 0)
    def _():
        acc_ref[...] = jnp.zeros_like(acc_ref)

    acc_ref[...] += jnp.dot(x_ref[...], w_ref[...],
                            preferred_element_type=jnp.float32)

    @pl.when(pl.program_id(3) == pl.num_programs(3) - 1)
    def _():
        out = acc_ref[...] + shift_ref[...]
        if relu:
            out = jnp.maximum(out, 0.0)
        o_ref[...] = out


def _conv_matmul_res_kernel(x_ref, w_ref, shift_ref, res_ref, o_ref, acc_ref):
    # Same as above plus residual add + ReLU (BasicBlock tail), fully fused.
    @pl.when(pl.program_id(3) == 0)
    def _():
        acc_ref[...] = jnp.zeros_like(acc_ref)

    acc_ref[...] += jnp.dot(x_ref[...], w_ref[...],
                            preferred_element_type=jnp.float32)

    @pl.when(pl.program_id(3) == pl.num_programs(3) - 1)
    def _():
        o_ref[...] = jnp.maximum(acc_ref[...] + shift_ref[...] + res_ref[...],
                                 0.0)


def _head_kernel(fa_ref, fg_ref, wa_ref, ba_ref, wg_ref, bg_ref, wn_ref, bn_ref,
                 za_ref, zg_ref, lg_ref):
    # fc_app, fc_geo and fc_num (logit depends on z_geo) in one kernel.
    # All output widths are zero-padded to 128 lanes by the caller.
    za = jnp.dot(fa_ref[...], wa_ref[...],
                 preferred_element_type=jnp.float32) + ba_ref[...]
    zg = jnp.dot(fg_ref[...], wg_ref[...],
                 preferred_element_type=jnp.float32) + bg_ref[...]
    lg = jnp.dot(zg, wn_ref[...],
                 preferred_element_type=jnp.float32) + bn_ref[...]
    za_ref[...] = za
    zg_ref[...] = zg
    lg_ref[...] = lg


# ------------------------------- glue: conv ---------------------------------

def _im2col_nhwc(x, kh, kw, stride, pad):
    """(T, N, H, W, C) -> (T, N*OH*OW, kh*kw*C); feature order (i, j, c)."""
    T, N, H, W, C = x.shape
    if pad > 0:
        x = jnp.pad(x, ((0, 0), (0, 0), (pad, pad), (pad, pad), (0, 0)))
    OH = (H + 2 * pad - kh) // stride + 1
    OW = (W + 2 * pad - kw) // stride + 1
    cols = [x[:, :, i:i + stride * OH:stride, j:j + stride * OW:stride, :]
            for i in range(kh) for j in range(kw)]
    patches = jnp.concatenate(cols, axis=-1)        # (T, N, OH, OW, kh*kw*C)
    return patches.reshape(T, N * OH * OW, kh * kw * C), OH, OW


def conv_bn(x, w, scale, shift, *, stride, pad, relu, residual=None):
    """Fused conv + eval-mode BN [+ residual] [+ ReLU] over stacked towers.

    x:           (Tx, N, H, W, Cin) f32 NHWC; Tx == T, or Tx == 1 (shared
                 input broadcast to all towers through the index_map).
    w:           (T, Cout, Cin, kh, kw)  (PyTorch layout, stacked over towers)
    scale/shift: (T, Cout) folded BN affine
    residual:    optional (T, N, OH, OW, Cout)
    returns      (T, N, OH, OW, Cout) f32
    """
    Tw = w.shape[0]
    Tx, N = x.shape[0], x.shape[1]
    Cout, Cin, kh, kw = w.shape[1:]

    patches, OH, OW = _im2col_nhwc(x, kh, kw, stride, pad)   # (Tx, M, K)
    M, K = patches.shape[1], patches.shape[2]

    # BN scale folded into the weight columns; rows ordered (kh, kw, Cin) to
    # match the im2col feature ordering.
    w_kc = w.transpose(0, 3, 4, 2, 1).reshape(Tw, kh * kw * Cin, Cout)
    w_kc = w_kc * scale[:, None, :]

    # Pad M/K for aligned tiles and Cout to a lane multiple so every output
    # store is unmasked / lane-dense.  Zero padding is exact for the matmul.
    M_pad, tm = _m_tiling(M)
    K_pad = _round_up(K, 128)
    Cout_pad = _round_up(Cout, 128)
    tk = _pick_tile(K_pad, 768, 128)
    tn = Cout_pad if Cout_pad <= 256 else _pick_tile(Cout_pad, 256, 128)

    patches = jnp.pad(patches.astype(jnp.bfloat16),
                      ((0, 0), (0, M_pad - M), (0, K_pad - K)))
    w_kc = jnp.pad(w_kc, ((0, 0), (0, K_pad - K), (0, Cout_pad - Cout)))
    w_kc = w_kc.astype(jnp.bfloat16)
    shift_r = jnp.pad(shift, ((0, 0), (0, Cout_pad - Cout)))
    shift_r = shift_r.reshape(Tw, 1, Cout_pad)

    grid = (Tw, M_pad // tm, Cout_pad // tn, K_pad // tk)
    if Tx == Tw:
        x_idx = lambda t, i, j, k: (t, i, k)
    else:  # shared input across towers (e.g. conv1): single copy in HBM.
        x_idx = lambda t, i, j, k: (0, i, k)
    x_spec = pl.BlockSpec((None, tm, tk), x_idx)
    w_spec = pl.BlockSpec((None, tk, tn), lambda t, i, j, k: (t, k, j))
    s_spec = pl.BlockSpec((None, 1, tn), lambda t, i, j, k: (t, 0, j))
    o_spec = pl.BlockSpec((None, tm, tn), lambda t, i, j, k: (t, i, j))

    if residual is None:
        kernel = functools.partial(_conv_matmul_kernel, relu=relu)
        in_specs = [x_spec, w_spec, s_spec]
        operands = (patches, w_kc, shift_r)
    else:
        res = residual.reshape(Tw, M, Cout)
        res = jnp.pad(res, ((0, 0), (0, M_pad - M), (0, Cout_pad - Cout)))
        kernel = _conv_matmul_res_kernel
        r_spec = pl.BlockSpec((None, tm, tn), lambda t, i, j, k: (t, i, j))
        in_specs = [x_spec, w_spec, s_spec, r_spec]
        operands = (patches, w_kc, shift_r, res)

    out = pl.pallas_call(
        kernel,
        out_shape=jax.ShapeDtypeStruct((Tw, M_pad, Cout_pad), jnp.float32),
        grid_spec=pltpu.PrefetchScalarGridSpec(
            num_scalar_prefetch=0,
            grid=grid,
            in_specs=in_specs,
            out_specs=o_spec,
            scratch_shapes=[pltpu.VMEM((tm, tn), jnp.float32)]),
        compiler_params=pltpu.CompilerParams(
            dimension_semantics=("parallel", "parallel", "parallel",
                                 "arbitrary"),
            vmem_limit_bytes=_VMEM_LIMIT),
    )(*operands)

    out = out[:, :M, :Cout]
    return out.reshape(Tw, N, OH, OW, Cout)


def maxpool_3x3_s2_p1(x):
    # (T, N, H, W, C) NHWC max-pool, kernel 3, stride 2, pad 1 (plain JAX glue)
    T, N, H, W, C = x.shape
    xp = jnp.pad(x, ((0, 0), (0, 0), (1, 1), (1, 1), (0, 0)),
                 constant_values=-jnp.inf)
    OH = (H + 2 - 3) // 2 + 1
    OW = (W + 2 - 3) // 2 + 1
    out = None
    for i in range(3):
        for j in range(3):
            s = xp[:, :, i:i + 2 * OH:2, j:j + 2 * OW:2, :]
            out = s if out is None else jnp.maximum(out, s)
    return out


# ---------------------------- ResNet18 features -----------------------------

def basic_block(x, blk, stride):
    if blk['downsample'] is not None:
        dw, dscale, dshift = blk['downsample']
        identity = conv_bn(x, dw, dscale, dshift, stride=stride, pad=0,
                           relu=False)
    else:
        identity = x
    out = conv_bn(x, blk['conv1'], *blk['bn1'], stride=stride, pad=1, relu=True)
    out = conv_bn(out, blk['conv2'], *blk['bn2'], stride=1, pad=1, relu=True,
                  residual=identity)
    return out


def resnet18_features(x, p):
    # x: (1, N, H, W, 3) NHWC shared by both towers; returns (T, N, 512).
    out = conv_bn(x, p['conv1'], *p['bn1'], stride=2, pad=3, relu=True)
    out = maxpool_3x3_s2_p1(out)
    for li, blocks in enumerate(p['layers']):
        for bi, blk in enumerate(blocks):
            stride = 2 if (li > 0 and bi == 0) else 1
            out = basic_block(out, blk, stride)
    # AdaptiveAvgPool2d((1,1)) + Flatten -> (T, N, 512)
    return jnp.mean(out, axis=(2, 3))


# --------------------------------- head -------------------------------------

def head(feat_app, feat_geo, hp):
    N = feat_app.shape[0]
    N_pad = _round_up(N, 8)
    d_app = hp['w_app'].shape[0]
    d_geo = hp['w_geo'].shape[0]
    n_cls = hp['w_num'].shape[0]
    da_p = _round_up(d_app, 128)
    dg_p = _round_up(d_geo, 128)
    nc_p = _round_up(n_cls, 128)

    fa = jnp.pad(feat_app, ((0, N_pad - N), (0, 0)))
    fg = jnp.pad(feat_geo, ((0, N_pad - N), (0, 0)))
    wa = jnp.pad(hp['w_app'].T, ((0, 0), (0, da_p - d_app)))
    ba = jnp.pad(hp['b_app'], ((0, da_p - d_app),)).reshape(1, da_p)
    wg = jnp.pad(hp['w_geo'].T, ((0, 0), (0, dg_p - d_geo)))
    bg = jnp.pad(hp['b_geo'], ((0, dg_p - d_geo),)).reshape(1, dg_p)
    wn = jnp.pad(hp['w_num'].T, ((0, dg_p - d_geo), (0, nc_p - n_cls)))
    bn = jnp.pad(hp['b_num'], ((0, nc_p - n_cls),)).reshape(1, nc_p)

    za, zg, lg = pl.pallas_call(
        _head_kernel,
        out_shape=(jax.ShapeDtypeStruct((N_pad, da_p), jnp.float32),
                   jax.ShapeDtypeStruct((N_pad, dg_p), jnp.float32),
                   jax.ShapeDtypeStruct((N_pad, nc_p), jnp.float32)),
        in_specs=[_VMEM_SPEC] * 8,
        out_specs=(_VMEM_SPEC, _VMEM_SPEC, _VMEM_SPEC),
        compiler_params=pltpu.CompilerParams(vmem_limit_bytes=_VMEM_LIMIT),
    )(fa, fg, wa, ba, wg, bg, wn, bn)
    return za[:N, :d_app], zg[:N, :d_geo], lg[:N, :n_cls]


def encoder_forward(x_nchw, params):
    # TODO(synk): Dropout layers (drop_rate=0 / eval mode) are identity here.
    x = jnp.transpose(x_nchw, (0, 2, 3, 1))[None]         # (1, N, H, W, 3)
    feats = resnet18_features(x, params['features'])      # (2, N, 512)
    z_app, z_geo, logit = head(feats[0], feats[1], params['head'])
    return z_app, z_geo, logit


# ------------------------- deterministic parameters -------------------------

def _init_conv(key, cout, cin, kh, kw):
    fan_in = cin * kh * kw
    return jax.random.normal(key, (cout, cin, kh, kw), jnp.float32) * (
        2.0 / fan_in) ** 0.5


def _init_bn(key, c):
    k1, k2, k3, k4 = jax.random.split(key, 4)
    gamma = 1.0 + 0.1 * jax.random.normal(k1, (c,), jnp.float32)
    beta = 0.1 * jax.random.normal(k2, (c,), jnp.float32)
    mean = 0.1 * jax.random.normal(k3, (c,), jnp.float32)
    var = 1.0 + 0.1 * jnp.abs(jax.random.normal(k4, (c,), jnp.float32))
    eps = 1e-5
    scale = gamma / jnp.sqrt(var + eps)       # eval-mode BN folded into affine
    shift = beta - mean * scale
    return scale, shift


def init_resnet18(key):
    keys = iter(jax.random.split(key, 128))
    p = {'conv1': _init_conv(next(keys), 64, 3, 7, 7),
         'bn1': _init_bn(next(keys), 64)}
    widths = [64, 128, 256, 512]
    in_c, layers = 64, []
    for li, c in enumerate(widths):
        blocks = []
        for bi in range(2):
            stride = 2 if (li > 0 and bi == 0) else 1
            blk = {
                'conv1': _init_conv(next(keys), c, in_c, 3, 3),
                'bn1': _init_bn(next(keys), c),
                'conv2': _init_conv(next(keys), c, c, 3, 3),
                'bn2': _init_bn(next(keys), c),
                'downsample': None,
            }
            if stride != 1 or in_c != c:
                blk['downsample'] = (_init_conv(next(keys), c, in_c, 1, 1),
                                     *_init_bn(next(keys), c))
            blocks.append(blk)
            in_c = c
        layers.append(blocks)
    p['layers'] = layers
    return p


def init_head(key, z_app, z_geo, num_class):
    ks = jax.random.split(key, 6)

    def lin(kw, kb, out_f, in_f):
        bound = 1.0 / (in_f ** 0.5)
        w = jax.random.uniform(kw, (out_f, in_f), jnp.float32, -bound, bound)
        b = jax.random.uniform(kb, (out_f,), jnp.float32, -bound, bound)
        return w, b

    w_app, b_app = lin(ks[0], ks[1], z_app, 512)
    w_geo, b_geo = lin(ks[2], ks[3], z_geo, 512)
    w_num, b_num = lin(ks[4], ks[5], num_class, z_geo)
    return {'w_app': w_app, 'b_app': b_app,
            'w_geo': w_geo, 'b_geo': b_geo,
            'w_num': w_num, 'b_num': b_num}


# ----------------------------------- main ------------------------------------

if __name__ == "__main__":
    Z_APP, Z_GEO, NUM_CLASS = 32, 16, 8
    key = jax.random.PRNGKey(0)
    k_in, k_app, k_geo, k_head = jax.random.split(key, 4)

    x = jax.random.normal(k_in, (2, 3, 32, 32), jnp.float32)  # NCHW image

    # Stack the two (independent) ResNet18 towers along a leading tower axis.
    p_app = init_resnet18(k_app)
    p_geo = init_resnet18(k_geo)
    features = jax.tree_util.tree_map(
        lambda a, g: jnp.stack([a, g], axis=0), p_app, p_geo)
    params = {
        'features': features,
        'head': init_head(k_head, Z_APP, Z_GEO, NUM_CLASS),
    }

    fwd = jax.jit(encoder_forward)
    z_app, z_geo, logit = fwd(x, params)
    jax.block_until_ready((z_app, z_geo, logit))

    assert z_app.shape == (2, Z_APP)
    assert z_geo.shape == (2, Z_GEO)
    assert logit.shape == (2, NUM_CLASS)
    assert bool(jnp.all(jnp.isfinite(z_app)))
    assert bool(jnp.all(jnp.isfinite(z_geo)))
    assert bool(jnp.all(jnp.isfinite(logit)))
    print("KERNEL_OK")
</pallas_src>

<mosaic_0001>
module attributes {stable_mosaic.version = 11 : i64} {
  func.func @_conv_matmul_kernel(%arg0: i32, %arg1: i32, %arg2: i32, %arg3: i32, %arg4: memref<1x512x256xbf16, #tpu.memory_space<vmem>>, %arg5: memref<1x256x128xbf16, #tpu.memory_space<vmem>>, %arg6: memref<1x1x128xf32, #tpu.memory_space<vmem>>, %arg7: memref<1x512x128xf32, #tpu.memory_space<vmem>>, %arg8: memref<512x128xf32, #tpu.memory_space<vmem>>) attributes {dimension_semantics = [#tpu.dimension_semantics<parallel>, #tpu.dimension_semantics<parallel>, #tpu.dimension_semantics<parallel>, #tpu.dimension_semantics<arbitrary>], iteration_bounds = array<i64: 2, 1, 1, 1>, scalar_prefetch = 0 : i64, scratch_operands = 1 : i64, tpu.core_type = #tpu.core_type<tc>, window_params = [{transform_indices = @transform_0, window_bounds = array<i64: 1, 512, 256>}, {transform_indices = @transform_1, window_bounds = array<i64: 1, 256, 128>}, {transform_indices = @transform_2, window_bounds = array<i64: 1, 1, 128>}, {transform_indices = @transform_3, window_bounds = array<i64: 1, 512, 128>}]} {
    %c0_i32 = arith.constant 0 : i32
    %0 = arith.cmpi eq, %arg3, %c0_i32 : i32
    %1 = arith.extui %0 : i1 to i32
    %c0_i32_0 = arith.constant 0 : i32
    %2 = arith.cmpi ne, %1, %c0_i32_0 : i32
    scf.if %2 {
      %cst_12 = arith.constant 0.000000e+00 : f32
      %14 = vector.broadcast %cst_12 : f32 to vector<512x128xf32>
      %c0_13 = arith.constant 0 : index
      %c0_14 = arith.constant 0 : index
      %15 = vector.load %arg8[%c0_13, %c0_14] : memref<512x128xf32, #tpu.memory_space<vmem>>, vector<512x128xf32>
      tpu.vector_store %arg8[%c0_13, %c0_14], %14 {strides = array<i32>} : memref<512x128xf32, #tpu.memory_space<vmem>>, vector<512x128xf32>,
    } else {
    }
    %c0 = arith.constant 0 : index
    %c0_1 = arith.constant 0 : index
    %3 = vector.load %arg8[%c0, %c0_1] : memref<512x128xf32, #tpu.memory_space<vmem>>, vector<512x128xf32>
    %c0_2 = arith.constant 0 : index
    %c0_3 = arith.constant 0 : index
    %c0_4 = arith.constant 0 : index
    %4 = vector.load %arg4[%c0_2, %c0_3, %c0_4] : memref<1x512x256xbf16, #tpu.memory_space<vmem>>, vector<1x512x256xbf16>
    %5 = vector.shape_cast %4 : vector<1x512x256xbf16> to vector<512x256xbf16>
    %c0_5 = arith.constant 0 : index
    %c0_6 = arith.constant 0 : index
    %c0_7 = arith.constant 0 : index
    %6 = vector.load %arg5[%c0_5, %c0_6, %c0_7] : memref<1x256x128xbf16, #tpu.memory_space<vmem>>, vector<1x256x128xbf16>
    %7 = vector.shape_cast %6 : vector<1x256x128xbf16> to vector<256x128xbf16>
    %cst = arith.constant dense<0.000000e+00> : vector<512x128xf32>
    %8 = tpu.matmul %5, %7, %cst {dimension_numbers = #tpu.dot_dimension_numbers<[1], [0], [0], [1], [0, 0, 1, 1], [], []>} : vector<512x256xbf16>, vector<256x128xbf16>, vector<512x128xf32> -> vector<512x128xf32>
    %9 = arith.addf %3, %8 : vector<512x128xf32>
    %c0_8 = arith.constant 0 : index
    %c0_9 = arith.constant 0 : index
    %10 = vector.load %arg8[%c0_8, %c0_9] : memref<512x128xf32, #tpu.memory_space<vmem>>, vector<512x128xf32>
    tpu.vector_store %arg8[%c0_8, %c0_9], %9 {strides = array<i32>} : memref<512x128xf32, #tpu.memory_space<vmem>>, vector<512x128xf32>,
    %c0_i32_10 = arith.constant 0 : i32
    %11 = arith.cmpi eq, %arg3, %c0_i32_10 : i32
    %12 = arith.extui %11 : i1 to i32
    %c0_i32_11 = arith.constant 0 : i32
    %13 = arith.cmpi ne, %12, %c0_i32_11 : i32
    scf.if %13 {
      %c0_12 = arith.constant 0 : index
      %c0_13 = arith.constant 0 : index
      %14 = vector.load %arg8[%c0_12, %c0_13] : memref<512x128xf32, #tpu.memory_space<vmem>>, vector<512x128xf32>
      %c0_14 = arith.constant 0 : index
      %c0_15 = arith.constant 0 : index
      %c0_16 = arith.constant 0 : index
      %15 = vector.load %arg6[%c0_14, %c0_15, %c0_16] : memref<1x1x128xf32, #tpu.memory_space<vmem>>, vector<1x1x128xf32>
      %16 = vector.shape_cast %15 : vector<1x1x128xf32> to vector<1x128xf32>
      %17 = vector.broadcast %16 : vector<1x128xf32> to vector<512x128xf32>
      %18 = arith.addf %14, %17 : vector<512x128xf32>
      %cst_17 = arith.constant 0.000000e+00 : f32
      %19 = vector.broadcast %cst_17 : f32 to vector<512x128xf32>
      %20 = arith.maximumf %18, %19 : vector<512x128xf32>
      %c0_18 = arith.constant 0 : index
      %c0_19 = arith.constant 0 : index
      %c0_20 = arith.constant 0 : index
      %21 = vector.load %arg7[%c0_18, %c0_19, %c0_20] : memref<1x512x128xf32, #tpu.memory_space<vmem>>, vector<1x512x128xf32>
      %22 = vector.shape_cast %21 : vector<1x512x128xf32> to vector<512x128xf32>
      %23 = vector.shape_cast %20 : vector<512x128xf32> to vector<1x512x128xf32>
      tpu.vector_store %arg7[%c0_18, %c0_19, %c0_20], %23 {strides = array<i32>} : memref<1x512x128xf32, #tpu.memory_space<vmem>>, vector<1x512x128xf32>,
    } else {
    }
    return
  }
  func.func @transform_0(%arg0: i32, %arg1: i32, %arg2: i32, %arg3: i32) -> (i32, i32, i32) {
    %c0_i32 = arith.constant 0 : i32
    %c0_i32_0 = arith.constant 0 : i32
    return %c0_i32, %arg1, %arg3 : i32, i32, i32
  }
  func.func @transform_1(%arg0: i32, %arg1: i32, %arg2: i32, %arg3: i32) -> (i32, i32, i32) {
    %c0_i32 = arith.constant 0 : i32
    return %arg0, %arg3, %arg2 : i32, i32, i32
  }
  func.func @transform_2(%arg0: i32, %arg1: i32, %arg2: i32, %arg3: i32) -> (i32, i32, i32) {
    %c0_i32 = arith.constant 0 : i32
    %c0_i32_0 = arith.constant 0 : i32
    return %arg0, %c0_i32, %arg2 : i32, i32, i32
  }
  func.func @transform_3(%arg0: i32, %arg1: i32, %arg2: i32, %arg3: i32) -> (i32, i32, i32) {
    %c0_i32 = arith.constant 0 : i32
    return %arg0, %arg1, %arg2 : i32, i32, i32
  }
}

module attributes {stable_mosaic.version = 11 : i64} {
  func.func @_conv_matmul_kernel(%arg0: i32, %arg1: i32, %arg2: i32, %arg3: i32, %arg4: memref<1x128x640xbf16, #tpu.memory_space<vmem>>, %arg5: memref<1x640x128xbf16, #tpu.memory_space<vmem>>, %arg6: memref<1x1x128xf32, #tpu.memory_space<vmem>>, %arg7: memref<1x128x128xf32, #tpu.memory_space<vmem>>, %arg8: memref<128x128xf32, #tpu.memory_space<vmem>>) attributes {dimension_semantics = [#tpu.dimension_semantics<parallel>, #tpu.dimension_semantics<parallel>, #tpu.dimension_semantics<parallel>, #tpu.dimension_semantics<arbitrary>], iteration_bounds = array<i64: 2, 1, 1, 1>, scalar_prefetch = 0 : i64, scratch_operands = 1 : i64, tpu.core_type = #tpu.core_type<tc>, window_params = [{transform_indices = @transform_0, window_bounds = array<i64: 1, 128, 640>}, {transform_indices = @transform_1, window_bounds = array<i64: 1, 640, 128>}, {transform_indices = @transform_2, window_bounds = array<i64: 1, 1, 128>}, {transform_indices = @transform_3, window_bounds = array<i64: 1, 128, 128>}]} {
    %c0_i32 = arith.constant 0 : i32
    %0 = arith.cmpi eq, %arg3, %c0_i32 : i32
    %1 = arith.extui %0 : i1 to i32
    %c0_i32_0 = arith.constant 0 : i32
    %2 = arith.cmpi ne, %1, %c0_i32_0 : i32
    scf.if %2 {
      %cst_12 = arith.constant 0.000000e+00 : f32
      %14 = vector.broadcast %cst_12 : f32 to vector<128x128xf32>
      %c0_13 = arith.constant 0 : index
      %c0_14 = arith.constant 0 : index
      %15 = vector.load %arg8[%c0_13, %c0_14] : memref<128x128xf32, #tpu.memory_space<vmem>>, vector<128x128xf32>
      tpu.vector_store %arg8[%c0_13, %c0_14], %14 {strides = array<i32>} : memref<128x128xf32, #tpu.memory_space<vmem>>, vector<128x128xf32>,
    } else {
    }
    %c0 = arith.constant 0 : index
    %c0_1 = arith.constant 0 : index
    %3 = vector.load %arg8[%c0, %c0_1] : memref<128x128xf32, #tpu.memory_space<vmem>>, vector<128x128xf32>
    %c0_2 = arith.constant 0 : index
    %c0_3 = arith.constant 0 : index
    %c0_4 = arith.constant 0 : index
    %4 = vector.load %arg4[%c0_2, %c0_3, %c0_4] : memref<1x128x640xbf16, #tpu.memory_space<vmem>>, vector<1x128x640xbf16>
    %5 = vector.shape_cast %4 : vector<1x128x640xbf16> to vector<128x640xbf16>
    %c0_5 = arith.constant 0 : index
    %c0_6 = arith.constant 0 : index
    %c0_7 = arith.constant 0 : index
    %6 = vector.load %arg5[%c0_5, %c0_6, %c0_7] : memref<1x640x128xbf16, #tpu.memory_space<vmem>>, vector<1x640x128xbf16>
    %7 = vector.shape_cast %6 : vector<1x640x128xbf16> to vector<640x128xbf16>
    %cst = arith.constant dense<0.000000e+00> : vector<128x128xf32>
    %8 = tpu.matmul %5, %7, %cst {dimension_numbers = #tpu.dot_dimension_numbers<[1], [0], [0], [1], [0, 0, 1, 1], [], []>} : vector<128x640xbf16>, vector<640x128xbf16>, vector<128x128xf32> -> vector<128x128xf32>
    %9 = arith.addf %3, %8 : vector<128x128xf32>
    %c0_8 = arith.constant 0 : index
    %c0_9 = arith.constant 0 : index
    %10 = vector.load %arg8[%c0_8, %c0_9] : memref<128x128xf32, #tpu.memory_space<vmem>>, vector<128x128xf32>
    tpu.vector_store %arg8[%c0_8, %c0_9], %9 {strides = array<i32>} : memref<128x128xf32, #tpu.memory_space<vmem>>, vector<128x128xf32>,
    %c0_i32_10 = arith.constant 0 : i32
    %11 = arith.cmpi eq, %arg3, %c0_i32_10 : i32
    %12 = arith.extui %11 : i1 to i32
    %c0_i32_11 = arith.constant 0 : i32
    %13 = arith.cmpi ne, %12, %c0_i32_11 : i32
    scf.if %13 {
      %c0_12 = arith.constant 0 : index
      %c0_13 = arith.constant 0 : index
      %14 = vector.load %arg8[%c0_12, %c0_13] : memref<128x128xf32, #tpu.memory_space<vmem>>, vector<128x128xf32>
      %c0_14 = arith.constant 0 : index
      %c0_15 = arith.constant 0 : index
      %c0_16 = arith.constant 0 : index
      %15 = vector.load %arg6[%c0_14, %c0_15, %c0_16] : memref<1x1x128xf32, #tpu.memory_space<vmem>>, vector<1x1x128xf32>
      %16 = vector.shape_cast %15 : vector<1x1x128xf32> to vector<1x128xf32>
      %17 = vector.broadcast %16 : vector<1x128xf32> to vector<128x128xf32>
      %18 = arith.addf %14, %17 : vector<128x128xf32>
      %cst_17 = arith.constant 0.000000e+00 : f32
      %19 = vector.broadcast %cst_17 : f32 to vector<128x128xf32>
      %20 = arith.maximumf %18, %19 : vector<128x128xf32>
      %c0_18 = arith.constant 0 : index
      %c0_19 = arith.constant 0 : index
      %c0_20 = arith.constant 0 : index
      %21 = vector.load %arg7[%c0_18, %c0_19, %c0_20] : memref<1x128x128xf32, #tpu.memory_space<vmem>>, vector<1x128x128xf32>
      %22 = vector.shape_cast %21 : vector<1x128x128xf32> to vector<128x128xf32>
      %23 = vector.shape_cast %20 : vector<128x128xf32> to vector<1x128x128xf32>
      tpu.vector_store %arg7[%c0_18, %c0_19, %c0_20], %23 {strides = array<i32>} : memref<1x128x128xf32, #tpu.memory_space<vmem>>, vector<1x128x128xf32>,
    } else {
    }
    return
  }
  func.func @transform_0(%arg0: i32, %arg1: i32, %arg2: i32, %arg3: i32) -> (i32, i32, i32) {
    %c0_i32 = arith.constant 0 : i32
    return %arg0, %arg1, %arg3 : i32, i32, i32
  }
  func.func @transform_1(%arg0: i32, %arg1: i32, %arg2: i32, %arg3: i32) -> (i32, i32, i32) {
    %c0_i32 = arith.constant 0 : i32
    return %arg0, %arg3, %arg2 : i32, i32, i32
  }
  func.func @transform_2(%arg0: i32, %arg1: i32, %arg2: i32, %arg3: i32) -> (i32, i32, i32) {
    %c0_i32 = arith.constant 0 : i32
    %c0_i32_0 = arith.constant 0 : i32
    return %arg0, %c0_i32, %arg2 : i32, i32, i32
  }
  func.func @transform_3(%arg0: i32, %arg1: i32, %arg2: i32, %arg3: i32) -> (i32, i32, i32) {
    %c0_i32 = arith.constant 0 : i32
    return %arg0, %arg1, %arg2 : i32, i32, i32
  }
}

module attributes {stable_mosaic.version = 11 : i64} {
  func.func @_conv_matmul_res_kernel(%arg0: i32, %arg1: i32, %arg2: i32, %arg3: i32, %arg4: memref<1x128x640xbf16, #tpu.memory_space<vmem>>, %arg5: memref<1x640x128xbf16, #tpu.memory_space<vmem>>, %arg6: memref<1x1x128xf32, #tpu.memory_space<vmem>>, %arg7: memref<1x128x128xf32, #tpu.memory_space<vmem>>, %arg8: memref<1x128x128xf32, #tpu.memory_space<vmem>>, %arg9: memref<128x128xf32, #tpu.memory_space<vmem>>) attributes {dimension_semantics = [#tpu.dimension_semantics<parallel>, #tpu.dimension_semantics<parallel>, #tpu.dimension_semantics<parallel>, #tpu.dimension_semantics<arbitrary>], iteration_bounds = array<i64: 2, 1, 1, 1>, scalar_prefetch = 0 : i64, scratch_operands = 1 : i64, tpu.core_type = #tpu.core_type<tc>, window_params = [{transform_indices = @transform_0, window_bounds = array<i64: 1, 128, 640>}, {transform_indices = @transform_1, window_bounds = array<i64: 1, 640, 128>}, {transform_indices = @transform_2, window_bounds = array<i64: 1, 1, 128>}, {transform_indices = @transform_3, window_bounds = array<i64: 1, 128, 128>}, {transform_indices = @transform_4, window_bounds = array<i64: 1, 128, 128>}]} {
    %c0_i32 = arith.constant 0 : i32
    %0 = arith.cmpi eq, %arg3, %c0_i32 : i32
    %1 = arith.extui %0 : i1 to i32
    %c0_i32_0 = arith.constant 0 : i32
    %2 = arith.cmpi ne, %1, %c0_i32_0 : i32
    scf.if %2 {
      %cst_12 = arith.constant 0.000000e+00 : f32
      %14 = vector.broadcast %cst_12 : f32 to vector<128x128xf32>
      %c0_13 = arith.constant 0 : index
      %c0_14 = arith.constant 0 : index
      %15 = vector.load %arg9[%c0_13, %c0_14] : memref<128x128xf32, #tpu.memory_space<vmem>>, vector<128x128xf32>
      tpu.vector_store %arg9[%c0_13, %c0_14], %14 {strides = array<i32>} : memref<128x128xf32, #tpu.memory_space<vmem>>, vector<128x128xf32>,
    } else {
    }
    %c0 = arith.constant 0 : index
    %c0_1 = arith.constant 0 : index
    %3 = vector.load %arg9[%c0, %c0_1] : memref<128x128xf32, #tpu.memory_space<vmem>>, vector<128x128xf32>
    %c0_2 = arith.constant 0 : index
    %c0_3 = arith.constant 0 : index
    %c0_4 = arith.constant 0 : index
    %4 = vector.load %arg4[%c0_2, %c0_3, %c0_4] : memref<1x128x640xbf16, #tpu.memory_space<vmem>>, vector<1x128x640xbf16>
    %5 = vector.shape_cast %4 : vector<1x128x640xbf16> to vector<128x640xbf16>
    %c0_5 = arith.constant 0 : index
    %c0_6 = arith.constant 0 : index
    %c0_7 = arith.constant 0 : index
    %6 = vector.load %arg5[%c0_5, %c0_6, %c0_7] : memref<1x640x128xbf16, #tpu.memory_space<vmem>>, vector<1x640x128xbf16>
    %7 = vector.shape_cast %6 : vector<1x640x128xbf16> to vector<640x128xbf16>
    %cst = arith.constant dense<0.000000e+00> : vector<128x128xf32>
    %8 = tpu.matmul %5, %7, %cst {dimension_numbers = #tpu.dot_dimension_numbers<[1], [0], [0], [1], [0, 0, 1, 1], [], []>} : vector<128x640xbf16>, vector<640x128xbf16>, vector<128x128xf32> -> vector<128x128xf32>
    %9 = arith.addf %3, %8 : vector<128x128xf32>
    %c0_8 = arith.constant 0 : index
    %c0_9 = arith.constant 0 : index
    %10 = vector.load %arg9[%c0_8, %c0_9] : memref<128x128xf32, #tpu.memory_space<vmem>>, vector<128x128xf32>
    tpu.vector_store %arg9[%c0_8, %c0_9], %9 {strides = array<i32>} : memref<128x128xf32, #tpu.memory_space<vmem>>, vector<128x128xf32>,
    %c0_i32_10 = arith.constant 0 : i32
    %11 = arith.cmpi eq, %arg3, %c0_i32_10 : i32
    %12 = arith.extui %11 : i1 to i32
    %c0_i32_11 = arith.constant 0 : i32
    %13 = arith.cmpi ne, %12, %c0_i32_11 : i32
    scf.if %13 {
      %c0_12 = arith.constant 0 : index
      %c0_13 = arith.constant 0 : index
      %14 = vector.load %arg9[%c0_12, %c0_13] : memref<128x128xf32, #tpu.memory_space<vmem>>, vector<128x128xf32>
      %c0_14 = arith.constant 0 : index
      %c0_15 = arith.constant 0 : index
      %c0_16 = arith.constant 0 : index
      %15 = vector.load %arg6[%c0_14, %c0_15, %c0_16] : memref<1x1x128xf32, #tpu.memory_space<vmem>>, vector<1x1x128xf32>
      %16 = vector.shape_cast %15 : vector<1x1x128xf32> to vector<1x128xf32>
      %17 = vector.broadcast %16 : vector<1x128xf32> to vector<128x128xf32>
      %18 = arith.addf %14, %17 : vector<128x128xf32>
      %c0_17 = arith.constant 0 : index
      %c0_18 = arith.constant 0 : index
      %c0_19 = arith.constant 0 : index
      %19 = vector.load %arg7[%c0_17, %c0_18, %c0_19] : memref<1x128x128xf32, #tpu.memory_space<vmem>>, vector<1x128x128xf32>
      %20 = vector.shape_cast %19 : vector<1x128x128xf32> to vector<128x128xf32>
      %21 = arith.addf %18, %20 : vector<128x128xf32>
      %cst_20 = arith.constant 0.000000e+00 : f32
      %22 = vector.broadcast %cst_20 : f32 to vector<128x128xf32>
      %23 = arith.maximumf %21, %22 : vector<128x128xf32>
      %c0_21 = arith.constant 0 : index
      %c0_22 = arith.constant 0 : index
      %c0_23 = arith.constant 0 : index
      %24 = vector.load %arg8[%c0_21, %c0_22, %c0_23] : memref<1x128x128xf32, #tpu.memory_space<vmem>>, vector<1x128x128xf32>
      %25 = vector.shape_cast %24 : vector<1x128x128xf32> to vector<128x128xf32>
      %26 = vector.shape_cast %23 : vector<128x128xf32> to vector<1x128x128xf32>
      tpu.vector_store %arg8[%c0_21, %c0_22, %c0_23], %26 {strides = array<i32>} : memref<1x128x128xf32, #tpu.memory_space<vmem>>, vector<1x128x128xf32>,
    } else {
    }
    return
  }
  func.func @transform_0(%arg0: i32, %arg1: i32, %arg2: i32, %arg3: i32) -> (i32, i32, i32) {
    %c0_i32 = arith.constant 0 : i32
    return %arg0, %arg1, %arg3 : i32, i32, i32
  }
  func.func @transform_1(%arg0: i32, %arg1: i32, %arg2: i32, %arg3: i32) -> (i32, i32, i32) {
    %c0_i32 = arith.constant 0 : i32
    return %arg0, %arg3, %arg2 : i32, i32, i32
  }
  func.func @transform_2(%arg0: i32, %arg1: i32, %arg2: i32, %arg3: i32) -> (i32, i32, i32) {
    %c0_i32 = arith.constant 0 : i32
    %c0_i32_0 = arith.constant 0 : i32
    return %arg0, %c0_i32, %arg2 : i32, i32, i32
  }
  func.func @transform_3(%arg0: i32, %arg1: i32, %arg2: i32, %arg3: i32) -> (i32, i32, i32) {
    %c0_i32 = arith.constant 0 : i32
    return %arg0, %arg1, %arg2 : i32, i32, i32
  }
  func.func @transform_4(%arg0: i32, %arg1: i32, %arg2: i32, %arg3: i32) -> (i32, i32, i32) {
    %c0_i32 = arith.constant 0 : i32
    return %arg0, %arg1, %arg2 : i32, i32, i32
  }
}

module attributes {stable_mosaic.version = 11 : i64} {
  func.func @_conv_matmul_kernel(%arg0: i32, %arg1: i32, %arg2: i32, %arg3: i32, %arg4: memref<1x32x640xbf16, #tpu.memory_space<vmem>>, %arg5: memref<1x640x128xbf16, #tpu.memory_space<vmem>>, %arg6: memref<1x1x128xf32, #tpu.memory_space<vmem>>, %arg7: memref<1x32x128xf32, #tpu.memory_space<vmem>>, %arg8: memref<32x128xf32, #tpu.memory_space<vmem>>) attributes {dimension_semantics = [#tpu.dimension_semantics<parallel>, #tpu.dimension_semantics<parallel>, #tpu.dimension_semantics<parallel>, #tpu.dimension_semantics<arbitrary>], iteration_bounds = array<i64: 2, 1, 1, 1>, scalar_prefetch = 0 : i64, scratch_operands = 1 : i64, tpu.core_type = #tpu.core_type<tc>, window_params = [{transform_indices = @transform_0, window_bounds = array<i64: 1, 32, 640>}, {transform_indices = @transform_1, window_bounds = array<i64: 1, 640, 128>}, {transform_indices = @transform_2, window_bounds = array<i64: 1, 1, 128>}, {transform_indices = @transform_3, window_bounds = array<i64: 1, 32, 128>}]} {
    %c0_i32 = arith.constant 0 : i32
    %0 = arith.cmpi eq, %arg3, %c0_i32 : i32
    %1 = arith.extui %0 : i1 to i32
    %c0_i32_0 = arith.constant 0 : i32
    %2 = arith.cmpi ne, %1, %c0_i32_0 : i32
    scf.if %2 {
      %cst_12 = arith.constant 0.000000e+00 : f32
      %14 = vector.broadcast %cst_12 : f32 to vector<32x128xf32>
      %c0_13 = arith.constant 0 : index
      %c0_14 = arith.constant 0 : index
      %15 = vector.load %arg8[%c0_13, %c0_14] : memref<32x128xf32, #tpu.memory_space<vmem>>, vector<32x128xf32>
      tpu.vector_store %arg8[%c0_13, %c0_14], %14 {strides = array<i32>} : memref<32x128xf32, #tpu.memory_space<vmem>>, vector<32x128xf32>,
    } else {
    }
    %c0 = arith.constant 0 : index
    %c0_1 = arith.constant 0 : index
    %3 = vector.load %arg8[%c0, %c0_1] : memref<32x128xf32, #tpu.memory_space<vmem>>, vector<32x128xf32>
    %c0_2 = arith.constant 0 : index
    %c0_3 = arith.constant 0 : index
    %c0_4 = arith.constant 0 : index
    %4 = vector.load %arg4[%c0_2, %c0_3, %c0_4] : memref<1x32x640xbf16, #tpu.memory_space<vmem>>, vector<1x32x640xbf16>
    %5 = vector.shape_cast %4 : vector<1x32x640xbf16> to vector<32x640xbf16>
    %c0_5 = arith.constant 0 : index
    %c0_6 = arith.constant 0 : index
    %c0_7 = arith.constant 0 : index
    %6 = vector.load %arg5[%c0_5, %c0_6, %c0_7] : memref<1x640x128xbf16, #tpu.memory_space<vmem>>, vector<1x640x128xbf16>
    %7 = vector.shape_cast %6 : vector<1x640x128xbf16> to vector<640x128xbf16>
    %cst = arith.constant dense<0.000000e+00> : vector<32x128xf32>
    %8 = tpu.matmul %5, %7, %cst {dimension_numbers = #tpu.dot_dimension_numbers<[1], [0], [0], [1], [0, 0, 1, 1], [], []>} : vector<32x640xbf16>, vector<640x128xbf16>, vector<32x128xf32> -> vector<32x128xf32>
    %9 = arith.addf %3, %8 : vector<32x128xf32>
    %c0_8 = arith.constant 0 : index
    %c0_9 = arith.constant 0 : index
    %10 = vector.load %arg8[%c0_8, %c0_9] : memref<32x128xf32, #tpu.memory_space<vmem>>, vector<32x128xf32>
    tpu.vector_store %arg8[%c0_8, %c0_9], %9 {strides = array<i32>} : memref<32x128xf32, #tpu.memory_space<vmem>>, vector<32x128xf32>,
    %c0_i32_10 = arith.constant 0 : i32
    %11 = arith.cmpi eq, %arg3, %c0_i32_10 : i32
    %12 = arith.extui %11 : i1 to i32
    %c0_i32_11 = arith.constant 0 : i32
    %13 = arith.cmpi ne, %12, %c0_i32_11 : i32
    scf.if %13 {
      %c0_12 = arith.constant 0 : index
      %c0_13 = arith.constant 0 : index
      %14 = vector.load %arg8[%c0_12, %c0_13] : memref<32x128xf32, #tpu.memory_space<vmem>>, vector<32x128xf32>
      %c0_14 = arith.constant 0 : index
      %c0_15 = arith.constant 0 : index
      %c0_16 = arith.constant 0 : index
      %15 = vector.load %arg6[%c0_14, %c0_15, %c0_16] : memref<1x1x128xf32, #tpu.memory_space<vmem>>, vector<1x1x128xf32>
      %16 = vector.shape_cast %15 : vector<1x1x128xf32> to vector<1x128xf32>
      %17 = vector.broadcast %16 : vector<1x128xf32> to vector<32x128xf32>
      %18 = arith.addf %14, %17 : vector<32x128xf32>
      %cst_17 = arith.constant 0.000000e+00 : f32
      %19 = vector.broadcast %cst_17 : f32 to vector<32x128xf32>
      %20 = arith.maximumf %18, %19 : vector<32x128xf32>
      %c0_18 = arith.constant 0 : index
      %c0_19 = arith.constant 0 : index
      %c0_20 = arith.constant 0 : index
      %21 = vector.load %arg7[%c0_18, %c0_19, %c0_20] : memref<1x32x128xf32, #tpu.memory_space<vmem>>, vector<1x32x128xf32>
      %22 = vector.shape_cast %21 : vector<1x32x128xf32> to vector<32x128xf32>
      %23 = vector.shape_cast %20 : vector<32x128xf32> to vector<1x32x128xf32>
      tpu.vector_store %arg7[%c0_18, %c0_19, %c0_20], %23 {strides = array<i32>} : memref<1x32x128xf32, #tpu.memory_space<vmem>>, vector<1x32x128xf32>,
    } else {
    }
    return
  }
  func.func @transform_0(%arg0: i32, %arg1: i32, %arg2: i32, %arg3: i32) -> (i32, i32, i32) {
    %c0_i32 = arith.constant 0 : i32
    return %arg0, %arg1, %arg3 : i32, i32, i32
  }
  func.func @transform_1(%arg0: i32, %arg1: i32, %arg2: i32, %arg3: i32) -> (i32, i32, i32) {
    %c0_i32 = arith.constant 0 : i32
    return %arg0, %arg3, %arg2 : i32, i32, i32
  }
  func.func @transform_2(%arg0: i32, %arg1: i32, %arg2: i32, %arg3: i32) -> (i32, i32, i32) {
    %c0_i32 = arith.constant 0 : i32
    %c0_i32_0 = arith.constant 0 : i32
    return %arg0, %c0_i32, %arg2 : i32, i32, i32
  }
  func.func @transform_3(%arg0: i32, %arg1: i32, %arg2: i32, %arg3: i32) -> (i32, i32, i32) {
    %c0_i32 = arith.constant 0 : i32
    return %arg0, %arg1, %arg2 : i32, i32, i32
  }
}

module attributes {stable_mosaic.version = 11 : i64} {
  func.func @_conv_matmul_kernel(%arg0: i32, %arg1: i32, %arg2: i32, %arg3: i32, %arg4: memref<1x32x128xbf16, #tpu.memory_space<vmem>>, %arg5: memref<1x128x128xbf16, #tpu.memory_space<vmem>>, %arg6: memref<1x1x128xf32, #tpu.memory_space<vmem>>, %arg7: memref<1x32x128xf32, #tpu.memory_space<vmem>>, %arg8: memref<32x128xf32, #tpu.memory_space<vmem>>) attributes {dimension_semantics = [#tpu.dimension_semantics<parallel>, #tpu.dimension_semantics<parallel>, #tpu.dimension_semantics<parallel>, #tpu.dimension_semantics<arbitrary>], iteration_bounds = array<i64: 2, 1, 1, 1>, scalar_prefetch = 0 : i64, scratch_operands = 1 : i64, tpu.core_type = #tpu.core_type<tc>, window_params = [{transform_indices = @transform_0, window_bounds = array<i64: 1, 32, 128>}, {transform_indices = @transform_1, window_bounds = array<i64: 1, 128, 128>}, {transform_indices = @transform_2, window_bounds = array<i64: 1, 1, 128>}, {transform_indices = @transform_3, window_bounds = array<i64: 1, 32, 128>}]} {
    %c0_i32 = arith.constant 0 : i32
    %0 = arith.cmpi eq, %arg3, %c0_i32 : i32
    %1 = arith.extui %0 : i1 to i32
    %c0_i32_0 = arith.constant 0 : i32
    %2 = arith.cmpi ne, %1, %c0_i32_0 : i32
    scf.if %2 {
      %cst_12 = arith.constant 0.000000e+00 : f32
      %14 = vector.broadcast %cst_12 : f32 to vector<32x128xf32>
      %c0_13 = arith.constant 0 : index
      %c0_14 = arith.constant 0 : index
      %15 = vector.load %arg8[%c0_13, %c0_14] : memref<32x128xf32, #tpu.memory_space<vmem>>, vector<32x128xf32>
      tpu.vector_store %arg8[%c0_13, %c0_14], %14 {strides = array<i32>} : memref<32x128xf32, #tpu.memory_space<vmem>>, vector<32x128xf32>,
    } else {
    }
    %c0 = arith.constant 0 : index
    %c0_1 = arith.constant 0 : index
    %3 = vector.load %arg8[%c0, %c0_1] : memref<32x128xf32, #tpu.memory_space<vmem>>, vector<32x128xf32>
    %c0_2 = arith.constant 0 : index
    %c0_3 = arith.constant 0 : index
    %c0_4 = arith.constant 0 : index
    %4 = vector.load %arg4[%c0_2, %c0_3, %c0_4] : memref<1x32x128xbf16, #tpu.memory_space<vmem>>, vector<1x32x128xbf16>
    %5 = vector.shape_cast %4 : vector<1x32x128xbf16> to vector<32x128xbf16>
    %c0_5 = arith.constant 0 : index
    %c0_6 = arith.constant 0 : index
    %c0_7 = arith.constant 0 : index
    %6 = vector.load %arg5[%c0_5, %c0_6, %c0_7] : memref<1x128x128xbf16, #tpu.memory_space<vmem>>, vector<1x128x128xbf16>
    %7 = vector.shape_cast %6 : vector<1x128x128xbf16> to vector<128x128xbf16>
    %cst = arith.constant dense<0.000000e+00> : vector<32x128xf32>
    %8 = tpu.matmul %5, %7, %cst {dimension_numbers = #tpu.dot_dimension_numbers<[1], [0], [0], [1], [0, 0, 1, 1], [], []>} : vector<32x128xbf16>, vector<128x128xbf16>, vector<32x128xf32> -> vector<32x128xf32>
    %9 = arith.addf %3, %8 : vector<32x128xf32>
    %c0_8 = arith.constant 0 : index
    %c0_9 = arith.constant 0 : index
    %10 = vector.load %arg8[%c0_8, %c0_9] : memref<32x128xf32, #tpu.memory_space<vmem>>, vector<32x128xf32>
    tpu.vector_store %arg8[%c0_8, %c0_9], %9 {strides = array<i32>} : memref<32x128xf32, #tpu.memory_space<vmem>>, vector<32x128xf32>,
    %c0_i32_10 = arith.constant 0 : i32
    %11 = arith.cmpi eq, %arg3, %c0_i32_10 : i32
    %12 = arith.extui %11 : i1 to i32
    %c0_i32_11 = arith.constant 0 : i32
    %13 = arith.cmpi ne, %12, %c0_i32_11 : i32
    scf.if %13 {
      %c0_12 = arith.constant 0 : index
      %c0_13 = arith.constant 0 : index
      %14 = vector.load %arg8[%c0_12, %c0_13] : memref<32x128xf32, #tpu.memory_space<vmem>>, vector<32x128xf32>
      %c0_14 = arith.constant 0 : index
      %c0_15 = arith.constant 0 : index
      %c0_16 = arith.constant 0 : index
      %15 = vector.load %arg6[%c0_14, %c0_15, %c0_16] : memref<1x1x128xf32, #tpu.memory_space<vmem>>, vector<1x1x128xf32>
      %16 = vector.shape_cast %15 : vector<1x1x128xf32> to vector<1x128xf32>
      %17 = vector.broadcast %16 : vector<1x128xf32> to vector<32x128xf32>
      %18 = arith.addf %14, %17 : vector<32x128xf32>
      %c0_17 = arith.constant 0 : index
      %c0_18 = arith.constant 0 : index
      %c0_19 = arith.constant 0 : index
      %19 = vector.load %arg7[%c0_17, %c0_18, %c0_19] : memref<1x32x128xf32, #tpu.memory_space<vmem>>, vector<1x32x128xf32>
      %20 = vector.shape_cast %19 : vector<1x32x128xf32> to vector<32x128xf32>
      %21 = vector.shape_cast %18 : vector<32x128xf32> to vector<1x32x128xf32>
      tpu.vector_store %arg7[%c0_17, %c0_18, %c0_19], %21 {strides = array<i32>} : memref<1x32x128xf32, #tpu.memory_space<vmem>>, vector<1x32x128xf32>,
    } else {
    }
    return
  }
  func.func @transform_0(%arg0: i32, %arg1: i32, %arg2: i32, %arg3: i32) -> (i32, i32, i32) {
    %c0_i32 = arith.constant 0 : i32
    return %arg0, %arg1, %arg3 : i32, i32, i32
  }
  func.func @transform_1(%arg0: i32, %arg1: i32, %arg2: i32, %arg3: i32) -> (i32, i32, i32) {
    %c0_i32 = arith.constant 0 : i32
    return %arg0, %arg3, %arg2 : i32, i32, i32
  }
  func.func @transform_2(%arg0: i32, %arg1: i32, %arg2: i32, %arg3: i32) -> (i32, i32, i32) {
    %c0_i32 = arith.constant 0 : i32
    %c0_i32_0 = arith.constant 0 : i32
    return %arg0, %c0_i32, %arg2 : i32, i32, i32
  }
  func.func @transform_3(%arg0: i32, %arg1: i32, %arg2: i32, %arg3: i32) -> (i32, i32, i32) {
    %c0_i32 = arith.constant 0 : i32
    return %arg0, %arg1, %arg2 : i32, i32, i32
  }
}

module attributes {stable_mosaic.version = 11 : i64} {
  func.func @_conv_matmul_res_kernel(%arg0: i32, %arg1: i32, %arg2: i32, %arg3: i32, %arg4: memref<1x32x384xbf16, #tpu.memory_space<vmem>>, %arg5: memref<1x384x128xbf16, #tpu.memory_space<vmem>>, %arg6: memref<1x1x128xf32, #tpu.memory_space<vmem>>, %arg7: memref<1x32x128xf32, #tpu.memory_space<vmem>>, %arg8: memref<1x32x128xf32, #tpu.memory_space<vmem>>, %arg9: memref<32x128xf32, #tpu.memory_space<vmem>>) attributes {dimension_semantics = [#tpu.dimension_semantics<parallel>, #tpu.dimension_semantics<parallel>, #tpu.dimension_semantics<parallel>, #tpu.dimension_semantics<arbitrary>], iteration_bounds = array<i64: 2, 1, 1, 3>, scalar_prefetch = 0 : i64, scratch_operands = 1 : i64, tpu.core_type = #tpu.core_type<tc>, window_params = [{transform_indices = @transform_0, window_bounds = array<i64: 1, 32, 384>}, {transform_indices = @transform_1, window_bounds = array<i64: 1, 384, 128>}, {transform_indices = @transform_2, window_bounds = array<i64: 1, 1, 128>}, {transform_indices = @transform_3, window_bounds = array<i64: 1, 32, 128>}, {transform_indices = @transform_4, window_bounds = array<i64: 1, 32, 128>}]} {
    %c0_i32 = arith.constant 0 : i32
    %0 = arith.cmpi eq, %arg3, %c0_i32 : i32
    %1 = arith.extui %0 : i1 to i32
    %c0_i32_0 = arith.constant 0 : i32
    %2 = arith.cmpi ne, %1, %c0_i32_0 : i32
    scf.if %2 {
      %cst_11 = arith.constant 0.000000e+00 : f32
      %14 = vector.broadcast %cst_11 : f32 to vector<32x128xf32>
      %c0_12 = arith.constant 0 : index
      %c0_13 = arith.constant 0 : index
      %15 = vector.load %arg9[%c0_12, %c0_13] : memref<32x128xf32, #tpu.memory_space<vmem>>, vector<32x128xf32>
      tpu.vector_store %arg9[%c0_12, %c0_13], %14 {strides = array<i32>} : memref<32x128xf32, #tpu.memory_space<vmem>>, vector<32x128xf32>,
    } else {
    }
    %c0 = arith.constant 0 : index
    %c0_1 = arith.constant 0 : index
    %3 = vector.load %arg9[%c0, %c0_1] : memref<32x128xf32, #tpu.memory_space<vmem>>, vector<32x128xf32>
    %c0_2 = arith.constant 0 : index
    %c0_3 = arith.constant 0 : index
    %c0_4 = arith.constant 0 : index
    %4 = vector.load %arg4[%c0_2, %c0_3, %c0_4] : memref<1x32x384xbf16, #tpu.memory_space<vmem>>, vector<1x32x384xbf16>
    %5 = vector.shape_cast %4 : vector<1x32x384xbf16> to vector<32x384xbf16>
    %c0_5 = arith.constant 0 : index
    %c0_6 = arith.constant 0 : index
    %c0_7 = arith.constant 0 : index
    %6 = vector.load %arg5[%c0_5, %c0_6, %c0_7] : memref<1x384x128xbf16, #tpu.memory_space<vmem>>, vector<1x384x128xbf16>
    %7 = vector.shape_cast %6 : vector<1x384x128xbf16> to vector<384x128xbf16>
    %cst = arith.constant dense<0.000000e+00> : vector<32x128xf32>
    %8 = tpu.matmul %5, %7, %cst {dimension_numbers = #tpu.dot_dimension_numbers<[1], [0], [0], [1], [0, 0, 1, 1], [], []>} : vector<32x384xbf16>, vector<384x128xbf16>, vector<32x128xf32> -> vector<32x128xf32>
    %9 = arith.addf %3, %8 : vector<32x128xf32>
    %c0_8 = arith.constant 0 : index
    %c0_9 = arith.constant 0 : index
    %10 = vector.load %arg9[%c0_8, %c0_9] : memref<32x128xf32, #tpu.memory_space<vmem>>, vector<32x128xf32>
    tpu.vector_store %arg9[%c0_8, %c0_9], %9 {strides = array<i32>} : memref<32x128xf32, #tpu.memory_space<vmem>>, vector<32x128xf32>,
    %c2_i32 = arith.constant 2 : i32
    %11 = arith.cmpi eq, %arg3, %c2_i32 : i32
    %12 = arith.extui %11 : i1 to i32
    %c0_i32_10 = arith.constant 0 : i32
    %13 = arith.cmpi ne, %12, %c0_i32_10 : i32
    scf.if %13 {
      %c0_11 = arith.constant 0 : index
      %c0_12 = arith.constant 0 : index
      %14 = vector.load %arg9[%c0_11, %c0_12] : memref<32x128xf32, #tpu.memory_space<vmem>>, vector<32x128xf32>
      %c0_13 = arith.constant 0 : index
      %c0_14 = arith.constant 0 : index
      %c0_15 = arith.constant 0 : index
      %15 = vector.load %arg6[%c0_13, %c0_14, %c0_15] : memref<1x1x128xf32, #tpu.memory_space<vmem>>, vector<1x1x128xf32>
      %16 = vector.shape_cast %15 : vector<1x1x128xf32> to vector<1x128xf32>
      %17 = vector.broadcast %16 : vector<1x128xf32> to vector<32x128xf32>
      %18 = arith.addf %14, %17 : vector<32x128xf32>
      %c0_16 = arith.constant 0 : index
      %c0_17 = arith.constant 0 : index
      %c0_18 = arith.constant 0 : index
      %19 = vector.load %arg7[%c0_16, %c0_17, %c0_18] : memref<1x32x128xf32, #tpu.memory_space<vmem>>, vector<1x32x128xf32>
      %20 = vector.shape_cast %19 : vector<1x32x128xf32> to vector<32x128xf32>
      %21 = arith.addf %18, %20 : vector<32x128xf32>
      %cst_19 = arith.constant 0.000000e+00 : f32
      %22 = vector.broadcast %cst_19 : f32 to vector<32x128xf32>
      %23 = arith.maximumf %21, %22 : vector<32x128xf32>
      %c0_20 = arith.constant 0 : index
      %c0_21 = arith.constant 0 : index
      %c0_22 = arith.constant 0 : index
      %24 = vector.load %arg8[%c0_20, %c0_21, %c0_22] : memref<1x32x128xf32, #tpu.memory_space<vmem>>, vector<1x32x128xf32>
      %25 = vector.shape_cast %24 : vector<1x32x128xf32> to vector<32x128xf32>
      %26 = vector.shape_cast %23 : vector<32x128xf32> to vector<1x32x128xf32>
      tpu.vector_store %arg8[%c0_20, %c0_21, %c0_22], %26 {strides = array<i32>} : memref<1x32x128xf32, #tpu.memory_space<vmem>>, vector<1x32x128xf32>,
    } else {
    }
    return
  }
  func.func @transform_0(%arg0: i32, %arg1: i32, %arg2: i32, %arg3: i32) -> (i32, i32, i32) {
    %c0_i32 = arith.constant 0 : i32
    return %arg0, %arg1, %arg3 : i32, i32, i32
  }
  func.func @transform_1(%arg0: i32, %arg1: i32, %arg2: i32, %arg3: i32) -> (i32, i32, i32) {
    %c0_i32 = arith.constant 0 : i32
    return %arg0, %arg3, %arg2 : i32, i32, i32
  }
  func.func @transform_2(%arg0: i32, %arg1: i32, %arg2: i32, %arg3: i32) -> (i32, i32, i32) {
    %c0_i32 = arith.constant 0 : i32
    %c0_i32_0 = arith.constant 0 : i32
    return %arg0, %c0_i32, %arg2 : i32, i32, i32
  }
  func.func @transform_3(%arg0: i32, %arg1: i32, %arg2: i32, %arg3: i32) -> (i32, i32, i32) {
    %c0_i32 = arith.constant 0 : i32
    return %arg0, %arg1, %arg2 : i32, i32, i32
  }
  func.func @transform_4(%arg0: i32, %arg1: i32, %arg2: i32, %arg3: i32) -> (i32, i32, i32) {
    %c0_i32 = arith.constant 0 : i32
    return %arg0, %arg1, %arg2 : i32, i32, i32
  }
}

module attributes {stable_mosaic.version = 11 : i64} {
  func.func @_conv_matmul_kernel(%arg0: i32, %arg1: i32, %arg2: i32, %arg3: i32, %arg4: memref<1x32x384xbf16, #tpu.memory_space<vmem>>, %arg5: memref<1x384x128xbf16, #tpu.memory_space<vmem>>, %arg6: memref<1x1x128xf32, #tpu.memory_space<vmem>>, %arg7: memref<1x32x128xf32, #tpu.memory_space<vmem>>, %arg8: memref<32x128xf32, #tpu.memory_space<vmem>>) attributes {dimension_semantics = [#tpu.dimension_semantics<parallel>, #tpu.dimension_semantics<parallel>, #tpu.dimension_semantics<parallel>, #tpu.dimension_semantics<arbitrary>], iteration_bounds = array<i64: 2, 1, 1, 3>, scalar_prefetch = 0 : i64, scratch_operands = 1 : i64, tpu.core_type = #tpu.core_type<tc>, window_params = [{transform_indices = @transform_0, window_bounds = array<i64: 1, 32, 384>}, {transform_indices = @transform_1, window_bounds = array<i64: 1, 384, 128>}, {transform_indices = @transform_2, window_bounds = array<i64: 1, 1, 128>}, {transform_indices = @transform_3, window_bounds = array<i64: 1, 32, 128>}]} {
    %c0_i32 = arith.constant 0 : i32
    %0 = arith.cmpi eq, %arg3, %c0_i32 : i32
    %1 = arith.extui %0 : i1 to i32
    %c0_i32_0 = arith.constant 0 : i32
    %2 = arith.cmpi ne, %1, %c0_i32_0 : i32
    scf.if %2 {
      %cst_11 = arith.constant 0.000000e+00 : f32
      %14 = vector.broadcast %cst_11 : f32 to vector<32x128xf32>
      %c0_12 = arith.constant 0 : index
      %c0_13 = arith.constant 0 : index
      %15 = vector.load %arg8[%c0_12, %c0_13] : memref<32x128xf32, #tpu.memory_space<vmem>>, vector<32x128xf32>
      tpu.vector_store %arg8[%c0_12, %c0_13], %14 {strides = array<i32>} : memref<32x128xf32, #tpu.memory_space<vmem>>, vector<32x128xf32>,
    } else {
    }
    %c0 = arith.constant 0 : index
    %c0_1 = arith.constant 0 : index
    %3 = vector.load %arg8[%c0, %c0_1] : memref<32x128xf32, #tpu.memory_space<vmem>>, vector<32x128xf32>
    %c0_2 = arith.constant 0 : index
    %c0_3 = arith.constant 0 : index
    %c0_4 = arith.constant 0 : index
    %4 = vector.load %arg4[%c0_2, %c0_3, %c0_4] : memref<1x32x384xbf16, #tpu.memory_space<vmem>>, vector<1x32x384xbf16>
    %5 = vector.shape_cast %4 : vector<1x32x384xbf16> to vector<32x384xbf16>
    %c0_5 = arith.constant 0 : index
    %c0_6 = arith.constant 0 : index
    %c0_7 = arith.constant 0 : index
    %6 = vector.load %arg5[%c0_5, %c0_6, %c0_7] : memref<1x384x128xbf16, #tpu.memory_space<vmem>>, vector<1x384x128xbf16>
    %7 = vector.shape_cast %6 : vector<1x384x128xbf16> to vector<384x128xbf16>
    %cst = arith.constant dense<0.000000e+00> : vector<32x128xf32>
    %8 = tpu.matmul %5, %7, %cst {dimension_numbers = #tpu.dot_dimension_numbers<[1], [0], [0], [1], [0, 0, 1, 1], [], []>} : vector<32x384xbf16>, vector<384x128xbf16>, vector<32x128xf32> -> vector<32x128xf32>
    %9 = arith.addf %3, %8 : vector<32x128xf32>
    %c0_8 = arith.constant 0 : index
    %c0_9 = arith.constant 0 : index
    %10 = vector.load %arg8[%c0_8, %c0_9] : memref<32x128xf32, #tpu.memory_space<vmem>>, vector<32x128xf32>
    tpu.vector_store %arg8[%c0_8, %c0_9], %9 {strides = array<i32>} : memref<32x128xf32, #tpu.memory_space<vmem>>, vector<32x128xf32>,
    %c2_i32 = arith.constant 2 : i32
    %11 = arith.cmpi eq, %arg3, %c2_i32 : i32
    %12 = arith.extui %11 : i1 to i32
    %c0_i32_10 = arith.constant 0 : i32
    %13 = arith.cmpi ne, %12, %c0_i32_10 : i32
    scf.if %13 {
      %c0_11 = arith.constant 0 : index
      %c0_12 = arith.constant 0 : index
      %14 = vector.load %arg8[%c0_11, %c0_12] : memref<32x128xf32, #tpu.memory_space<vmem>>, vector<32x128xf32>
      %c0_13 = arith.constant 0 : index
      %c0_14 = arith.constant 0 : index
      %c0_15 = arith.constant 0 : index
      %15 = vector.load %arg6[%c0_13, %c0_14, %c0_15] : memref<1x1x128xf32, #tpu.memory_space<vmem>>, vector<1x1x128xf32>
      %16 = vector.shape_cast %15 : vector<1x1x128xf32> to vector<1x128xf32>
      %17 = vector.broadcast %16 : vector<1x128xf32> to vector<32x128xf32>
      %18 = arith.addf %14, %17 : vector<32x128xf32>
      %cst_16 = arith.constant 0.000000e+00 : f32
      %19 = vector.broadcast %cst_16 : f32 to vector<32x128xf32>
      %20 = arith.maximumf %18, %19 : vector<32x128xf32>
      %c0_17 = arith.constant 0 : index
      %c0_18 = arith.constant 0 : index
      %c0_19 = arith.constant 0 : index
      %21 = vector.load %arg7[%c0_17, %c0_18, %c0_19] : memref<1x32x128xf32, #tpu.memory_space<vmem>>, vector<1x32x128xf32>
      %22 = vector.shape_cast %21 : vector<1x32x128xf32> to vector<32x128xf32>
      %23 = vector.shape_cast %20 : vector<32x128xf32> to vector<1x32x128xf32>
      tpu.vector_store %arg7[%c0_17, %c0_18, %c0_19], %23 {strides = array<i32>} : memref<1x32x128xf32, #tpu.memory_space<vmem>>, vector<1x32x128xf32>,
    } else {
    }
    return
  }
  func.func @transform_0(%arg0: i32, %arg1: i32, %arg2: i32, %arg3: i32) -> (i32, i32, i32) {
    %c0_i32 = arith.constant 0 : i32
    return %arg0, %arg1, %arg3 : i32, i32, i32
  }
  func.func @transform_1(%arg0: i32, %arg1: i32, %arg2: i32, %arg3: i32) -> (i32, i32, i32) {
    %c0_i32 = arith.constant 0 : i32
    return %arg0, %arg3, %arg2 : i32, i32, i32
  }
  func.func @transform_2(%arg0: i32, %arg1: i32, %arg2: i32, %arg3: i32) -> (i32, i32, i32) {
    %c0_i32 = arith.constant 0 : i32
    %c0_i32_0 = arith.constant 0 : i32
    return %arg0, %c0_i32, %arg2 : i32, i32, i32
  }
  func.func @transform_3(%arg0: i32, %arg1: i32, %arg2: i32, %arg3: i32) -> (i32, i32, i32) {
    %c0_i32 = arith.constant 0 : i32
    return %arg0, %arg1, %arg2 : i32, i32, i32
  }
}

module attributes {stable_mosaic.version = 11 : i64} {
  func.func @_conv_matmul_kernel(%arg0: i32, %arg1: i32, %arg2: i32, %arg3: i32, %arg4: memref<1x8x384xbf16, #tpu.memory_space<vmem>>, %arg5: memref<1x384x256xbf16, #tpu.memory_space<vmem>>, %arg6: memref<1x1x256xf32, #tpu.memory_space<vmem>>, %arg7: memref<1x8x256xf32, #tpu.memory_space<vmem>>, %arg8: memref<8x256xf32, #tpu.memory_space<vmem>>) attributes {dimension_semantics = [#tpu.dimension_semantics<parallel>, #tpu.dimension_semantics<parallel>, #tpu.dimension_semantics<parallel>, #tpu.dimension_semantics<arbitrary>], iteration_bounds = array<i64: 2, 1, 1, 3>, scalar_prefetch = 0 : i64, scratch_operands = 1 : i64, tpu.core_type = #tpu.core_type<tc>, window_params = [{transform_indices = @transform_0, window_bounds = array<i64: 1, 8, 384>}, {transform_indices = @transform_1, window_bounds = array<i64: 1, 384, 256>}, {transform_indices = @transform_2, window_bounds = array<i64: 1, 1, 256>}, {transform_indices = @transform_3, window_bounds = array<i64: 1, 8, 256>}]} {
    %c0_i32 = arith.constant 0 : i32
    %0 = arith.cmpi eq, %arg3, %c0_i32 : i32
    %1 = arith.extui %0 : i1 to i32
    %c0_i32_0 = arith.constant 0 : i32
    %2 = arith.cmpi ne, %1, %c0_i32_0 : i32
    scf.if %2 {
      %cst_11 = arith.constant 0.000000e+00 : f32
      %14 = vector.broadcast %cst_11 : f32 to vector<8x256xf32>
      %c0_12 = arith.constant 0 : index
      %c0_13 = arith.constant 0 : index
      %15 = vector.load %arg8[%c0_12, %c0_13] : memref<8x256xf32, #tpu.memory_space<vmem>>, vector<8x256xf32>
      tpu.vector_store %arg8[%c0_12, %c0_13], %14 {strides = array<i32>} : memref<8x256xf32, #tpu.memory_space<vmem>>, vector<8x256xf32>,
    } else {
    }
    %c0 = arith.constant 0 : index
    %c0_1 = arith.constant 0 : index
    %3 = vector.load %arg8[%c0, %c0_1] : memref<8x256xf32, #tpu.memory_space<vmem>>, vector<8x256xf32>
    %c0_2 = arith.constant 0 : index
    %c0_3 = arith.constant 0 : index
    %c0_4 = arith.constant 0 : index
    %4 = vector.load %arg4[%c0_2, %c0_3, %c0_4] : memref<1x8x384xbf16, #tpu.memory_space<vmem>>, vector<1x8x384xbf16>
    %5 = vector.shape_cast %4 : vector<1x8x384xbf16> to vector<8x384xbf16>
    %c0_5 = arith.constant 0 : index
    %c0_6 = arith.constant 0 : index
    %c0_7 = arith.constant 0 : index
    %6 = vector.load %arg5[%c0_5, %c0_6, %c0_7] : memref<1x384x256xbf16, #tpu.memory_space<vmem>>, vector<1x384x256xbf16>
    %7 = vector.shape_cast %6 : vector<1x384x256xbf16> to vector<384x256xbf16>
    %cst = arith.constant dense<0.000000e+00> : vector<8x256xf32>
    %8 = tpu.matmul %5, %7, %cst {dimension_numbers = #tpu.dot_dimension_numbers<[1], [0], [0], [1], [0, 0, 1, 1], [], []>} : vector<8x384xbf16>, vector<384x256xbf16>, vector<8x256xf32> -> vector<8x256xf32>
    %9 = arith.addf %3, %8 : vector<8x256xf32>
    %c0_8 = arith.constant 0 : index
    %c0_9 = arith.constant 0 : index
    %10 = vector.load %arg8[%c0_8, %c0_9] : memref<8x256xf32, #tpu.memory_space<vmem>>, vector<8x256xf32>
    tpu.vector_store %arg8[%c0_8, %c0_9], %9 {strides = array<i32>} : memref<8x256xf32, #tpu.memory_space<vmem>>, vector<8x256xf32>,
    %c2_i32 = arith.constant 2 : i32
    %11 = arith.cmpi eq, %arg3, %c2_i32 : i32
    %12 = arith.extui %11 : i1 to i32
    %c0_i32_10 = arith.constant 0 : i32
    %13 = arith.cmpi ne, %12, %c0_i32_10 : i32
    scf.if %13 {
      %c0_11 = arith.constant 0 : index
      %c0_12 = arith.constant 0 : index
      %14 = vector.load %arg8[%c0_11, %c0_12] : memref<8x256xf32, #tpu.memory_space<vmem>>, vector<8x256xf32>
      %c0_13 = arith.constant 0 : index
      %c0_14 = arith.constant 0 : index
      %c0_15 = arith.constant 0 : index
      %15 = vector.load %arg6[%c0_13, %c0_14, %c0_15] : memref<1x1x256xf32, #tpu.memory_space<vmem>>, vector<1x1x256xf32>
      %16 = vector.shape_cast %15 : vector<1x1x256xf32> to vector<1x256xf32>
      %17 = vector.broadcast %16 : vector<1x256xf32> to vector<8x256xf32>
      %18 = arith.addf %14, %17 : vector<8x256xf32>
      %cst_16 = arith.constant 0.000000e+00 : f32
      %19 = vector.broadcast %cst_16 : f32 to vector<8x256xf32>
      %20 = arith.maximumf %18, %19 : vector<8x256xf32>
      %c0_17 = arith.constant 0 : index
      %c0_18 = arith.constant 0 : index
      %c0_19 = arith.constant 0 : index
      %21 = vector.load %arg7[%c0_17, %c0_18, %c0_19] : memref<1x8x256xf32, #tpu.memory_space<vmem>>, vector<1x8x256xf32>
      %22 = vector.shape_cast %21 : vector<1x8x256xf32> to vector<8x256xf32>
      %23 = vector.shape_cast %20 : vector<8x256xf32> to vector<1x8x256xf32>
      tpu.vector_store %arg7[%c0_17, %c0_18, %c0_19], %23 {strides = array<i32>} : memref<1x8x256xf32, #tpu.memory_space<vmem>>, vector<1x8x256xf32>,
    } else {
    }
    return
  }
  func.func @transform_0(%arg0: i32, %arg1: i32, %arg2: i32, %arg3: i32) -> (i32, i32, i32) {
    %c0_i32 = arith.constant 0 : i32
    return %arg0, %arg1, %arg3 : i32, i32, i32
  }
  func.func @transform_1(%arg0: i32, %arg1: i32, %arg2: i32, %arg3: i32) -> (i32, i32, i32) {
    %c0_i32 = arith.constant 0 : i32
    return %arg0, %arg3, %arg2 : i32, i32, i32
  }
  func.func @transform_2(%arg0: i32, %arg1: i32, %arg2: i32, %arg3: i32) -> (i32, i32, i32) {
    %c0_i32 = arith.constant 0 : i32
    %c0_i32_0 = arith.constant 0 : i32
    return %arg0, %c0_i32, %arg2 : i32, i32, i32
  }
  func.func @transform_3(%arg0: i32, %arg1: i32, %arg2: i32, %arg3: i32) -> (i32, i32, i32) {
    %c0_i32 = arith.constant 0 : i32
    return %arg0, %arg1, %arg2 : i32, i32, i32
  }
}

module attributes {stable_mosaic.version = 11 : i64} {
  func.func @_conv_matmul_kernel(%arg0: i32, %arg1: i32, %arg2: i32, %arg3: i32, %arg4: memref<1x8x128xbf16, #tpu.memory_space<vmem>>, %arg5: memref<1x128x256xbf16, #tpu.memory_space<vmem>>, %arg6: memref<1x1x256xf32, #tpu.memory_space<vmem>>, %arg7: memref<1x8x256xf32, #tpu.memory_space<vmem>>, %arg8: memref<8x256xf32, #tpu.memory_space<vmem>>) attributes {dimension_semantics = [#tpu.dimension_semantics<parallel>, #tpu.dimension_semantics<parallel>, #tpu.dimension_semantics<parallel>, #tpu.dimension_semantics<arbitrary>], iteration_bounds = array<i64: 2, 1, 1, 1>, scalar_prefetch = 0 : i64, scratch_operands = 1 : i64, tpu.core_type = #tpu.core_type<tc>, window_params = [{transform_indices = @transform_0, window_bounds = array<i64: 1, 8, 128>}, {transform_indices = @transform_1, window_bounds = array<i64: 1, 128, 256>}, {transform_indices = @transform_2, window_bounds = array<i64: 1, 1, 256>}, {transform_indices = @transform_3, window_bounds = array<i64: 1, 8, 256>}]} {
    %c0_i32 = arith.constant 0 : i32
    %0 = arith.cmpi eq, %arg3, %c0_i32 : i32
    %1 = arith.extui %0 : i1 to i32
    %c0_i32_0 = arith.constant 0 : i32
    %2 = arith.cmpi ne, %1, %c0_i32_0 : i32
    scf.if %2 {
      %cst_12 = arith.constant 0.000000e+00 : f32
      %14 = vector.broadcast %cst_12 : f32 to vector<8x256xf32>
      %c0_13 = arith.constant 0 : index
      %c0_14 = arith.constant 0 : index
      %15 = vector.load %arg8[%c0_13, %c0_14] : memref<8x256xf32, #tpu.memory_space<vmem>>, vector<8x256xf32>
      tpu.vector_store %arg8[%c0_13, %c0_14], %14 {strides = array<i32>} : memref<8x256xf32, #tpu.memory_space<vmem>>, vector<8x256xf32>,
    } else {
    }
    %c0 = arith.constant 0 : index
    %c0_1 = arith.constant 0 : index
    %3 = vector.load %arg8[%c0, %c0_1] : memref<8x256xf32, #tpu.memory_space<vmem>>, vector<8x256xf32>
    %c0_2 = arith.constant 0 : index
    %c0_3 = arith.constant 0 : index
    %c0_4 = arith.constant 0 : index
    %4 = vector.load %arg4[%c0_2, %c0_3, %c0_4] : memref<1x8x128xbf16, #tpu.memory_space<vmem>>, vector<1x8x128xbf16>
    %5 = vector.shape_cast %4 : vector<1x8x128xbf16> to vector<8x128xbf16>
    %c0_5 = arith.constant 0 : index
    %c0_6 = arith.constant 0 : index
    %c0_7 = arith.constant 0 : index
    %6 = vector.load %arg5[%c0_5, %c0_6, %c0_7] : memref<1x128x256xbf16, #tpu.memory_space<vmem>>, vector<1x128x256xbf16>
    %7 = vector.shape_cast %6 : vector<1x128x256xbf16> to vector<128x256xbf16>
    %cst = arith.constant dense<0.000000e+00> : vector<8x256xf32>
    %8 = tpu.matmul %5, %7, %cst {dimension_numbers = #tpu.dot_dimension_numbers<[1], [0], [0], [1], [0, 0, 1, 1], [], []>} : vector<8x128xbf16>, vector<128x256xbf16>, vector<8x256xf32> -> vector<8x256xf32>
    %9 = arith.addf %3, %8 : vector<8x256xf32>
    %c0_8 = arith.constant 0 : index
    %c0_9 = arith.constant 0 : index
    %10 = vector.load %arg8[%c0_8, %c0_9] : memref<8x256xf32, #tpu.memory_space<vmem>>, vector<8x256xf32>
    tpu.vector_store %arg8[%c0_8, %c0_9], %9 {strides = array<i32>} : memref<8x256xf32, #tpu.memory_space<vmem>>, vector<8x256xf32>,
    %c0_i32_10 = arith.constant 0 : i32
    %11 = arith.cmpi eq, %arg3, %c0_i32_10 : i32
    %12 = arith.extui %11 : i1 to i32
    %c0_i32_11 = arith.constant 0 : i32
    %13 = arith.cmpi ne, %12, %c0_i32_11 : i32
    scf.if %13 {
      %c0_12 = arith.constant 0 : index
      %c0_13 = arith.constant 0 : index
      %14 = vector.load %arg8[%c0_12, %c0_13] : memref<8x256xf32, #tpu.memory_space<vmem>>, vector<8x256xf32>
      %c0_14 = arith.constant 0 : index
      %c0_15 = arith.constant 0 : index
      %c0_16 = arith.constant 0 : index
      %15 = vector.load %arg6[%c0_14, %c0_15, %c0_16] : memref<1x1x256xf32, #tpu.memory_space<vmem>>, vector<1x1x256xf32>
      %16 = vector.shape_cast %15 : vector<1x1x256xf32> to vector<1x256xf32>
      %17 = vector.broadcast %16 : vector<1x256xf32> to vector<8x256xf32>
      %18 = arith.addf %14, %17 : vector<8x256xf32>
      %c0_17 = arith.constant 0 : index
      %c0_18 = arith.constant 0 : index
      %c0_19 = arith.constant 0 : index
      %19 = vector.load %arg7[%c0_17, %c0_18, %c0_19] : memref<1x8x256xf32, #tpu.memory_space<vmem>>, vector<1x8x256xf32>
      %20 = vector.shape_cast %19 : vector<1x8x256xf32> to vector<8x256xf32>
      %21 = vector.shape_cast %18 : vector<8x256xf32> to vector<1x8x256xf32>
      tpu.vector_store %arg7[%c0_17, %c0_18, %c0_19], %21 {strides = array<i32>} : memref<1x8x256xf32, #tpu.memory_space<vmem>>, vector<1x8x256xf32>,
    } else {
    }
    return
  }
  func.func @transform_0(%arg0: i32, %arg1: i32, %arg2: i32, %arg3: i32) -> (i32, i32, i32) {
    %c0_i32 = arith.constant 0 : i32
    return %arg0, %arg1, %arg3 : i32, i32, i32
  }
  func.func @transform_1(%arg0: i32, %arg1: i32, %arg2: i32, %arg3: i32) -> (i32, i32, i32) {
    %c0_i32 = arith.constant 0 : i32
    return %arg0, %arg3, %arg2 : i32, i32, i32
  }
  func.func @transform_2(%arg0: i32, %arg1: i32, %arg2: i32, %arg3: i32) -> (i32, i32, i32) {
    %c0_i32 = arith.constant 0 : i32
    %c0_i32_0 = arith.constant 0 : i32
    return %arg0, %c0_i32, %arg2 : i32, i32, i32
  }
  func.func @transform_3(%arg0: i32, %arg1: i32, %arg2: i32, %arg3: i32) -> (i32, i32, i32) {
    %c0_i32 = arith.constant 0 : i32
    return %arg0, %arg1, %arg2 : i32, i32, i32
  }
}

module attributes {stable_mosaic.version = 11 : i64} {
  func.func @_conv_matmul_res_kernel(%arg0: i32, %arg1: i32, %arg2: i32, %arg3: i32, %arg4: memref<1x8x768xbf16, #tpu.memory_space<vmem>>, %arg5: memref<1x768x256xbf16, #tpu.memory_space<vmem>>, %arg6: memref<1x1x256xf32, #tpu.memory_space<vmem>>, %arg7: memref<1x8x256xf32, #tpu.memory_space<vmem>>, %arg8: memref<1x8x256xf32, #tpu.memory_space<vmem>>, %arg9: memref<8x256xf32, #tpu.memory_space<vmem>>) attributes {dimension_semantics = [#tpu.dimension_semantics<parallel>, #tpu.dimension_semantics<parallel>, #tpu.dimension_semantics<parallel>, #tpu.dimension_semantics<arbitrary>], iteration_bounds = array<i64: 2, 1, 1, 3>, scalar_prefetch = 0 : i64, scratch_operands = 1 : i64, tpu.core_type = #tpu.core_type<tc>, window_params = [{transform_indices = @transform_0, window_bounds = array<i64: 1, 8, 768>}, {transform_indices = @transform_1, window_bounds = array<i64: 1, 768, 256>}, {transform_indices = @transform_2, window_bounds = array<i64: 1, 1, 256>}, {transform_indices = @transform_3, window_bounds = array<i64: 1, 8, 256>}, {transform_indices = @transform_4, window_bounds = array<i64: 1, 8, 256>}]} {
    %c0_i32 = arith.constant 0 : i32
    %0 = arith.cmpi eq, %arg3, %c0_i32 : i32
    %1 = arith.extui %0 : i1 to i32
    %c0_i32_0 = arith.constant 0 : i32
    %2 = arith.cmpi ne, %1, %c0_i32_0 : i32
    scf.if %2 {
      %cst_11 = arith.constant 0.000000e+00 : f32
      %14 = vector.broadcast %cst_11 : f32 to vector<8x256xf32>
      %c0_12 = arith.constant 0 : index
      %c0_13 = arith.constant 0 : index
      %15 = vector.load %arg9[%c0_12, %c0_13] : memref<8x256xf32, #tpu.memory_space<vmem>>, vector<8x256xf32>
      tpu.vector_store %arg9[%c0_12, %c0_13], %14 {strides = array<i32>} : memref<8x256xf32, #tpu.memory_space<vmem>>, vector<8x256xf32>,
    } else {
    }
    %c0 = arith.constant 0 : index
    %c0_1 = arith.constant 0 : index
    %3 = vector.load %arg9[%c0, %c0_1] : memref<8x256xf32, #tpu.memory_space<vmem>>, vector<8x256xf32>
    %c0_2 = arith.constant 0 : index
    %c0_3 = arith.constant 0 : index
    %c0_4 = arith.constant 0 : index
    %4 = vector.load %arg4[%c0_2, %c0_3, %c0_4] : memref<1x8x768xbf16, #tpu.memory_space<vmem>>, vector<1x8x768xbf16>
    %5 = vector.shape_cast %4 : vector<1x8x768xbf16> to vector<8x768xbf16>
    %c0_5 = arith.constant 0 : index
    %c0_6 = arith.constant 0 : index
    %c0_7 = arith.constant 0 : index
    %6 = vector.load %arg5[%c0_5, %c0_6, %c0_7] : memref<1x768x256xbf16, #tpu.memory_space<vmem>>, vector<1x768x256xbf16>
    %7 = vector.shape_cast %6 : vector<1x768x256xbf16> to vector<768x256xbf16>
    %cst = arith.constant dense<0.000000e+00> : vector<8x256xf32>
    %8 = tpu.matmul %5, %7, %cst {dimension_numbers = #tpu.dot_dimension_numbers<[1], [0], [0], [1], [0, 0, 1, 1], [], []>} : vector<8x768xbf16>, vector<768x256xbf16>, vector<8x256xf32> -> vector<8x256xf32>
    %9 = arith.addf %3, %8 : vector<8x256xf32>
    %c0_8 = arith.constant 0 : index
    %c0_9 = arith.constant 0 : index
    %10 = vector.load %arg9[%c0_8, %c0_9] : memref<8x256xf32, #tpu.memory_space<vmem>>, vector<8x256xf32>
    tpu.vector_store %arg9[%c0_8, %c0_9], %9 {strides = array<i32>} : memref<8x256xf32, #tpu.memory_space<vmem>>, vector<8x256xf32>,
    %c2_i32 = arith.constant 2 : i32
    %11 = arith.cmpi eq, %arg3, %c2_i32 : i32
    %12 = arith.extui %11 : i1 to i32
    %c0_i32_10 = arith.constant 0 : i32
    %13 = arith.cmpi ne, %12, %c0_i32_10 : i32
    scf.if %13 {
      %c0_11 = arith.constant 0 : index
      %c0_12 = arith.constant 0 : index
      %14 = vector.load %arg9[%c0_11, %c0_12] : memref<8x256xf32, #tpu.memory_space<vmem>>, vector<8x256xf32>
      %c0_13 = arith.constant 0 : index
      %c0_14 = arith.constant 0 : index
      %c0_15 = arith.constant 0 : index
      %15 = vector.load %arg6[%c0_13, %c0_14, %c0_15] : memref<1x1x256xf32, #tpu.memory_space<vmem>>, vector<1x1x256xf32>
      %16 = vector.shape_cast %15 : vector<1x1x256xf32> to vector<1x256xf32>
      %17 = vector.broadcast %16 : vector<1x256xf32> to vector<8x256xf32>
      %18 = arith.addf %14, %17 : vector<8x256xf32>
      %c0_16 = arith.constant 0 : index
      %c0_17 = arith.constant 0 : index
      %c0_18 = arith.constant 0 : index
      %19 = vector.load %arg7[%c0_16, %c0_17, %c0_18] : memref<1x8x256xf32, #tpu.memory_space<vmem>>, vector<1x8x256xf32>
      %20 = vector.shape_cast %19 : vector<1x8x256xf32> to vector<8x256xf32>
      %21 = arith.addf %18, %20 : vector<8x256xf32>
      %cst_19 = arith.constant 0.000000e+00 : f32
      %22 = vector.broadcast %cst_19 : f32 to vector<8x256xf32>
      %23 = arith.maximumf %21, %22 : vector<8x256xf32>
      %c0_20 = arith.constant 0 : index
      %c0_21 = arith.constant 0 : index
      %c0_22 = arith.constant 0 : index
      %24 = vector.load %arg8[%c0_20, %c0_21, %c0_22] : memref<1x8x256xf32, #tpu.memory_space<vmem>>, vector<1x8x256xf32>
      %25 = vector.shape_cast %24 : vector<1x8x256xf32> to vector<8x256xf32>
      %26 = vector.shape_cast %23 : vector<8x256xf32> to vector<1x8x256xf32>
      tpu.vector_store %arg8[%c0_20, %c0_21, %c0_22], %26 {strides = array<i32>} : memref<1x8x256xf32, #tpu.memory_space<vmem>>, vector<1x8x256xf32>,
    } else {
    }
    return
  }
  func.func @transform_0(%arg0: i32, %arg1: i32, %arg2: i32, %arg3: i32) -> (i32, i32, i32) {
    %c0_i32 = arith.constant 0 : i32
    return %arg0, %arg1, %arg3 : i32, i32, i32
  }
  func.func @transform_1(%arg0: i32, %arg1: i32, %arg2: i32, %arg3: i32) -> (i32, i32, i32) {
    %c0_i32 = arith.constant 0 : i32
    return %arg0, %arg3, %arg2 : i32, i32, i32
  }
  func.func @transform_2(%arg0: i32, %arg1: i32, %arg2: i32, %arg3: i32) -> (i32, i32, i32) {
    %c0_i32 = arith.constant 0 : i32
    %c0_i32_0 = arith.constant 0 : i32
    return %arg0, %c0_i32, %arg2 : i32, i32, i32
  }
  func.func @transform_3(%arg0: i32, %arg1: i32, %arg2: i32, %arg3: i32) -> (i32, i32, i32) {
    %c0_i32 = arith.constant 0 : i32
    return %arg0, %arg1, %arg2 : i32, i32, i32
  }
  func.func @transform_4(%arg0: i32, %arg1: i32, %arg2: i32, %arg3: i32) -> (i32, i32, i32) {
    %c0_i32 = arith.constant 0 : i32
    return %arg0, %arg1, %arg2 : i32, i32, i32
  }
}

module attributes {stable_mosaic.version = 11 : i64} {
  func.func @_conv_matmul_kernel(%arg0: i32, %arg1: i32, %arg2: i32, %arg3: i32, %arg4: memref<1x8x768xbf16, #tpu.memory_space<vmem>>, %arg5: memref<1x768x256xbf16, #tpu.memory_space<vmem>>, %arg6: memref<1x1x256xf32, #tpu.memory_space<vmem>>, %arg7: memref<1x8x256xf32, #tpu.memory_space<vmem>>, %arg8: memref<8x256xf32, #tpu.memory_space<vmem>>) attributes {dimension_semantics = [#tpu.dimension_semantics<parallel>, #tpu.dimension_semantics<parallel>, #tpu.dimension_semantics<parallel>, #tpu.dimension_semantics<arbitrary>], iteration_bounds = array<i64: 2, 1, 1, 3>, scalar_prefetch = 0 : i64, scratch_operands = 1 : i64, tpu.core_type = #tpu.core_type<tc>, window_params = [{transform_indices = @transform_0, window_bounds = array<i64: 1, 8, 768>}, {transform_indices = @transform_1, window_bounds = array<i64: 1, 768, 256>}, {transform_indices = @transform_2, window_bounds = array<i64: 1, 1, 256>}, {transform_indices = @transform_3, window_bounds = array<i64: 1, 8, 256>}]} {
    %c0_i32 = arith.constant 0 : i32
    %0 = arith.cmpi eq, %arg3, %c0_i32 : i32
    %1 = arith.extui %0 : i1 to i32
    %c0_i32_0 = arith.constant 0 : i32
    %2 = arith.cmpi ne, %1, %c0_i32_0 : i32
    scf.if %2 {
      %cst_11 = arith.constant 0.000000e+00 : f32
      %14 = vector.broadcast %cst_11 : f32 to vector<8x256xf32>
      %c0_12 = arith.constant 0 : index
      %c0_13 = arith.constant 0 : index
      %15 = vector.load %arg8[%c0_12, %c0_13] : memref<8x256xf32, #tpu.memory_space<vmem>>, vector<8x256xf32>
      tpu.vector_store %arg8[%c0_12, %c0_13], %14 {strides = array<i32>} : memref<8x256xf32, #tpu.memory_space<vmem>>, vector<8x256xf32>,
    } else {
    }
    %c0 = arith.constant 0 : index
    %c0_1 = arith.constant 0 : index
    %3 = vector.load %arg8[%c0, %c0_1] : memref<8x256xf32, #tpu.memory_space<vmem>>, vector<8x256xf32>
    %c0_2 = arith.constant 0 : index
    %c0_3 = arith.constant 0 : index
    %c0_4 = arith.constant 0 : index
    %4 = vector.load %arg4[%c0_2, %c0_3, %c0_4] : memref<1x8x768xbf16, #tpu.memory_space<vmem>>, vector<1x8x768xbf16>
    %5 = vector.shape_cast %4 : vector<1x8x768xbf16> to vector<8x768xbf16>
    %c0_5 = arith.constant 0 : index
    %c0_6 = arith.constant 0 : index
    %c0_7 = arith.constant 0 : index
    %6 = vector.load %arg5[%c0_5, %c0_6, %c0_7] : memref<1x768x256xbf16, #tpu.memory_space<vmem>>, vector<1x768x256xbf16>
    %7 = vector.shape_cast %6 : vector<1x768x256xbf16> to vector<768x256xbf16>
    %cst = arith.constant dense<0.000000e+00> : vector<8x256xf32>
    %8 = tpu.matmul %5, %7, %cst {dimension_numbers = #tpu.dot_dimension_numbers<[1], [0], [0], [1], [0, 0, 1, 1], [], []>} : vector<8x768xbf16>, vector<768x256xbf16>, vector<8x256xf32> -> vector<8x256xf32>
    %9 = arith.addf %3, %8 : vector<8x256xf32>
    %c0_8 = arith.constant 0 : index
    %c0_9 = arith.constant 0 : index
    %10 = vector.load %arg8[%c0_8, %c0_9] : memref<8x256xf32, #tpu.memory_space<vmem>>, vector<8x256xf32>
    tpu.vector_store %arg8[%c0_8, %c0_9], %9 {strides = array<i32>} : memref<8x256xf32, #tpu.memory_space<vmem>>, vector<8x256xf32>,
    %c2_i32 = arith.constant 2 : i32
    %11 = arith.cmpi eq, %arg3, %c2_i32 : i32
    %12 = arith.extui %11 : i1 to i32
    %c0_i32_10 = arith.constant 0 : i32
    %13 = arith.cmpi ne, %12, %c0_i32_10 : i32
    scf.if %13 {
      %c0_11 = arith.constant 0 : index
      %c0_12 = arith.constant 0 : index
      %14 = vector.load %arg8[%c0_11, %c0_12] : memref<8x256xf32, #tpu.memory_space<vmem>>, vector<8x256xf32>
      %c0_13 = arith.constant 0 : index
      %c0_14 = arith.constant 0 : index
      %c0_15 = arith.constant 0 : index
      %15 = vector.load %arg6[%c0_13, %c0_14, %c0_15] : memref<1x1x256xf32, #tpu.memory_space<vmem>>, vector<1x1x256xf32>
      %16 = vector.shape_cast %15 : vector<1x1x256xf32> to vector<1x256xf32>
      %17 = vector.broadcast %16 : vector<1x256xf32> to vector<8x256xf32>
      %18 = arith.addf %14, %17 : vector<8x256xf32>
      %cst_16 = arith.constant 0.000000e+00 : f32
      %19 = vector.broadcast %cst_16 : f32 to vector<8x256xf32>
      %20 = arith.maximumf %18, %19 : vector<8x256xf32>
      %c0_17 = arith.constant 0 : index
      %c0_18 = arith.constant 0 : index
      %c0_19 = arith.constant 0 : index
      %21 = vector.load %arg7[%c0_17, %c0_18, %c0_19] : memref<1x8x256xf32, #tpu.memory_space<vmem>>, vector<1x8x256xf32>
      %22 = vector.shape_cast %21 : vector<1x8x256xf32> to vector<8x256xf32>
      %23 = vector.shape_cast %20 : vector<8x256xf32> to vector<1x8x256xf32>
      tpu.vector_store %arg7[%c0_17, %c0_18, %c0_19], %23 {strides = array<i32>} : memref<1x8x256xf32, #tpu.memory_space<vmem>>, vector<1x8x256xf32>,
    } else {
    }
    return
  }
  func.func @transform_0(%arg0: i32, %arg1: i32, %arg2: i32, %arg3: i32) -> (i32, i32, i32) {
    %c0_i32 = arith.constant 0 : i32
    return %arg0, %arg1, %arg3 : i32, i32, i32
  }
  func.func @transform_1(%arg0: i32, %arg1: i32, %arg2: i32, %arg3: i32) -> (i32, i32, i32) {
    %c0_i32 = arith.constant 0 : i32
    return %arg0, %arg3, %arg2 : i32, i32, i32
  }
  func.func @transform_2(%arg0: i32, %arg1: i32, %arg2: i32, %arg3: i32) -> (i32, i32, i32) {
    %c0_i32 = arith.constant 0 : i32
    %c0_i32_0 = arith.constant 0 : i32
    return %arg0, %c0_i32, %arg2 : i32, i32, i32
  }
  func.func @transform_3(%arg0: i32, %arg1: i32, %arg2: i32, %arg3: i32) -> (i32, i32, i32) {
    %c0_i32 = arith.constant 0 : i32
    return %arg0, %arg1, %arg2 : i32, i32, i32
  }
}

module attributes {stable_mosaic.version = 11 : i64} {
  func.func @_conv_matmul_kernel(%arg0: i32, %arg1: i32, %arg2: i32, %arg3: i32, %arg4: memref<1x8x768xbf16, #tpu.memory_space<vmem>>, %arg5: memref<1x768x256xbf16, #tpu.memory_space<vmem>>, %arg6: memref<1x1x256xf32, #tpu.memory_space<vmem>>, %arg7: memref<1x8x256xf32, #tpu.memory_space<vmem>>, %arg8: memref<8x256xf32, #tpu.memory_space<vmem>>) attributes {dimension_semantics = [#tpu.dimension_semantics<parallel>, #tpu.dimension_semantics<parallel>, #tpu.dimension_semantics<parallel>, #tpu.dimension_semantics<arbitrary>], iteration_bounds = array<i64: 2, 1, 2, 3>, scalar_prefetch = 0 : i64, scratch_operands = 1 : i64, tpu.core_type = #tpu.core_type<tc>, window_params = [{transform_indices = @transform_0, window_bounds = array<i64: 1, 8, 768>}, {transform_indices = @transform_1, window_bounds = array<i64: 1, 768, 256>}, {transform_indices = @transform_2, window_bounds = array<i64: 1, 1, 256>}, {transform_indices = @transform_3, window_bounds = array<i64: 1, 8, 256>}]} {
    %c0_i32 = arith.constant 0 : i32
    %0 = arith.cmpi eq, %arg3, %c0_i32 : i32
    %1 = arith.extui %0 : i1 to i32
    %c0_i32_0 = arith.constant 0 : i32
    %2 = arith.cmpi ne, %1, %c0_i32_0 : i32
    scf.if %2 {
      %cst_11 = arith.constant 0.000000e+00 : f32
      %14 = vector.broadcast %cst_11 : f32 to vector<8x256xf32>
      %c0_12 = arith.constant 0 : index
      %c0_13 = arith.constant 0 : index
      %15 = vector.load %arg8[%c0_12, %c0_13] : memref<8x256xf32, #tpu.memory_space<vmem>>, vector<8x256xf32>
      tpu.vector_store %arg8[%c0_12, %c0_13], %14 {strides = array<i32>} : memref<8x256xf32, #tpu.memory_space<vmem>>, vector<8x256xf32>,
    } else {
    }
    %c0 = arith.constant 0 : index
    %c0_1 = arith.constant 0 : index
    %3 = vector.load %arg8[%c0, %c0_1] : memref<8x256xf32, #tpu.memory_space<vmem>>, vector<8x256xf32>
    %c0_2 = arith.constant 0 : index
    %c0_3 = arith.constant 0 : index
    %c0_4 = arith.constant 0 : index
    %4 = vector.load %arg4[%c0_2, %c0_3, %c0_4] : memref<1x8x768xbf16, #tpu.memory_space<vmem>>, vector<1x8x768xbf16>
    %5 = vector.shape_cast %4 : vector<1x8x768xbf16> to vector<8x768xbf16>
    %c0_5 = arith.constant 0 : index
    %c0_6 = arith.constant 0 : index
    %c0_7 = arith.constant 0 : index
    %6 = vector.load %arg5[%c0_5, %c0_6, %c0_7] : memref<1x768x256xbf16, #tpu.memory_space<vmem>>, vector<1x768x256xbf16>
    %7 = vector.shape_cast %6 : vector<1x768x256xbf16> to vector<768x256xbf16>
    %cst = arith.constant dense<0.000000e+00> : vector<8x256xf32>
    %8 = tpu.matmul %5, %7, %cst {dimension_numbers = #tpu.dot_dimension_numbers<[1], [0], [0], [1], [0, 0, 1, 1], [], []>} : vector<8x768xbf16>, vector<768x256xbf16>, vector<8x256xf32> -> vector<8x256xf32>
    %9 = arith.addf %3, %8 : vector<8x256xf32>
    %c0_8 = arith.constant 0 : index
    %c0_9 = arith.constant 0 : index
    %10 = vector.load %arg8[%c0_8, %c0_9] : memref<8x256xf32, #tpu.memory_space<vmem>>, vector<8x256xf32>
    tpu.vector_store %arg8[%c0_8, %c0_9], %9 {strides = array<i32>} : memref<8x256xf32, #tpu.memory_space<vmem>>, vector<8x256xf32>,
    %c2_i32 = arith.constant 2 : i32
    %11 = arith.cmpi eq, %arg3, %c2_i32 : i32
    %12 = arith.extui %11 : i1 to i32
    %c0_i32_10 = arith.constant 0 : i32
    %13 = arith.cmpi ne, %12, %c0_i32_10 : i32
    scf.if %13 {
      %c0_11 = arith.constant 0 : index
      %c0_12 = arith.constant 0 : index
      %14 = vector.load %arg8[%c0_11, %c0_12] : memref<8x256xf32, #tpu.memory_space<vmem>>, vector<8x256xf32>
      %c0_13 = arith.constant 0 : index
      %c0_14 = arith.constant 0 : index
      %c0_15 = arith.constant 0 : index
      %15 = vector.load %arg6[%c0_13, %c0_14, %c0_15] : memref<1x1x256xf32, #tpu.memory_space<vmem>>, vector<1x1x256xf32>
      %16 = vector.shape_cast %15 : vector<1x1x256xf32> to vector<1x256xf32>
      %17 = vector.broadcast %16 : vector<1x256xf32> to vector<8x256xf32>
      %18 = arith.addf %14, %17 : vector<8x256xf32>
      %cst_16 = arith.constant 0.000000e+00 : f32
      %19 = vector.broadcast %cst_16 : f32 to vector<8x256xf32>
      %20 = arith.maximumf %18, %19 : vector<8x256xf32>
      %c0_17 = arith.constant 0 : index
      %c0_18 = arith.constant 0 : index
      %c0_19 = arith.constant 0 : index
      %21 = vector.load %arg7[%c0_17, %c0_18, %c0_19] : memref<1x8x256xf32, #tpu.memory_space<vmem>>, vector<1x8x256xf32>
      %22 = vector.shape_cast %21 : vector<1x8x256xf32> to vector<8x256xf32>
      %23 = vector.shape_cast %20 : vector<8x256xf32> to vector<1x8x256xf32>
      tpu.vector_store %arg7[%c0_17, %c0_18, %c0_19], %23 {strides = array<i32>} : memref<1x8x256xf32, #tpu.memory_space<vmem>>, vector<1x8x256xf32>,
    } else {
    }
    return
  }
  func.func @transform_0(%arg0: i32, %arg1: i32, %arg2: i32, %arg3: i32) -> (i32, i32, i32) {
    %c0_i32 = arith.constant 0 : i32
    return %arg0, %arg1, %arg3 : i32, i32, i32
  }
  func.func @transform_1(%arg0: i32, %arg1: i32, %arg2: i32, %arg3: i32) -> (i32, i32, i32) {
    %c0_i32 = arith.constant 0 : i32
    return %arg0, %arg3, %arg2 : i32, i32, i32
  }
  func.func @transform_2(%arg0: i32, %arg1: i32, %arg2: i32, %arg3: i32) -> (i32, i32, i32) {
    %c0_i32 = arith.constant 0 : i32
    %c0_i32_0 = arith.constant 0 : i32
    return %arg0, %c0_i32, %arg2 : i32, i32, i32
  }
  func.func @transform_3(%arg0: i32, %arg1: i32, %arg2: i32, %arg3: i32) -> (i32, i32, i32) {
    %c0_i32 = arith.constant 0 : i32
    return %arg0, %arg1, %arg2 : i32, i32, i32
  }
}

module attributes {stable_mosaic.version = 11 : i64} {
  func.func @_conv_matmul_kernel(%arg0: i32, %arg1: i32, %arg2: i32, %arg3: i32, %arg4: memref<1x8x256xbf16, #tpu.memory_space<vmem>>, %arg5: memref<1x256x256xbf16, #tpu.memory_space<vmem>>, %arg6: memref<1x1x256xf32, #tpu.memory_space<vmem>>, %arg7: memref<1x8x256xf32, #tpu.memory_space<vmem>>, %arg8: memref<8x256xf32, #tpu.memory_space<vmem>>) attributes {dimension_semantics = [#tpu.dimension_semantics<parallel>, #tpu.dimension_semantics<parallel>, #tpu.dimension_semantics<parallel>, #tpu.dimension_semantics<arbitrary>], iteration_bounds = array<i64: 2, 1, 2, 1>, scalar_prefetch = 0 : i64, scratch_operands = 1 : i64, tpu.core_type = #tpu.core_type<tc>, window_params = [{transform_indices = @transform_0, window_bounds = array<i64: 1, 8, 256>}, {transform_indices = @transform_1, window_bounds = array<i64: 1, 256, 256>}, {transform_indices = @transform_2, window_bounds = array<i64: 1, 1, 256>}, {transform_indices = @transform_3, window_bounds = array<i64: 1, 8, 256>}]} {
    %c0_i32 = arith.constant 0 : i32
    %0 = arith.cmpi eq, %arg3, %c0_i32 : i32
    %1 = arith.extui %0 : i1 to i32
    %c0_i32_0 = arith.constant 0 : i32
    %2 = arith.cmpi ne, %1, %c0_i32_0 : i32
    scf.if %2 {
      %cst_12 = arith.constant 0.000000e+00 : f32
      %14 = vector.broadcast %cst_12 : f32 to vector<8x256xf32>
      %c0_13 = arith.constant 0 : index
      %c0_14 = arith.constant 0 : index
      %15 = vector.load %arg8[%c0_13, %c0_14] : memref<8x256xf32, #tpu.memory_space<vmem>>, vector<8x256xf32>
      tpu.vector_store %arg8[%c0_13, %c0_14], %14 {strides = array<i32>} : memref<8x256xf32, #tpu.memory_space<vmem>>, vector<8x256xf32>,
    } else {
    }
    %c0 = arith.constant 0 : index
    %c0_1 = arith.constant 0 : index
    %3 = vector.load %arg8[%c0, %c0_1] : memref<8x256xf32, #tpu.memory_space<vmem>>, vector<8x256xf32>
    %c0_2 = arith.constant 0 : index
    %c0_3 = arith.constant 0 : index
    %c0_4 = arith.constant 0 : index
    %4 = vector.load %arg4[%c0_2, %c0_3, %c0_4] : memref<1x8x256xbf16, #tpu.memory_space<vmem>>, vector<1x8x256xbf16>
    %5 = vector.shape_cast %4 : vector<1x8x256xbf16> to vector<8x256xbf16>
    %c0_5 = arith.constant 0 : index
    %c0_6 = arith.constant 0 : index
    %c0_7 = arith.constant 0 : index
    %6 = vector.load %arg5[%c0_5, %c0_6, %c0_7] : memref<1x256x256xbf16, #tpu.memory_space<vmem>>, vector<1x256x256xbf16>
    %7 = vector.shape_cast %6 : vector<1x256x256xbf16> to vector<256x256xbf16>
    %cst = arith.constant dense<0.000000e+00> : vector<8x256xf32>
    %8 = tpu.matmul %5, %7, %cst {dimension_numbers = #tpu.dot_dimension_numbers<[1], [0], [0], [1], [0, 0, 1, 1], [], []>} : vector<8x256xbf16>, vector<256x256xbf16>, vector<8x256xf32> -> vector<8x256xf32>
    %9 = arith.addf %3, %8 : vector<8x256xf32>
    %c0_8 = arith.constant 0 : index
    %c0_9 = arith.constant 0 : index
    %10 = vector.load %arg8[%c0_8, %c0_9] : memref<8x256xf32, #tpu.memory_space<vmem>>, vector<8x256xf32>
    tpu.vector_store %arg8[%c0_8, %c0_9], %9 {strides = array<i32>} : memref<8x256xf32, #tpu.memory_space<vmem>>, vector<8x256xf32>,
    %c0_i32_10 = arith.constant 0 : i32
    %11 = arith.cmpi eq, %arg3, %c0_i32_10 : i32
    %12 = arith.extui %11 : i1 to i32
    %c0_i32_11 = arith.constant 0 : i32
    %13 = arith.cmpi ne, %12, %c0_i32_11 : i32
    scf.if %13 {
      %c0_12 = arith.constant 0 : index
      %c0_13 = arith.constant 0 : index
      %14 = vector.load %arg8[%c0_12, %c0_13] : memref<8x256xf32, #tpu.memory_space<vmem>>, vector<8x256xf32>
      %c0_14 = arith.constant 0 : index
      %c0_15 = arith.constant 0 : index
      %c0_16 = arith.constant 0 : index
      %15 = vector.load %arg6[%c0_14, %c0_15, %c0_16] : memref<1x1x256xf32, #tpu.memory_space<vmem>>, vector<1x1x256xf32>
      %16 = vector.shape_cast %15 : vector<1x1x256xf32> to vector<1x256xf32>
      %17 = vector.broadcast %16 : vector<1x256xf32> to vector<8x256xf32>
      %18 = arith.addf %14, %17 : vector<8x256xf32>
      %c0_17 = arith.constant 0 : index
      %c0_18 = arith.constant 0 : index
      %c0_19 = arith.constant 0 : index
      %19 = vector.load %arg7[%c0_17, %c0_18, %c0_19] : memref<1x8x256xf32, #tpu.memory_space<vmem>>, vector<1x8x256xf32>
      %20 = vector.shape_cast %19 : vector<1x8x256xf32> to vector<8x256xf32>
      %21 = vector.shape_cast %18 : vector<8x256xf32> to vector<1x8x256xf32>
      tpu.vector_store %arg7[%c0_17, %c0_18, %c0_19], %21 {strides = array<i32>} : memref<1x8x256xf32, #tpu.memory_space<vmem>>, vector<1x8x256xf32>,
    } else {
    }
    return
  }
  func.func @transform_0(%arg0: i32, %arg1: i32, %arg2: i32, %arg3: i32) -> (i32, i32, i32) {
    %c0_i32 = arith.constant 0 : i32
    return %arg0, %arg1, %arg3 : i32, i32, i32
  }
  func.func @transform_1(%arg0: i32, %arg1: i32, %arg2: i32, %arg3: i32) -> (i32, i32, i32) {
    %c0_i32 = arith.constant 0 : i32
    return %arg0, %arg3, %arg2 : i32, i32, i32
  }
  func.func @transform_2(%arg0: i32, %arg1: i32, %arg2: i32, %arg3: i32) -> (i32, i32, i32) {
    %c0_i32 = arith.constant 0 : i32
    %c0_i32_0 = arith.constant 0 : i32
    return %arg0, %c0_i32, %arg2 : i32, i32, i32
  }
  func.func @transform_3(%arg0: i32, %arg1: i32, %arg2: i32, %arg3: i32) -> (i32, i32, i32) {
    %c0_i32 = arith.constant 0 : i32
    return %arg0, %arg1, %arg2 : i32, i32, i32
  }
}

module attributes {stable_mosaic.version = 11 : i64} {
  func.func @_conv_matmul_res_kernel(%arg0: i32, %arg1: i32, %arg2: i32, %arg3: i32, %arg4: memref<1x8x768xbf16, #tpu.memory_space<vmem>>, %arg5: memref<1x768x256xbf16, #tpu.memory_space<vmem>>, %arg6: memref<1x1x256xf32, #tpu.memory_space<vmem>>, %arg7: memref<1x8x256xf32, #tpu.memory_space<vmem>>, %arg8: memref<1x8x256xf32, #tpu.memory_space<vmem>>, %arg9: memref<8x256xf32, #tpu.memory_space<vmem>>) attributes {dimension_semantics = [#tpu.dimension_semantics<parallel>, #tpu.dimension_semantics<parallel>, #tpu.dimension_semantics<parallel>, #tpu.dimension_semantics<arbitrary>], iteration_bounds = array<i64: 2, 1, 2, 6>, scalar_prefetch = 0 : i64, scratch_operands = 1 : i64, tpu.core_type = #tpu.core_type<tc>, window_params = [{transform_indices = @transform_0, window_bounds = array<i64: 1, 8, 768>}, {transform_indices = @transform_1, window_bounds = array<i64: 1, 768, 256>}, {transform_indices = @transform_2, window_bounds = array<i64: 1, 1, 256>}, {transform_indices = @transform_3, window_bounds = array<i64: 1, 8, 256>}, {transform_indices = @transform_4, window_bounds = array<i64: 1, 8, 256>}]} {
    %c0_i32 = arith.constant 0 : i32
    %0 = arith.cmpi eq, %arg3, %c0_i32 : i32
    %1 = arith.extui %0 : i1 to i32
    %c0_i32_0 = arith.constant 0 : i32
    %2 = arith.cmpi ne, %1, %c0_i32_0 : i32
    scf.if %2 {
      %cst_11 = arith.constant 0.000000e+00 : f32
      %14 = vector.broadcast %cst_11 : f32 to vector<8x256xf32>
      %c0_12 = arith.constant 0 : index
      %c0_13 = arith.constant 0 : index
      %15 = vector.load %arg9[%c0_12, %c0_13] : memref<8x256xf32, #tpu.memory_space<vmem>>, vector<8x256xf32>
      tpu.vector_store %arg9[%c0_12, %c0_13], %14 {strides = array<i32>} : memref<8x256xf32, #tpu.memory_space<vmem>>, vector<8x256xf32>,
    } else {
    }
    %c0 = arith.constant 0 : index
    %c0_1 = arith.constant 0 : index
    %3 = vector.load %arg9[%c0, %c0_1] : memref<8x256xf32, #tpu.memory_space<vmem>>, vector<8x256xf32>
    %c0_2 = arith.constant 0 : index
    %c0_3 = arith.constant 0 : index
    %c0_4 = arith.constant 0 : index
    %4 = vector.load %arg4[%c0_2, %c0_3, %c0_4] : memref<1x8x768xbf16, #tpu.memory_space<vmem>>, vector<1x8x768xbf16>
    %5 = vector.shape_cast %4 : vector<1x8x768xbf16> to vector<8x768xbf16>
    %c0_5 = arith.constant 0 : index
    %c0_6 = arith.constant 0 : index
    %c0_7 = arith.constant 0 : index
    %6 = vector.load %arg5[%c0_5, %c0_6, %c0_7] : memref<1x768x256xbf16, #tpu.memory_space<vmem>>, vector<1x768x256xbf16>
    %7 = vector.shape_cast %6 : vector<1x768x256xbf16> to vector<768x256xbf16>
    %cst = arith.constant dense<0.000000e+00> : vector<8x256xf32>
    %8 = tpu.matmul %5, %7, %cst {dimension_numbers = #tpu.dot_dimension_numbers<[1], [0], [0], [1], [0, 0, 1, 1], [], []>} : vector<8x768xbf16>, vector<768x256xbf16>, vector<8x256xf32> -> vector<8x256xf32>
    %9 = arith.addf %3, %8 : vector<8x256xf32>
    %c0_8 = arith.constant 0 : index
    %c0_9 = arith.constant 0 : index
    %10 = vector.load %arg9[%c0_8, %c0_9] : memref<8x256xf32, #tpu.memory_space<vmem>>, vector<8x256xf32>
    tpu.vector_store %arg9[%c0_8, %c0_9], %9 {strides = array<i32>} : memref<8x256xf32, #tpu.memory_space<vmem>>, vector<8x256xf32>,
    %c5_i32 = arith.constant 5 : i32
    %11 = arith.cmpi eq, %arg3, %c5_i32 : i32
    %12 = arith.extui %11 : i1 to i32
    %c0_i32_10 = arith.constant 0 : i32
    %13 = arith.cmpi ne, %12, %c0_i32_10 : i32
    scf.if %13 {
      %c0_11 = arith.constant 0 : index
      %c0_12 = arith.constant 0 : index
      %14 = vector.load %arg9[%c0_11, %c0_12] : memref<8x256xf32, #tpu.memory_space<vmem>>, vector<8x256xf32>
      %c0_13 = arith.constant 0 : index
      %c0_14 = arith.constant 0 : index
      %c0_15 = arith.constant 0 : index
      %15 = vector.load %arg6[%c0_13, %c0_14, %c0_15] : memref<1x1x256xf32, #tpu.memory_space<vmem>>, vector<1x1x256xf32>
      %16 = vector.shape_cast %15 : vector<1x1x256xf32> to vector<1x256xf32>
      %17 = vector.broadcast %16 : vector<1x256xf32> to vector<8x256xf32>
      %18 = arith.addf %14, %17 : vector<8x256xf32>
      %c0_16 = arith.constant 0 : index
      %c0_17 = arith.constant 0 : index
      %c0_18 = arith.constant 0 : index
      %19 = vector.load %arg7[%c0_16, %c0_17, %c0_18] : memref<1x8x256xf32, #tpu.memory_space<vmem>>, vector<1x8x256xf32>
      %20 = vector.shape_cast %19 : vector<1x8x256xf32> to vector<8x256xf32>
      %21 = arith.addf %18, %20 : vector<8x256xf32>
      %cst_19 = arith.constant 0.000000e+00 : f32
      %22 = vector.broadcast %cst_19 : f32 to vector<8x256xf32>
      %23 = arith.maximumf %21, %22 : vector<8x256xf32>
      %c0_20 = arith.constant 0 : index
      %c0_21 = arith.constant 0 : index
      %c0_22 = arith.constant 0 : index
      %24 = vector.load %arg8[%c0_20, %c0_21, %c0_22] : memref<1x8x256xf32, #tpu.memory_space<vmem>>, vector<1x8x256xf32>
      %25 = vector.shape_cast %24 : vector<1x8x256xf32> to vector<8x256xf32>
      %26 = vector.shape_cast %23 : vector<8x256xf32> to vector<1x8x256xf32>
      tpu.vector_store %arg8[%c0_20, %c0_21, %c0_22], %26 {strides = array<i32>} : memref<1x8x256xf32, #tpu.memory_space<vmem>>, vector<1x8x256xf32>,
    } else {
    }
    return
  }
  func.func @transform_0(%arg0: i32, %arg1: i32, %arg2: i32, %arg3: i32) -> (i32, i32, i32) {
    %c0_i32 = arith.constant 0 : i32
    return %arg0, %arg1, %arg3 : i32, i32, i32
  }
  func.func @transform_1(%arg0: i32, %arg1: i32, %arg2: i32, %arg3: i32) -> (i32, i32, i32) {
    %c0_i32 = arith.constant 0 : i32
    return %arg0, %arg3, %arg2 : i32, i32, i32
  }
  func.func @transform_2(%arg0: i32, %arg1: i32, %arg2: i32, %arg3: i32) -> (i32, i32, i32) {
    %c0_i32 = arith.constant 0 : i32
    %c0_i32_0 = arith.constant 0 : i32
    return %arg0, %c0_i32, %arg2 : i32, i32, i32
  }
  func.func @transform_3(%arg0: i32, %arg1: i32, %arg2: i32, %arg3: i32) -> (i32, i32, i32) {
    %c0_i32 = arith.constant 0 : i32
    return %arg0, %arg1, %arg2 : i32, i32, i32
  }
  func.func @transform_4(%arg0: i32, %arg1: i32, %arg2: i32, %arg3: i32) -> (i32, i32, i32) {
    %c0_i32 = arith.constant 0 : i32
    return %arg0, %arg1, %arg2 : i32, i32, i32
  }
}

module attributes {stable_mosaic.version = 11 : i64} {
  func.func @_conv_matmul_kernel(%arg0: i32, %arg1: i32, %arg2: i32, %arg3: i32, %arg4: memref<1x8x768xbf16, #tpu.memory_space<vmem>>, %arg5: memref<1x768x256xbf16, #tpu.memory_space<vmem>>, %arg6: memref<1x1x256xf32, #tpu.memory_space<vmem>>, %arg7: memref<1x8x256xf32, #tpu.memory_space<vmem>>, %arg8: memref<8x256xf32, #tpu.memory_space<vmem>>) attributes {dimension_semantics = [#tpu.dimension_semantics<parallel>, #tpu.dimension_semantics<parallel>, #tpu.dimension_semantics<parallel>, #tpu.dimension_semantics<arbitrary>], iteration_bounds = array<i64: 2, 1, 2, 6>, scalar_prefetch = 0 : i64, scratch_operands = 1 : i64, tpu.core_type = #tpu.core_type<tc>, window_params = [{transform_indices = @transform_0, window_bounds = array<i64: 1, 8, 768>}, {transform_indices = @transform_1, window_bounds = array<i64: 1, 768, 256>}, {transform_indices = @transform_2, window_bounds = array<i64: 1, 1, 256>}, {transform_indices = @transform_3, window_bounds = array<i64: 1, 8, 256>}]} {
    %c0_i32 = arith.constant 0 : i32
    %0 = arith.cmpi eq, %arg3, %c0_i32 : i32
    %1 = arith.extui %0 : i1 to i32
    %c0_i32_0 = arith.constant 0 : i32
    %2 = arith.cmpi ne, %1, %c0_i32_0 : i32
    scf.if %2 {
      %cst_11 = arith.constant 0.000000e+00 : f32
      %14 = vector.broadcast %cst_11 : f32 to vector<8x256xf32>
      %c0_12 = arith.constant 0 : index
      %c0_13 = arith.constant 0 : index
      %15 = vector.load %arg8[%c0_12, %c0_13] : memref<8x256xf32, #tpu.memory_space<vmem>>, vector<8x256xf32>
      tpu.vector_store %arg8[%c0_12, %c0_13], %14 {strides = array<i32>} : memref<8x256xf32, #tpu.memory_space<vmem>>, vector<8x256xf32>,
    } else {
    }
    %c0 = arith.constant 0 : index
    %c0_1 = arith.constant 0 : index
    %3 = vector.load %arg8[%c0, %c0_1] : memref<8x256xf32, #tpu.memory_space<vmem>>, vector<8x256xf32>
    %c0_2 = arith.constant 0 : index
    %c0_3 = arith.constant 0 : index
    %c0_4 = arith.constant 0 : index
    %4 = vector.load %arg4[%c0_2, %c0_3, %c0_4] : memref<1x8x768xbf16, #tpu.memory_space<vmem>>, vector<1x8x768xbf16>
    %5 = vector.shape_cast %4 : vector<1x8x768xbf16> to vector<8x768xbf16>
    %c0_5 = arith.constant 0 : index
    %c0_6 = arith.constant 0 : index
    %c0_7 = arith.constant 0 : index
    %6 = vector.load %arg5[%c0_5, %c0_6, %c0_7] : memref<1x768x256xbf16, #tpu.memory_space<vmem>>, vector<1x768x256xbf16>
    %7 = vector.shape_cast %6 : vector<1x768x256xbf16> to vector<768x256xbf16>
    %cst = arith.constant dense<0.000000e+00> : vector<8x256xf32>
    %8 = tpu.matmul %5, %7, %cst {dimension_numbers = #tpu.dot_dimension_numbers<[1], [0], [0], [1], [0, 0, 1, 1], [], []>} : vector<8x768xbf16>, vector<768x256xbf16>, vector<8x256xf32> -> vector<8x256xf32>
    %9 = arith.addf %3, %8 : vector<8x256xf32>
    %c0_8 = arith.constant 0 : index
    %c0_9 = arith.constant 0 : index
    %10 = vector.load %arg8[%c0_8, %c0_9] : memref<8x256xf32, #tpu.memory_space<vmem>>, vector<8x256xf32>
    tpu.vector_store %arg8[%c0_8, %c0_9], %9 {strides = array<i32>} : memref<8x256xf32, #tpu.memory_space<vmem>>, vector<8x256xf32>,
    %c5_i32 = arith.constant 5 : i32
    %11 = arith.cmpi eq, %arg3, %c5_i32 : i32
    %12 = arith.extui %11 : i1 to i32
    %c0_i32_10 = arith.constant 0 : i32
    %13 = arith.cmpi ne, %12, %c0_i32_10 : i32
    scf.if %13 {
      %c0_11 = arith.constant 0 : index
      %c0_12 = arith.constant 0 : index
      %14 = vector.load %arg8[%c0_11, %c0_12] : memref<8x256xf32, #tpu.memory_space<vmem>>, vector<8x256xf32>
      %c0_13 = arith.constant 0 : index
      %c0_14 = arith.constant 0 : index
      %c0_15 = arith.constant 0 : index
      %15 = vector.load %arg6[%c0_13, %c0_14, %c0_15] : memref<1x1x256xf32, #tpu.memory_space<vmem>>, vector<1x1x256xf32>
      %16 = vector.shape_cast %15 : vector<1x1x256xf32> to vector<1x256xf32>
      %17 = vector.broadcast %16 : vector<1x256xf32> to vector<8x256xf32>
      %18 = arith.addf %14, %17 : vector<8x256xf32>
      %cst_16 = arith.constant 0.000000e+00 : f32
      %19 = vector.broadcast %cst_16 : f32 to vector<8x256xf32>
      %20 = arith.maximumf %18, %19 : vector<8x256xf32>
      %c0_17 = arith.constant 0 : index
      %c0_18 = arith.constant 0 : index
      %c0_19 = arith.constant 0 : index
      %21 = vector.load %arg7[%c0_17, %c0_18, %c0_19] : memref<1x8x256xf32, #tpu.memory_space<vmem>>, vector<1x8x256xf32>
      %22 = vector.shape_cast %21 : vector<1x8x256xf32> to vector<8x256xf32>
      %23 = vector.shape_cast %20 : vector<8x256xf32> to vector<1x8x256xf32>
      tpu.vector_store %arg7[%c0_17, %c0_18, %c0_19], %23 {strides = array<i32>} : memref<1x8x256xf32, #tpu.memory_space<vmem>>, vector<1x8x256xf32>,
    } else {
    }
    return
  }
  func.func @transform_0(%arg0: i32, %arg1: i32, %arg2: i32, %arg3: i32) -> (i32, i32, i32) {
    %c0_i32 = arith.constant 0 : i32
    return %arg0, %arg1, %arg3 : i32, i32, i32
  }
  func.func @transform_1(%arg0: i32, %arg1: i32, %arg2: i32, %arg3: i32) -> (i32, i32, i32) {
    %c0_i32 = arith.constant 0 : i32
    return %arg0, %arg3, %arg2 : i32, i32, i32
  }
  func.func @transform_2(%arg0: i32, %arg1: i32, %arg2: i32, %arg3: i32) -> (i32, i32, i32) {
    %c0_i32 = arith.constant 0 : i32
    %c0_i32_0 = arith.constant 0 : i32
    return %arg0, %c0_i32, %arg2 : i32, i32, i32
  }
  func.func @transform_3(%arg0: i32, %arg1: i32, %arg2: i32, %arg3: i32) -> (i32, i32, i32) {
    %c0_i32 = arith.constant 0 : i32
    return %arg0, %arg1, %arg2 : i32, i32, i32
  }
}

module attributes {stable_mosaic.version = 11 : i64} {
  func.func @_head_kernel(%arg0: memref<8x512xf32, #tpu.memory_space<vmem>>, %arg1: memref<8x512xf32, #tpu.memory_space<vmem>>, %arg2: memref<512x128xf32, #tpu.memory_space<vmem>>, %arg3: memref<1x128xf32, #tpu.memory_space<vmem>>, %arg4: memref<512x128xf32, #tpu.memory_space<vmem>>, %arg5: memref<1x128xf32, #tpu.memory_space<vmem>>, %arg6: memref<128x128xf32, #tpu.memory_space<vmem>>, %arg7: memref<1x128xf32, #tpu.memory_space<vmem>>, %arg8: memref<8x128xf32, #tpu.memory_space<vmem>>, %arg9: memref<8x128xf32, #tpu.memory_space<vmem>>, %arg10: memref<8x128xf32, #tpu.memory_space<vmem>>) attributes {dimension_semantics = [], scalar_prefetch = 0 : i64, scratch_operands = 0 : i64, tpu.core_type = #tpu.core_type<tc>} {
    %c0 = arith.constant 0 : index
    %c0_0 = arith.constant 0 : index
    %0 = vector.load %arg0[%c0, %c0_0] : memref<8x512xf32, #tpu.memory_space<vmem>>, vector<8x512xf32>
    %c0_1 = arith.constant 0 : index
    %c0_2 = arith.constant 0 : index
    %1 = vector.load %arg2[%c0_1, %c0_2] : memref<512x128xf32, #tpu.memory_space<vmem>>, vector<512x128xf32>
    %cst = arith.constant dense<0.000000e+00> : vector<8x128xf32>
    %2 = tpu.matmul %0, %1, %cst {dimension_numbers = #tpu.dot_dimension_numbers<[1], [0], [0], [1], [0, 0, 1, 1], [], []>} : vector<8x512xf32>, vector<512x128xf32>, vector<8x128xf32> -> vector<8x128xf32>
    %c0_3 = arith.constant 0 : index
    %c0_4 = arith.constant 0 : index
    %3 = vector.load %arg3[%c0_3, %c0_4] : memref<1x128xf32, #tpu.memory_space<vmem>>, vector<1x128xf32>
    %4 = vector.broadcast %3 : vector<1x128xf32> to vector<8x128xf32>
    %5 = arith.addf %2, %4 : vector<8x128xf32>
    %c0_5 = arith.constant 0 : index
    %c0_6 = arith.constant 0 : index
    %6 = vector.load %arg1[%c0_5, %c0_6] : memref<8x512xf32, #tpu.memory_space<vmem>>, vector<8x512xf32>
    %c0_7 = arith.constant 0 : index
    %c0_8 = arith.constant 0 : index
    %7 = vector.load %arg4[%c0_7, %c0_8] : memref<512x128xf32, #tpu.memory_space<vmem>>, vector<512x128xf32>
    %cst_9 = arith.constant dense<0.000000e+00> : vector<8x128xf32>
    %8 = tpu.matmul %6, %7, %cst_9 {dimension_numbers = #tpu.dot_dimension_numbers<[1], [0], [0], [1], [0, 0, 1, 1], [], []>} : vector<8x512xf32>, vector<512x128xf32>, vector<8x128xf32> -> vector<8x128xf32>
    %c0_10 = arith.constant 0 : index
    %c0_11 = arith.constant 0 : index
    %9 = vector.load %arg5[%c0_10, %c0_11] : memref<1x128xf32, #tpu.memory_space<vmem>>, vector<1x128xf32>
    %10 = vector.broadcast %9 : vector<1x128xf32> to vector<8x128xf32>
    %11 = arith.addf %8, %10 : vector<8x128xf32>
    %c0_12 = arith.constant 0 : index
    %c0_13 = arith.constant 0 : index
    %12 = vector.load %arg6[%c0_12, %c0_13] : memref<128x128xf32, #tpu.memory_space<vmem>>, vector<128x128xf32>
    %cst_14 = arith.constant dense<0.000000e+00> : vector<8x128xf32>
    %13 = tpu.matmul %11, %12, %cst_14 {dimension_numbers = #tpu.dot_dimension_numbers<[1], [0], [0], [1], [0, 0, 1, 1], [], []>} : vector<8x128xf32>, vector<128x128xf32>, vector<8x128xf32> -> vector<8x128xf32>
    %c0_15 = arith.constant 0 : index
    %c0_16 = arith.constant 0 : index
    %14 = vector.load %arg7[%c0_15, %c0_16] : memref<1x128xf32, #tpu.memory_space<vmem>>, vector<1x128xf32>
    %15 = vector.broadcast %14 : vector<1x128xf32> to vector<8x128xf32>
    %16 = arith.addf %13, %15 : vector<8x128xf32>
    %c0_17 = arith.constant 0 : index
    %c0_18 = arith.constant 0 : index
    %17 = vector.load %arg8[%c0_17, %c0_18] : memref<8x128xf32, #tpu.memory_space<vmem>>, vector<8x128xf32>
    tpu.vector_store %arg8[%c0_17, %c0_18], %5 {strides = array<i32>} : memref<8x128xf32, #tpu.memory_space<vmem>>, vector<8x128xf32>,
    %c0_19 = arith.constant 0 : index
    %c0_20 = arith.constant 0 : index
    %18 = vector.load %arg9[%c0_19, %c0_20] : memref<8x128xf32, #tpu.memory_space<vmem>>, vector<8x128xf32>
    tpu.vector_store %arg9[%c0_19, %c0_20], %11 {strides = array<i32>} : memref<8x128xf32, #tpu.memory_space<vmem>>, vector<8x128xf32>,
    %c0_21 = arith.constant 0 : index
    %c0_22 = arith.constant 0 : index
    %19 = vector.load %arg10[%c0_21, %c0_22] : memref<8x128xf32, #tpu.memory_space<vmem>>, vector<8x128xf32>
    tpu.vector_store %arg10[%c0_21, %c0_22], %16 {strides = array<i32>} : memref<8x128xf32, #tpu.memory_space<vmem>>, vector<8x128xf32>,
    return
  }
}

</mosaic_0001>

<bundles_post_ra>
// kernel: encoder_forward.21
= control target key start
LH: loop header
LB: loop body
LE: loop exit
PB: predicated region body
PF: predicated region fallthrough
CT: control target
= control target key end

     0   :  { %s2085_s12 = smov 0   ;;  %s2087_s13 = smov 0   ;;  %s2500_s0 = inlined_call_operand.vmem [shape: bf16[1,512,256], index: 0, kind: input, shape index: {}]   ;;  %s2501_s1 = inlined_call_operand.vmem [shape: bf16[2,256,128], index: 1, kind: input, shape index: {}]   ;;  %s2502_s2 = inlined_call_operand.vmem [shape: f32[2,1,128], index: 2, kind: input, shape index: {}]   ;;  %s2503_s3 = inlined_call_operand.vmem [shape: f32[2,512,128], index: 3, kind: output, shape index: {}]  }
   0x1   :  { %s2089_s14 = smov 0  }
   0x2 LB: > { %s39_s15 = sadd.s32 1, %s2058_s13  ;;  %p1781_p0 = scmp.ge.s32.totalorder %s2062_s14, 1  ;;  %s2062_s14 = sphi %s2089_s14, %s13_s14   ;;  %s2058_s13 = sphi %s2087_s13, %s2505_s13   ;;  %s2054_s12 = sphi %s2085_s12, %s2504_s12  }
   0x3   : > { %p41_p1 = scmp.ge.s32.totalorder %s39_s15, 2  ;;  %p211_p2 = scmp.lt.s32.totalorder %s2062_s14, 3 }
   0x5   : > { %s2507_s15 = smov (%p41_p1, %s39_s15), 0  ;;  %p212_p3 = pnand %p1781_p0, %p211_p2 }
   0x6   : > { %p278_p4 = scmp.lt.s32.totalorder (!%p212_p3), %s2054_s12, 1  ;;  %v2064_v0 = vmov (!%p212_p3), 0   ;;  %v1946_v1 = vld [vmem:[%s2500_s0 + $0x4] ss:$8 sps:$4 sm:$0xff] (!%p212_p3)   ;;  %v1944_v19 = vld [vmem:[%s2500_s0] ss:$8 sps:$4 sm:$0xff] (!%p212_p3)  }
   0x7   : > { %215 = sbr.rel (%p212_p3) target bundleno = 420 (0x1a4), region = 32  ;;  %954 = vmatprep.subr.bf16.mxu0 (!%p212_p3), %v2064_v0  ;;  %1871 = vmatprep.subr.bf16.mxu1 (!%p212_p3), %v2064_v0  ;;  %v1949_v2 = vld [vmem:[%s2500_s0 + $0x104] ss:$8 sps:$4 sm:$0xff] (!%p212_p3)   ;;  %v1947_v20 = vld [vmem:[%s2500_s0 + $0x100] ss:$8 sps:$4 sm:$0xff] (!%p212_p3)  }
   0x8   : > { %986 = vmatprep.mubr.bf16.mxu0 (!%p212_p3), %v1946_v1  ;;  %1114 = vmatprep.mubr.bf16.mxu1 (!%p212_p3), %v1949_v2  ;;  %v1950_v21 = vld [vmem:[%s2500_s0 + $0x14] ss:$8 sps:$4 sm:$0xff] (!%p212_p3)   ;;  %v1954_v23 = vld [vmem:[%s2500_s0 + $0x10] ss:$8 sps:$4 sm:$0xff] (!%p212_p3)   ;;  %v1956_v25 = vld [vmem:[%s2500_s0 + $0x24] ss:$8 sps:$4 sm:$0xff] (!%p212_p3)  }
   0x9   : > { %v1952_v22 = vld [vmem:[%s2500_s0 + $0x114] ss:$8 sps:$4 sm:$0xff] (!%p212_p3)   ;;  %v1955_v24 = vld [vmem:[%s2500_s0 + $0x110] ss:$8 sps:$4 sm:$0xff] (!%p212_p3)   ;;  %v1958_v26 = vld [vmem:[%s2500_s0 + $0x124] ss:$8 sps:$4 sm:$0xff] (!%p212_p3)  }
   0xa   : > { %v1960_v27 = vld [vmem:[%s2500_s0 + $0x20] ss:$8 sps:$4 sm:$0xff] (!%p212_p3)   ;;  %v1962_v29 = vld [vmem:[%s2500_s0 + $0x34] ss:$8 sps:$4 sm:$0xff] (!%p212_p3)   ;;  %v1966_v31 = vld [vmem:[%s2500_s0 + $0x30] ss:$8 sps:$4 sm:$0xff] (!%p212_p3)  }
   0xb   : > { %v1961_v28 = vld [vmem:[%s2500_s0 + $0x120] ss:$8 sps:$4 sm:$0xff] (!%p212_p3)   ;;  %v1964_v30 = vld [vmem:[%s2500_s0 + $0x134] ss:$8 sps:$4 sm:$0xff] (!%p212_p3)   ;;  %v1967_v32 = vld [vmem:[%s2500_s0 + $0x130] ss:$8 sps:$4 sm:$0xff] (!%p212_p3)  }
   0xc   : > { %v1968_v33 = vld [vmem:[%s2500_s0 + $0x44] ss:$8 sps:$4 sm:$0xff] (!%p212_p3)   ;;  %v1972_v35 = vld [vmem:[%s2500_s0 + $0x40] ss:$8 sps:$4 sm:$0xff] (!%p212_p3)   ;;  %v1974_v37 = vld [vmem:[%s2500_s0 + $0x54] ss:$8 sps:$4 sm:$0xff] (!%p212_p3)  }
   0xd   : > { %v1970_v34 = vld [vmem:[%s2500_s0 + $0x144] ss:$8 sps:$4 sm:$0xff] (!%p212_p3)   ;;  %v1973_v36 = vld [vmem:[%s2500_s0 + $0x140] ss:$8 sps:$4 sm:$0xff] (!%p212_p3)   ;;  %v1976_v38 = vld [vmem:[%s2500_s0 + $0x154] ss:$8 sps:$4 sm:$0xff] (!%p212_p3)  }
   0xe   : > { %s2509_s12 = smov (!%p278_p4, %s2054_s12), 1  ;;  %v1978_v39 = vld [vmem:[%s2500_s0 + $0x50] ss:$8 sps:$4 sm:$0xff]   ;;  %v1980_v41 = vld [vmem:[%s2500_s0 + $0x64] ss:$8 sps:$4 sm:$0xff]  }
   0xf   : > { %s1869_s20 = sshll.u32 %s2509_s12, 7  ;;  %v1979_v40 = vld [vmem:[%s2500_s0 + $0x150] ss:$8 sps:$4 sm:$0xff]   ;;  %v1982_v42 = vld [vmem:[%s2500_s0 + $0x164] ss:$8 sps:$4 sm:$0xff]   ;;  %s295_s8 = scalar_lea.vmem %s2502_s2, %s2509_s12 }
  0x10   : > { %s2117_s23 = scalar_lea.vmem %s2501_s1, %s1869_s20  ;;  %v1984_v43 = vld [vmem:[%s2500_s0 + $0x60] ss:$8 sps:$4 sm:$0xff]   ;;  %v1986_v45 = vld [vmem:[%s2500_s0 + $0x74] ss:$8 sps:$4 sm:$0xff]   ;;  %v1990_v47 = vld [vmem:[%s2500_s0 + $0x70] ss:$8 sps:$4 sm:$0xff]  }
  0x11   : > { %v1928_v3 = vld [vmem:[%s2117_s23] sm:$0xff]   ;;  %v1929_v4 = vld [vmem:[%s2117_s23 + $0x8] sm:$0xff]   ;;  %v1930_v5 = vld [vmem:[%s2117_s23 + $0x10] sm:$0xff]   ;;  %s1870_s9 = sshll.u32 %s2509_s12, 9 }
  0x12   : > { %955 = vmatpush1.bf16.msra.mxu0 %v1928_v3  ;;  %1887 = vmatpush1.bf16.msra.mxu1 %v1928_v3  ;;  %v1931_v6 = vld [vmem:[%s2117_s23 + $0x18] sm:$0xff]   ;;  %v1932_v7 = vld [vmem:[%s2117_s23 + $0x20] sm:$0xff]   ;;  %v1933_v8 = vld [vmem:[%s2117_s23 + $0x28] sm:$0xff]   ;;  %s2363_s16 = scalar_lea.vmem %s2503_s3, %s1870_s9 }
  0x13   : > { %956 = vmatprep.subr.bf16.mxu0 %v2064_v0  ;;  %1872 = vmatprep.subr.bf16.mxu1 %v2064_v0  ;;  %v1934_v9 = vld [vmem:[%s2117_s23 + $0x30] sm:$0xff]   ;;  %v1935_v10 = vld [vmem:[%s2117_s23 + $0x38] sm:$0xff]   ;;  %v1936_v11 = vld [vmem:[%s2117_s23 + $0x40] sm:$0xff]  }
  0x14   : > { %v1937_v12 = vld [vmem:[%s2117_s23 + $0x48] sm:$0xff]   ;;  %v1938_v13 = vld [vmem:[%s2117_s23 + $0x50] sm:$0xff]   ;;  %v1939_v14 = vld [vmem:[%s2117_s23 + $0x58] sm:$0xff]  }
  0x15   : > { %v1940_v15 = vld [vmem:[%s2117_s23 + $0x60] sm:$0xff]   ;;  %v1941_v16 = vld [vmem:[%s2117_s23 + $0x68] sm:$0xff]   ;;  %v1942_v17 = vld [vmem:[%s2117_s23 + $0x70] sm:$0xff]  }
  0x16   : > { %957 = vmatpush1.bf16.msra.mxu0 %v1929_v4  ;;  %1888 = vmatpush1.bf16.msra.mxu1 %v1929_v4  ;;  %v1943_v18 = vld [vmem:[%s2117_s23 + $0x78] sm:$0xff]   ;;  %v1985_v44 = vld [vmem:[%s2500_s0 + $0x160] ss:$8 sps:$4 sm:$0xff]   ;;  %v1992_v49 = vld [vmem:[%s2500_s0 + $0x84] ss:$8 sps:$4 sm:$0xff]  }
  0x17   : > { %958 = vmatprep.subr.bf16.mxu0 %v2064_v0  ;;  %1873 = vmatprep.subr.bf16.mxu1 %v2064_v0  ;;  %v1988_v46 = vld [vmem:[%s2500_s0 + $0x174] ss:$8 sps:$4 sm:$0xff]   ;;  %v1991_v48 = vld [vmem:[%s2500_s0 + $0x170] ss:$8 sps:$4 sm:$0xff]   ;;  %v1994_v50 = vld [vmem:[%s2500_s0 + $0x184] ss:$8 sps:$4 sm:$0xff]  }
  0x18   : > { %v1996_v51 = vld [vmem:[%s2500_s0 + $0x80] ss:$8 sps:$4 sm:$0xff]   ;;  %v1998_v53 = vld [vmem:[%s2500_s0 + $0x94] ss:$8 sps:$4 sm:$0xff]   ;;  %v2002_v55 = vld [vmem:[%s2500_s0 + $0x90] ss:$8 sps:$4 sm:$0xff]  }
  0x19   : > { %v1997_v52 = vld [vmem:[%s2500_s0 + $0x180] ss:$8 sps:$4 sm:$0xff]   ;;  %v2000_v54 = vld [vmem:[%s2500_s0 + $0x194] ss:$8 sps:$4 sm:$0xff]   ;;  %v2003_v56 = vld [vmem:[%s2500_s0 + $0x190] ss:$8 sps:$4 sm:$0xff]  }
  0x1a   : > { %959 = vmatpush1.bf16.msra.mxu0 %v1930_v5  ;;  %1889 = vmatpush1.bf16.msra.mxu1 %v1930_v5  ;;  %v2004_v57 = vld [vmem:[%s2500_s0 + $0xa4] ss:$8 sps:$4 sm:$0xff]   ;;  %v2008_v59 = vld [vmem:[%s2500_s0 + $0xa0] ss:$8 sps:$4 sm:$0xff]   ;;  %v2010_v61 = vld [vmem:[%s2500_s0 + $0xb4] ss:$8 sps:$4 sm:$0xff]  }
  0x1b   : > { %960 = vmatprep.subr.bf16.mxu0 %v2064_v0  ;;  %1874 = vmatprep.subr.bf16.mxu1 %v2064_v0  ;;  %v2006_v58 = vld [vmem:[%s2500_s0 + $0x1a4] ss:$8 sps:$4 sm:$0xff]   ;;  %v2009_v60 = vld [vmem:[%s2500_s0 + $0x1a0] ss:$8 sps:$4 sm:$0xff]   ;;  %v2012_v62 = vld [vmem:[%s2500_s0 + $0x1b4] ss:$8 sps:$4 sm:$0xff]  }
  0x1c   : > { %v2014_v63 = vld [vmem:[%s2500_s0 + $0xb0] ss:$8 sps:$4 sm:$0xff]   ;;  %v2016_v1 = vld [vmem:[%s2500_s0 + $0xc4] ss:$8 sps:$4 sm:$0xff]   ;;  %v2020_v3 = vld [vmem:[%s2500_s0 + $0xc0] ss:$8 sps:$4 sm:$0xff]  }
  0x1d   : > { %v2018_v2 = vld [vmem:[%s2500_s0 + $0x1c4] ss:$8 sps:$4 sm:$0xff]   ;;  %v2021_v4 = vld [vmem:[%s2500_s0 + $0x1c0] ss:$8 sps:$4 sm:$0xff]   ;;  %v2022_v5 = vld [vmem:[%s2500_s0 + $0xd4] ss:$8 sps:$4 sm:$0xff]  }
  0x1e   : > { %961 = vmatpush1.bf16.msra.mxu0 %v1931_v6  ;;  %1890 = vmatpush1.bf16.msra.mxu1 %v1931_v6  ;;  %v2024_v6 = vld [vmem:[%s2500_s0 + $0x1d4] ss:$8 sps:$4 sm:$0xff]  }
  0x1f   : > { %962 = vmatprep.subr.bf16.mxu0 %v2064_v0  ;;  %1875 = vmatprep.subr.bf16.mxu1 %v2064_v0 }
  0x22   : > { %963 = vmatpush1.bf16.msra.mxu0 %v1932_v7  ;;  %1891 = vmatpush1.bf16.msra.mxu1 %v1932_v7  ;;  %v2026_v7 = vld [vmem:[%s2500_s0 + $0xd0] ss:$8 sps:$4 sm:$0xff]  }
  0x23   : > { %964 = vmatprep.subr.bf16.mxu0 %v2064_v0  ;;  %1876 = vmatprep.subr.bf16.mxu1 %v2064_v0 }
  0x26   : > { %965 = vmatpush1.bf16.msra.mxu0 %v1933_v8  ;;  %1892 = vmatpush1.bf16.msra.mxu1 %v1933_v8  ;;  %v2027_v8 = vld [vmem:[%s2500_s0 + $0x1d0] ss:$8 sps:$4 sm:$0xff]  }
  0x27   : > { %966 = vmatprep.subr.bf16.mxu0 %v2064_v0  ;;  %1877 = vmatprep.subr.bf16.mxu1 %v2064_v0 }
  0x2a   : > { %967 = vmatpush1.bf16.msra.mxu0 %v1934_v9  ;;  %1893 = vmatpush1.bf16.msra.mxu1 %v1934_v9  ;;  %v2028_v9 = vld [vmem:[%s2500_s0 + $0xe4] ss:$8 sps:$4 sm:$0xff]  }
  0x2b   : > { %968 = vmatprep.subr.bf16.mxu0 %v2064_v0  ;;  %1878 = vmatprep.subr.bf16.mxu1 %v2064_v0 }
  0x2e   : > { %969 = vmatpush1.bf16.msra.mxu0 %v1935_v10  ;;  %1894 = vmatpush1.bf16.msra.mxu1 %v1935_v10  ;;  %v2030_v10 = vld [vmem:[%s2500_s0 + $0x1e4] ss:$8 sps:$4 sm:$0xff]  }
  0x2f   : > { %970 = vmatprep.subr.bf16.mxu0 %v2064_v0  ;;  %1879 = vmatprep.subr.bf16.mxu1 %v2064_v0 }
  0x32   : > { %971 = vmatpush1.bf16.msra.mxu0 %v1936_v11  ;;  %1895 = vmatpush1.bf16.msra.mxu1 %v1936_v11  ;;  %v2032_v11 = vld [vmem:[%s2500_s0 + $0xe0] ss:$8 sps:$4 sm:$0xff]  }
  0x33   : > { %972 = vmatprep.subr.bf16.mxu0 %v2064_v0  ;;  %1880 = vmatprep.subr.bf16.mxu1 %v2064_v0 }
  0x36   : > { %973 = vmatpush1.bf16.msra.mxu0 %v1937_v12  ;;  %1896 = vmatpush1.bf16.msra.mxu1 %v1937_v12  ;;  %v2033_v12 = vld [vmem:[%s2500_s0 + $0x1e0] ss:$8 sps:$4 sm:$0xff]  }
  0x37   : > { %974 = vmatprep.subr.bf16.mxu0 %v2064_v0  ;;  %1881 = vmatprep.subr.bf16.mxu1 %v2064_v0 }
  0x3a   : > { %975 = vmatpush1.bf16.msra.mxu0 %v1938_v13  ;;  %1897 = vmatpush1.bf16.msra.mxu1 %v1938_v13  ;;  %v2034_v13 = vld [vmem:[%s2500_s0 + $0xf4] ss:$8 sps:$4 sm:$0xff]  }
  0x3b   : > { %976 = vmatprep.subr.bf16.mxu0 %v2064_v0  ;;  %1882 = vmatprep.subr.bf16.mxu1 %v2064_v0 }
  0x3e   : > { %977 = vmatpush1.bf16.msra.mxu0 %v1939_v14  ;;  %1898 = vmatpush1.bf16.msra.mxu1 %v1939_v14  ;;  %v2036_v14 = vld [vmem:[%s2500_s0 + $0x1f4] ss:$8 sps:$4 sm:$0xff]  }
  0x3f   : > { %978 = vmatprep.subr.bf16.mxu0 %v2064_v0  ;;  %1883 = vmatprep.subr.bf16.mxu1 %v2064_v0 }
  0x42   : > { %979 = vmatpush1.bf16.msra.mxu0 %v1940_v15  ;;  %1899 = vmatpush1.bf16.msra.mxu1 %v1940_v15  ;;  %v2038_v15 = vld [vmem:[%s2500_s0 + $0xf0] ss:$8 sps:$4 sm:$0xff]  }
  0x43   : > { %980 = vmatprep.subr.bf16.mxu0 %v2064_v0  ;;  %1884 = vmatprep.subr.bf16.mxu1 %v2064_v0 }
  0x46   : > { %981 = vmatpush1.bf16.msra.mxu0 %v1941_v16  ;;  %1900 = vmatpush1.bf16.msra.mxu1 %v1941_v16  ;;  %v2039_v16 = vld [vmem:[%s2500_s0 + $0x1f0] ss:$8 sps:$4 sm:$0xff]  }
  0x47   : > { %982 = vmatprep.subr.bf16.mxu0 %v2064_v0  ;;  %1885 = vmatprep.subr.bf16.mxu1 %v2064_v0 }
  0x4a   : > { %983 = vmatpush1.bf16.msra.mxu0 %v1942_v17  ;;  %1901 = vmatpush1.bf16.msra.mxu1 %v1942_v17  ;;  %v2355_v17 = vld [vmem:[%s295_s8] ss:$0 sm:$0xff] }
  0x4b   : > { %984 = vmatprep.subr.bf16.mxu0 %v2064_v0  ;;  %1886 = vmatprep.subr.bf16.mxu1 %v2064_v0  ;;  %v2015_v0 = vld [vmem:[%s2500_s0 + $0x1b0] ss:$8 sps:$4 sm:$0xff]  }
  0x4e   : > { %985 = vmatpush1.bf16.msra.mxu0 %v1943_v18  ;;  %1902 = vmatpush1.bf16.msra.mxu1 %v1943_v18 }
  0x51   : > { %987 = vmatmul.mubr.bf16.vlgmr.msra.gmra.mrb[0].mxu0 %v1944_v19  ;;  %1115 = vmatmul.mubr.bf16.vlgmr.msra.gmra.mrb[0].mxu1 %v1947_v20 }
  0x52   : > { %994 = vmatprep.mubr.bf16.mxu0 %v1950_v21  ;;  %1122 = vmatprep.mubr.bf16.mxu1 %v1952_v22 }
  0x59   : > { %995 = vmatmul.mubr.bf16.gmra.mrb[4].mxu0 %v1954_v23  ;;  %1123 = vmatmul.mubr.bf16.gmra.mrb[4].mxu1 %v1955_v24 }
  0x5a   : > { %1002 = vmatprep.mubr.bf16.mxu0 %v1956_v25  ;;  %1130 = vmatprep.mubr.bf16.mxu1 %v1958_v26 }
  0x61   : > { %1003 = vmatmul.mubr.bf16.gmra.mrb[8].mxu0 %v1960_v27  ;;  %1131 = vmatmul.mubr.bf16.gmra.mrb[8].mxu1 %v1961_v28 }
  0x62   : > { %1010 = vmatprep.mubr.bf16.mxu0 %v1962_v29  ;;  %1138 = vmatprep.mubr.bf16.mxu1 %v1964_v30 }
  0x69   : > { %1011 = vmatmul.mubr.bf16.gmra.mrb[12].mxu0 %v1966_v31  ;;  %1139 = vmatmul.mubr.bf16.gmra.mrb[12].mxu1 %v1967_v32 }
  0x6a   : > { %1018 = vmatprep.mubr.bf16.mxu0 %v1968_v33  ;;  %1146 = vmatprep.mubr.bf16.mxu1 %v1970_v34 }
  0x71   : > { %1019 = vmatmul.mubr.bf16.gmra.mrb[16].mxu0 %v1972_v35  ;;  %1147 = vmatmul.mubr.bf16.gmra.mrb[16].mxu1 %v1973_v36 }
  0x72   : > { %1026 = vmatprep.mubr.bf16.mxu0 %v1974_v37  ;;  %1154 = vmatprep.mubr.bf16.mxu1 %v1976_v38 }
  0x79   : > { %1027 = vmatmul.mubr.bf16.gmra.mrb[20].mxu0 %v1978_v39  ;;  %1155 = vmatmul.mubr.bf16.gmra.mrb[20].mxu1 %v1979_v40 }
  0x7a   : > { %1034 = vmatprep.mubr.bf16.mxu0 %v1980_v41  ;;  %1162 = vmatprep.mubr.bf16.mxu1 %v1982_v42 }
  0x81   : > { %1035 = vmatmul.mubr.bf16.gmra.mrb[24].mxu0 %v1984_v43  ;;  %1163 = vmatmul.mubr.bf16.gmra.mrb[24].mxu1 %v1985_v44 }
  0x82   : > { %1042 = vmatprep.mubr.bf16.mxu0 %v1986_v45  ;;  %1170 = vmatprep.mubr.bf16.mxu1 %v1988_v46 }
  0x89   : > { %1043 = vmatmul.mubr.bf16.gmra.mrb[28].mxu0 %v1990_v47  ;;  %1171 = vmatmul.mubr.bf16.gmra.mrb[28].mxu1 %v1991_v48 }
  0x8a   : > { %1050 = vmatprep.mubr.bf16.mxu0 %v1992_v49  ;;  %1178 = vmatprep.mubr.bf16.mxu1 %v1994_v50 }
  0x91   : > { %1051 = vmatmul.mubr.bf16.gmra.mrb[32].mxu0 %v1996_v51  ;;  %1179 = vmatmul.mubr.bf16.gmra.mrb[32].mxu1 %v1997_v52 }
  0x92   : > { %1058 = vmatprep.mubr.bf16.mxu0 %v1998_v53  ;;  %1186 = vmatprep.mubr.bf16.mxu1 %v2000_v54 }
  0x99   : > { %1059 = vmatmul.mubr.bf16.gmra.mrb[36].mxu0 %v2002_v55  ;;  %1187 = vmatmul.mubr.bf16.gmra.mrb[36].mxu1 %v2003_v56 }
  0x9a   : > { %1066 = vmatprep.mubr.bf16.mxu0 %v2004_v57  ;;  %1194 = vmatprep.mubr.bf16.mxu1 %v2006_v58 }
  0xa1   : > { %1067 = vmatmul.mubr.bf16.gmra.mrb[40].mxu0 %v2008_v59  ;;  %1195 = vmatmul.mubr.bf16.gmra.mrb[40].mxu1 %v2009_v60 }
  0xa2   : > { %1074 = vmatprep.mubr.bf16.mxu0 %v2010_v61  ;;  %1202 = vmatprep.mubr.bf16.mxu1 %v2012_v62 }
  0xa9   : > { %1075 = vmatmul.mubr.bf16.gmra.mrb[44].mxu0 %v2014_v63  ;;  %1203 = vmatmul.mubr.bf16.gmra.mrb[44].mxu1 %v2015_v0 }
  0xaa   : > { %1082 = vmatprep.mubr.bf16.mxu0 %v2016_v1  ;;  %1210 = vmatprep.mubr.bf16.mxu1 %v2018_v2 }
  0xb1   : > { %1083 = vmatmul.mubr.bf16.gmra.mrb[48].mxu0 %v2020_v3  ;;  %1211 = vmatmul.mubr.bf16.gmra.mrb[48].mxu1 %v2021_v4 }
  0xb2   : > { %1090 = vmatprep.mubr.bf16.mxu0 %v2022_v5  ;;  %1218 = vmatprep.mubr.bf16.mxu1 %v2024_v6 }
  0xb9   : > { %1091 = vmatmul.mubr.bf16.gmra.mrb[52].mxu0 %v2026_v7  ;;  %1219 = vmatmul.mubr.bf16.gmra.mrb[52].mxu1 %v2027_v8 }
  0xba   : > { %1098 = vmatprep.mubr.bf16.mxu0 %v2028_v9  ;;  %1226 = vmatprep.mubr.bf16.mxu1 %v2030_v10 }
  0xc1   : > { %1099 = vmatmul.mubr.bf16.gmra.mrb[56].mxu0 %v2032_v11  ;;  %1227 = vmatmul.mubr.bf16.gmra.mrb[56].mxu1 %v2033_v12 }
  0xc2   : > { %1106 = vmatprep.mubr.bf16.mxu0 %v2034_v13  ;;  %1234 = vmatprep.mubr.bf16.mxu1 %v2036_v14 }
  0xc9   : > { %1107 = vmatmul.mubr.bf16.gmra.mrb[60].mxu0 %v2038_v15  ;;  %1235 = vmatmul.mubr.bf16.gmra.mrb[60].mxu1 %v2039_v16 }
 0x124   : > { %v988_v18 = vpop.f32.mrb[0].mxu0  ;;  %v1116_v19 = vpop.f32.mrb[0].mxu1 }
 0x125   : > { %v1445_v20 = vadd.f32 %v2355_v17, %v988_v18  ;;  %v1477_v21 = vadd.f32 %v2355_v17, %v1116_v19  ;;  %v990_v22 = vpop.f32.mrb[1].mxu0  ;;  %v1118_v23 = vpop.f32.mrb[1].mxu1 }
 0x126   : > { %v991_v24 = vpop.f32.mrb[2].mxu0  ;;  %v1119_v25 = vpop.f32.mrb[2].mxu1 }
 0x127   : > { %v1509_v26 = vmax.f32 %v1445_v20, 0.0  ;;  %v1541_v27 = vmax.f32 %v1477_v21, 0.0  ;;  %v1446_v28 = vadd.f32 %v2355_v17, %v991_v24  ;;  %v1478_v29 = vadd.f32 %v2355_v17, %v1119_v25  ;;  %v993_v30 = vpop.f32.mrb[3].mxu0  ;;  %v1121_v31 = vpop.f32.mrb[3].mxu1 }
 0x129   : > { %1573 = vst [vmem:[%s2363_s16] sm:$0xff] %v1509_v26  ;;  %1605 = vst [vmem:[%s2363_s16 + $0x100] sm:$0xff] %v1541_v27  ;;  %v1510_v32 = vmax.f32 %v1446_v28, 0.0  ;;  %v1542_v33 = vmax.f32 %v1478_v29, 0.0 }
 0x12b   : > { %1574 = vst [vmem:[%s2363_s16 + $0x8] sm:$0xff] %v1510_v32  ;;  %1606 = vst [vmem:[%s2363_s16 + $0x108] sm:$0xff] %v1542_v33 }
 0x12c   : > { %v996_v34 = vpop.f32.mrb[4].mxu0  ;;  %v1124_v35 = vpop.f32.mrb[4].mxu1 }
 0x12d   : > { %v1447_v36 = vadd.f32 %v2355_v17, %v996_v34  ;;  %v1479_v37 = vadd.f32 %v2355_v17, %v1124_v35  ;;  %v998_v38 = vpop.f32.mrb[5].mxu0  ;;  %v1126_v39 = vpop.f32.mrb[5].mxu1 }
 0x12e   : > { %v999_v40 = vpop.f32.mrb[6].mxu0  ;;  %v1127_v41 = vpop.f32.mrb[6].mxu1 }
 0x12f   : > { %v1511_v42 = vmax.f32 %v1447_v36, 0.0  ;;  %v1543_v43 = vmax.f32 %v1479_v37, 0.0  ;;  %v1448_v44 = vadd.f32 %v2355_v17, %v999_v40  ;;  %v1480_v45 = vadd.f32 %v2355_v17, %v1127_v41  ;;  %v1001_v46 = vpop.f32.mrb[7].mxu0  ;;  %v1129_v47 = vpop.f32.mrb[7].mxu1 }
 0x131   : > { %1575 = vst [vmem:[%s2363_s16 + $0x10] sm:$0xff] %v1511_v42  ;;  %1607 = vst [vmem:[%s2363_s16 + $0x110] sm:$0xff] %v1543_v43  ;;  %v1512_v48 = vmax.f32 %v1448_v44, 0.0  ;;  %v1544_v49 = vmax.f32 %v1480_v45, 0.0 }
 0x133   : > { %1576 = vst [vmem:[%s2363_s16 + $0x18] sm:$0xff] %v1512_v48  ;;  %1608 = vst [vmem:[%s2363_s16 + $0x118] sm:$0xff] %v1544_v49 }
 0x134   : > { %v1004_v50 = vpop.f32.mrb[8].mxu0  ;;  %v1132_v51 = vpop.f32.mrb[8].mxu1 }
 0x135   : > { %v1449_v52 = vadd.f32 %v2355_v17, %v1004_v50  ;;  %v1481_v53 = vadd.f32 %v2355_v17, %v1132_v51  ;;  %v1006_v54 = vpop.f32.mrb[9].mxu0  ;;  %v1134_v55 = vpop.f32.mrb[9].mxu1 }
 0x136   : > { %v1007_v56 = vpop.f32.mrb[10].mxu0  ;;  %v1135_v57 = vpop.f32.mrb[10].mxu1 }
 0x137   : > { %v1513_v58 = vmax.f32 %v1449_v52, 0.0  ;;  %v1545_v59 = vmax.f32 %v1481_v53, 0.0  ;;  %v1450_v60 = vadd.f32 %v2355_v17, %v1007_v56  ;;  %v1482_v61 = vadd.f32 %v2355_v17, %v1135_v57  ;;  %v1009_v62 = vpop.f32.mrb[11].mxu0  ;;  %v1137_v63 = vpop.f32.mrb[11].mxu1 }
 0x139   : > { %1577 = vst [vmem:[%s2363_s16 + $0x20] sm:$0xff] %v1513_v58  ;;  %1609 = vst [vmem:[%s2363_s16 + $0x120] sm:$0xff] %v1545_v59  ;;  %v1514_v0 = vmax.f32 %v1450_v60, 0.0  ;;  %v1546_v1 = vmax.f32 %v1482_v61, 0.0 }
 0x13b   : > { %1578 = vst [vmem:[%s2363_s16 + $0x28] sm:$0xff] %v1514_v0  ;;  %1610 = vst [vmem:[%s2363_s16 + $0x128] sm:$0xff] %v1546_v1 }
 0x13c   : > { %v1012_v2 = vpop.f32.mrb[12].mxu0  ;;  %v1140_v3 = vpop.f32.mrb[12].mxu1 }
 0x13d   : > { %v1451_v4 = vadd.f32 %v2355_v17, %v1012_v2  ;;  %v1483_v5 = vadd.f32 %v2355_v17, %v1140_v3  ;;  %v1014_v6 = vpop.f32.mrb[13].mxu0  ;;  %v1142_v7 = vpop.f32.mrb[13].mxu1 }
 0x13e   : > { %v1015_v8 = vpop.f32.mrb[14].mxu0  ;;  %v1143_v9 = vpop.f32.mrb[14].mxu1 }
 0x13f   : > { %v1515_v10 = vmax.f32 %v1451_v4, 0.0  ;;  %v1547_v11 = vmax.f32 %v1483_v5, 0.0  ;;  %v1452_v12 = vadd.f32 %v2355_v17, %v1015_v8  ;;  %v1484_v13 = vadd.f32 %v2355_v17, %v1143_v9  ;;  %v1017_v14 = vpop.f32.mrb[15].mxu0  ;;  %v1145_v15 = vpop.f32.mrb[15].mxu1 }
 0x141   : > { %1579 = vst [vmem:[%s2363_s16 + $0x30] sm:$0xff] %v1515_v10  ;;  %1611 = vst [vmem:[%s2363_s16 + $0x130] sm:$0xff] %v1547_v11  ;;  %v1516_v16 = vmax.f32 %v1452_v12, 0.0  ;;  %v1548_v18 = vmax.f32 %v1484_v13, 0.0 }
 0x143   : > { %1580 = vst [vmem:[%s2363_s16 + $0x38] sm:$0xff] %v1516_v16  ;;  %1612 = vst [vmem:[%s2363_s16 + $0x138] sm:$0xff] %v1548_v18 }
 0x144   : > { %v1020_v19 = vpop.f32.mrb[16].mxu0  ;;  %v1148_v20 = vpop.f32.mrb[16].mxu1 }
 0x145   : > { %v1453_v21 = vadd.f32 %v2355_v17, %v1020_v19  ;;  %v1485_v22 = vadd.f32 %v2355_v17, %v1148_v20  ;;  %v1022_v23 = vpop.f32.mrb[17].mxu0  ;;  %v1150_v24 = vpop.f32.mrb[17].mxu1 }
 0x146   : > { %v1023_v25 = vpop.f32.mrb[18].mxu0  ;;  %v1151_v26 = vpop.f32.mrb[18].mxu1 }
 0x147   : > { %v1517_v27 = vmax.f32 %v1453_v21, 0.0  ;;  %v1549_v28 = vmax.f32 %v1485_v22, 0.0  ;;  %v1454_v29 = vadd.f32 %v2355_v17, %v1023_v25  ;;  %v1486_v30 = vadd.f32 %v2355_v17, %v1151_v26  ;;  %v1025_v31 = vpop.f32.mrb[19].mxu0  ;;  %v1153_v32 = vpop.f32.mrb[19].mxu1 }
 0x149   : > { %1581 = vst [vmem:[%s2363_s16 + $0x40] sm:$0xff] %v1517_v27  ;;  %1613 = vst [vmem:[%s2363_s16 + $0x140] sm:$0xff] %v1549_v28  ;;  %v1518_v33 = vmax.f32 %v1454_v29, 0.0  ;;  %v1550_v34 = vmax.f32 %v1486_v30, 0.0 }
 0x14b   : > { %1582 = vst [vmem:[%s2363_s16 + $0x48] sm:$0xff] %v1518_v33  ;;  %1614 = vst [vmem:[%s2363_s16 + $0x148] sm:$0xff] %v1550_v34 }
 0x14c   : > { %v1028_v35 = vpop.f32.mrb[20].mxu0  ;;  %v1156_v36 = vpop.f32.mrb[20].mxu1 }
 0x14d   : > { %v1455_v37 = vadd.f32 %v2355_v17, %v1028_v35  ;;  %v1487_v38 = vadd.f32 %v2355_v17, %v1156_v36  ;;  %v1030_v39 = vpop.f32.mrb[21].mxu0  ;;  %v1158_v40 = vpop.f32.mrb[21].mxu1 }
 0x14e   : > { %v1031_v41 = vpop.f32.mrb[22].mxu0  ;;  %v1159_v42 = vpop.f32.mrb[22].mxu1 }
 0x14f   : > { %v1519_v43 = vmax.f32 %v1455_v37, 0.0  ;;  %v1551_v44 = vmax.f32 %v1487_v38, 0.0  ;;  %v1456_v45 = vadd.f32 %v2355_v17, %v1031_v41  ;;  %v1488_v46 = vadd.f32 %v2355_v17, %v1159_v42  ;;  %v1033_v47 = vpop.f32.mrb[23].mxu0  ;;  %v1161_v48 = vpop.f32.mrb[23].mxu1 }
 0x151   : > { %1583 = vst [vmem:[%s2363_s16 + $0x50] sm:$0xff] %v1519_v43  ;;  %1615 = vst [vmem:[%s2363_s16 + $0x150] sm:$0xff] %v1551_v44  ;;  %v1520_v49 = vmax.f32 %v1456_v45, 0.0  ;;  %v1552_v50 = vmax.f32 %v1488_v46, 0.0 }
 0x153   : > { %1584 = vst [vmem:[%s2363_s16 + $0x58] sm:$0xff] %v1520_v49  ;;  %1616 = vst [vmem:[%s2363_s16 + $0x158] sm:$0xff] %v1552_v50 }
 0x154   : > { %v1036_v51 = vpop.f32.mrb[24].mxu0  ;;  %v1164_v52 = vpop.f32.mrb[24].mxu1 }
 0x155   : > { %v1457_v53 = vadd.f32 %v2355_v17, %v1036_v51  ;;  %v1489_v54 = vadd.f32 %v2355_v17, %v1164_v52  ;;  %v1038_v55 = vpop.f32.mrb[25].mxu0  ;;  %v1166_v56 = vpop.f32.mrb[25].mxu1 }
 0x156   : > { %v1039_v57 = vpop.f32.mrb[26].mxu0  ;;  %v1167_v58 = vpop.f32.mrb[26].mxu1 }
 0x157   : > { %v1521_v59 = vmax.f32 %v1457_v53, 0.0  ;;  %v1553_v60 = vmax.f32 %v1489_v54, 0.0  ;;  %v1458_v61 = vadd.f32 %v2355_v17, %v1039_v57  ;;  %v1490_v62 = vadd.f32 %v2355_v17, %v1167_v58  ;;  %v1041_v63 = vpop.f32.mrb[27].mxu0  ;;  %v1169_v0 = vpop.f32.mrb[27].mxu1 }
 0x159   : > { %1585 = vst [vmem:[%s2363_s16 + $0x60] sm:$0xff] %v1521_v59  ;;  %1617 = vst [vmem:[%s2363_s16 + $0x160] sm:$0xff] %v1553_v60  ;;  %v1522_v1 = vmax.f32 %v1458_v61, 0.0  ;;  %v1554_v2 = vmax.f32 %v1490_v62, 0.0 }
 0x15b   : > { %1586 = vst [vmem:[%s2363_s16 + $0x68] sm:$0xff] %v1522_v1  ;;  %1618 = vst [vmem:[%s2363_s16 + $0x168] sm:$0xff] %v1554_v2 }
 0x15c   : > { %v1044_v3 = vpop.f32.mrb[28].mxu0  ;;  %v1172_v4 = vpop.f32.mrb[28].mxu1 }
 0x15d   : > { %v1459_v5 = vadd.f32 %v2355_v17, %v1044_v3  ;;  %v1491_v6 = vadd.f32 %v2355_v17, %v1172_v4  ;;  %v1046_v7 = vpop.f32.mrb[29].mxu0  ;;  %v1174_v8 = vpop.f32.mrb[29].mxu1 }
 0x15e   : > { %v1047_v9 = vpop.f32.mrb[30].mxu0  ;;  %v1175_v10 = vpop.f32.mrb[30].mxu1 }
 0x15f   : > { %v1523_v11 = vmax.f32 %v1459_v5, 0.0  ;;  %v1555_v12 = vmax.f32 %v1491_v6, 0.0  ;;  %v1460_v13 = vadd.f32 %v2355_v17, %v1047_v9  ;;  %v1492_v14 = vadd.f32 %v2355_v17, %v1175_v10  ;;  %v1049_v15 = vpop.f32.mrb[31].mxu0  ;;  %v1177_v16 = vpop.f32.mrb[31].mxu1 }
 0x161   : > { %1587 = vst [vmem:[%s2363_s16 + $0x70] sm:$0xff] %v1523_v11  ;;  %1619 = vst [vmem:[%s2363_s16 + $0x170] sm:$0xff] %v1555_v12  ;;  %v1524_v18 = vmax.f32 %v1460_v13, 0.0  ;;  %v1556_v19 = vmax.f32 %v1492_v14, 0.0 }
 0x163   : > { %1588 = vst [vmem:[%s2363_s16 + $0x78] sm:$0xff] %v1524_v18  ;;  %1620 = vst [vmem:[%s2363_s16 + $0x178] sm:$0xff] %v1556_v19 }
 0x164   : > { %v1052_v20 = vpop.f32.mrb[32].mxu0  ;;  %v1180_v21 = vpop.f32.mrb[32].mxu1 }
 0x165   : > { %v1461_v22 = vadd.f32 %v2355_v17, %v1052_v20  ;;  %v1493_v23 = vadd.f32 %v2355_v17, %v1180_v21  ;;  %v1054_v24 = vpop.f32.mrb[33].mxu0  ;;  %v1182_v25 = vpop.f32.mrb[33].mxu1 }
 0x166   : > { %v1055_v26 = vpop.f32.mrb[34].mxu0  ;;  %v1183_v27 = vpop.f32.mrb[34].mxu1 }
 0x167   : > { %v1525_v28 = vmax.f32 %v1461_v22, 0.0  ;;  %v1557_v29 = vmax.f32 %v1493_v23, 0.0  ;;  %v1462_v30 = vadd.f32 %v2355_v17, %v1055_v26  ;;  %v1494_v31 = vadd.f32 %v2355_v17, %v1183_v27  ;;  %v1057_v32 = vpop.f32.mrb[35].mxu0  ;;  %v1185_v33 = vpop.f32.mrb[35].mxu1 }
 0x169   : > { %1589 = vst [vmem:[%s2363_s16 + $0x80] sm:$0xff] %v1525_v28  ;;  %1621 = vst [vmem:[%s2363_s16 + $0x180] sm:$0xff] %v1557_v29  ;;  %v1526_v34 = vmax.f32 %v1462_v30, 0.0  ;;  %v1558_v35 = vmax.f32 %v1494_v31, 0.0 }
 0x16b   : > { %1590 = vst [vmem:[%s2363_s16 + $0x88] sm:$0xff] %v1526_v34  ;;  %1622 = vst [vmem:[%s2363_s16 + $0x188] sm:$0xff] %v1558_v35 }
 0x16c   : > { %v1060_v36 = vpop.f32.mrb[36].mxu0  ;;  %v1188_v37 = vpop.f32.mrb[36].mxu1 }
 0x16d   : > { %v1463_v38 = vadd.f32 %v2355_v17, %v1060_v36  ;;  %v1495_v39 = vadd.f32 %v2355_v17, %v1188_v37  ;;  %v1062_v40 = vpop.f32.mrb[37].mxu0  ;;  %v1190_v41 = vpop.f32.mrb[37].mxu1 }
 0x16e   : > { %v1063_v42 = vpop.f32.mrb[38].mxu0  ;;  %v1191_v43 = vpop.f32.mrb[38].mxu1 }
 0x16f   : > { %v1527_v44 = vmax.f32 %v1463_v38, 0.0  ;;  %v1559_v45 = vmax.f32 %v1495_v39, 0.0  ;;  %v1464_v46 = vadd.f32 %v2355_v17, %v1063_v42  ;;  %v1496_v47 = vadd.f32 %v2355_v17, %v1191_v43  ;;  %v1065_v48 = vpop.f32.mrb[39].mxu0  ;;  %v1193_v49 = vpop.f32.mrb[39].mxu1 }
 0x171   : > { %1591 = vst [vmem:[%s2363_s16 + $0x90] sm:$0xff] %v1527_v44  ;;  %1623 = vst [vmem:[%s2363_s16 + $0x190] sm:$0xff] %v1559_v45  ;;  %v1528_v50 = vmax.f32 %v1464_v46, 0.0  ;;  %v1560_v51 = vmax.f32 %v1496_v47, 0.0 }
 0x173   : > { %1592 = vst [vmem:[%s2363_s16 + $0x98] sm:$0xff] %v1528_v50  ;;  %1624 = vst [vmem:[%s2363_s16 + $0x198] sm:$0xff] %v1560_v51 }
 0x174   : > { %v1068_v52 = vpop.f32.mrb[40].mxu0  ;;  %v1196_v53 = vpop.f32.mrb[40].mxu1 }
 0x175   : > { %v1465_v54 = vadd.f32 %v2355_v17, %v1068_v52  ;;  %v1497_v55 = vadd.f32 %v2355_v17, %v1196_v53  ;;  %v1070_v56 = vpop.f32.mrb[41].mxu0  ;;  %v1198_v57 = vpop.f32.mrb[41].mxu1 }
 0x176   : > { %v1071_v58 = vpop.f32.mrb[42].mxu0  ;;  %v1199_v59 = vpop.f32.mrb[42].mxu1 }
 0x177   : > { %v1529_v60 = vmax.f32 %v1465_v54, 0.0  ;;  %v1561_v61 = vmax.f32 %v1497_v55, 0.0  ;;  %v1466_v62 = vadd.f32 %v2355_v17, %v1071_v58  ;;  %v1498_v63 = vadd.f32 %v2355_v17, %v1199_v59  ;;  %v1073_v0 = vpop.f32.mrb[43].mxu0  ;;  %v1201_v1 = vpop.f32.mrb[43].mxu1 }
 0x179   : > { %1593 = vst [vmem:[%s2363_s16 + $0xa0] sm:$0xff] %v1529_v60  ;;  %1625 = vst [vmem:[%s2363_s16 + $0x1a0] sm:$0xff] %v1561_v61  ;;  %v1530_v2 = vmax.f32 %v1466_v62, 0.0  ;;  %v1562_v3 = vmax.f32 %v1498_v63, 0.0 }
 0x17b   : > { %1594 = vst [vmem:[%s2363_s16 + $0xa8] sm:$0xff] %v1530_v2  ;;  %1626 = vst [vmem:[%s2363_s16 + $0x1a8] sm:$0xff] %v1562_v3 }
 0x17c   : > { %v1076_v4 = vpop.f32.mrb[44].mxu0  ;;  %v1204_v5 = vpop.f32.mrb[44].mxu1 }
 0x17d   : > { %v1467_v6 = vadd.f32 %v2355_v17, %v1076_v4  ;;  %v1499_v7 = vadd.f32 %v2355_v17, %v1204_v5  ;;  %v1078_v8 = vpop.f32.mrb[45].mxu0  ;;  %v1206_v9 = vpop.f32.mrb[45].mxu1 }
 0x17e   : > { %v1079_v10 = vpop.f32.mrb[46].mxu0  ;;  %v1207_v11 = vpop.f32.mrb[46].mxu1 }
 0x17f   : > { %v1531_v12 = vmax.f32 %v1467_v6, 0.0  ;;  %v1563_v13 = vmax.f32 %v1499_v7, 0.0  ;;  %v1468_v14 = vadd.f32 %v2355_v17, %v1079_v10  ;;  %v1500_v15 = vadd.f32 %v2355_v17, %v1207_v11  ;;  %v1081_v16 = vpop.f32.mrb[47].mxu0  ;;  %v1209_v18 = vpop.f32.mrb[47].mxu1 }
 0x181   : > { %1595 = vst [vmem:[%s2363_s16 + $0xb0] sm:$0xff] %v1531_v12  ;;  %1627 = vst [vmem:[%s2363_s16 + $0x1b0] sm:$0xff] %v1563_v13  ;;  %v1532_v19 = vmax.f32 %v1468_v14, 0.0  ;;  %v1564_v20 = vmax.f32 %v1500_v15, 0.0 }
 0x183   : > { %1596 = vst [vmem:[%s2363_s16 + $0xb8] sm:$0xff] %v1532_v19  ;;  %1628 = vst [vmem:[%s2363_s16 + $0x1b8] sm:$0xff] %v1564_v20 }
 0x184   : > { %v1084_v21 = vpop.f32.mrb[48].mxu0  ;;  %v1212_v22 = vpop.f32.mrb[48].mxu1 }
 0x185   : > { %v1469_v23 = vadd.f32 %v2355_v17, %v1084_v21  ;;  %v1501_v24 = vadd.f32 %v2355_v17, %v1212_v22  ;;  %v1086_v25 = vpop.f32.mrb[49].mxu0  ;;  %v1214_v26 = vpop.f32.mrb[49].mxu1 }
 0x186   : > { %v1087_v27 = vpop.f32.mrb[50].mxu0  ;;  %v1215_v28 = vpop.f32.mrb[50].mxu1 }
 0x187   : > { %v1533_v29 = vmax.f32 %v1469_v23, 0.0  ;;  %v1565_v30 = vmax.f32 %v1501_v24, 0.0  ;;  %v1470_v31 = vadd.f32 %v2355_v17, %v1087_v27  ;;  %v1502_v32 = vadd.f32 %v2355_v17, %v1215_v28  ;;  %v1089_v33 = vpop.f32.mrb[51].mxu0  ;;  %v1217_v34 = vpop.f32.mrb[51].mxu1 }
 0x189   : > { %1597 = vst [vmem:[%s2363_s16 + $0xc0] sm:$0xff] %v1533_v29  ;;  %1629 = vst [vmem:[%s2363_s16 + $0x1c0] sm:$0xff] %v1565_v30  ;;  %v1534_v35 = vmax.f32 %v1470_v31, 0.0  ;;  %v1566_v36 = vmax.f32 %v1502_v32, 0.0 }
 0x18b   : > { %1598 = vst [vmem:[%s2363_s16 + $0xc8] sm:$0xff] %v1534_v35  ;;  %1630 = vst [vmem:[%s2363_s16 + $0x1c8] sm:$0xff] %v1566_v36 }
 0x18c   : > { %v1092_v37 = vpop.f32.mrb[52].mxu0  ;;  %v1220_v38 = vpop.f32.mrb[52].mxu1 }
 0x18d   : > { %v1471_v39 = vadd.f32 %v2355_v17, %v1092_v37  ;;  %v1503_v40 = vadd.f32 %v2355_v17, %v1220_v38  ;;  %v1094_v41 = vpop.f32.mrb[53].mxu0  ;;  %v1222_v42 = vpop.f32.mrb[53].mxu1 }
 0x18e   : > { %v1095_v43 = vpop.f32.mrb[54].mxu0  ;;  %v1223_v44 = vpop.f32.mrb[54].mxu1 }
 0x18f   : > { %v1535_v45 = vmax.f32 %v1471_v39, 0.0  ;;  %v1567_v46 = vmax.f32 %v1503_v40, 0.0  ;;  %v1472_v47 = vadd.f32 %v2355_v17, %v1095_v43  ;;  %v1504_v48 = vadd.f32 %v2355_v17, %v1223_v44  ;;  %v1097_v49 = vpop.f32.mrb[55].mxu0  ;;  %v1225_v50 = vpop.f32.mrb[55].mxu1 }
 0x191   : > { %1599 = vst [vmem:[%s2363_s16 + $0xd0] sm:$0xff] %v1535_v45  ;;  %1631 = vst [vmem:[%s2363_s16 + $0x1d0] sm:$0xff] %v1567_v46  ;;  %v1536_v51 = vmax.f32 %v1472_v47, 0.0  ;;  %v1568_v52 = vmax.f32 %v1504_v48, 0.0 }
 0x193   : > { %1600 = vst [vmem:[%s2363_s16 + $0xd8] sm:$0xff] %v1536_v51  ;;  %1632 = vst [vmem:[%s2363_s16 + $0x1d8] sm:$0xff] %v1568_v52 }
 0x194   : > { %v1100_v53 = vpop.f32.mrb[56].mxu0  ;;  %v1228_v54 = vpop.f32.mrb[56].mxu1 }
 0x195   : > { %v1473_v55 = vadd.f32 %v2355_v17, %v1100_v53  ;;  %v1505_v56 = vadd.f32 %v2355_v17, %v1228_v54  ;;  %v1102_v57 = vpop.f32.mrb[57].mxu0  ;;  %v1230_v58 = vpop.f32.mrb[57].mxu1 }
 0x196   : > { %v1103_v59 = vpop.f32.mrb[58].mxu0  ;;  %v1231_v60 = vpop.f32.mrb[58].mxu1 }
 0x197   : > { %v1537_v61 = vmax.f32 %v1473_v55, 0.0  ;;  %v1569_v62 = vmax.f32 %v1505_v56, 0.0  ;;  %v1474_v63 = vadd.f32 %v2355_v17, %v1103_v59  ;;  %v1506_v0 = vadd.f32 %v2355_v17, %v1231_v60  ;;  %v1105_v1 = vpop.f32.mrb[59].mxu0  ;;  %v1233_v2 = vpop.f32.mrb[59].mxu1 }
 0x199   : > { %1601 = vst [vmem:[%s2363_s16 + $0xe0] sm:$0xff] %v1537_v61  ;;  %1633 = vst [vmem:[%s2363_s16 + $0x1e0] sm:$0xff] %v1569_v62  ;;  %v1538_v3 = vmax.f32 %v1474_v63, 0.0  ;;  %v1570_v4 = vmax.f32 %v1506_v0, 0.0 }
 0x19b   : > { %1602 = vst [vmem:[%s2363_s16 + $0xe8] sm:$0xff] %v1538_v3  ;;  %1634 = vst [vmem:[%s2363_s16 + $0x1e8] sm:$0xff] %v1570_v4 }
 0x19c   : > { %v1108_v5 = vpop.f32.mrb[60].mxu0  ;;  %v1236_v6 = vpop.f32.mrb[60].mxu1 }
 0x19d   : > { %v1475_v7 = vadd.f32 %v2355_v17, %v1108_v5  ;;  %v1507_v8 = vadd.f32 %v2355_v17, %v1236_v6  ;;  %v1110_v9 = vpop.f32.mrb[61].mxu0  ;;  %v1238_v10 = vpop.f32.mrb[61].mxu1 }
 0x19e   : > { %v1111_v11 = vpop.f32.mrb[62].mxu0  ;;  %v1239_v12 = vpop.f32.mrb[62].mxu1 }
 0x19f   : > { %v1539_v13 = vmax.f32 %v1475_v7, 0.0  ;;  %v1571_v14 = vmax.f32 %v1507_v8, 0.0  ;;  %v1476_v15 = vadd.f32 %v2355_v17, %v1111_v11  ;;  %v1508_v16 = vadd.f32 %v2355_v17, %v1239_v12  ;;  %v1113_v18 = vpop.f32.mrb[63].mxu0  ;;  %v1241_v19 = vpop.f32.mrb[63].mxu1 }
 0x1a1   : > { %1603 = vst [vmem:[%s2363_s16 + $0xf0] sm:$0xff] %v1539_v13  ;;  %1635 = vst [vmem:[%s2363_s16 + $0x1f0] sm:$0xff] %v1571_v14  ;;  %v1540_v20 = vmax.f32 %v1476_v15, 0.0  ;;  %v1572_v21 = vmax.f32 %v1508_v16, 0.0 }
 0x1a3   : > { %1604 = vst [vmem:[%s2363_s16 + $0xf8] sm:$0xff] %v1540_v20  ;;  %1636 = vst [vmem:[%s2363_s16 + $0x1f8] sm:$0xff] %v1572_v21 }
 0x1a4 PF: > { %s13_s14 = sadd.s32 1, %s2062_s14   ;;  %s2504_s12 = smov %s2058_s13 }
 0x1a5   : > { %p10_p5 = scmp.ge.s32.totalorder %s13_s14, 4   ;;  %s2505_s13 = smov %s2507_s15 }
 0x1a7   :  { %12 = sbr.rel (!%p10_p5) target bundleno = 2 (0x2), region = 76 }

// kernel: encoder_forward.22
= control target key start
LH: loop header
LB: loop body
LE: loop exit
PB: predicated region body
PF: predicated region fallthrough
CT: control target
= control target key end

     0   :  { %s1925_s12 = smov 0   ;;  %s1927_s13 = smov 0   ;;  %s2126_s0 = inlined_call_operand.vmem [shape: bf16[2,128,640], index: 0, kind: input, shape index: {}]   ;;  %s2127_s1 = inlined_call_operand.vmem [shape: bf16[2,640,128], index: 1, kind: input, shape index: {}]   ;;  %s2128_s2 = inlined_call_operand.vmem [shape: f32[2,1,128], index: 2, kind: input, shape index: {}]   ;;  %s2129_s3 = inlined_call_operand.vmem [shape: f32[2,128,128], index: 3, kind: output, shape index: {}]  }
   0x1   :  { %s1929_s14 = smov 0  }
   0x2 LB: > { %s39_s15 = sadd.s32 1, %s1899_s13  ;;  %p1479_p0 = scmp.ge.s32.totalorder %s1903_s14, 1  ;;  %s1903_s14 = sphi %s1929_s14, %s13_s14   ;;  %s1899_s13 = sphi %s1927_s13, %s2131_s13   ;;  %s1895_s12 = sphi %s1925_s12, %s2130_s12  }
   0x3   : > { %p41_p1 = scmp.ge.s32.totalorder %s39_s15, 2  ;;  %p217_p2 = scmp.lt.s32.totalorder %s1903_s14, 3 }
   0x5   : > { %s2133_s15 = smov (%p41_p1, %s39_s15), 0  ;;  %p218_p3 = pnand %p1479_p0, %p217_p2 }
   0x6   : > { %p277_p4 = scmp.lt.s32.totalorder (!%p218_p3), %s1895_s12, 1 }
   0x7   : > { %221 = sbr.rel (%p218_p3) target bundleno = 347 (0x15b), region = 32 }
   0xe   : > { %s2135_s12 = smov (!%p277_p4, %s1895_s12), 1 }
   0xf   : > { %s1760_s16 = smul.u32 320, %s2135_s12  ;;  %s309_s25 = scalar_lea.vmem %s2128_s2, %s2135_s12 }
  0x10   : > { %s1567_s26 = sshll.u32 %s2135_s12, 7 }
  0x11   : > { %s1951_s19 = scalar_lea.vmem %s2127_s1, %s1760_s16  ;;  %s1988_s22 = scalar_lea.vmem %s2126_s0, %s1760_s16 }
  0x12   : > { %v1785_v0 = vld [vmem:[%s1951_s19 + $0x40] sm:$0xff]   ;;  %v1789_v4 = vld [vmem:[%s1951_s19 + $0x48] sm:$0xff]   ;;  %v1793_v8 = vld [vmem:[%s1951_s19 + $0x50] sm:$0xff]   ;;  %s2076_s29 = scalar_lea.vmem %s2129_s3, %s1567_s26 }
  0x13   : > { %v1786_v1 = vld [vmem:[%s1951_s19 + $0xc0] sm:$0xff]   ;;  %1568 = vmatprep.subr.bf16.mxu0 %v1785_v0  ;;  %v1790_v5 = vld [vmem:[%s1951_s19 + $0xc8] sm:$0xff]   ;;  %v1794_v9 = vld [vmem:[%s1951_s19 + $0xd0] sm:$0xff]  }
  0x14   : > { %v1787_v2 = vld [vmem:[%s1951_s19] sm:$0xff]   ;;  %1632 = vmatprep.subr.bf16.mxu1 %v1786_v1  ;;  %v1791_v6 = vld [vmem:[%s1951_s19 + $0x8] sm:$0xff]   ;;  %v1795_v10 = vld [vmem:[%s1951_s19 + $0x10] sm:$0xff]  }
  0x15   : > { %v1788_v3 = vld [vmem:[%s1951_s19 + $0x80] sm:$0xff]   ;;  %1569 = vmatpush3.bf16.msra.mxu0 %v1787_v2  ;;  %v1792_v7 = vld [vmem:[%s1951_s19 + $0x88] sm:$0xff]   ;;  %v1796_v11 = vld [vmem:[%s1951_s19 + $0x90] sm:$0xff]  }
  0x16   : > { %1633 = vmatpush3.bf16.msra.mxu1 %v1788_v3  ;;  %1570 = vmatprep.subr.bf16.mxu0 %v1789_v4  ;;  %v1797_v12 = vld [vmem:[%s1951_s19 + $0x58] sm:$0xff]   ;;  %v1801_v16 = vld [vmem:[%s1951_s19 + $0x60] sm:$0xff]   ;;  %v1805_v20 = vld [vmem:[%s1951_s19 + $0x68] sm:$0xff]  }
  0x17   : > { %1634 = vmatprep.subr.bf16.mxu1 %v1790_v5  ;;  %v1798_v13 = vld [vmem:[%s1951_s19 + $0xd8] sm:$0xff]   ;;  %v1802_v17 = vld [vmem:[%s1951_s19 + $0xe0] sm:$0xff]   ;;  %v1806_v21 = vld [vmem:[%s1951_s19 + $0xe8] sm:$0xff]  }
  0x18   : > { %v1799_v14 = vld [vmem:[%s1951_s19 + $0x18] sm:$0xff]   ;;  %v1803_v18 = vld [vmem:[%s1951_s19 + $0x20] sm:$0xff]   ;;  %v1807_v22 = vld [vmem:[%s1951_s19 + $0x28] sm:$0xff]  }
  0x19   : > { %1571 = vmatpush3.bf16.msra.mxu0 %v1791_v6  ;;  %v1800_v15 = vld [vmem:[%s1951_s19 + $0x98] sm:$0xff]   ;;  %v1804_v19 = vld [vmem:[%s1951_s19 + $0xa0] sm:$0xff]   ;;  %v1808_v23 = vld [vmem:[%s1951_s19 + $0xa8] sm:$0xff]  }
  0x1a   : > { %1635 = vmatpush3.bf16.msra.mxu1 %v1792_v7  ;;  %1572 = vmatprep.subr.bf16.mxu0 %v1793_v8  ;;  %v1809_v24 = vld [vmem:[%s1951_s19 + $0x70] sm:$0xff]   ;;  %v1813_v28 = vld [vmem:[%s1951_s19 + $0x78] sm:$0xff]   ;;  %v1822_v35 = vld [vmem:[%s1988_s22 + $0xc] ss:$20 sps:$4 sm:$0xff]  }
  0x1b   : > { %1636 = vmatprep.subr.bf16.mxu1 %v1794_v9  ;;  %v1810_v25 = vld [vmem:[%s1951_s19 + $0xf0] sm:$0xff]   ;;  %v1814_v29 = vld [vmem:[%s1951_s19 + $0xf8] sm:$0xff]   ;;  %v1823_v36 = vld [vmem:[%s1951_s19 + $0x100] sm:$0xff]   ;;  %1065 = vmatprep.mubr.bf16.mxu1 %v1822_v35 }
  0x1c   : > { %v1811_v26 = vld [vmem:[%s1951_s19 + $0x30] sm:$0xff]   ;;  %v1815_v30 = vld [vmem:[%s1951_s19 + $0x38] sm:$0xff]   ;;  %v1824_v37 = vld [vmem:[%s1988_s22 + $0x2c] ss:$20 sps:$4 sm:$0xff]  }
  0x1d   : > { %1573 = vmatpush3.bf16.msra.mxu0 %v1795_v10  ;;  %v1812_v27 = vld [vmem:[%s1951_s19 + $0xb0] sm:$0xff]   ;;  %v1816_v31 = vld [vmem:[%s1951_s19 + $0xb8] sm:$0xff]   ;;  %v1830_v39 = vld [vmem:[%s1951_s19 + $0x108] sm:$0xff]  }
  0x1e   : > { %1637 = vmatpush3.bf16.msra.mxu1 %v1796_v11  ;;  %1574 = vmatprep.subr.bf16.mxu0 %v1797_v12  ;;  %v1817_v32 = vld [vmem:[%s1988_s22] ss:$20 sps:$4 sm:$0xff]   ;;  %v1819_v33 = vld [vmem:[%s1988_s22 + $0x4] ss:$20 sps:$4 sm:$0xff]   ;;  %v1820_v34 = vld [vmem:[%s1988_s22 + $0x8] ss:$20 sps:$4 sm:$0xff]  }
  0x1f   : > { %1638 = vmatprep.subr.bf16.mxu1 %v1798_v13  ;;  %968 = vmatprep.mubr.bf16.mxu0 %v1819_v33  ;;  %v1826_v38 = vld [vmem:[%s1988_s22 + $0x34] ss:$20 sps:$4 sm:$0xff]   ;;  %v1829_v41 = vld [vmem:[%s1988_s22 + $0x30] ss:$20 sps:$4 sm:$0xff]   ;;  %v1844_v45 = vld [vmem:[%s1951_s19 + $0x118] sm:$0xff]  }
  0x20   : > { %v1828_v40 = vld [vmem:[%s1988_s22 + $0x28] ss:$20 sps:$4 sm:$0xff]   ;;  %v1837_v44 = vld [vmem:[%s1951_s19 + $0x110] sm:$0xff]   ;;  %v1836_v47 = vld [vmem:[%s1988_s22 + $0x58] ss:$20 sps:$4 sm:$0xff]  }
  0x21   : > { %1575 = vmatpush3.bf16.msra.mxu0 %v1799_v14  ;;  %v1831_v42 = vld [vmem:[%s1988_s22 + $0x54] ss:$20 sps:$4 sm:$0xff]   ;;  %v1833_v43 = vld [vmem:[%s1988_s22 + $0x5c] ss:$20 sps:$4 sm:$0xff]   ;;  %v1840_v49 = vld [vmem:[%s1988_s22 + $0x84] ss:$20 sps:$4 sm:$0xff]  }
  0x22   : > { %1639 = vmatpush3.bf16.msra.mxu1 %v1800_v15  ;;  %1576 = vmatprep.subr.bf16.mxu0 %v1801_v16  ;;  %v1835_v46 = vld [vmem:[%s1988_s22 + $0x50] ss:$20 sps:$4 sm:$0xff]   ;;  %v1858_v51 = vld [vmem:[%s1951_s19 + $0x128] sm:$0xff]   ;;  %v1843_v53 = vld [vmem:[%s1988_s22 + $0x80] ss:$20 sps:$4 sm:$0xff]  }
  0x23   : > { %1640 = vmatprep.subr.bf16.mxu1 %v1802_v17  ;;  %v1838_v48 = vld [vmem:[%s1988_s22 + $0x7c] ss:$20 sps:$4 sm:$0xff]   ;;  %v1851_v50 = vld [vmem:[%s1951_s19 + $0x120] sm:$0xff]   ;;  %v1842_v52 = vld [vmem:[%s1988_s22 + $0x78] ss:$20 sps:$4 sm:$0xff]  }
  0x24   : > { %v1845_v54 = vld [vmem:[%s1988_s22 + $0xa4] ss:$20 sps:$4 sm:$0xff]   ;;  %v1865_v55 = vld [vmem:[%s1951_s19 + $0x130] sm:$0xff]   ;;  %v1847_v56 = vld [vmem:[%s1988_s22 + $0xac] ss:$20 sps:$4 sm:$0xff]  }
  0x25   : > { %1577 = vmatpush3.bf16.msra.mxu0 %v1803_v18  ;;  %v1872_v57 = vld [vmem:[%s1951_s19 + $0x138] sm:$0xff]   ;;  %v1849_v58 = vld [vmem:[%s1988_s22 + $0xa0] ss:$20 sps:$4 sm:$0xff]   ;;  %v1857_v63 = vld [vmem:[%s1988_s22 + $0xd0] ss:$20 sps:$4 sm:$0xff]  }
  0x26   : > { %1641 = vmatpush3.bf16.msra.mxu1 %v1804_v19  ;;  %1578 = vmatprep.subr.bf16.mxu0 %v1805_v20  ;;  %v1850_v59 = vld [vmem:[%s1988_s22 + $0xa8] ss:$20 sps:$4 sm:$0xff]   ;;  %v1852_v60 = vld [vmem:[%s1988_s22 + $0xcc] ss:$20 sps:$4 sm:$0xff]   ;;  %v1863_v2 = vld [vmem:[%s1988_s22 + $0xf0] ss:$20 sps:$4 sm:$0xff]  }
  0x27   : > { %1642 = vmatprep.subr.bf16.mxu1 %v1806_v21  ;;  %v1854_v61 = vld [vmem:[%s1988_s22 + $0xd4] ss:$20 sps:$4 sm:$0xff]   ;;  %v1861_v1 = vld [vmem:[%s1988_s22 + $0xfc] ss:$20 sps:$4 sm:$0xff]   ;;  %v1864_v3 = vld [vmem:[%s1988_s22 + $0xf8] ss:$20 sps:$4 sm:$0xff]  }
  0x28   : > { %v1856_v62 = vld [vmem:[%s1988_s22 + $0xc8] ss:$20 sps:$4 sm:$0xff]   ;;  %v1868_v5 = vld [vmem:[%s1988_s22 + $0x124] ss:$20 sps:$4 sm:$0xff]   ;;  %v1871_v7 = vld [vmem:[%s1988_s22 + $0x120] ss:$20 sps:$4 sm:$0xff]  }
  0x29   : > { %1579 = vmatpush3.bf16.msra.mxu0 %v1807_v22  ;;  %v1859_v0 = vld [vmem:[%s1988_s22 + $0xf4] ss:$20 sps:$4 sm:$0xff]   ;;  %v1866_v4 = vld [vmem:[%s1988_s22 + $0x11c] ss:$20 sps:$4 sm:$0xff]   ;;  %v1870_v6 = vld [vmem:[%s1988_s22 + $0x118] ss:$20 sps:$4 sm:$0xff]  }
  0x2a   : > { %1643 = vmatpush3.bf16.msra.mxu1 %v1808_v23  ;;  %1580 = vmatprep.subr.bf16.mxu0 %v1809_v24  ;;  %v1873_v8 = vld [vmem:[%s1988_s22 + $0x10] ss:$20 sps:$4 sm:$0xff]   ;;  %v1875_v10 = vld [vmem:[%s1988_s22 + $0x38] ss:$20 sps:$4 sm:$0xff]   ;;  %v1877_v12 = vld [vmem:[%s1988_s22 + $0x60] ss:$20 sps:$4 sm:$0xff]  }
  0x2b   : > { %1644 = vmatprep.subr.bf16.mxu1 %v1810_v25  ;;  %v1874_v9 = vld [vmem:[%s1988_s22 + $0xb0] ss:$20 sps:$4 sm:$0xff]   ;;  %v1876_v11 = vld [vmem:[%s1988_s22 + $0xd8] ss:$20 sps:$4 sm:$0xff]   ;;  %v1878_v13 = vld [vmem:[%s1988_s22 + $0x100] ss:$20 sps:$4 sm:$0xff]  }
  0x2c   : > { %v1879_v14 = vld [vmem:[%s1988_s22 + $0x88] ss:$20 sps:$4 sm:$0xff]  }
  0x2d   : > { %1581 = vmatpush3.bf16.msra.mxu0 %v1811_v26  ;;  %v1880_v15 = vld [vmem:[%s1988_s22 + $0x128] ss:$20 sps:$4 sm:$0xff]  }
  0x2e   : > { %1645 = vmatpush3.bf16.msra.mxu1 %v1812_v27  ;;  %1582 = vmatprep.subr.bf16.mxu0 %v1813_v28 }
  0x2f   : > { %1646 = vmatprep.subr.bf16.mxu1 %v1814_v29 }
  0x31   : > { %1583 = vmatpush3.bf16.msra.mxu0 %v1815_v30 }
  0x32   : > { %1647 = vmatpush3.bf16.msra.mxu1 %v1816_v31  ;;  %1712 = vmatprep.subr.bf16.mxu0 %v1823_v36 }
  0x33   : > { %1744 = vmatprep.subr.bf16.mxu1 %v1823_v36 }
  0x34   : > { %969 = vmatmul.mubr.bf16.vlgmr.msra.gmra.mrb[0].mxu0 %v1817_v32 }
  0x35   : > { %1066 = vmatmul.mubr.bf16.vlgmr.msra.gmra.mrb[0].mxu1 %v1820_v34  ;;  %1713 = vmatpush3.bf16.msra.mxu0 %v1823_v36 }
  0x36   : > { %1752 = vmatpush3.bf16.msra.mxu1 %v1823_v36  ;;  %976 = vmatprep.mubr.bf16.mxu0 %v1824_v37 }
  0x37   : > { %1073 = vmatprep.mubr.bf16.mxu1 %v1826_v38  ;;  %1714 = vmatprep.subr.bf16.mxu0 %v1830_v39 }
  0x38   : > { %1745 = vmatprep.subr.bf16.mxu1 %v1830_v39 }
  0x39   : > { %1715 = vmatpush3.bf16.msra.mxu0 %v1830_v39 }
  0x3a   : > { %1753 = vmatpush3.bf16.msra.mxu1 %v1830_v39  ;;  %1716 = vmatprep.subr.bf16.mxu0 %v1837_v44 }
  0x3b   : > { %1746 = vmatprep.subr.bf16.mxu1 %v1837_v44 }
  0x3c   : > { %977 = vmatmul.mubr.bf16.gmra.mrb[4].mxu0 %v1828_v40 }
  0x3d   : > { %1074 = vmatmul.mubr.bf16.gmra.mrb[4].mxu1 %v1829_v41  ;;  %984 = vmatprep.mubr.bf16.mxu0 %v1831_v42 }
  0x3e   : > { %1081 = vmatprep.mubr.bf16.mxu1 %v1833_v43  ;;  %1717 = vmatpush3.bf16.msra.mxu0 %v1837_v44 }
  0x3f   : > { %1754 = vmatpush3.bf16.msra.mxu1 %v1837_v44  ;;  %1718 = vmatprep.subr.bf16.mxu0 %v1844_v45 }
  0x40   : > { %1747 = vmatprep.subr.bf16.mxu1 %v1844_v45 }
  0x42   : > { %1719 = vmatpush3.bf16.msra.mxu0 %v1844_v45 }
  0x43   : > { %1755 = vmatpush3.bf16.msra.mxu1 %v1844_v45  ;;  %1720 = vmatprep.subr.bf16.mxu0 %v1851_v50 }
  0x44   : > { %985 = vmatmul.mubr.bf16.gmra.mrb[8].mxu0 %v1835_v46  ;;  %1748 = vmatprep.subr.bf16.mxu1 %v1851_v50 }
  0x45   : > { %1082 = vmatmul.mubr.bf16.gmra.mrb[8].mxu1 %v1836_v47  ;;  %992 = vmatprep.mubr.bf16.mxu0 %v1838_v48 }
  0x46   : > { %1089 = vmatprep.mubr.bf16.mxu1 %v1840_v49  ;;  %1721 = vmatpush3.bf16.msra.mxu0 %v1851_v50 }
  0x47   : > { %1756 = vmatpush3.bf16.msra.mxu1 %v1851_v50  ;;  %1722 = vmatprep.subr.bf16.mxu0 %v1858_v51 }
  0x48   : > { %1749 = vmatprep.subr.bf16.mxu1 %v1858_v51 }
  0x4a   : > { %1723 = vmatpush3.bf16.msra.mxu0 %v1858_v51 }
  0x4b   : > { %1757 = vmatpush3.bf16.msra.mxu1 %v1858_v51  ;;  %1724 = vmatprep.subr.bf16.mxu0 %v1865_v55 }
  0x4c   : > { %993 = vmatmul.mubr.bf16.gmra.mrb[12].mxu0 %v1842_v52  ;;  %1750 = vmatprep.subr.bf16.mxu1 %v1865_v55 }
  0x4d   : > { %1090 = vmatmul.mubr.bf16.gmra.mrb[12].mxu1 %v1843_v53  ;;  %1000 = vmatprep.mubr.bf16.mxu0 %v1845_v54 }
  0x4e   : > { %1097 = vmatprep.mubr.bf16.mxu1 %v1847_v56  ;;  %1725 = vmatpush3.bf16.msra.mxu0 %v1865_v55 }
  0x4f   : > { %1758 = vmatpush3.bf16.msra.mxu1 %v1865_v55  ;;  %1726 = vmatprep.subr.bf16.mxu0 %v1872_v57 }
  0x50   : > { %1751 = vmatprep.subr.bf16.mxu1 %v1872_v57 }
  0x52   : > { %1727 = vmatpush3.bf16.msra.mxu0 %v1872_v57 }
  0x53   : > { %1759 = vmatpush3.bf16.msra.mxu1 %v1872_v57 }
  0x54   : > { %1001 = vmatmul.mubr.bf16.gmra.mrb[16].mxu0 %v1849_v58 }
  0x55   : > { %1098 = vmatmul.mubr.bf16.gmra.mrb[16].mxu1 %v1850_v59  ;;  %1008 = vmatprep.mubr.bf16.mxu0 %v1852_v60 }
  0x56   : > { %1105 = vmatprep.mubr.bf16.mxu1 %v1854_v61 }
  0x5c   : > { %1009 = vmatmul.mubr.bf16.gmra.mrb[20].mxu0 %v1856_v62 }
  0x5d   : > { %1106 = vmatmul.mubr.bf16.gmra.mrb[20].mxu1 %v1857_v63  ;;  %1016 = vmatprep.mubr.bf16.mxu0 %v1859_v0 }
  0x5e   : > { %1113 = vmatprep.mubr.bf16.mxu1 %v1861_v1 }
  0x64   : > { %1017 = vmatmul.mubr.bf16.gmra.mrb[24].mxu0 %v1863_v2 }
  0x65   : > { %1114 = vmatmul.mubr.bf16.gmra.mrb[24].mxu1 %v1864_v3  ;;  %1024 = vmatprep.mubr.bf16.mxu0 %v1866_v4 }
  0x66   : > { %1121 = vmatprep.mubr.bf16.mxu1 %v1868_v5 }
  0x6c   : > { %1025 = vmatmul.mubr.bf16.gmra.mrb[28].mxu0 %v1870_v6 }
  0x6d   : > { %1122 = vmatmul.mubr.bf16.gmra.mrb[28].mxu1 %v1871_v7  ;;  %1728 = vmatprep.mubr.bf16.mxu0 %v1873_v8 }
  0x6e   : > { %1736 = vmatprep.mubr.bf16.mxu1 %v1874_v9 }
  0x74   : > { %1729 = vmatmul.mubr.bf16.vlgmr.msra.gmra.mrb[32].mxu0 %v1875_v10 }
  0x75   : > { %1737 = vmatmul.mubr.bf16.vlgmr.msra.gmra.mrb[32].mxu1 %v1876_v11  ;;  %1732 = vmatprep.mubr.bf16.mxu0 %v1877_v12 }
  0x76   : > { %1740 = vmatprep.mubr.bf16.mxu1 %v1878_v13 }
  0x7c   : > { %1733 = vmatmul.mubr.bf16.gmra.mrb[36].mxu0 %v1879_v14 }
  0x7d   : > { %1741 = vmatmul.mubr.bf16.gmra.mrb[36].mxu1 %v1880_v15 }
 0x107   : > { %v1584_v16 = vpop.f32.mrb[0].mxu0 }
 0x108   : > { %v1648_v17 = vpop.f32.mrb[0].mxu1  ;;  %v1585_v18 = vpop.f32.mrb[1].mxu0 }
 0x109   : > { %v1586_v19 = vadd.f32 %v1585_v18, %v1584_v16  ;;  %v1649_v20 = vpop.f32.mrb[1].mxu1  ;;  %v1587_v21 = vpop.f32.mrb[2].mxu0 }
 0x10a   : > { %v1650_v22 = vadd.f32 %v1649_v20, %v1648_v17  ;;  %v1651_v23 = vpop.f32.mrb[2].mxu1  ;;  %v1588_v24 = vpop.f32.mrb[3].mxu0 }
 0x10b   : > { %v1589_v25 = vadd.f32 %v1588_v24, %v1587_v21  ;;  %v1652_v26 = vpop.f32.mrb[3].mxu1 }
 0x10c   : > { %v1653_v27 = vadd.f32 %v1652_v26, %v1651_v23  ;;  %v2040_v28 = vadd.f32 %v1650_v22, %v1586_v19 }
 0x10e   : > { %v2042_v29 = vadd.f32 %v1653_v27, %v1589_v25 }
 0x10f   : > { %v1590_v30 = vpop.f32.mrb[4].mxu0 }
 0x110   : > { %v1654_v31 = vpop.f32.mrb[4].mxu1  ;;  %v1591_v32 = vpop.f32.mrb[5].mxu0 }
 0x111   : > { %v1592_v33 = vadd.f32 %v1591_v32, %v1590_v30  ;;  %v1655_v34 = vpop.f32.mrb[5].mxu1  ;;  %v1593_v35 = vpop.f32.mrb[6].mxu0 }
 0x112   : > { %v1656_v36 = vadd.f32 %v1655_v34, %v1654_v31  ;;  %v1657_v37 = vpop.f32.mrb[6].mxu1  ;;  %v1594_v38 = vpop.f32.mrb[7].mxu0 }
 0x113   : > { %v1595_v39 = vadd.f32 %v1594_v38, %v1593_v35  ;;  %v1658_v40 = vpop.f32.mrb[7].mxu1 }
 0x114   : > { %v1659_v41 = vadd.f32 %v1658_v40, %v1657_v37  ;;  %v2044_v42 = vadd.f32 %v1656_v36, %v1592_v33 }
 0x116   : > { %v2046_v43 = vadd.f32 %v1659_v41, %v1595_v39 }
 0x117   : > { %v1596_v44 = vpop.f32.mrb[8].mxu0 }
 0x118   : > { %v1660_v45 = vpop.f32.mrb[8].mxu1  ;;  %v1597_v46 = vpop.f32.mrb[9].mxu0 }
 0x119   : > { %v1598_v47 = vadd.f32 %v1597_v46, %v1596_v44  ;;  %v1661_v48 = vpop.f32.mrb[9].mxu1  ;;  %v1599_v49 = vpop.f32.mrb[10].mxu0 }
 0x11a   : > { %v1662_v50 = vadd.f32 %v1661_v48, %v1660_v45  ;;  %v1663_v51 = vpop.f32.mrb[10].mxu1  ;;  %v1600_v52 = vpop.f32.mrb[11].mxu0 }
 0x11b   : > { %v1601_v53 = vadd.f32 %v1600_v52, %v1599_v49  ;;  %v1664_v54 = vpop.f32.mrb[11].mxu1 }
 0x11c   : > { %v1665_v55 = vadd.f32 %v1664_v54, %v1663_v51  ;;  %v2048_v56 = vadd.f32 %v1662_v50, %v1598_v47 }
 0x11e   : > { %v2050_v57 = vadd.f32 %v1665_v55, %v1601_v53 }
 0x11f   : > { %v1602_v58 = vpop.f32.mrb[12].mxu0 }
 0x120   : > { %v1666_v59 = vpop.f32.mrb[12].mxu1  ;;  %v1603_v60 = vpop.f32.mrb[13].mxu0 }
 0x121   : > { %v1604_v61 = vadd.f32 %v1603_v60, %v1602_v58  ;;  %v1667_v62 = vpop.f32.mrb[13].mxu1  ;;  %v1605_v63 = vpop.f32.mrb[14].mxu0 }
 0x122   : > { %v1668_v0 = vadd.f32 %v1667_v62, %v1666_v59  ;;  %v1669_v1 = vpop.f32.mrb[14].mxu1  ;;  %v1606_v2 = vpop.f32.mrb[15].mxu0 }
 0x123   : > { %v1607_v3 = vadd.f32 %v1606_v2, %v1605_v63  ;;  %v1670_v4 = vpop.f32.mrb[15].mxu1 }
 0x124   : > { %v1671_v5 = vadd.f32 %v1670_v4, %v1669_v1  ;;  %v2052_v6 = vadd.f32 %v1668_v0, %v1604_v61 }
 0x126   : > { %v2054_v7 = vadd.f32 %v1671_v5, %v1607_v3 }
 0x127   : > { %v1608_v8 = vpop.f32.mrb[16].mxu0 }
 0x128   : > { %v1672_v9 = vpop.f32.mrb[16].mxu1  ;;  %v1609_v10 = vpop.f32.mrb[17].mxu0 }
 0x129   : > { %v1610_v11 = vadd.f32 %v1609_v10, %v1608_v8  ;;  %v1673_v12 = vpop.f32.mrb[17].mxu1  ;;  %v1611_v13 = vpop.f32.mrb[18].mxu0 }
 0x12a   : > { %v1674_v14 = vadd.f32 %v1673_v12, %v1672_v9  ;;  %v1675_v15 = vpop.f32.mrb[18].mxu1  ;;  %v1612_v16 = vpop.f32.mrb[19].mxu0  ;;  %v2066_v9 = vld [vmem:[%s309_s25] ss:$0 sm:$0xff] }
 0x12b   : > { %v1613_v17 = vadd.f32 %v1612_v16, %v1611_v13  ;;  %v1676_v18 = vpop.f32.mrb[19].mxu1 }
 0x12c   : > { %v1677_v19 = vadd.f32 %v1676_v18, %v1675_v15  ;;  %v1100_v20 = vadd.f32 %v1674_v14, %v1610_v11 }
 0x12e   : > { %v2056_v21 = vadd.f32 %v1677_v19, %v1613_v17 }
 0x12f   : > { %v1614_v22 = vpop.f32.mrb[20].mxu0 }
 0x130   : > { %v1678_v23 = vpop.f32.mrb[20].mxu1  ;;  %v1615_v24 = vpop.f32.mrb[21].mxu0 }
 0x131   : > { %v1616_v25 = vadd.f32 %v1615_v24, %v1614_v22  ;;  %v1679_v26 = vpop.f32.mrb[21].mxu1  ;;  %v1617_v27 = vpop.f32.mrb[22].mxu0 }
 0x132   : > { %v1680_v30 = vadd.f32 %v1679_v26, %v1678_v23  ;;  %v1681_v31 = vpop.f32.mrb[22].mxu1  ;;  %v1618_v32 = vpop.f32.mrb[23].mxu0 }
 0x133   : > { %v1619_v33 = vadd.f32 %v1618_v32, %v1617_v27  ;;  %v1682_v34 = vpop.f32.mrb[23].mxu1 }
 0x134   : > { %v1683_v35 = vadd.f32 %v1682_v34, %v1681_v31  ;;  %v1108_v36 = vadd.f32 %v1680_v30, %v1616_v25 }
 0x136   : > { %v1111_v37 = vadd.f32 %v1683_v35, %v1619_v33 }
 0x137   : > { %v1620_v38 = vpop.f32.mrb[24].mxu0 }
 0x138   : > { %v1684_v39 = vpop.f32.mrb[24].mxu1  ;;  %v1621_v40 = vpop.f32.mrb[25].mxu0 }
 0x139   : > { %v1622_v41 = vadd.f32 %v1621_v40, %v1620_v38  ;;  %v1685_v44 = vpop.f32.mrb[25].mxu1  ;;  %v1623_v45 = vpop.f32.mrb[26].mxu0 }
 0x13a   : > { %v1686_v46 = vadd.f32 %v1685_v44, %v1684_v39  ;;  %v1687_v47 = vpop.f32.mrb[26].mxu1  ;;  %v1624_v48 = vpop.f32.mrb[27].mxu0 }
 0x13b   : > { %v1625_v49 = vadd.f32 %v1624_v48, %v1623_v45  ;;  %v1688_v50 = vpop.f32.mrb[27].mxu1 }
 0x13c   : > { %v1689_v51 = vadd.f32 %v1688_v50, %v1687_v47  ;;  %v2058_v52 = vadd.f32 %v1686_v46, %v1622_v41 }
 0x13e   : > { %v2060_v53 = vadd.f32 %v1689_v51, %v1625_v49 }
 0x13f   : > { %v1626_v54 = vpop.f32.mrb[28].mxu0 }
 0x140   : > { %v1690_v55 = vpop.f32.mrb[28].mxu1  ;;  %v1627_v58 = vpop.f32.mrb[29].mxu0 }
 0x141   : > { %v1628_v59 = vadd.f32 %v1627_v58, %v1626_v54  ;;  %v1691_v60 = vpop.f32.mrb[29].mxu1  ;;  %v1629_v61 = vpop.f32.mrb[30].mxu0 }
 0x142   : > { %v1692_v62 = vadd.f32 %v1691_v60, %v1690_v55  ;;  %v1693_v63 = vpop.f32.mrb[30].mxu1  ;;  %v1630_v0 = vpop.f32.mrb[31].mxu0 }
 0x143   : > { %v1631_v1 = vadd.f32 %v1630_v0, %v1629_v61  ;;  %v1694_v2 = vpop.f32.mrb[31].mxu1 }
 0x144   : > { %v1695_v3 = vadd.f32 %v1694_v2, %v1693_v63  ;;  %v1124_v4 = vadd.f32 %v1692_v62, %v1628_v59 }
 0x146   : > { %v1127_v5 = vadd.f32 %v1695_v3, %v1631_v1 }
 0x147   : > { %v1730_v8 = vpop.f32.mrb[32].mxu0 }
 0x148   : > { %v1173_v10 = vadd.f32 %v1730_v8, %v2044_v42  ;;  %v1738_v11 = vpop.f32.mrb[32].mxu1  ;;  %v1164_v12 = vpop.f32.mrb[33].mxu0 }
 0x149   : > { %v1205_v13 = vadd.f32 %v1738_v11, %v1108_v36  ;;  %v1165_v14 = vadd.f32 %v1164_v12, %v2040_v28  ;;  %v1196_v15 = vpop.f32.mrb[33].mxu1  ;;  %v1731_v16 = vpop.f32.mrb[34].mxu0 }
 0x14a   : > { %v1287_v17 = vadd.f32 %v2066_v9, %v1173_v10  ;;  %v1197_v18 = vadd.f32 %v1196_v15, %v1100_v20  ;;  %v1176_v19 = vadd.f32 %v1731_v16, %v2046_v43  ;;  %v1739_v22 = vpop.f32.mrb[34].mxu1  ;;  %v1167_v23 = vpop.f32.mrb[35].mxu0 }
 0x14b   : > { %v1295_v42 = vadd.f32 %v2066_v9, %v1205_v13  ;;  %v1285_v24 = vadd.f32 %v2066_v9, %v1165_v14  ;;  %v1208_v28 = vadd.f32 %v1739_v22, %v1111_v37  ;;  %v1168_v25 = vadd.f32 %v1167_v23, %v2042_v29  ;;  %v1199_v20 = vpop.f32.mrb[35].mxu1 }
 0x14c   : > { %v1303_v26 = vmax.f32 %v1287_v17, 0.0  ;;  %v1293_v43 = vadd.f32 %v2066_v9, %v1197_v18  ;;  %v1288_v27 = vadd.f32 %v2066_v9, %v1176_v19  ;;  %v1200_v30 = vadd.f32 %v1199_v20, %v2056_v21 }
 0x14d   : > { %v1311_v31 = vmax.f32 %v1295_v42, 0.0  ;;  %v1301_v32 = vmax.f32 %v1285_v24, 0.0  ;;  %v1296_v33 = vadd.f32 %v2066_v9, %v1208_v28  ;;  %v1286_v34 = vadd.f32 %v2066_v9, %v1168_v25 }
 0x14e   : > { %1319 = vst [vmem:[%s2076_s29 + $0x10] sm:$0xff] %v1303_v26  ;;  %v1309_v29 = vmax.f32 %v1293_v43, 0.0  ;;  %v1304_v35 = vmax.f32 %v1288_v27, 0.0  ;;  %v1294_v36 = vadd.f32 %v2066_v9, %v1200_v30 }
 0x14f   : > { %1327 = vst [vmem:[%s2076_s29 + $0x50] sm:$0xff] %v1311_v31  ;;  %1317 = vst [vmem:[%s2076_s29] sm:$0xff] %v1301_v32  ;;  %v1312_v37 = vmax.f32 %v1296_v33, 0.0  ;;  %v1302_v38 = vmax.f32 %v1286_v34, 0.0  ;;  %v1734_v39 = vpop.f32.mrb[36].mxu0 }
 0x150   : > { %1325 = vst [vmem:[%s2076_s29 + $0x40] sm:$0xff] %v1309_v29  ;;  %1320 = vst [vmem:[%s2076_s29 + $0x18] sm:$0xff] %v1304_v35  ;;  %v1310_v21 = vmax.f32 %v1294_v36, 0.0  ;;  %v1189_v40 = vadd.f32 %v1734_v39, %v2052_v6  ;;  %v1742_v41 = vpop.f32.mrb[36].mxu1  ;;  %v1180_v44 = vpop.f32.mrb[37].mxu0 }
 0x151   : > { %1328 = vst [vmem:[%s2076_s29 + $0x58] sm:$0xff] %v1312_v37  ;;  %1318 = vst [vmem:[%s2076_s29 + $0x8] sm:$0xff] %v1302_v38  ;;  %v1221_v45 = vadd.f32 %v1742_v41, %v1124_v4  ;;  %v1181_v46 = vadd.f32 %v1180_v44, %v2048_v56  ;;  %v1212_v47 = vpop.f32.mrb[37].mxu1  ;;  %v1735_v48 = vpop.f32.mrb[38].mxu0 }
 0x152   : > { %1326 = vst [vmem:[%s2076_s29 + $0x48] sm:$0xff] %v1310_v21  ;;  %v1291_v49 = vadd.f32 %v2066_v9, %v1189_v40  ;;  %v1213_v50 = vadd.f32 %v1212_v47, %v2058_v52  ;;  %v1192_v51 = vadd.f32 %v1735_v48, %v2054_v7  ;;  %v1743_v54 = vpop.f32.mrb[38].mxu1  ;;  %v1183_v55 = vpop.f32.mrb[39].mxu0 }
 0x153   : > { %v1299_v6 = vadd.f32 %v2066_v9, %v1221_v45  ;;  %v1289_v58 = vadd.f32 %v2066_v9, %v1181_v46  ;;  %v1224_v59 = vadd.f32 %v1743_v54, %v1127_v5  ;;  %v1184_v56 = vadd.f32 %v1183_v55, %v2050_v57  ;;  %v1215_v60 = vpop.f32.mrb[39].mxu1 }
 0x154   : > { %v1307_v61 = vmax.f32 %v1291_v49, 0.0  ;;  %v1297_v62 = vadd.f32 %v2066_v9, %v1213_v50  ;;  %v1292_v7 = vadd.f32 %v2066_v9, %v1192_v51  ;;  %v1216_v52 = vadd.f32 %v1215_v60, %v2060_v53 }
 0x155   : > { %v1315_v63 = vmax.f32 %v1299_v6, 0.0  ;;  %v1305_v0 = vmax.f32 %v1289_v58, 0.0  ;;  %v1300_v1 = vadd.f32 %v2066_v9, %v1224_v59  ;;  %v1290_v2 = vadd.f32 %v2066_v9, %v1184_v56 }
 0x156   : > { %1323 = vst [vmem:[%s2076_s29 + $0x30] sm:$0xff] %v1307_v61  ;;  %v1313_v57 = vmax.f32 %v1297_v62, 0.0  ;;  %v1308_v3 = vmax.f32 %v1292_v7, 0.0  ;;  %v1298_v4 = vadd.f32 %v2066_v9, %v1216_v52 }
 0x157   : > { %1331 = vst [vmem:[%s2076_s29 + $0x70] sm:$0xff] %v1315_v63  ;;  %1321 = vst [vmem:[%s2076_s29 + $0x20] sm:$0xff] %v1305_v0  ;;  %v1316_v5 = vmax.f32 %v1300_v1, 0.0  ;;  %v1306_v8 = vmax.f32 %v1290_v2, 0.0 }
 0x158   : > { %1329 = vst [vmem:[%s2076_s29 + $0x60] sm:$0xff] %v1313_v57  ;;  %1324 = vst [vmem:[%s2076_s29 + $0x38] sm:$0xff] %v1308_v3  ;;  %v1314_v53 = vmax.f32 %v1298_v4, 0.0 }
 0x159   : > { %1332 = vst [vmem:[%s2076_s29 + $0x78] sm:$0xff] %v1316_v5  ;;  %1322 = vst [vmem:[%s2076_s29 + $0x28] sm:$0xff] %v1306_v8 }
 0x15a   : > { %1330 = vst [vmem:[%s2076_s29 + $0x68] sm:$0xff] %v1314_v53 }
 0x15b PF: > { %s13_s14 = sadd.s32 1, %s1903_s14   ;;  %s2130_s12 = smov %s1899_s13 }
 0x15c   : > { %p10_p5 = scmp.ge.s32.totalorder %s13_s14, 4   ;;  %s2131_s13 = smov %s2133_s15 }
 0x15e   :  { %12 = sbr.rel (!%p10_p5) target bundleno = 2 (0x2), region = 76 }

// kernel: encoder_forward.23
= control target key start
LH: loop header
LB: loop body
LE: loop exit
PB: predicated region body
PF: predicated region fallthrough
CT: control target
= control target key end

     0   :  { %s2060_s15 = smov 0   ;;  %s2062_s16 = smov 0   ;;  %s2289_s0 = inlined_call_operand.vmem [shape: bf16[2,128,640], index: 0, kind: input, shape index: {}]   ;;  %s2290_s1 = inlined_call_operand.vmem [shape: bf16[2,640,128], index: 1, kind: input, shape index: {}]   ;;  %s2291_s2 = inlined_call_operand.vmem [shape: f32[2,1,128], index: 2, kind: input, shape index: {}]   ;;  %s2292_s3 = inlined_call_operand.vmem [shape: f32[2,128,128], index: 3, kind: input, shape index: {}]   ;;  %s2293_s4 = inlined_call_operand.vmem [shape: f32[2,128,128], index: 4, kind: output, shape index: {}]  }
   0x1   :  { %s2064_s17 = smov 0  }
   0x2 LB: > { %s40_s18 = sadd.s32 1, %s2029_s16  ;;  %p1606_p0 = scmp.ge.s32.totalorder %s2033_s17, 1  ;;  %s2033_s17 = sphi %s2064_s17, %s14_s17   ;;  %s2029_s16 = sphi %s2062_s16, %s2295_s16   ;;  %s2025_s15 = sphi %s2060_s15, %s2294_s15  }
   0x3   : > { %p42_p1 = scmp.ge.s32.totalorder %s40_s18, 2  ;;  %p264_p2 = scmp.lt.s32.totalorder %s2033_s17, 3 }
   0x5   : > { %s2297_s18 = smov (%p42_p1, %s40_s18), 0  ;;  %p265_p3 = pnand %p1606_p0, %p264_p2 }
   0x6   : > { %p338_p4 = scmp.lt.s32.totalorder (!%p265_p3), %s2025_s15, 1 }
   0x7   : > { %268 = sbr.rel (%p265_p3) target bundleno = 350 (0x15e), region = 36 }
   0xe   : > { %s2299_s15 = smov (!%p338_p4, %s2025_s15), 1 }
   0xf   : > { %s1890_s19 = smul.u32 320, %s2299_s15  ;;  %s1696_s26 = sshll.u32 %s2299_s15, 7 }
  0x10   : > { %s370_s29 = scalar_lea.vmem %s2291_s2, %s2299_s15  ;;  %s2207_s6 = scalar_lea.vmem %s2292_s3, %s1696_s26 }
  0x11   : > { %s2086_s22 = scalar_lea.vmem %s2290_s1, %s1890_s19  ;;  %s2123_s25 = scalar_lea.vmem %s2289_s0, %s1890_s19 }
  0x12   : > { %v1915_v0 = vld [vmem:[%s2086_s22 + $0x40] sm:$0xff]   ;;  %v1919_v4 = vld [vmem:[%s2086_s22 + $0x48] sm:$0xff]   ;;  %v1923_v8 = vld [vmem:[%s2086_s22 + $0x50] sm:$0xff]   ;;  %s2235_s9 = scalar_lea.vmem %s2293_s4, %s1696_s26 }
  0x13   : > { %v1916_v1 = vld [vmem:[%s2086_s22 + $0xc0] sm:$0xff]   ;;  %1698 = vmatprep.subr.bf16.mxu0 %v1915_v0  ;;  %v1920_v5 = vld [vmem:[%s2086_s22 + $0xc8] sm:$0xff]   ;;  %v1924_v9 = vld [vmem:[%s2086_s22 + $0xd0] sm:$0xff]  }
  0x14   : > { %v1917_v2 = vld [vmem:[%s2086_s22] sm:$0xff]   ;;  %1762 = vmatprep.subr.bf16.mxu1 %v1916_v1  ;;  %v1921_v6 = vld [vmem:[%s2086_s22 + $0x8] sm:$0xff]   ;;  %v1925_v10 = vld [vmem:[%s2086_s22 + $0x10] sm:$0xff]  }
  0x15   : > { %v1918_v3 = vld [vmem:[%s2086_s22 + $0x80] sm:$0xff]   ;;  %1699 = vmatpush3.bf16.msra.mxu0 %v1917_v2  ;;  %v1922_v7 = vld [vmem:[%s2086_s22 + $0x88] sm:$0xff]   ;;  %v1926_v11 = vld [vmem:[%s2086_s22 + $0x90] sm:$0xff]  }
  0x16   : > { %1763 = vmatpush3.bf16.msra.mxu1 %v1918_v3  ;;  %1700 = vmatprep.subr.bf16.mxu0 %v1919_v4  ;;  %v1927_v12 = vld [vmem:[%s2086_s22 + $0x58] sm:$0xff]   ;;  %v1931_v16 = vld [vmem:[%s2086_s22 + $0x60] sm:$0xff]   ;;  %v1935_v20 = vld [vmem:[%s2086_s22 + $0x68] sm:$0xff]  }
  0x17   : > { %1764 = vmatprep.subr.bf16.mxu1 %v1920_v5  ;;  %v1928_v13 = vld [vmem:[%s2086_s22 + $0xd8] sm:$0xff]   ;;  %v1932_v17 = vld [vmem:[%s2086_s22 + $0xe0] sm:$0xff]   ;;  %v1936_v21 = vld [vmem:[%s2086_s22 + $0xe8] sm:$0xff]  }
  0x18   : > { %v1929_v14 = vld [vmem:[%s2086_s22 + $0x18] sm:$0xff]   ;;  %v1933_v18 = vld [vmem:[%s2086_s22 + $0x20] sm:$0xff]   ;;  %v1937_v22 = vld [vmem:[%s2086_s22 + $0x28] sm:$0xff]  }
  0x19   : > { %1701 = vmatpush3.bf16.msra.mxu0 %v1921_v6  ;;  %v1930_v15 = vld [vmem:[%s2086_s22 + $0x98] sm:$0xff]   ;;  %v1934_v19 = vld [vmem:[%s2086_s22 + $0xa0] sm:$0xff]   ;;  %v1938_v23 = vld [vmem:[%s2086_s22 + $0xa8] sm:$0xff]  }
  0x1a   : > { %1765 = vmatpush3.bf16.msra.mxu1 %v1922_v7  ;;  %1702 = vmatprep.subr.bf16.mxu0 %v1923_v8  ;;  %v1939_v24 = vld [vmem:[%s2086_s22 + $0x70] sm:$0xff]   ;;  %v1943_v28 = vld [vmem:[%s2086_s22 + $0x78] sm:$0xff]   ;;  %v1952_v35 = vld [vmem:[%s2123_s25 + $0xc] ss:$20 sps:$4 sm:$0xff]  }
  0x1b   : > { %1766 = vmatprep.subr.bf16.mxu1 %v1924_v9  ;;  %v1940_v25 = vld [vmem:[%s2086_s22 + $0xf0] sm:$0xff]   ;;  %v1944_v29 = vld [vmem:[%s2086_s22 + $0xf8] sm:$0xff]   ;;  %v1953_v36 = vld [vmem:[%s2086_s22 + $0x100] sm:$0xff]   ;;  %1139 = vmatprep.mubr.bf16.mxu1 %v1952_v35 }
  0x1c   : > { %v1941_v26 = vld [vmem:[%s2086_s22 + $0x30] sm:$0xff]   ;;  %v1945_v30 = vld [vmem:[%s2086_s22 + $0x38] sm:$0xff]   ;;  %v1954_v37 = vld [vmem:[%s2123_s25 + $0x2c] ss:$20 sps:$4 sm:$0xff]  }
  0x1d   : > { %1703 = vmatpush3.bf16.msra.mxu0 %v1925_v10  ;;  %v1942_v27 = vld [vmem:[%s2086_s22 + $0xb0] sm:$0xff]   ;;  %v1946_v31 = vld [vmem:[%s2086_s22 + $0xb8] sm:$0xff]   ;;  %v1960_v39 = vld [vmem:[%s2086_s22 + $0x108] sm:$0xff]  }
  0x1e   : > { %1767 = vmatpush3.bf16.msra.mxu1 %v1926_v11  ;;  %1704 = vmatprep.subr.bf16.mxu0 %v1927_v12  ;;  %v1947_v32 = vld [vmem:[%s2123_s25] ss:$20 sps:$4 sm:$0xff]   ;;  %v1949_v33 = vld [vmem:[%s2123_s25 + $0x4] ss:$20 sps:$4 sm:$0xff]   ;;  %v1950_v34 = vld [vmem:[%s2123_s25 + $0x8] ss:$20 sps:$4 sm:$0xff]  }
  0x1f   : > { %1768 = vmatprep.subr.bf16.mxu1 %v1928_v13  ;;  %1042 = vmatprep.mubr.bf16.mxu0 %v1949_v33  ;;  %v1956_v38 = vld [vmem:[%s2123_s25 + $0x34] ss:$20 sps:$4 sm:$0xff]   ;;  %v1959_v41 = vld [vmem:[%s2123_s25 + $0x30] ss:$20 sps:$4 sm:$0xff]   ;;  %v1974_v45 = vld [vmem:[%s2086_s22 + $0x118] sm:$0xff]  }
  0x20   : > { %v1958_v40 = vld [vmem:[%s2123_s25 + $0x28] ss:$20 sps:$4 sm:$0xff]   ;;  %v1967_v44 = vld [vmem:[%s2086_s22 + $0x110] sm:$0xff]   ;;  %v1966_v47 = vld [vmem:[%s2123_s25 + $0x58] ss:$20 sps:$4 sm:$0xff]  }
  0x21   : > { %1705 = vmatpush3.bf16.msra.mxu0 %v1929_v14  ;;  %v1961_v42 = vld [vmem:[%s2123_s25 + $0x54] ss:$20 sps:$4 sm:$0xff]   ;;  %v1963_v43 = vld [vmem:[%s2123_s25 + $0x5c] ss:$20 sps:$4 sm:$0xff]   ;;  %v1970_v49 = vld [vmem:[%s2123_s25 + $0x84] ss:$20 sps:$4 sm:$0xff]  }
  0x22   : > { %1769 = vmatpush3.bf16.msra.mxu1 %v1930_v15  ;;  %1706 = vmatprep.subr.bf16.mxu0 %v1931_v16  ;;  %v1965_v46 = vld [vmem:[%s2123_s25 + $0x50] ss:$20 sps:$4 sm:$0xff]   ;;  %v1988_v51 = vld [vmem:[%s2086_s22 + $0x128] sm:$0xff]   ;;  %v1973_v53 = vld [vmem:[%s2123_s25 + $0x80] ss:$20 sps:$4 sm:$0xff]  }
  0x23   : > { %1770 = vmatprep.subr.bf16.mxu1 %v1932_v17  ;;  %v1968_v48 = vld [vmem:[%s2123_s25 + $0x7c] ss:$20 sps:$4 sm:$0xff]   ;;  %v1981_v50 = vld [vmem:[%s2086_s22 + $0x120] sm:$0xff]   ;;  %v1972_v52 = vld [vmem:[%s2123_s25 + $0x78] ss:$20 sps:$4 sm:$0xff]  }
  0x24   : > { %v1975_v54 = vld [vmem:[%s2123_s25 + $0xa4] ss:$20 sps:$4 sm:$0xff]   ;;  %v1995_v55 = vld [vmem:[%s2086_s22 + $0x130] sm:$0xff]   ;;  %v1977_v56 = vld [vmem:[%s2123_s25 + $0xac] ss:$20 sps:$4 sm:$0xff]  }
  0x25   : > { %1707 = vmatpush3.bf16.msra.mxu0 %v1933_v18  ;;  %v2002_v57 = vld [vmem:[%s2086_s22 + $0x138] sm:$0xff]   ;;  %v1979_v58 = vld [vmem:[%s2123_s25 + $0xa0] ss:$20 sps:$4 sm:$0xff]   ;;  %v1987_v63 = vld [vmem:[%s2123_s25 + $0xd0] ss:$20 sps:$4 sm:$0xff]  }
  0x26   : > { %1771 = vmatpush3.bf16.msra.mxu1 %v1934_v19  ;;  %1708 = vmatprep.subr.bf16.mxu0 %v1935_v20  ;;  %v1980_v59 = vld [vmem:[%s2123_s25 + $0xa8] ss:$20 sps:$4 sm:$0xff]   ;;  %v1982_v60 = vld [vmem:[%s2123_s25 + $0xcc] ss:$20 sps:$4 sm:$0xff]   ;;  %v1993_v2 = vld [vmem:[%s2123_s25 + $0xf0] ss:$20 sps:$4 sm:$0xff]  }
  0x27   : > { %1772 = vmatprep.subr.bf16.mxu1 %v1936_v21  ;;  %v1984_v61 = vld [vmem:[%s2123_s25 + $0xd4] ss:$20 sps:$4 sm:$0xff]   ;;  %v1991_v1 = vld [vmem:[%s2123_s25 + $0xfc] ss:$20 sps:$4 sm:$0xff]   ;;  %v1994_v3 = vld [vmem:[%s2123_s25 + $0xf8] ss:$20 sps:$4 sm:$0xff]  }
  0x28   : > { %v1986_v62 = vld [vmem:[%s2123_s25 + $0xc8] ss:$20 sps:$4 sm:$0xff]   ;;  %v1998_v5 = vld [vmem:[%s2123_s25 + $0x124] ss:$20 sps:$4 sm:$0xff]   ;;  %v2001_v7 = vld [vmem:[%s2123_s25 + $0x120] ss:$20 sps:$4 sm:$0xff]  }
  0x29   : > { %1709 = vmatpush3.bf16.msra.mxu0 %v1937_v22  ;;  %v1989_v0 = vld [vmem:[%s2123_s25 + $0xf4] ss:$20 sps:$4 sm:$0xff]   ;;  %v1996_v4 = vld [vmem:[%s2123_s25 + $0x11c] ss:$20 sps:$4 sm:$0xff]   ;;  %v2000_v6 = vld [vmem:[%s2123_s25 + $0x118] ss:$20 sps:$4 sm:$0xff]  }
  0x2a   : > { %1773 = vmatpush3.bf16.msra.mxu1 %v1938_v23  ;;  %1710 = vmatprep.subr.bf16.mxu0 %v1939_v24  ;;  %v2003_v8 = vld [vmem:[%s2123_s25 + $0x10] ss:$20 sps:$4 sm:$0xff]   ;;  %v2005_v10 = vld [vmem:[%s2123_s25 + $0x38] ss:$20 sps:$4 sm:$0xff]   ;;  %v2007_v12 = vld [vmem:[%s2123_s25 + $0x60] ss:$20 sps:$4 sm:$0xff]  }
  0x2b   : > { %1774 = vmatprep.subr.bf16.mxu1 %v1940_v25  ;;  %v2004_v9 = vld [vmem:[%s2123_s25 + $0xb0] ss:$20 sps:$4 sm:$0xff]   ;;  %v2006_v11 = vld [vmem:[%s2123_s25 + $0xd8] ss:$20 sps:$4 sm:$0xff]   ;;  %v2008_v13 = vld [vmem:[%s2123_s25 + $0x100] ss:$20 sps:$4 sm:$0xff]  }
  0x2c   : > { %v2009_v14 = vld [vmem:[%s2123_s25 + $0x88] ss:$20 sps:$4 sm:$0xff]  }
  0x2d   : > { %1711 = vmatpush3.bf16.msra.mxu0 %v1941_v26  ;;  %v2010_v15 = vld [vmem:[%s2123_s25 + $0x128] ss:$20 sps:$4 sm:$0xff]  }
  0x2e   : > { %1775 = vmatpush3.bf16.msra.mxu1 %v1942_v27  ;;  %1712 = vmatprep.subr.bf16.mxu0 %v1943_v28 }
  0x2f   : > { %1776 = vmatprep.subr.bf16.mxu1 %v1944_v29 }
  0x31   : > { %1713 = vmatpush3.bf16.msra.mxu0 %v1945_v30 }
  0x32   : > { %1777 = vmatpush3.bf16.msra.mxu1 %v1946_v31  ;;  %1842 = vmatprep.subr.bf16.mxu0 %v1953_v36 }
  0x33   : > { %1874 = vmatprep.subr.bf16.mxu1 %v1953_v36 }
  0x34   : > { %1043 = vmatmul.mubr.bf16.vlgmr.msra.gmra.mrb[0].mxu0 %v1947_v32 }
  0x35   : > { %1140 = vmatmul.mubr.bf16.vlgmr.msra.gmra.mrb[0].mxu1 %v1950_v34  ;;  %1843 = vmatpush3.bf16.msra.mxu0 %v1953_v36 }
  0x36   : > { %1882 = vmatpush3.bf16.msra.mxu1 %v1953_v36  ;;  %1050 = vmatprep.mubr.bf16.mxu0 %v1954_v37 }
  0x37   : > { %1147 = vmatprep.mubr.bf16.mxu1 %v1956_v38  ;;  %1844 = vmatprep.subr.bf16.mxu0 %v1960_v39 }
  0x38   : > { %1875 = vmatprep.subr.bf16.mxu1 %v1960_v39 }
  0x39   : > { %1845 = vmatpush3.bf16.msra.mxu0 %v1960_v39 }
  0x3a   : > { %1883 = vmatpush3.bf16.msra.mxu1 %v1960_v39  ;;  %1846 = vmatprep.subr.bf16.mxu0 %v1967_v44 }
  0x3b   : > { %1876 = vmatprep.subr.bf16.mxu1 %v1967_v44 }
  0x3c   : > { %1051 = vmatmul.mubr.bf16.gmra.mrb[4].mxu0 %v1958_v40 }
  0x3d   : > { %1148 = vmatmul.mubr.bf16.gmra.mrb[4].mxu1 %v1959_v41  ;;  %1058 = vmatprep.mubr.bf16.mxu0 %v1961_v42 }
  0x3e   : > { %1155 = vmatprep.mubr.bf16.mxu1 %v1963_v43  ;;  %1847 = vmatpush3.bf16.msra.mxu0 %v1967_v44 }
  0x3f   : > { %1884 = vmatpush3.bf16.msra.mxu1 %v1967_v44  ;;  %1848 = vmatprep.subr.bf16.mxu0 %v1974_v45 }
  0x40   : > { %1877 = vmatprep.subr.bf16.mxu1 %v1974_v45 }
  0x42   : > { %1849 = vmatpush3.bf16.msra.mxu0 %v1974_v45 }
  0x43   : > { %1885 = vmatpush3.bf16.msra.mxu1 %v1974_v45  ;;  %1850 = vmatprep.subr.bf16.mxu0 %v1981_v50 }
  0x44   : > { %1059 = vmatmul.mubr.bf16.gmra.mrb[8].mxu0 %v1965_v46  ;;  %1878 = vmatprep.subr.bf16.mxu1 %v1981_v50 }
  0x45   : > { %1156 = vmatmul.mubr.bf16.gmra.mrb[8].mxu1 %v1966_v47  ;;  %1066 = vmatprep.mubr.bf16.mxu0 %v1968_v48 }
  0x46   : > { %1163 = vmatprep.mubr.bf16.mxu1 %v1970_v49  ;;  %1851 = vmatpush3.bf16.msra.mxu0 %v1981_v50 }
  0x47   : > { %1886 = vmatpush3.bf16.msra.mxu1 %v1981_v50  ;;  %1852 = vmatprep.subr.bf16.mxu0 %v1988_v51 }
  0x48   : > { %1879 = vmatprep.subr.bf16.mxu1 %v1988_v51 }
  0x4a   : > { %1853 = vmatpush3.bf16.msra.mxu0 %v1988_v51 }
  0x4b   : > { %1887 = vmatpush3.bf16.msra.mxu1 %v1988_v51  ;;  %1854 = vmatprep.subr.bf16.mxu0 %v1995_v55 }
  0x4c   : > { %1067 = vmatmul.mubr.bf16.gmra.mrb[12].mxu0 %v1972_v52  ;;  %1880 = vmatprep.subr.bf16.mxu1 %v1995_v55 }
  0x4d   : > { %1164 = vmatmul.mubr.bf16.gmra.mrb[12].mxu1 %v1973_v53  ;;  %1074 = vmatprep.mubr.bf16.mxu0 %v1975_v54 }
  0x4e   : > { %1171 = vmatprep.mubr.bf16.mxu1 %v1977_v56  ;;  %1855 = vmatpush3.bf16.msra.mxu0 %v1995_v55 }
  0x4f   : > { %1888 = vmatpush3.bf16.msra.mxu1 %v1995_v55  ;;  %1856 = vmatprep.subr.bf16.mxu0 %v2002_v57 }
  0x50   : > { %1881 = vmatprep.subr.bf16.mxu1 %v2002_v57 }
  0x52   : > { %1857 = vmatpush3.bf16.msra.mxu0 %v2002_v57 }
  0x53   : > { %1889 = vmatpush3.bf16.msra.mxu1 %v2002_v57 }
  0x54   : > { %1075 = vmatmul.mubr.bf16.gmra.mrb[16].mxu0 %v1979_v58 }
  0x55   : > { %1172 = vmatmul.mubr.bf16.gmra.mrb[16].mxu1 %v1980_v59  ;;  %1082 = vmatprep.mubr.bf16.mxu0 %v1982_v60 }
  0x56   : > { %1179 = vmatprep.mubr.bf16.mxu1 %v1984_v61 }
  0x5c   : > { %1083 = vmatmul.mubr.bf16.gmra.mrb[20].mxu0 %v1986_v62 }
  0x5d   : > { %1180 = vmatmul.mubr.bf16.gmra.mrb[20].mxu1 %v1987_v63  ;;  %1090 = vmatprep.mubr.bf16.mxu0 %v1989_v0 }
  0x5e   : > { %1187 = vmatprep.mubr.bf16.mxu1 %v1991_v1 }
  0x64   : > { %1091 = vmatmul.mubr.bf16.gmra.mrb[24].mxu0 %v1993_v2 }
  0x65   : > { %1188 = vmatmul.mubr.bf16.gmra.mrb[24].mxu1 %v1994_v3  ;;  %1098 = vmatprep.mubr.bf16.mxu0 %v1996_v4 }
  0x66   : > { %1195 = vmatprep.mubr.bf16.mxu1 %v1998_v5 }
  0x6c   : > { %1099 = vmatmul.mubr.bf16.gmra.mrb[28].mxu0 %v2000_v6 }
  0x6d   : > { %1196 = vmatmul.mubr.bf16.gmra.mrb[28].mxu1 %v2001_v7  ;;  %1858 = vmatprep.mubr.bf16.mxu0 %v2003_v8 }
  0x6e   : > { %1866 = vmatprep.mubr.bf16.mxu1 %v2004_v9 }
  0x74   : > { %1859 = vmatmul.mubr.bf16.vlgmr.msra.gmra.mrb[32].mxu0 %v2005_v10 }
  0x75   : > { %1867 = vmatmul.mubr.bf16.vlgmr.msra.gmra.mrb[32].mxu1 %v2006_v11  ;;  %1862 = vmatprep.mubr.bf16.mxu0 %v2007_v12 }
  0x76   : > { %1870 = vmatprep.mubr.bf16.mxu1 %v2008_v13 }
  0x7c   : > { %1863 = vmatmul.mubr.bf16.gmra.mrb[36].mxu0 %v2009_v14 }
  0x7d   : > { %1871 = vmatmul.mubr.bf16.gmra.mrb[36].mxu1 %v2010_v15 }
 0x107   : > { %v1714_v16 = vpop.f32.mrb[0].mxu0 }
 0x108   : > { %v1778_v17 = vpop.f32.mrb[0].mxu1  ;;  %v1715_v18 = vpop.f32.mrb[1].mxu0 }
 0x109   : > { %v1716_v19 = vadd.f32 %v1715_v18, %v1714_v16  ;;  %v1779_v20 = vpop.f32.mrb[1].mxu1  ;;  %v1717_v21 = vpop.f32.mrb[2].mxu0 }
 0x10a   : > { %v1780_v22 = vadd.f32 %v1779_v20, %v1778_v17  ;;  %v1781_v23 = vpop.f32.mrb[2].mxu1  ;;  %v1718_v24 = vpop.f32.mrb[3].mxu0 }
 0x10b   : > { %v1719_v25 = vadd.f32 %v1718_v24, %v1717_v21  ;;  %v1782_v26 = vpop.f32.mrb[3].mxu1 }
 0x10c   : > { %v1783_v27 = vadd.f32 %v1782_v26, %v1781_v23  ;;  %v2175_v28 = vadd.f32 %v1780_v22, %v1716_v19 }
 0x10e   : > { %v2177_v29 = vadd.f32 %v1783_v27, %v1719_v25 }
 0x10f   : > { %v1720_v30 = vpop.f32.mrb[4].mxu0 }
 0x110   : > { %v1784_v31 = vpop.f32.mrb[4].mxu1  ;;  %v1721_v32 = vpop.f32.mrb[5].mxu0 }
 0x111   : > { %v1722_v33 = vadd.f32 %v1721_v32, %v1720_v30  ;;  %v1785_v34 = vpop.f32.mrb[5].mxu1  ;;  %v1723_v35 = vpop.f32.mrb[6].mxu0 }
 0x112   : > { %v1786_v36 = vadd.f32 %v1785_v34, %v1784_v31  ;;  %v1787_v37 = vpop.f32.mrb[6].mxu1  ;;  %v1724_v38 = vpop.f32.mrb[7].mxu0 }
 0x113   : > { %v1725_v39 = vadd.f32 %v1724_v38, %v1723_v35  ;;  %v1788_v40 = vpop.f32.mrb[7].mxu1 }
 0x114   : > { %v1789_v41 = vadd.f32 %v1788_v40, %v1787_v37  ;;  %v2179_v42 = vadd.f32 %v1786_v36, %v1722_v33 }
 0x116   : > { %v2181_v43 = vadd.f32 %v1789_v41, %v1725_v39 }
 0x117   : > { %v1726_v44 = vpop.f32.mrb[8].mxu0 }
 0x118   : > { %v1790_v45 = vpop.f32.mrb[8].mxu1  ;;  %v1727_v46 = vpop.f32.mrb[9].mxu0 }
 0x119   : > { %v1728_v47 = vadd.f32 %v1727_v46, %v1726_v44  ;;  %v1791_v48 = vpop.f32.mrb[9].mxu1  ;;  %v1729_v49 = vpop.f32.mrb[10].mxu0 }
 0x11a   : > { %v1792_v50 = vadd.f32 %v1791_v48, %v1790_v45  ;;  %v1793_v51 = vpop.f32.mrb[10].mxu1  ;;  %v1730_v52 = vpop.f32.mrb[11].mxu0 }
 0x11b   : > { %v1731_v53 = vadd.f32 %v1730_v52, %v1729_v49  ;;  %v1794_v54 = vpop.f32.mrb[11].mxu1 }
 0x11c   : > { %v1795_v55 = vadd.f32 %v1794_v54, %v1793_v51  ;;  %v2183_v56 = vadd.f32 %v1792_v50, %v1728_v47 }
 0x11e   : > { %v2185_v57 = vadd.f32 %v1795_v55, %v1731_v53 }
 0x11f   : > { %v1732_v58 = vpop.f32.mrb[12].mxu0 }
 0x120   : > { %v1796_v59 = vpop.f32.mrb[12].mxu1  ;;  %v1733_v60 = vpop.f32.mrb[13].mxu0 }
 0x121   : > { %v1734_v61 = vadd.f32 %v1733_v60, %v1732_v58  ;;  %v1797_v62 = vpop.f32.mrb[13].mxu1  ;;  %v1735_v63 = vpop.f32.mrb[14].mxu0 }
 0x122   : > { %v1798_v0 = vadd.f32 %v1797_v62, %v1796_v59  ;;  %v1799_v1 = vpop.f32.mrb[14].mxu1  ;;  %v1736_v2 = vpop.f32.mrb[15].mxu0 }
 0x123   : > { %v1737_v3 = vadd.f32 %v1736_v2, %v1735_v63  ;;  %v1800_v4 = vpop.f32.mrb[15].mxu1 }
 0x124   : > { %v1801_v5 = vadd.f32 %v1800_v4, %v1799_v1  ;;  %v2187_v6 = vadd.f32 %v1798_v0, %v1734_v61 }
 0x126   : > { %v2189_v7 = vadd.f32 %v1801_v5, %v1737_v3 }
 0x127   : > { %v1738_v8 = vpop.f32.mrb[16].mxu0 }
 0x128   : > { %v1802_v9 = vpop.f32.mrb[16].mxu1  ;;  %v1739_v10 = vpop.f32.mrb[17].mxu0 }
 0x129   : > { %v1740_v11 = vadd.f32 %v1739_v10, %v1738_v8  ;;  %v1803_v12 = vpop.f32.mrb[17].mxu1  ;;  %v1741_v13 = vpop.f32.mrb[18].mxu0 }
 0x12a   : > { %v1804_v14 = vadd.f32 %v1803_v12, %v1802_v9  ;;  %v1805_v15 = vpop.f32.mrb[18].mxu1  ;;  %v1742_v16 = vpop.f32.mrb[19].mxu0  ;;  %v2211_v9 = vld [vmem:[%s370_s29] ss:$0 sm:$0xff] }
 0x12b   : > { %v1743_v17 = vadd.f32 %v1742_v16, %v1741_v13  ;;  %v1806_v18 = vpop.f32.mrb[19].mxu1  ;;  %v1377_v13 = vld [vmem:[%s2207_s6 + $0x10] sm:$0xff] }
 0x12c   : > { %v1807_v19 = vadd.f32 %v1806_v18, %v1805_v15  ;;  %v1174_v20 = vadd.f32 %v1804_v14, %v1740_v11 }
 0x12e   : > { %v2191_v21 = vadd.f32 %v1807_v19, %v1743_v17  ;;  %v1385_v19 = vld [vmem:[%s2207_s6 + $0x50] sm:$0xff] }
 0x12f   : > { %v1744_v22 = vpop.f32.mrb[20].mxu0 }
 0x130   : > { %v1808_v23 = vpop.f32.mrb[20].mxu1  ;;  %v1745_v24 = vpop.f32.mrb[21].mxu0 }
 0x131   : > { %v1746_v25 = vadd.f32 %v1745_v24, %v1744_v22  ;;  %v1809_v26 = vpop.f32.mrb[21].mxu1  ;;  %v1747_v27 = vpop.f32.mrb[22].mxu0  ;;  %v1375_v22 = vld [vmem:[%s2207_s6] sm:$0xff] }
 0x132   : > { %v1810_v30 = vadd.f32 %v1809_v26, %v1808_v23  ;;  %v1811_v31 = vpop.f32.mrb[22].mxu1  ;;  %v1748_v32 = vpop.f32.mrb[23].mxu0 }
 0x133   : > { %v1749_v33 = vadd.f32 %v1748_v32, %v1747_v27  ;;  %v1812_v34 = vpop.f32.mrb[23].mxu1 }
 0x134   : > { %v1813_v35 = vadd.f32 %v1812_v34, %v1811_v31  ;;  %v1182_v36 = vadd.f32 %v1810_v30, %v1746_v25  ;;  %v1383_v30 = vld [vmem:[%s2207_s6 + $0x40] sm:$0xff] }
 0x136   : > { %v1185_v37 = vadd.f32 %v1813_v35, %v1749_v33 }
 0x137   : > { %v1750_v38 = vpop.f32.mrb[24].mxu0 }
 0x138   : > { %v1814_v39 = vpop.f32.mrb[24].mxu1  ;;  %v1751_v40 = vpop.f32.mrb[25].mxu0 }
 0x139   : > { %v1752_v41 = vadd.f32 %v1751_v40, %v1750_v38  ;;  %v1815_v44 = vpop.f32.mrb[25].mxu1  ;;  %v1753_v45 = vpop.f32.mrb[26].mxu0 }
 0x13a   : > { %v1816_v46 = vadd.f32 %v1815_v44, %v1814_v39  ;;  %v1817_v47 = vpop.f32.mrb[26].mxu1  ;;  %v1754_v48 = vpop.f32.mrb[27].mxu0 }
 0x13b   : > { %v1755_v49 = vadd.f32 %v1754_v48, %v1753_v45  ;;  %v1818_v50 = vpop.f32.mrb[27].mxu1 }
 0x13c   : > { %v1819_v51 = vadd.f32 %v1818_v50, %v1817_v47  ;;  %v2193_v52 = vadd.f32 %v1816_v46, %v1752_v41  ;;  %v1384_v41 = vld [vmem:[%s2207_s6 + $0x48] sm:$0xff] }
 0x13e   : > { %v2195_v53 = vadd.f32 %v1819_v51, %v1755_v49 }
 0x13f   : > { %v1756_v54 = vpop.f32.mrb[28].mxu0 }
 0x140   : > { %v1820_v55 = vpop.f32.mrb[28].mxu1  ;;  %v1757_v58 = vpop.f32.mrb[29].mxu0 }
 0x141   : > { %v1758_v59 = vadd.f32 %v1757_v58, %v1756_v54  ;;  %v1821_v60 = vpop.f32.mrb[29].mxu1  ;;  %v1759_v61 = vpop.f32.mrb[30].mxu0 }
 0x142   : > { %v1822_v62 = vadd.f32 %v1821_v60, %v1820_v55  ;;  %v1823_v63 = vpop.f32.mrb[30].mxu1  ;;  %v1760_v0 = vpop.f32.mrb[31].mxu0 }
 0x143   : > { %v1761_v1 = vadd.f32 %v1760_v0, %v1759_v61  ;;  %v1824_v2 = vpop.f32.mrb[31].mxu1  ;;  %v1381_v0 = vld [vmem:[%s2207_s6 + $0x30] sm:$0xff] }
 0x144   : > { %v1825_v3 = vadd.f32 %v1824_v2, %v1823_v63  ;;  %v1198_v4 = vadd.f32 %v1822_v62, %v1758_v59 }
 0x146   : > { %v2209_v5 = vadd.f32 %v1825_v3, %v1761_v1 }
 0x147   : > { %v1860_v8 = vpop.f32.mrb[32].mxu0 }
 0x148   : > { %v1247_v10 = vadd.f32 %v1860_v8, %v2179_v42  ;;  %v1868_v11 = vpop.f32.mrb[32].mxu1  ;;  %v1238_v12 = vpop.f32.mrb[33].mxu0 }
 0x149   : > { %v1279_v14 = vadd.f32 %v1868_v11, %v1182_v36  ;;  %v1239_v15 = vadd.f32 %v1238_v12, %v2175_v28  ;;  %v1270_v16 = vpop.f32.mrb[33].mxu1  ;;  %v1861_v17 = vpop.f32.mrb[34].mxu0  ;;  %v1378_v28 = vld [vmem:[%s2207_s6 + $0x18] sm:$0xff]  ;;  %v1376_v36 = vld [vmem:[%s2207_s6 + $0x8] sm:$0xff]  ;;  %v1389_v11 = vld [vmem:[%s2207_s6 + $0x70] sm:$0xff] }
 0x14a   : > { %v1361_v18 = vadd.f32 %v2211_v9, %v1247_v10  ;;  %v1271_v23 = vadd.f32 %v1270_v16, %v1174_v20  ;;  %v1250_v24 = vadd.f32 %v1861_v17, %v2181_v43  ;;  %v1869_v42 = vpop.f32.mrb[34].mxu1  ;;  %v1241_v25 = vpop.f32.mrb[35].mxu0  ;;  %v1386_v43 = vld [vmem:[%s2207_s6 + $0x58] sm:$0xff]  ;;  %v1379_v12 = vld [vmem:[%s2207_s6 + $0x20] sm:$0xff] }
 0x14b   : > { %v1369_v26 = vadd.f32 %v2211_v9, %v1279_v14  ;;  %v1359_v27 = vadd.f32 %v2211_v9, %v1239_v15  ;;  %v1282_v31 = vadd.f32 %v1869_v42, %v1185_v37  ;;  %v1242_v32 = vadd.f32 %v1241_v25, %v2177_v29  ;;  %v1273_v33 = vpop.f32.mrb[35].mxu1  ;;  %v1387_v17 = vld [vmem:[%s2207_s6 + $0x60] sm:$0xff]  ;;  %v1390_v42 = vld [vmem:[%s2207_s6 + $0x78] sm:$0xff]  ;;  %v1380_v25 = vld [vmem:[%s2207_s6 + $0x28] sm:$0xff] }
 0x14c   : > { %v1393_v34 = vadd.f32 %v1377_v13, %v1361_v18  ;;  %v1367_v35 = vadd.f32 %v2211_v9, %v1271_v23  ;;  %v1362_v20 = vadd.f32 %v2211_v9, %v1250_v24  ;;  %v1274_v38 = vadd.f32 %v1273_v33, %v2191_v21  ;;  %v1382_v18 = vld [vmem:[%s2207_s6 + $0x38] sm:$0xff] }
 0x14d   : > { %v1401_v37 = vadd.f32 %v1385_v19, %v1369_v26  ;;  %v1391_v39 = vadd.f32 %v1375_v22, %v1359_v27  ;;  %v1370_v29 = vadd.f32 %v2211_v9, %v1282_v31  ;;  %v1360_v40 = vadd.f32 %v2211_v9, %v1242_v32 }
 0x14e   : > { %v1409_v44 = vmax.f32 %v1393_v34, 0.0  ;;  %v1399_v45 = vadd.f32 %v1383_v30, %v1367_v35  ;;  %v1394_v46 = vadd.f32 %v1378_v28, %v1362_v20  ;;  %v1368_v21 = vadd.f32 %v2211_v9, %v1274_v38 }
 0x14f   : > { %v1417_v47 = vmax.f32 %v1401_v37, 0.0  ;;  %v1407_v48 = vmax.f32 %v1391_v39, 0.0  ;;  %v1402_v49 = vadd.f32 %v1386_v43, %v1370_v29  ;;  %v1392_v50 = vadd.f32 %v1376_v36, %v1360_v40  ;;  %v1864_v51 = vpop.f32.mrb[36].mxu0 }
 0x150   : > { %1425 = vst [vmem:[%s2235_s9 + $0x10] sm:$0xff] %v1409_v44  ;;  %v1415_v54 = vmax.f32 %v1399_v45, 0.0  ;;  %v1410_v55 = vmax.f32 %v1394_v46, 0.0  ;;  %v1400_v58 = vadd.f32 %v1384_v41, %v1368_v21  ;;  %v1263_v59 = vadd.f32 %v1864_v51, %v2187_v6  ;;  %v1872_v60 = vpop.f32.mrb[36].mxu1  ;;  %v1254_v61 = vpop.f32.mrb[37].mxu0 }
 0x151   : > { %1433 = vst [vmem:[%s2235_s9 + $0x50] sm:$0xff] %v1417_v47  ;;  %1423 = vst [vmem:[%s2235_s9] sm:$0xff] %v1407_v48  ;;  %v1418_v62 = vmax.f32 %v1402_v49, 0.0  ;;  %v1408_v63 = vmax.f32 %v1392_v50, 0.0  ;;  %v1295_v1 = vadd.f32 %v1872_v60, %v1198_v4  ;;  %v1255_v2 = vadd.f32 %v1254_v61, %v2183_v56  ;;  %v1286_v3 = vpop.f32.mrb[37].mxu1  ;;  %v1865_v8 = vpop.f32.mrb[38].mxu0 }
 0x152   : > { %1431 = vst [vmem:[%s2235_s9 + $0x40] sm:$0xff] %v1415_v54  ;;  %1426 = vst [vmem:[%s2235_s9 + $0x18] sm:$0xff] %v1410_v55  ;;  %v1416_v6 = vmax.f32 %v1400_v58, 0.0  ;;  %v1365_v10 = vadd.f32 %v2211_v9, %v1263_v59  ;;  %v1287_v13 = vadd.f32 %v1286_v3, %v2193_v52  ;;  %v1266_v14 = vadd.f32 %v1865_v8, %v2189_v7  ;;  %v1873_v4 = vpop.f32.mrb[38].mxu1  ;;  %v1257_v56 = vpop.f32.mrb[39].mxu0 }
 0x153   : > { %1434 = vst [vmem:[%s2235_s9 + $0x58] sm:$0xff] %v1418_v62  ;;  %1424 = vst [vmem:[%s2235_s9 + $0x8] sm:$0xff] %v1408_v63  ;;  %v1373_v15 = vadd.f32 %v2211_v9, %v1295_v1  ;;  %v1363_v16 = vadd.f32 %v2211_v9, %v1255_v2  ;;  %v1298_v19 = vadd.f32 %v1873_v4, %v2209_v5  ;;  %v1289_v52 = vpop.f32.mrb[39].mxu1  ;;  %v1388_v5 = vld [vmem:[%s2207_s6 + $0x68] sm:$0xff] }
 0x154   : > { %v1258_v22 = vadd.f32 %v1257_v56, %v2185_v57  ;;  %1432 = vst [vmem:[%s2235_s9 + $0x48] sm:$0xff] %v1416_v6  ;;  %v1397_v7 = vadd.f32 %v1381_v0, %v1365_v10  ;;  %v1371_v23 = vadd.f32 %v2211_v9, %v1287_v13  ;;  %v1366_v24 = vadd.f32 %v2211_v9, %v1266_v14 }
 0x155   : > { %v1290_v26 = vadd.f32 %v1289_v52, %v2195_v53  ;;  %v1405_v27 = vadd.f32 %v1389_v11, %v1373_v15  ;;  %v1395_v30 = vadd.f32 %v1379_v12, %v1363_v16  ;;  %v1374_v28 = vadd.f32 %v2211_v9, %v1298_v19 }
 0x156   : > { %v1364_v57 = vadd.f32 %v2211_v9, %v1258_v22  ;;  %v1413_v31 = vmax.f32 %v1397_v7, 0.0  ;;  %v1403_v32 = vadd.f32 %v1387_v17, %v1371_v23  ;;  %v1398_v33 = vadd.f32 %v1382_v18, %v1366_v24 }
 0x157   : > { %v1372_v34 = vadd.f32 %v2211_v9, %v1290_v26  ;;  %v1421_v35 = vmax.f32 %v1405_v27, 0.0  ;;  %v1411_v53 = vmax.f32 %v1395_v30, 0.0  ;;  %v1406_v20 = vadd.f32 %v1390_v42, %v1374_v28 }
 0x158   : > { %v1396_v43 = vadd.f32 %v1380_v25, %v1364_v57  ;;  %1429 = vst [vmem:[%s2235_s9 + $0x30] sm:$0xff] %v1413_v31  ;;  %v1419_v36 = vmax.f32 %v1403_v32, 0.0  ;;  %v1414_v38 = vmax.f32 %v1398_v33, 0.0 }
 0x159   : > { %v1404_v37 = vadd.f32 %v1388_v5, %v1372_v34  ;;  %1437 = vst [vmem:[%s2235_s9 + $0x70] sm:$0xff] %v1421_v35  ;;  %1427 = vst [vmem:[%s2235_s9 + $0x20] sm:$0xff] %v1411_v53  ;;  %v1422_v39 = vmax.f32 %v1406_v20, 0.0 }
 0x15a   : > { %v1412_v29 = vmax.f32 %v1396_v43, 0.0  ;;  %1435 = vst [vmem:[%s2235_s9 + $0x60] sm:$0xff] %v1419_v36  ;;  %1430 = vst [vmem:[%s2235_s9 + $0x38] sm:$0xff] %v1414_v38 }
 0x15b   : > { %v1420_v40 = vmax.f32 %v1404_v37, 0.0  ;;  %1438 = vst [vmem:[%s2235_s9 + $0x78] sm:$0xff] %v1422_v39 }
 0x15c   : > { %1428 = vst [vmem:[%s2235_s9 + $0x28] sm:$0xff] %v1412_v29 }
 0x15d   : > { %1436 = vst [vmem:[%s2235_s9 + $0x68] sm:$0xff] %v1420_v40 }
 0x15e PF: > { %s14_s17 = sadd.s32 1, %s2033_s17   ;;  %s2294_s15 = smov %s2029_s16 }
 0x15f   : > { %p11_p5 = scmp.ge.s32.totalorder %s14_s17, 4   ;;  %s2295_s16 = smov %s2297_s18 }
 0x161   :  { %13 = sbr.rel (!%p11_p5) target bundleno = 2 (0x2), region = 83 }

// kernel: encoder_forward.27
= control target key start
LH: loop header
LB: loop body
LE: loop exit
PB: predicated region body
PF: predicated region fallthrough
CT: control target
= control target key end

     0   :  { %s1316_s12 = smov 0   ;;  %s1318_s13 = smov 0   ;;  %s1415_s0 = inlined_call_operand.vmem [shape: bf16[2,32,640], index: 0, kind: input, shape index: {}]   ;;  %s1416_s1 = inlined_call_operand.vmem [shape: bf16[2,640,128], index: 1, kind: input, shape index: {}]   ;;  %s1417_s2 = inlined_call_operand.vmem [shape: f32[2,1,128], index: 2, kind: input, shape index: {}]   ;;  %s1418_s3 = inlined_call_operand.vmem [shape: f32[2,32,128], index: 3, kind: output, shape index: {}]  }
   0x1   :  { %s1320_s14 = smov 0  }
   0x2 LB: > { %s39_s15 = sadd.s32 1, %s1290_s13  ;;  %p1047_p0 = scmp.ge.s32.totalorder %s1294_s14, 1  ;;  %s1294_s14 = sphi %s1320_s14, %s13_s14   ;;  %s1290_s13 = sphi %s1318_s13, %s1420_s13   ;;  %s1286_s12 = sphi %s1316_s12, %s1419_s12  }
   0x3   : > { %p41_p1 = scmp.ge.s32.totalorder %s39_s15, 2  ;;  %p217_p2 = scmp.lt.s32.totalorder %s1294_s14, 3 }
   0x5   : > { %s1422_s15 = smov (%p41_p1, %s39_s15), 0  ;;  %p218_p3 = pnand %p1047_p0, %p217_p2 }
   0x6   : > { %p277_p4 = scmp.lt.s32.totalorder (!%p218_p3), %s1286_s12, 1 }
   0x7   : > { %221 = sbr.rel (%p218_p3) target bundleno = 306 (0x132), region = 32 }
   0xe   : > { %s1424_s12 = smov (!%p277_p4, %s1286_s12), 1 }
   0xf   : > { %s1193_s16 = smul.u32 320, %s1424_s12  ;;  %s309_s26 = scalar_lea.vmem %s1417_s2, %s1424_s12 }
  0x10   : > { %s1192_s20 = smul.u32 80, %s1424_s12  ;;  %s1105_s27 = sshll.u32 %s1424_s12, 5 }
  0x11   : > { %s1340_s19 = scalar_lea.vmem %s1416_s1, %s1193_s16  ;;  %s321_s30 = scalar_lea.vmem %s1418_s3, %s1105_s27 }
  0x12   : > { %v1218_v0 = vld [vmem:[%s1340_s19 + $0x40] sm:$0xff]   ;;  %v1222_v4 = vld [vmem:[%s1340_s19 + $0x48] sm:$0xff]   ;;  %v1226_v8 = vld [vmem:[%s1340_s19 + $0x50] sm:$0xff]   ;;  %s1376_s23 = scalar_lea.vmem %s1415_s0, %s1192_s20 }
  0x13   : > { %v1219_v1 = vld [vmem:[%s1340_s19 + $0xc0] sm:$0xff]   ;;  %1106 = vmatprep.subr.bf16.mxu0 %v1218_v0  ;;  %v1223_v5 = vld [vmem:[%s1340_s19 + $0xc8] sm:$0xff]   ;;  %v1227_v9 = vld [vmem:[%s1340_s19 + $0xd0] sm:$0xff]  }
  0x14   : > { %v1220_v2 = vld [vmem:[%s1340_s19] sm:$0xff]   ;;  %1134 = vmatprep.subr.bf16.mxu1 %v1219_v1  ;;  %v1224_v6 = vld [vmem:[%s1340_s19 + $0x8] sm:$0xff]   ;;  %v1228_v10 = vld [vmem:[%s1340_s19 + $0x10] sm:$0xff]  }
  0x15   : > { %v1221_v3 = vld [vmem:[%s1340_s19 + $0x80] sm:$0xff]   ;;  %1107 = vmatpush3.bf16.msra.mxu0 %v1220_v2  ;;  %v1225_v7 = vld [vmem:[%s1340_s19 + $0x88] sm:$0xff]   ;;  %v1229_v11 = vld [vmem:[%s1340_s19 + $0x90] sm:$0xff]  }
  0x16   : > { %1135 = vmatpush3.bf16.msra.mxu1 %v1221_v3  ;;  %1108 = vmatprep.subr.bf16.mxu0 %v1222_v4  ;;  %v1230_v12 = vld [vmem:[%s1340_s19 + $0x58] sm:$0xff]   ;;  %v1234_v16 = vld [vmem:[%s1340_s19 + $0x60] sm:$0xff]   ;;  %v1238_v20 = vld [vmem:[%s1340_s19 + $0x68] sm:$0xff]  }
  0x17   : > { %1136 = vmatprep.subr.bf16.mxu1 %v1223_v5  ;;  %v1231_v13 = vld [vmem:[%s1340_s19 + $0xd8] sm:$0xff]   ;;  %v1235_v17 = vld [vmem:[%s1340_s19 + $0xe0] sm:$0xff]   ;;  %v1239_v21 = vld [vmem:[%s1340_s19 + $0xe8] sm:$0xff]  }
  0x18   : > { %v1232_v14 = vld [vmem:[%s1340_s19 + $0x18] sm:$0xff]   ;;  %v1236_v18 = vld [vmem:[%s1340_s19 + $0x20] sm:$0xff]   ;;  %v1240_v22 = vld [vmem:[%s1340_s19 + $0x28] sm:$0xff]  }
  0x19   : > { %1109 = vmatpush3.bf16.msra.mxu0 %v1224_v6  ;;  %v1233_v15 = vld [vmem:[%s1340_s19 + $0x98] sm:$0xff]   ;;  %v1237_v19 = vld [vmem:[%s1340_s19 + $0xa0] sm:$0xff]   ;;  %v1241_v23 = vld [vmem:[%s1340_s19 + $0xa8] sm:$0xff]  }
  0x1a   : > { %1137 = vmatpush3.bf16.msra.mxu1 %v1225_v7  ;;  %1110 = vmatprep.subr.bf16.mxu0 %v1226_v8  ;;  %v1242_v24 = vld [vmem:[%s1340_s19 + $0x70] sm:$0xff]   ;;  %v1246_v28 = vld [vmem:[%s1340_s19 + $0x78] sm:$0xff]   ;;  %v1255_v35 = vld [vmem:[%s1376_s23 + $0xc] ss:$20 sps:$4 sm:$0xff]  }
  0x1b   : > { %1138 = vmatprep.subr.bf16.mxu1 %v1227_v9  ;;  %v1243_v25 = vld [vmem:[%s1340_s19 + $0xf0] sm:$0xff]   ;;  %v1247_v29 = vld [vmem:[%s1340_s19 + $0xf8] sm:$0xff]   ;;  %v1256_v36 = vld [vmem:[%s1340_s19 + $0x100] sm:$0xff]   ;;  %801 = vmatprep.mubr.bf16.mxu1 %v1255_v35 }
  0x1c   : > { %v1244_v26 = vld [vmem:[%s1340_s19 + $0x30] sm:$0xff]   ;;  %v1248_v30 = vld [vmem:[%s1340_s19 + $0x38] sm:$0xff]   ;;  %v1257_v37 = vld [vmem:[%s1340_s19 + $0x108] sm:$0xff]  }
  0x1d   : > { %1111 = vmatpush3.bf16.msra.mxu0 %v1228_v10  ;;  %v1245_v27 = vld [vmem:[%s1340_s19 + $0xb0] sm:$0xff]   ;;  %v1249_v31 = vld [vmem:[%s1340_s19 + $0xb8] sm:$0xff]   ;;  %v1261_v39 = vld [vmem:[%s1376_s23 + $0x2c] ss:$20 sps:$4 sm:$0xff]  }
  0x1e   : > { %1139 = vmatpush3.bf16.msra.mxu1 %v1229_v11  ;;  %1112 = vmatprep.subr.bf16.mxu0 %v1230_v12  ;;  %v1250_v32 = vld [vmem:[%s1376_s23] ss:$20 sps:$4 sm:$0xff]   ;;  %v1252_v33 = vld [vmem:[%s1376_s23 + $0x4] ss:$20 sps:$4 sm:$0xff]   ;;  %v1253_v34 = vld [vmem:[%s1376_s23 + $0x8] ss:$20 sps:$4 sm:$0xff]  }
  0x1f   : > { %1140 = vmatprep.subr.bf16.mxu1 %v1231_v13  ;;  %752 = vmatprep.mubr.bf16.mxu0 %v1252_v33  ;;  %v1258_v38 = vld [vmem:[%s1340_s19 + $0x110] sm:$0xff]   ;;  %v1259_v41 = vld [vmem:[%s1340_s19 + $0x118] sm:$0xff]   ;;  %v1260_v45 = vld [vmem:[%s1340_s19 + $0x120] sm:$0xff]  }
  0x20   : > { %v1263_v40 = vld [vmem:[%s1376_s23 + $0x34] ss:$20 sps:$4 sm:$0xff]   ;;  %v1267_v43 = vld [vmem:[%s1376_s23 + $0x30] ss:$20 sps:$4 sm:$0xff]   ;;  %v1269_v48 = vld [vmem:[%s1340_s19 + $0x138] sm:$0xff]  }
  0x21   : > { %1113 = vmatpush3.bf16.msra.mxu0 %v1232_v14  ;;  %v1266_v42 = vld [vmem:[%s1376_s23 + $0x28] ss:$20 sps:$4 sm:$0xff]   ;;  %v1270_v44 = vld [vmem:[%s1376_s23 + $0x10] ss:$20 sps:$4 sm:$0xff]   ;;  %v1271_v49 = vld [vmem:[%s1376_s23 + $0x38] ss:$20 sps:$4 sm:$0xff]  }
  0x22   : > { %1141 = vmatpush3.bf16.msra.mxu1 %v1233_v15  ;;  %1114 = vmatprep.subr.bf16.mxu0 %v1234_v16  ;;  %v1265_v46 = vld [vmem:[%s1340_s19 + $0x128] sm:$0xff]   ;;  %v1268_v47 = vld [vmem:[%s1340_s19 + $0x130] sm:$0xff]   ;;  %v1102_v15 = vld [vmem:[%s309_s26] ss:$0 sm:$0xff] }
  0x23   : > { %1142 = vmatprep.subr.bf16.mxu1 %v1235_v17 }
  0x25   : > { %1115 = vmatpush3.bf16.msra.mxu0 %v1236_v18 }
  0x26   : > { %1143 = vmatpush3.bf16.msra.mxu1 %v1237_v19  ;;  %1116 = vmatprep.subr.bf16.mxu0 %v1238_v20 }
  0x27   : > { %1144 = vmatprep.subr.bf16.mxu1 %v1239_v21 }
  0x29   : > { %1117 = vmatpush3.bf16.msra.mxu0 %v1240_v22 }
  0x2a   : > { %1145 = vmatpush3.bf16.msra.mxu1 %v1241_v23  ;;  %1118 = vmatprep.subr.bf16.mxu0 %v1242_v24 }
  0x2b   : > { %1146 = vmatprep.subr.bf16.mxu1 %v1243_v25 }
  0x2d   : > { %1119 = vmatpush3.bf16.msra.mxu0 %v1244_v26 }
  0x2e   : > { %1147 = vmatpush3.bf16.msra.mxu1 %v1245_v27  ;;  %1120 = vmatprep.subr.bf16.mxu0 %v1246_v28 }
  0x2f   : > { %1148 = vmatprep.subr.bf16.mxu1 %v1247_v29 }
  0x31   : > { %1121 = vmatpush3.bf16.msra.mxu0 %v1248_v30 }
  0x32   : > { %1149 = vmatpush3.bf16.msra.mxu1 %v1249_v31  ;;  %1172 = vmatprep.subr.bf16.mxu0 %v1256_v36 }
  0x34   : > { %753 = vmatmul.mubr.bf16.vlgmr.msra.gmra.mrb[0].mxu0 %v1250_v32 }
  0x35   : > { %802 = vmatmul.mubr.bf16.vlgmr.msra.gmra.mrb[0].mxu1 %v1253_v34  ;;  %1173 = vmatpush3.bf16.msra.mxu0 %v1256_v36 }
  0x36   : > { %1174 = vmatprep.subr.bf16.mxu0 %v1257_v37  ;;  %760 = vmatprep.mubr.bf16.mxu0 %v1261_v39 }
  0x37   : > { %809 = vmatprep.mubr.bf16.mxu1 %v1263_v40 }
  0x39   : > { %1175 = vmatpush3.bf16.msra.mxu0 %v1257_v37 }
  0x3a   : > { %1176 = vmatprep.subr.bf16.mxu0 %v1258_v38 }
  0x3c   : > { %761 = vmatmul.mubr.bf16.gmra.mrb[4].mxu0 %v1266_v42 }
  0x3d   : > { %810 = vmatmul.mubr.bf16.gmra.mrb[4].mxu1 %v1267_v43  ;;  %1177 = vmatpush3.bf16.msra.mxu0 %v1258_v38 }
  0x3e   : > { %1178 = vmatprep.subr.bf16.mxu0 %v1259_v41  ;;  %1188 = vmatprep.mubr.bf16.mxu0 %v1270_v44 }
  0x41   : > { %1179 = vmatpush3.bf16.msra.mxu0 %v1259_v41 }
  0x42   : > { %1180 = vmatprep.subr.bf16.mxu0 %v1260_v45 }
  0x45   : > { %1181 = vmatpush3.bf16.msra.mxu0 %v1260_v45 }
  0x46   : > { %1182 = vmatprep.subr.bf16.mxu0 %v1265_v46 }
  0x49   : > { %1183 = vmatpush3.bf16.msra.mxu0 %v1265_v46 }
  0x4a   : > { %1184 = vmatprep.subr.bf16.mxu0 %v1268_v47 }
  0x4d   : > { %1185 = vmatpush3.bf16.msra.mxu0 %v1268_v47 }
  0x4e   : > { %1186 = vmatprep.subr.bf16.mxu0 %v1269_v48 }
  0x51   : > { %1187 = vmatpush3.bf16.msra.mxu0 %v1269_v48 }
  0x54   : > { %1189 = vmatmul.mubr.bf16.vlgmr.msra.gmra.mrb[8].mxu0 %v1271_v49 }
 0x107   : > { %v1122_v50 = vpop.f32.mrb[0].mxu0 }
 0x108   : > { %v1150_v51 = vpop.f32.mrb[0].mxu1  ;;  %v1123_v52 = vpop.f32.mrb[1].mxu0 }
 0x109   : > { %v1124_v53 = vadd.f32 %v1123_v52, %v1122_v50  ;;  %v1151_v54 = vpop.f32.mrb[1].mxu1  ;;  %v1125_v55 = vpop.f32.mrb[2].mxu0 }
 0x10a   : > { %v1152_v56 = vadd.f32 %v1151_v54, %v1150_v51  ;;  %v1153_v57 = vpop.f32.mrb[2].mxu1  ;;  %v1126_v58 = vpop.f32.mrb[3].mxu0 }
 0x10b   : > { %v1127_v59 = vadd.f32 %v1126_v58, %v1125_v55  ;;  %v1154_v60 = vpop.f32.mrb[3].mxu1 }
 0x10c   : > { %v1155_v61 = vadd.f32 %v1154_v60, %v1153_v57  ;;  %v804_v62 = vadd.f32 %v1152_v56, %v1124_v53 }
 0x10e   : > { %v807_v63 = vadd.f32 %v1155_v61, %v1127_v59 }
 0x10f   : > { %v1128_v0 = vpop.f32.mrb[4].mxu0 }
 0x110   : > { %v1156_v1 = vpop.f32.mrb[4].mxu1  ;;  %v1129_v2 = vpop.f32.mrb[5].mxu0 }
 0x111   : > { %v1130_v3 = vadd.f32 %v1129_v2, %v1128_v0  ;;  %v1157_v4 = vpop.f32.mrb[5].mxu1  ;;  %v1131_v5 = vpop.f32.mrb[6].mxu0 }
 0x112   : > { %v1158_v6 = vadd.f32 %v1157_v4, %v1156_v1  ;;  %v1159_v7 = vpop.f32.mrb[6].mxu1  ;;  %v1132_v8 = vpop.f32.mrb[7].mxu0 }
 0x113   : > { %v1133_v9 = vadd.f32 %v1132_v8, %v1131_v5  ;;  %v1160_v10 = vpop.f32.mrb[7].mxu1 }
 0x114   : > { %v1161_v11 = vadd.f32 %v1160_v10, %v1159_v7  ;;  %v812_v12 = vadd.f32 %v1158_v6, %v1130_v3 }
 0x116   : > { %v815_v13 = vadd.f32 %v1161_v11, %v1133_v9 }
 0x127   : > { %v1190_v14 = vpop.f32.mrb[8].mxu0 }
 0x128   : > { %v861_v16 = vadd.f32 %v1190_v14, %v812_v12  ;;  %v852_v17 = vpop.f32.mrb[9].mxu0 }
 0x129   : > { %v853_v18 = vadd.f32 %v852_v17, %v804_v62  ;;  %v1191_v19 = vpop.f32.mrb[10].mxu0 }
 0x12a   : > { %v891_v20 = vadd.f32 %v1102_v15, %v861_v16  ;;  %v864_v21 = vadd.f32 %v1191_v19, %v815_v13  ;;  %v855_v22 = vpop.f32.mrb[11].mxu0 }
 0x12b   : > { %v889_v23 = vadd.f32 %v1102_v15, %v853_v18  ;;  %v856_v24 = vadd.f32 %v855_v22, %v807_v63 }
 0x12c   : > { %v895_v25 = vmax.f32 %v891_v20, 0.0  ;;  %v892_v26 = vadd.f32 %v1102_v15, %v864_v21 }
 0x12d   : > { %v893_v27 = vmax.f32 %v889_v23, 0.0  ;;  %v890_v28 = vadd.f32 %v1102_v15, %v856_v24 }
 0x12e   : > { %899 = vst [vmem:[%s321_s30 + $0x10] sm:$0xff] %v895_v25  ;;  %v896_v29 = vmax.f32 %v892_v26, 0.0 }
 0x12f   : > { %897 = vst [vmem:[%s321_s30] sm:$0xff] %v893_v27  ;;  %v894_v30 = vmax.f32 %v890_v28, 0.0 }
 0x130   : > { %900 = vst [vmem:[%s321_s30 + $0x18] sm:$0xff] %v896_v29 }
 0x131   : > { %898 = vst [vmem:[%s321_s30 + $0x8] sm:$0xff] %v894_v30 }
 0x132 PF: > { %s13_s14 = sadd.s32 1, %s1294_s14   ;;  %s1419_s12 = smov %s1290_s13 }
 0x133   : > { %p10_p5 = scmp.ge.s32.totalorder %s13_s14, 4   ;;  %s1420_s13 = smov %s1422_s15 }
 0x135   :  { %12 = sbr.rel (!%p10_p5) target bundleno = 2 (0x2), region = 76 }

// kernel: encoder_forward.26
= control target key start
LH: loop header
LB: loop body
LE: loop exit
PB: predicated region body
PF: predicated region fallthrough
CT: control target
= control target key end

     0   :  { %s761_s12 = smov 0   ;;  %s763_s13 = smov 0   ;;  %s806_s0 = inlined_call_operand.vmem [shape: bf16[2,32,128], index: 0, kind: input, shape index: {}]   ;;  %s807_s1 = inlined_call_operand.vmem [shape: bf16[2,128,128], index: 1, kind: input, shape index: {}]   ;;  %s808_s2 = inlined_call_operand.vmem [shape: f32[2,1,128], index: 2, kind: input, shape index: {}]   ;;  %s809_s3 = inlined_call_operand.vmem [shape: f32[2,32,128], index: 3, kind: output, shape index: {}]  }
   0x1   :  { %s765_s14 = smov 0  }
   0x2 LB: > { %s39_s15 = sadd.s32 1, %s735_s13  ;;  %p630_p0 = scmp.ge.s32.totalorder %s739_s14, 1  ;;  %s739_s14 = sphi %s765_s14, %s13_s14   ;;  %s735_s13 = sphi %s763_s13, %s811_s13   ;;  %s731_s12 = sphi %s761_s12, %s810_s12  }
   0x3   : > { %p41_p1 = scmp.ge.s32.totalorder %s39_s15, 2  ;;  %p214_p2 = scmp.lt.s32.totalorder %s739_s14, 3 }
   0x5   : > { %s813_s15 = smov (%p41_p1, %s39_s15), 0  ;;  %p215_p3 = pnand %p630_p0, %p214_p2 }
   0x6   : > { %p271_p4 = scmp.lt.s32.totalorder (!%p215_p3), %s731_s12, 1 }
   0x7   : > { %218 = sbr.rel (%p215_p3) target bundleno = 268 (0x10c), region = 32 }
   0xe   : > { %s815_s12 = smov (!%p271_p4, %s731_s12), 1 }
   0xf   : > { %s651_s16 = sshll.u32 %s815_s12, 6  ;;  %s650_s20 = sshll.u32 %s815_s12, 4 }
  0x10   : > { %s294_s19 = scalar_lea.vmem %s807_s1, %s651_s16  ;;  %s281_s23 = scalar_lea.vmem %s806_s0, %s650_s20 }
  0x11   : > { %v707_v0 = vld [vmem:[%s294_s19] sm:$0xff]   ;;  %v708_v1 = vld [vmem:[%s294_s19 + $0x8] sm:$0xff]   ;;  %v709_v2 = vld [vmem:[%s294_s19 + $0x10] sm:$0xff]   ;;  %s301_s26 = scalar_lea.vmem %s808_s2, %s815_s12  ;;  %s652_s27 = sshll.u32 %s815_s12, 5 }
  0x12   : > { %663 = vmatprep.subr.bf16.mxu0 %v707_v0  ;;  %v710_v3 = vld [vmem:[%s294_s19 + $0x18] sm:$0xff]   ;;  %v715_v4 = vld [vmem:[%s281_s23] sm:$0xff]   ;;  %v712_v6 = vld [vmem:[%s294_s19 + $0x28] sm:$0xff]   ;;  %s313_s30 = scalar_lea.vmem %s809_s3, %s652_s27 }
  0x13   : > { %664 = vmatpush3.bf16.msra.mxu0 %v707_v0  ;;  %679 = vmatprep.mubr.bf16.mxu0 %v715_v4  ;;  %v711_v5 = vld [vmem:[%s294_s19 + $0x20] sm:$0xff]   ;;  %v713_v7 = vld [vmem:[%s294_s19 + $0x30] sm:$0xff]   ;;  %v714_v8 = vld [vmem:[%s294_s19 + $0x38] sm:$0xff]  }
  0x14   : > { %665 = vmatprep.subr.bf16.mxu0 %v708_v1  ;;  %v716_v9 = vld [vmem:[%s281_s23 + $0x8] sm:$0xff]   ;;  %v647_v10 = vld [vmem:[%s301_s26] ss:$0 sm:$0xff] }
  0x17   : > { %666 = vmatpush3.bf16.msra.mxu0 %v708_v1 }
  0x18   : > { %667 = vmatprep.subr.bf16.mxu0 %v709_v2 }
  0x1b   : > { %668 = vmatpush3.bf16.msra.mxu0 %v709_v2 }
  0x1c   : > { %669 = vmatprep.subr.bf16.mxu0 %v710_v3 }
  0x1f   : > { %670 = vmatpush3.bf16.msra.mxu0 %v710_v3 }
  0x20   : > { %671 = vmatprep.subr.bf16.mxu0 %v711_v5 }
  0x23   : > { %672 = vmatpush3.bf16.msra.mxu0 %v711_v5 }
  0x24   : > { %673 = vmatprep.subr.bf16.mxu0 %v712_v6 }
  0x27   : > { %674 = vmatpush3.bf16.msra.mxu0 %v712_v6 }
  0x28   : > { %675 = vmatprep.subr.bf16.mxu0 %v713_v7 }
  0x2b   : > { %676 = vmatpush3.bf16.msra.mxu0 %v713_v7 }
  0x2c   : > { %677 = vmatprep.subr.bf16.mxu0 %v714_v8 }
  0x2f   : > { %678 = vmatpush3.bf16.msra.mxu0 %v714_v8 }
  0x32   : > { %680 = vmatmul.mubr.bf16.vlgmr.msra.gmra.mrb[0].mxu0 %v716_v9 }
 0x105   : > { %v681_v11 = vpop.f32.mrb[0].mxu0 }
 0x106   : > { %v481_v12 = vadd.f32 %v681_v11, %v647_v10  ;;  %v442_v13 = vpop.f32.mrb[1].mxu0 }
 0x107   : > { %v479_v14 = vadd.f32 %v647_v10, %v442_v13  ;;  %v682_v15 = vpop.f32.mrb[2].mxu0 }
 0x108   : > { %485 = vst [vmem:[%s313_s30 + $0x10] sm:$0xff] %v481_v12  ;;  %v482_v16 = vadd.f32 %v682_v15, %v647_v10  ;;  %v445_v17 = vpop.f32.mrb[3].mxu0 }
 0x109   : > { %483 = vst [vmem:[%s313_s30] sm:$0xff] %v479_v14  ;;  %v480_v18 = vadd.f32 %v647_v10, %v445_v17 }
 0x10a   : > { %486 = vst [vmem:[%s313_s30 + $0x18] sm:$0xff] %v482_v16 }
 0x10b   : > { %484 = vst [vmem:[%s313_s30 + $0x8] sm:$0xff] %v480_v18 }
 0x10c PF: > { %s13_s14 = sadd.s32 1, %s739_s14   ;;  %s810_s12 = smov %s735_s13 }
 0x10d   : > { %p10_p5 = scmp.ge.s32.totalorder %s13_s14, 4   ;;  %s811_s13 = smov %s813_s15 }
 0x10f   :  { %12 = sbr.rel (!%p10_p5) target bundleno = 2 (0x2), region = 76 }

// kernel: encoder_forward.28
= control target key start
LH: loop header
LB: loop body
LE: loop exit
PB: predicated region body
PF: predicated region fallthrough
CT: control target
= control target key end

     0   :  { %s1417_s0 = inlined_call_operand.vmem [shape: bf16[2,32,1152], index: 0, kind: input, shape index: {}]   ;;  %s1418_s1 = inlined_call_operand.vmem [shape: bf16[2,1152,128], index: 1, kind: input, shape index: {}]   ;;  %s1419_s2 = inlined_call_operand.vmem [shape: f32[2,1,128], index: 2, kind: input, shape index: {}]   ;;  %s1420_s3 = inlined_call_operand.vmem [shape: f32[2,32,128], index: 3, kind: input, shape index: {}]   ;;  %s1421_s4 = inlined_call_operand.vmem [shape: f32[2,32,128], index: 4, kind: output, shape index: {}]  }
   0x1   :  { %1422 = sst [smem:[#allocation4_spill]] %s1417_s0 }
   0x2   :  { %s1260_s15 = smov 0   ;;  %s1262_s16 = smov 0  }
   0x3   :  { %s1264_s17 = smov 0   ;;  %s1266_s18 = smov 0  }
   0x4   :  { %s1268_s19 = smov 0   ;;  %s1270_s20 = smov 0  }
   0x5   :  { %s1272_s21 = smov 0  }
   0x6 LB: > { %s29_s22 = sadd.s32 1, %s1224_s19  ;;  %s40_s23 = sadd.s32 1, %s1228_s20  ;;  %s1232_s21 = sphi %s1272_s21, %s14_s21   ;;  %s1228_s20 = sphi %s1270_s20, %s1429_s20   ;;  %s1224_s19 = sphi %s1268_s19, %s1428_s19   ;;  %s1220_s18 = sphi %s1266_s18, %s1427_s18   ;;  %s1216_s17 = sphi %s1264_s17, %s1426_s17   ;;  %s1212_s16 = sphi %s1262_s16, %s1425_s16   ;;  %s1208_s15 = sphi %s1260_s15, %s1424_s15  }
   0x7   : > { %p30_p0 = scmp.ge.s32.totalorder %s29_s22, 3  ;;  %p58_p1 = scmp.ne.s32.totalorder %s1212_s16, %s1208_s15 }
   0x8   : > { %p59_p2 = scmp.eq.s32.totalorder %s1232_s21, 0  ;;  %s51_s27 = sadd.s32 1, %s1212_s16 }
   0x9   : > { %s1431_s22 = smov (%p30_p0, %s29_s22), 0  ;;  %s1433_s23 = smov (!%p30_p0, %s40_s23), %s1228_s20 }
   0xa   : > { %p60_p3 = por %p59_p2, %p58_p1  ;;  %p42_p4 = scmp.ge.s32.totalorder %s1433_s23, 2 }
   0xb   : > { %s47_s24 = ssub.s32 %s1224_s19, %s1431_s22  ;;  %p974_p6 = scmp.ge.s32.totalorder %s1232_s21, 6 }
   0xc   : > { %s1435_s23 = smov (%p42_p4, %s1433_s23), 0 }
   0xd   : > { %s44_s25 = ssub.s32 %s1228_s20, %s1435_s23  ;;  %202 = sbr.rel (%p974_p6) target bundleno = 33 (0x21), region = 16 }
   0xe   : > { %s48_s26 = sor.u32 %s47_s24, %s44_s25 }
   0xf   : > { %p49_p5 = scmp.eq.s32.totalorder %s48_s26, 0 }
  0x11   : > { %s1311_s28 = scalar_select %p49_p5, %s1212_s16, %s51_s27  }
  0x14   : > { %205 = sbr.rel (!%p60_p3) target bundleno = 33 (0x21), region = 20  ;;  %s207_s29 = sand.u32 (%p60_p3), 1, %s1212_s16  }
  0x15   : > { %s211_s30 = smul.u32 (%p60_p3), 3, %s1224_s19  ;;  %s1423_s0 = sld [smem:[#allocation4_spill]] (%p60_p3) }
  0x16   : > { %s1085_s5 = smul.u32 (%p60_p3), 48, %s207_s29 }
  0x17   : > { %s1086_s6 = smul.u32 (%p60_p3), 36, %s1228_s20 }
  0x18   : > { %s209_s12 = scalar_lea.vmem (%p60_p3), [#allocation3], %s1085_s5 }
  0x19   : > { %s215_s7 = sadd.s32 (%p60_p3), %s1086_s6, %s211_s30 }
  0x1a   : > { %s975_s8 = sshll.u32 (%p60_p3), %s215_s7, 2 }
  0x1b   : > { %s217_s11 = scalar_lea.vmem %s1423_s0, %s975_s8 }
  0x1c   : > { %v232_v0 = vld [vmem:[%s217_s11] sm:$0xff]  ;;  %v236_v2 = vld [vmem:[%s217_s11 + $0x48] sm:$0xff]  ;;  %v980_v6 = vld [vmem:[%s217_s11 + $0x50] sm:$0xf] }
  0x1d   : > { %v234_v1 = vld [vmem:[%s217_s11 + $0x24] sm:$0xff]  ;;  %233 = vst [vmem:[%s209_s12] sm:$0xff] %v232_v0  ;;  %237 = vst [vmem:[%s209_s12 + $0x18] sm:$0xff] %v236_v2  ;;  %v238_v3 = vld [vmem:[%s217_s11 + $0x6c] sm:$0xff] }
  0x1e   : > { %235 = vst [vmem:[%s209_s12 + $0xc] sm:$0xff] %v234_v1  ;;  %v976_v4 = vld [vmem:[%s217_s11 + $0x8] sm:$0xf]  ;;  %v978_v5 = vld [vmem:[%s217_s11 + $0x2c] sm:$0xf]  ;;  %239 = vst [vmem:[%s209_s12 + $0x24] sm:$0xff] %v238_v3 }
  0x1f   : > { %977 = vst [vmem:[%s209_s12 + $0x8] sm:$0xf] %v976_v4  ;;  %979 = vst [vmem:[%s209_s12 + $0x14] sm:$0xf] %v978_v5  ;;  %v982_v7 = vld [vmem:[%s217_s11 + $0x74] sm:$0xf] }
  0x20   : > { %981 = vst [vmem:[%s209_s12 + $0x20] sm:$0xf] %v980_v6  ;;  %983 = vst [vmem:[%s209_s12 + $0x2c] sm:$0xf] %v982_v7 }
  0x21 PF: > { %p984_p7 = scmp.ge.s32.totalorder %s1232_s21, 1  ;;  %p300_p8 = scmp.lt.s32.totalorder %s1232_s21, 7 }
  0x23   : > { %p301_p9 = pnand %p984_p7, %p300_p8 }
  0x24   : > { %s307_s13 = sand.u32 (!%p301_p9), 1, %s1208_s15   ;;  %s371_s14 = smul.u32 (!%p301_p9), 48, %s1216_s17 }
  0x25   : > { %304 = sbr.rel (%p301_p9) target bundleno = 330 (0x14a), region = 58  ;;  %p372_p10 = scmp.lt.s32.totalorder (!%p301_p9), %s1220_s18, 1 }
  0x26   : > { %s1087_s24 = smul.u32 (!%p301_p9), 48, %s307_s13  ;;  %p374_p11 = scmp.lt.s32.totalorder (!%p301_p9), %s371_s14, 143 }
  0x27   : > { %p990_p12 = scmp.ne.s32.totalorder (!%p301_p9), %s1216_s17, 0 }
  0x28   : > { %s1349_s26 = scalar_lea.vmem (!%p301_p9), [#allocation3], %s1087_s24 }
  0x2c   : > { %s1437_s18 = smov (!%p372_p10, %s1220_s18), 1  ;;  %s1439_s14 = smov (!%p374_p11, %s371_s14), 143 }
  0x2d   : > { %s1088_s25 = smul.u32 144, %s1437_s18  ;;  %s389_s29 = scalar_lea.vmem %s1419_s2, %s1437_s18  ;;  %v1234_v8 = vmov (!%p990_p12), 0.0  }
  0x2e   : > { %s1025_s30 = sshll.u32 %s1437_s18, 5  ;;  %420 = sbr.rel (%p990_p12) target bundleno = 53 (0x35), region = 66  ;;  %421 = vst [vmem:[#allocation2] sm:$0xff] (!%p990_p12), %v1234_v8  ;;  %422 = vst [vmem:[#allocation2 + $0x8] sm:$0xff] (!%p990_p12), %v1234_v8 }
  0x2f   : > { %s380_s5 = sadd.s32 %s1088_s25, %s1439_s14  ;;  %s1337_s15 = scalar_lea.vmem %s1420_s3, %s1025_s30  ;;  %423 = vst [vmem:[#allocation2 + $0x10] sm:$0xff] (!%p990_p12), %v1234_v8  ;;  %424 = vst [vmem:[#allocation2 + $0x18] sm:$0xff] (!%p990_p12), %v1234_v8 }
  0x30   : > { %s985_s8 = sshll.u32 %s380_s5, 2  ;;  %s1342_s11 = scalar_lea.vmem %s1421_s4, %s1025_s30 }
  0x31   : > { %s1347_s0 = scalar_lea.vmem %s1418_s1, %s985_s8 }
  0x35 PF: > { %v1146_v9 = vld [vmem:[%s1347_s0 + $0x40] sm:$0xff]   ;;  %v1149_v12 = vld [vmem:[%s1347_s0 + $0x48] sm:$0xff]   ;;  %v1152_v15 = vld [vmem:[%s1347_s0 + $0x50] sm:$0xff]   ;;  %p1021_p13 = scmp.ne.s32.totalorder %s1216_s17, 2 }
  0x36   : > { %v1147_v10 = vld [vmem:[%s1347_s0] sm:$0xff]   ;;  %1027 = vmatprep.subr.bf16.mxu0 %v1146_v9  ;;  %v1150_v13 = vld [vmem:[%s1347_s0 + $0x8] sm:$0xff]   ;;  %v1153_v16 = vld [vmem:[%s1347_s0 + $0x10] sm:$0xff]  }
  0x37   : > { %v1148_v11 = vld [vmem:[%s1347_s0 + $0x80] sm:$0xff]   ;;  %1028 = vmatpush3.bf16.msra.mxu0 %v1147_v10  ;;  %v1151_v14 = vld [vmem:[%s1347_s0 + $0x88] sm:$0xff]   ;;  %v1154_v17 = vld [vmem:[%s1347_s0 + $0x90] sm:$0xff]  }
  0x38   : > { %1065 = vmatprep.subr.bf16.mxu1 %v1148_v11  ;;  %1029 = vmatprep.subr.bf16.mxu0 %v1149_v12  ;;  %v1155_v18 = vld [vmem:[%s1347_s0 + $0x58] sm:$0xff]   ;;  %v1158_v21 = vld [vmem:[%s1347_s0 + $0x60] sm:$0xff]   ;;  %v1161_v24 = vld [vmem:[%s1347_s0 + $0x68] sm:$0xff]  }
  0x39   : > { %1066 = vmatpush3.bf16.msra.mxu1 %v1148_v11  ;;  %v1156_v19 = vld [vmem:[%s1347_s0 + $0x18] sm:$0xff]   ;;  %v1160_v22 = vld [vmem:[%s1347_s0 + $0xa0] sm:$0xff]   ;;  %v1163_v25 = vld [vmem:[%s1347_s0 + $0xa8] sm:$0xff]  }
  0x3a   : > { %1067 = vmatprep.subr.bf16.mxu1 %v1151_v14  ;;  %v1157_v20 = vld [vmem:[%s1347_s0 + $0x98] sm:$0xff]   ;;  %v1159_v23 = vld [vmem:[%s1347_s0 + $0x20] sm:$0xff]   ;;  %v1162_v26 = vld [vmem:[%s1347_s0 + $0x28] sm:$0xff]  }
  0x3b   : > { %1030 = vmatpush3.bf16.msra.mxu0 %v1150_v13  ;;  %v1164_v27 = vld [vmem:[%s1347_s0 + $0x70] sm:$0xff]   ;;  %v1167_v30 = vld [vmem:[%s1347_s0 + $0x78] sm:$0xff]   ;;  %v425_v45 = vld [vmem:[#allocation2] sm:$0xff] }
  0x3c   : > { %1031 = vmatprep.subr.bf16.mxu0 %v1152_v15  ;;  %v1165_v28 = vld [vmem:[%s1347_s0 + $0x30] sm:$0xff]   ;;  %v1169_v31 = vld [vmem:[%s1347_s0 + $0xb8] sm:$0xff]   ;;  %v426_v50 = vld [vmem:[#allocation2 + $0x8] sm:$0xff] }
  0x3d   : > { %1068 = vmatpush3.bf16.msra.mxu1 %v1151_v14  ;;  %v1166_v29 = vld [vmem:[%s1347_s0 + $0xb0] sm:$0xff]   ;;  %v1168_v34 = vld [vmem:[%s1347_s0 + $0x38] sm:$0xff]   ;;  %v1022_v4 = vld [vmem:[%s389_s29] ss:$0 sm:$0xff] (!%p1021_p13) }
  0x3e   : > { %1069 = vmatprep.subr.bf16.mxu1 %v1154_v17  ;;  %v1172_v32 = vld [vmem:[%s1349_s26 + $0x4] ss:$12 sps:$4 sm:$0xff]   ;;  %v1173_v33 = vld [vmem:[%s1349_s26 + $0x8] ss:$12 sps:$4 sm:$0xff]   ;;  %v1170_v35 = vld [vmem:[%s1349_s26] ss:$12 sps:$4 sm:$0xff]  }
  0x3f   : > { %1032 = vmatpush3.bf16.msra.mxu0 %v1153_v16  ;;  %693 = vmatprep.mubr.bf16.mxu0 %v1172_v32  ;;  %v1175_v36 = vld [vmem:[%s1349_s26 + $0x1c] ss:$12 sps:$4 sm:$0xff]   ;;  %v1174_v37 = vld [vmem:[%s1349_s26 + $0x20] ss:$12 sps:$4 sm:$0xff]   ;;  %v1177_v38 = vld [vmem:[%s1349_s26 + $0x18] ss:$12 sps:$4 sm:$0xff]  }
  0x40   : > { %1033 = vmatprep.subr.bf16.mxu0 %v1155_v18  ;;  %1081 = vmatprep.mubr.bf16.mxu1 %v1173_v33  ;;  %v427_v59 = vld [vmem:[#allocation2 + $0x10] sm:$0xff]  ;;  %v428_v63 = vld [vmem:[#allocation2 + $0x18] sm:$0xff]  ;;  %v786_v5 = vld [vmem:[%s1337_s15] sm:$0xff] (!%p1021_p13) }
  0x41   : > { %1070 = vmatpush3.bf16.msra.mxu1 %v1154_v17  ;;  %v787_v8 = vld [vmem:[%s1337_s15 + $0x8] sm:$0xff] (!%p1021_p13)  ;;  %v788_v12 = vld [vmem:[%s1337_s15 + $0x10] sm:$0xff] (!%p1021_p13)  ;;  %v789_v14 = vld [vmem:[%s1337_s15 + $0x18] sm:$0xff] (!%p1021_p13) }
  0x42   : > { %1071 = vmatprep.subr.bf16.mxu1 %v1157_v20 }
  0x43   : > { %1034 = vmatpush3.bf16.msra.mxu0 %v1156_v19 }
  0x44   : > { %1035 = vmatprep.subr.bf16.mxu0 %v1158_v21 }
  0x45   : > { %1072 = vmatpush3.bf16.msra.mxu1 %v1157_v20 }
  0x46   : > { %1073 = vmatprep.subr.bf16.mxu1 %v1160_v22 }
  0x47   : > { %1036 = vmatpush3.bf16.msra.mxu0 %v1159_v23 }
  0x48   : > { %1037 = vmatprep.subr.bf16.mxu0 %v1161_v24 }
  0x49   : > { %1074 = vmatpush3.bf16.msra.mxu1 %v1160_v22 }
  0x4a   : > { %1075 = vmatprep.subr.bf16.mxu1 %v1163_v25 }
  0x4b   : > { %1038 = vmatpush3.bf16.msra.mxu0 %v1162_v26 }
  0x4c   : > { %1039 = vmatprep.subr.bf16.mxu0 %v1164_v27 }
  0x4d   : > { %1076 = vmatpush3.bf16.msra.mxu1 %v1163_v25 }
  0x4e   : > { %1077 = vmatprep.subr.bf16.mxu1 %v1166_v29 }
  0x4f   : > { %1040 = vmatpush3.bf16.msra.mxu0 %v1165_v28 }
  0x50   : > { %1041 = vmatprep.subr.bf16.mxu0 %v1167_v30 }
  0x51   : > { %1078 = vmatpush3.bf16.msra.mxu1 %v1166_v29 }
  0x52   : > { %1079 = vmatprep.subr.bf16.mxu1 %v1169_v31 }
  0x53   : > { %1042 = vmatpush3.bf16.msra.mxu0 %v1168_v34 }
  0x55   : > { %1080 = vmatpush3.bf16.msra.mxu1 %v1169_v31 }
  0x56   : > { %694 = vmatmul.mubr.bf16.vlgmr.msra.gmra.mrb[0].mxu0 %v1170_v35 }
  0x57   : > { %701 = vmatprep.mubr.bf16.mxu0 %v1175_v36 }
  0x58   : > { %1082 = vmatmul.mubr.bf16.vlgmr.msra.gmra.mrb[0].mxu1 %v1174_v37 }
  0x5e   : > { %702 = vmatmul.mubr.bf16.gmra.mrb[4].mxu0 %v1177_v38 }
 0x129   : > { %v1043_v39 = vpop.f32.mrb[0].mxu0 }
 0x12a   : > { %v1044_v40 = vpop.f32.mrb[1].mxu0 }
 0x12b   : > { %v1045_v41 = vadd.f32 %v1044_v40, %v1043_v39  ;;  %v1046_v42 = vpop.f32.mrb[2].mxu0  ;;  %v1083_v43 = vpop.f32.mrb[0].mxu1 }
 0x12c   : > { %v1047_v44 = vpop.f32.mrb[3].mxu0  ;;  %v744_v46 = vpop.f32.mrb[1].mxu1 }
 0x12d   : > { %v1048_v47 = vadd.f32 %v1047_v44, %v1046_v42  ;;  %v745_v48 = vadd.f32 %v1045_v41, %v744_v46  ;;  %v1084_v49 = vpop.f32.mrb[2].mxu1 }
 0x12e   : > { %v747_v51 = vpop.f32.mrb[3].mxu1 }
 0x12f   : > { %v759_v52 = vadd.f32 %v745_v48, %v425_v45  ;;  %v748_v53 = vadd.f32 %v1048_v47, %v747_v51 }
 0x131   : > { %763 = vst [vmem:[#allocation2] sm:$0xff] %v759_v52  ;;  %v760_v54 = vadd.f32 %v748_v53, %v426_v50  ;;  %v1049_v55 = vpop.f32.mrb[4].mxu0 }
 0x132   : > { %v1050_v56 = vpop.f32.mrb[5].mxu0 }
 0x133   : > { %764 = vst [vmem:[#allocation2 + $0x8] sm:$0xff] %v760_v54  ;;  %v1051_v57 = vadd.f32 %v1050_v56, %v1049_v55  ;;  %v1052_v58 = vpop.f32.mrb[6].mxu0 }
 0x134   : > { %v1053_v60 = vpop.f32.mrb[7].mxu0 }
 0x135   : > { %v753_v61 = vadd.f32 %v1083_v43, %v1051_v57  ;;  %v1054_v62 = vadd.f32 %v1053_v60, %v1052_v58  ;;  %770 = sbr.rel (%p1021_p13) target bundleno = 330 (0x14a), region = 70 }
 0x137   : > { %v761_v0 = vadd.f32 %v753_v61, %v427_v59  ;;  %v756_v1 = vadd.f32 %v1084_v49, %v1054_v62 }
 0x138   : > { %v771_v3 = vld [vmem:[#allocation2] sm:$0xff] (!%p1021_p13) }
 0x139   : > { %765 = vst [vmem:[#allocation2 + $0x10] sm:$0xff] %v761_v0  ;;  %v762_v2 = vadd.f32 %v756_v1, %v428_v63  ;;  %v782_v6 = vadd.f32 (!%p1021_p13), %v1022_v4, %v771_v3 }
 0x13a   : > { %v772_v7 = vld [vmem:[#allocation2 + $0x8] sm:$0xff] (!%p1021_p13) }
 0x13b   : > { %766 = vst [vmem:[#allocation2 + $0x18] sm:$0xff] %v762_v2  ;;  %v783_v10 = vadd.f32 (!%p1021_p13), %v1022_v4, %v772_v7  ;;  %v790_v15 = vadd.f32 (!%p1021_p13), %v786_v5, %v782_v6 }
 0x13d   : > { %v791_v17 = vadd.f32 %v787_v8, %v783_v10  ;;  %v794_v19 = vmax.f32 %v790_v15, 0.0 }
 0x13f   : > { %v795_v21 = vmax.f32 %v791_v17, 0.0  ;;  %798 = vst [vmem:[%s1342_s11] sm:$0xff] %v794_v19 }
 0x140   : > { %v773_v9 = vld [vmem:[#allocation2 + $0x10] sm:$0xff] }
 0x141   : > { %v784_v11 = vadd.f32 %v1022_v4, %v773_v9  ;;  %799 = vst [vmem:[%s1342_s11 + $0x8] sm:$0xff] %v795_v21 }
 0x142   : > { %v774_v13 = vld [vmem:[#allocation2 + $0x18] sm:$0xff] }
 0x143   : > { %v785_v16 = vadd.f32 %v1022_v4, %v774_v13  ;;  %v792_v18 = vadd.f32 %v788_v12, %v784_v11 }
 0x145   : > { %v793_v20 = vadd.f32 %v789_v14, %v785_v16  ;;  %v796_v22 = vmax.f32 %v792_v18, 0.0 }
 0x147   : > { %v797_v23 = vmax.f32 %v793_v20, 0.0  ;;  %800 = vst [vmem:[%s1342_s11 + $0x10] sm:$0xff] %v796_v22 }
 0x149   : > { %801 = vst [vmem:[%s1342_s11 + $0x18] sm:$0xff] %v797_v23 }
 0x14a PF: > { %s14_s21 = sadd.s32 1, %s1232_s21   ;;  %s1424_s15 = smov %s1212_s16 }
 0x14b   : > { %p11_p0 = scmp.ge.s32.totalorder %s14_s21, 8   ;;  %s1425_s16 = smov %s1311_s28 }
 0x14c   : > { %s1426_s17 = smov %s1224_s19  ;;  %s1427_s18 = smov %s1228_s20 }
 0x14d   : > { %s1428_s19 = smov %s1431_s22  ;;  %s1429_s20 = smov %s1435_s23 }
 0x14e   :  { %13 = sbr.rel (!%p11_p0) target bundleno = 6 (0x6), region = 120 }

// kernel: encoder_forward.29
= control target key start
LH: loop header
LB: loop body
LE: loop exit
PB: predicated region body
PF: predicated region fallthrough
CT: control target
= control target key end

     0   :  { %s1149_s12 = smov 0   ;;  %s1151_s13 = smov 0   ;;  %s1297_s0 = inlined_call_operand.vmem [shape: bf16[2,32,1152], index: 0, kind: input, shape index: {}]   ;;  %s1298_s1 = inlined_call_operand.vmem [shape: bf16[2,1152,128], index: 1, kind: input, shape index: {}]   ;;  %s1299_s2 = inlined_call_operand.vmem [shape: f32[2,1,128], index: 2, kind: input, shape index: {}]   ;;  %s1300_s3 = inlined_call_operand.vmem [shape: f32[2,32,128], index: 3, kind: output, shape index: {}]  }
   0x1   :  { %s1153_s14 = smov 0   ;;  %s1155_s15 = smov 0  }
   0x2   :  { %s1157_s16 = smov 0   ;;  %s1159_s17 = smov 0  }
   0x3   :  { %s1161_s18 = smov 0  }
   0x4 LB: > { %s28_s19 = sadd.s32 1, %s1118_s16  ;;  %s39_s20 = sadd.s32 1, %s1122_s17  ;;  %s1126_s18 = sphi %s1161_s18, %s13_s18   ;;  %s1122_s17 = sphi %s1159_s17, %s1306_s17   ;;  %s1118_s16 = sphi %s1157_s16, %s1305_s16   ;;  %s1114_s15 = sphi %s1155_s15, %s1304_s15   ;;  %s1110_s14 = sphi %s1153_s14, %s1303_s14   ;;  %s1106_s13 = sphi %s1151_s13, %s1302_s13   ;;  %s1102_s12 = sphi %s1149_s12, %s1301_s12  }
   0x5   : > { %p29_p0 = scmp.ge.s32.totalorder %s28_s19, 3  ;;  %p57_p1 = scmp.ne.s32.totalorder %s1106_s13, %s1102_s12 }
   0x6   : > { %p58_p2 = scmp.eq.s32.totalorder %s1126_s18, 0  ;;  %s50_s24 = sadd.s32 1, %s1106_s13 }
   0x7   : > { %s1308_s19 = smov (%p29_p0, %s28_s19), 0  ;;  %s1310_s20 = smov (!%p29_p0, %s39_s20), %s1122_s17 }
   0x8   : > { %p59_p3 = por %p58_p2, %p57_p1  ;;  %p41_p4 = scmp.ge.s32.totalorder %s1310_s20, 2 }
   0x9   : > { %s46_s21 = ssub.s32 %s1118_s16, %s1308_s19  ;;  %p871_p6 = scmp.ge.s32.totalorder %s1126_s18, 6 }
   0xa   : > { %s1312_s20 = smov (%p41_p4, %s1310_s20), 0 }
   0xb   : > { %s43_s22 = ssub.s32 %s1122_s17, %s1312_s20  ;;  %171 = sbr.rel (%p871_p6) target bundleno = 31 (0x1f), region = 16 }
   0xc   : > { %s47_s23 = sor.u32 %s46_s21, %s43_s22 }
   0xd   : > { %p48_p5 = scmp.eq.s32.totalorder %s47_s23, 0 }
   0xf   : > { %s1200_s25 = scalar_select %p48_p5, %s1106_s13, %s50_s24  }
  0x12   : > { %174 = sbr.rel (!%p59_p3) target bundleno = 31 (0x1f), region = 20  ;;  %s176_s26 = sand.u32 (%p59_p3), 1, %s1106_s13  }
  0x13   : > { %s180_s27 = smul.u32 (%p59_p3), 3, %s1118_s16 }
  0x14   : > { %s979_s28 = smul.u32 (%p59_p3), 48, %s176_s26 }
  0x15   : > { %s980_s29 = smul.u32 (%p59_p3), 36, %s1122_s17 }
  0x16   : > { %s178_s8 = scalar_lea.vmem (%p59_p3), [#allocation3], %s979_s28 }
  0x17   : > { %s184_s30 = sadd.s32 (%p59_p3), %s980_s29, %s180_s27 }
  0x18   : > { %s872_s4 = sshll.u32 (%p59_p3), %s184_s30, 2 }
  0x19   : > { %s186_s7 = scalar_lea.vmem %s1297_s0, %s872_s4 }
  0x1a   : > { %v201_v0 = vld [vmem:[%s186_s7] sm:$0xff]  ;;  %v205_v2 = vld [vmem:[%s186_s7 + $0x48] sm:$0xff]  ;;  %v877_v6 = vld [vmem:[%s186_s7 + $0x50] sm:$0xf] }
  0x1b   : > { %v203_v1 = vld [vmem:[%s186_s7 + $0x24] sm:$0xff]  ;;  %202 = vst [vmem:[%s178_s8] sm:$0xff] %v201_v0  ;;  %206 = vst [vmem:[%s178_s8 + $0x18] sm:$0xff] %v205_v2  ;;  %v207_v3 = vld [vmem:[%s186_s7 + $0x6c] sm:$0xff] }
  0x1c   : > { %204 = vst [vmem:[%s178_s8 + $0xc] sm:$0xff] %v203_v1  ;;  %v873_v4 = vld [vmem:[%s186_s7 + $0x8] sm:$0xf]  ;;  %v875_v5 = vld [vmem:[%s186_s7 + $0x2c] sm:$0xf]  ;;  %208 = vst [vmem:[%s178_s8 + $0x24] sm:$0xff] %v207_v3 }
  0x1d   : > { %874 = vst [vmem:[%s178_s8 + $0x8] sm:$0xf] %v873_v4  ;;  %876 = vst [vmem:[%s178_s8 + $0x14] sm:$0xf] %v875_v5  ;;  %v879_v7 = vld [vmem:[%s186_s7 + $0x74] sm:$0xf] }
  0x1e   : > { %878 = vst [vmem:[%s178_s8 + $0x20] sm:$0xf] %v877_v6  ;;  %880 = vst [vmem:[%s178_s8 + $0x2c] sm:$0xf] %v879_v7 }
  0x1f PF: > { %p881_p7 = scmp.ge.s32.totalorder %s1126_s18, 1  ;;  %p253_p8 = scmp.lt.s32.totalorder %s1126_s18, 7 }
  0x21   : > { %p254_p9 = pnand %p881_p7, %p253_p8 }
  0x22   : > { %s260_s9 = sand.u32 (!%p254_p9), 1, %s1102_s12   ;;  %s310_s10 = smul.u32 (!%p254_p9), 48, %s1110_s14 }
  0x23   : > { %257 = sbr.rel (%p254_p9) target bundleno = 326 (0x146), region = 54  ;;  %p311_p10 = scmp.lt.s32.totalorder (!%p254_p9), %s1114_s15, 1 }
  0x24   : > { %s981_s11 = smul.u32 (!%p254_p9), 48, %s260_s9  ;;  %p313_p11 = scmp.lt.s32.totalorder (!%p254_p9), %s310_s10, 143 }
  0x25   : > { %p885_p12 = scmp.ne.s32.totalorder (!%p254_p9), %s1110_s14, 0 }
  0x26   : > { %s1233_s7 = scalar_lea.vmem (!%p254_p9), [#allocation3], %s981_s11 }
  0x2a   : > { %s1314_s15 = smov (!%p311_p10, %s1114_s15), 1  ;;  %s1316_s10 = smov (!%p313_p11, %s310_s10), 143 }
  0x2b   : > { %s982_s21 = smul.u32 144, %s1314_s15  ;;  %s328_s24 = scalar_lea.vmem %s1299_s2, %s1314_s15  ;;  %v1128_v8 = vmov (!%p885_p12), 0.0  }
  0x2c   : > { %s920_s26 = sshll.u32 %s1314_s15, 5  ;;  %346 = sbr.rel (%p885_p12) target bundleno = 51 (0x33), region = 62  ;;  %347 = vst [vmem:[#allocation2] sm:$0xff] (!%p885_p12), %v1128_v8  ;;  %348 = vst [vmem:[#allocation2 + $0x8] sm:$0xff] (!%p885_p12), %v1128_v8 }
  0x2d   : > { %s319_s27 = sadd.s32 %s982_s21, %s1316_s10  ;;  %s1226_s12 = scalar_lea.vmem %s1300_s3, %s920_s26  ;;  %349 = vst [vmem:[#allocation2 + $0x10] sm:$0xff] (!%p885_p12), %v1128_v8  ;;  %350 = vst [vmem:[#allocation2 + $0x18] sm:$0xff] (!%p885_p12), %v1128_v8 }
  0x2e   : > { %s882_s30 = sshll.u32 %s319_s27, 2 }
  0x2f   : > { %s1231_s6 = scalar_lea.vmem %s1298_s1, %s882_s30 }
  0x33 PF: > { %v1040_v9 = vld [vmem:[%s1231_s6 + $0x40] sm:$0xff]   ;;  %v1043_v12 = vld [vmem:[%s1231_s6 + $0x48] sm:$0xff]   ;;  %v1046_v15 = vld [vmem:[%s1231_s6 + $0x50] sm:$0xff]   ;;  %p916_p13 = scmp.ne.s32.totalorder %s1110_s14, 2 }
  0x34   : > { %v1041_v10 = vld [vmem:[%s1231_s6] sm:$0xff]   ;;  %921 = vmatprep.subr.bf16.mxu0 %v1040_v9  ;;  %v1044_v13 = vld [vmem:[%s1231_s6 + $0x8] sm:$0xff]   ;;  %v1047_v16 = vld [vmem:[%s1231_s6 + $0x10] sm:$0xff]  }
  0x35   : > { %v1042_v11 = vld [vmem:[%s1231_s6 + $0x80] sm:$0xff]   ;;  %922 = vmatpush3.bf16.msra.mxu0 %v1041_v10  ;;  %v1045_v14 = vld [vmem:[%s1231_s6 + $0x88] sm:$0xff]   ;;  %v1048_v17 = vld [vmem:[%s1231_s6 + $0x90] sm:$0xff]  }
  0x36   : > { %959 = vmatprep.subr.bf16.mxu1 %v1042_v11  ;;  %923 = vmatprep.subr.bf16.mxu0 %v1043_v12  ;;  %v1049_v18 = vld [vmem:[%s1231_s6 + $0x58] sm:$0xff]   ;;  %v1052_v21 = vld [vmem:[%s1231_s6 + $0x60] sm:$0xff]   ;;  %v1055_v24 = vld [vmem:[%s1231_s6 + $0x68] sm:$0xff]  }
  0x37   : > { %960 = vmatpush3.bf16.msra.mxu1 %v1042_v11  ;;  %v1050_v19 = vld [vmem:[%s1231_s6 + $0x18] sm:$0xff]   ;;  %v1054_v22 = vld [vmem:[%s1231_s6 + $0xa0] sm:$0xff]   ;;  %v1057_v25 = vld [vmem:[%s1231_s6 + $0xa8] sm:$0xff]  }
  0x38   : > { %961 = vmatprep.subr.bf16.mxu1 %v1045_v14  ;;  %v1051_v20 = vld [vmem:[%s1231_s6 + $0x98] sm:$0xff]   ;;  %v1053_v23 = vld [vmem:[%s1231_s6 + $0x20] sm:$0xff]   ;;  %v1056_v26 = vld [vmem:[%s1231_s6 + $0x28] sm:$0xff]  }
  0x39   : > { %924 = vmatpush3.bf16.msra.mxu0 %v1044_v13  ;;  %v1058_v27 = vld [vmem:[%s1231_s6 + $0x70] sm:$0xff]   ;;  %v1061_v30 = vld [vmem:[%s1231_s6 + $0x78] sm:$0xff]   ;;  %v351_v45 = vld [vmem:[#allocation2] sm:$0xff] }
  0x3a   : > { %925 = vmatprep.subr.bf16.mxu0 %v1046_v15  ;;  %v1059_v28 = vld [vmem:[%s1231_s6 + $0x30] sm:$0xff]   ;;  %v1063_v31 = vld [vmem:[%s1231_s6 + $0xb8] sm:$0xff]   ;;  %v352_v50 = vld [vmem:[#allocation2 + $0x8] sm:$0xff] }
  0x3b   : > { %962 = vmatpush3.bf16.msra.mxu1 %v1045_v14  ;;  %v1060_v29 = vld [vmem:[%s1231_s6 + $0xb0] sm:$0xff]   ;;  %v1062_v34 = vld [vmem:[%s1231_s6 + $0x38] sm:$0xff]   ;;  %v917_v4 = vld [vmem:[%s328_s24] ss:$0 sm:$0xff] (!%p916_p13) }
  0x3c   : > { %963 = vmatprep.subr.bf16.mxu1 %v1048_v17  ;;  %v1066_v32 = vld [vmem:[%s1233_s7 + $0x4] ss:$12 sps:$4 sm:$0xff]   ;;  %v1067_v33 = vld [vmem:[%s1233_s7 + $0x8] ss:$12 sps:$4 sm:$0xff]   ;;  %v1064_v35 = vld [vmem:[%s1233_s7] ss:$12 sps:$4 sm:$0xff]  }
  0x3d   : > { %926 = vmatpush3.bf16.msra.mxu0 %v1047_v16  ;;  %619 = vmatprep.mubr.bf16.mxu0 %v1066_v32  ;;  %v1069_v36 = vld [vmem:[%s1233_s7 + $0x1c] ss:$12 sps:$4 sm:$0xff]   ;;  %v1068_v37 = vld [vmem:[%s1233_s7 + $0x20] ss:$12 sps:$4 sm:$0xff]   ;;  %v1071_v38 = vld [vmem:[%s1233_s7 + $0x18] ss:$12 sps:$4 sm:$0xff]  }
  0x3e   : > { %927 = vmatprep.subr.bf16.mxu0 %v1049_v18  ;;  %975 = vmatprep.mubr.bf16.mxu1 %v1067_v33  ;;  %v353_v59 = vld [vmem:[#allocation2 + $0x10] sm:$0xff]  ;;  %v354_v63 = vld [vmem:[#allocation2 + $0x18] sm:$0xff] }
  0x3f   : > { %964 = vmatpush3.bf16.msra.mxu1 %v1048_v17 }
  0x40   : > { %965 = vmatprep.subr.bf16.mxu1 %v1051_v20 }
  0x41   : > { %928 = vmatpush3.bf16.msra.mxu0 %v1050_v19 }
  0x42   : > { %929 = vmatprep.subr.bf16.mxu0 %v1052_v21 }
  0x43   : > { %966 = vmatpush3.bf16.msra.mxu1 %v1051_v20 }
  0x44   : > { %967 = vmatprep.subr.bf16.mxu1 %v1054_v22 }
  0x45   : > { %930 = vmatpush3.bf16.msra.mxu0 %v1053_v23 }
  0x46   : > { %931 = vmatprep.subr.bf16.mxu0 %v1055_v24 }
  0x47   : > { %968 = vmatpush3.bf16.msra.mxu1 %v1054_v22 }
  0x48   : > { %969 = vmatprep.subr.bf16.mxu1 %v1057_v25 }
  0x49   : > { %932 = vmatpush3.bf16.msra.mxu0 %v1056_v26 }
  0x4a   : > { %933 = vmatprep.subr.bf16.mxu0 %v1058_v27 }
  0x4b   : > { %970 = vmatpush3.bf16.msra.mxu1 %v1057_v25 }
  0x4c   : > { %971 = vmatprep.subr.bf16.mxu1 %v1060_v29 }
  0x4d   : > { %934 = vmatpush3.bf16.msra.mxu0 %v1059_v28 }
  0x4e   : > { %935 = vmatprep.subr.bf16.mxu0 %v1061_v30 }
  0x4f   : > { %972 = vmatpush3.bf16.msra.mxu1 %v1060_v29 }
  0x50   : > { %973 = vmatprep.subr.bf16.mxu1 %v1063_v31 }
  0x51   : > { %936 = vmatpush3.bf16.msra.mxu0 %v1062_v34 }
  0x53   : > { %974 = vmatpush3.bf16.msra.mxu1 %v1063_v31 }
  0x54   : > { %620 = vmatmul.mubr.bf16.vlgmr.msra.gmra.mrb[0].mxu0 %v1064_v35 }
  0x55   : > { %627 = vmatprep.mubr.bf16.mxu0 %v1069_v36 }
  0x56   : > { %976 = vmatmul.mubr.bf16.vlgmr.msra.gmra.mrb[0].mxu1 %v1068_v37 }
  0x5c   : > { %628 = vmatmul.mubr.bf16.gmra.mrb[4].mxu0 %v1071_v38 }
 0x127   : > { %v937_v39 = vpop.f32.mrb[0].mxu0 }
 0x128   : > { %v938_v40 = vpop.f32.mrb[1].mxu0 }
 0x129   : > { %v939_v41 = vadd.f32 %v938_v40, %v937_v39  ;;  %v940_v42 = vpop.f32.mrb[2].mxu0  ;;  %v977_v43 = vpop.f32.mrb[0].mxu1 }
 0x12a   : > { %v941_v44 = vpop.f32.mrb[3].mxu0  ;;  %v670_v46 = vpop.f32.mrb[1].mxu1 }
 0x12b   : > { %v942_v47 = vadd.f32 %v941_v44, %v940_v42  ;;  %v671_v48 = vadd.f32 %v939_v41, %v670_v46  ;;  %v978_v49 = vpop.f32.mrb[2].mxu1 }
 0x12c   : > { %v673_v51 = vpop.f32.mrb[3].mxu1 }
 0x12d   : > { %v685_v52 = vadd.f32 %v671_v48, %v351_v45  ;;  %v674_v53 = vadd.f32 %v942_v47, %v673_v51 }
 0x12f   : > { %689 = vst [vmem:[#allocation2] sm:$0xff] %v685_v52  ;;  %v686_v54 = vadd.f32 %v674_v53, %v352_v50  ;;  %v943_v55 = vpop.f32.mrb[4].mxu0 }
 0x130   : > { %v944_v56 = vpop.f32.mrb[5].mxu0 }
 0x131   : > { %690 = vst [vmem:[#allocation2 + $0x8] sm:$0xff] %v686_v54  ;;  %v945_v57 = vadd.f32 %v944_v56, %v943_v55  ;;  %v946_v58 = vpop.f32.mrb[6].mxu0 }
 0x132   : > { %v947_v60 = vpop.f32.mrb[7].mxu0 }
 0x133   : > { %v679_v61 = vadd.f32 %v977_v43, %v945_v57  ;;  %v948_v62 = vadd.f32 %v947_v60, %v946_v58  ;;  %696 = sbr.rel (%p916_p13) target bundleno = 326 (0x146), region = 66 }
 0x135   : > { %v687_v0 = vadd.f32 %v679_v61, %v353_v59  ;;  %v682_v1 = vadd.f32 %v978_v49, %v948_v62 }
 0x136   : > { %v697_v3 = vld [vmem:[#allocation2] sm:$0xff] (!%p916_p13) }
 0x137   : > { %691 = vst [vmem:[#allocation2 + $0x10] sm:$0xff] %v687_v0  ;;  %v688_v2 = vadd.f32 %v682_v1, %v354_v63  ;;  %v708_v6 = vadd.f32 (!%p916_p13), %v917_v4, %v697_v3 }
 0x138   : > { %v698_v5 = vld [vmem:[#allocation2 + $0x8] sm:$0xff] (!%p916_p13) }
 0x139   : > { %692 = vst [vmem:[#allocation2 + $0x18] sm:$0xff] %v688_v2  ;;  %v709_v7 = vadd.f32 (!%p916_p13), %v917_v4, %v698_v5  ;;  %v712_v12 = vmax.f32 (!%p916_p13), %v708_v6, 0.0 }
 0x13b   : > { %v713_v13 = vmax.f32 %v709_v7, 0.0  ;;  %716 = vst [vmem:[%s1226_s12] sm:$0xff] %v712_v12 }
 0x13d   : > { %717 = vst [vmem:[%s1226_s12 + $0x8] sm:$0xff] %v713_v13 }
 0x13e   : > { %v699_v8 = vld [vmem:[#allocation2 + $0x10] sm:$0xff] }
 0x13f   : > { %v710_v10 = vadd.f32 %v917_v4, %v699_v8 }
 0x140   : > { %v700_v9 = vld [vmem:[#allocation2 + $0x18] sm:$0xff] }
 0x141   : > { %v711_v11 = vadd.f32 %v917_v4, %v700_v9  ;;  %v714_v14 = vmax.f32 %v710_v10, 0.0 }
 0x143   : > { %v715_v15 = vmax.f32 %v711_v11, 0.0  ;;  %718 = vst [vmem:[%s1226_s12 + $0x10] sm:$0xff] %v714_v14 }
 0x145   : > { %719 = vst [vmem:[%s1226_s12 + $0x18] sm:$0xff] %v715_v15 }
 0x146 PF: > { %s13_s18 = sadd.s32 1, %s1126_s18   ;;  %s1301_s12 = smov %s1106_s13 }
 0x147   : > { %p10_p0 = scmp.ge.s32.totalorder %s13_s18, 8   ;;  %s1302_s13 = smov %s1200_s25 }
 0x148   : > { %s1303_s14 = smov %s1118_s16  ;;  %s1304_s15 = smov %s1122_s17 }
 0x149   : > { %s1305_s16 = smov %s1308_s19  ;;  %s1306_s17 = smov %s1312_s20 }
 0x14a   :  { %12 = sbr.rel (!%p10_p0) target bundleno = 4 (0x4), region = 113 }

// kernel: encoder_forward.32
= control target key start
LH: loop header
LB: loop body
LE: loop exit
PB: predicated region body
PF: predicated region fallthrough
CT: control target
= control target key end

     0   :  { %s1161_s12 = smov 0   ;;  %s1163_s13 = smov 0   ;;  %s1285_s0 = inlined_call_operand.vmem [shape: bf16[2,8,1152], index: 0, kind: input, shape index: {}]   ;;  %s1286_s1 = inlined_call_operand.vmem [shape: bf16[2,1152,256], index: 1, kind: input, shape index: {}]   ;;  %s1287_s2 = inlined_call_operand.vmem [shape: f32[2,1,256], index: 2, kind: input, shape index: {}]   ;;  %s1288_s3 = inlined_call_operand.vmem [shape: f32[2,8,256], index: 3, kind: output, shape index: {}]  }
   0x1   :  { %s1165_s14 = smov 0   ;;  %s1167_s15 = smov 0  }
   0x2   :  { %s1169_s16 = smov 0  }
   0x3 LB: > { %s28_s17 = sadd.s32 1, %s1129_s14  ;;  %s39_s18 = sadd.s32 1, %s1133_s15  ;;  %s1137_s16 = sphi %s1169_s16, %s13_s16   ;;  %s1133_s15 = sphi %s1167_s15, %s1292_s15   ;;  %s1129_s14 = sphi %s1165_s14, %s1291_s14   ;;  %s1125_s13 = sphi %s1163_s13, %s1290_s13   ;;  %s1121_s12 = sphi %s1161_s12, %s1289_s12  }
   0x4   : > { %p29_p0 = scmp.ge.s32.totalorder %s28_s17, 3  ;;  %p917_p1 = scmp.ge.s32.totalorder %s1137_s16, 1 }
   0x5   : > { %p221_p2 = scmp.lt.s32.totalorder %s1137_s16, 7 }
   0x6   : > { %s1294_s17 = smov (%p29_p0, %s28_s17), 0  ;;  %s1296_s18 = smov (!%p29_p0, %s39_s18), %s1133_s15 }
   0x7   : > { %p222_p3 = pnand %p917_p1, %p221_p2  ;;  %p41_p4 = scmp.ge.s32.totalorder %s1296_s18, 2 }
   0x8   : > { %s283_s19 = smul.u32 (!%p222_p3), 3, %s1121_s12  ;;  %p284_p5 = scmp.lt.s32.totalorder (!%p222_p3), %s1125_s13, 1 }
   0x9   : > { %s1298_s18 = smov (%p41_p4, %s1296_s18), 0  ;;  %225 = sbr.rel (%p222_p3) target bundleno = 325 (0x145), region = 32 }
   0xa   : > { %s297_s20 = smul.u32 (!%p222_p3), 48, %s1121_s12  ;;  %p288_p6 = scmp.lt.s32.totalorder (!%p222_p3), %s283_s19, 8 }
   0xb   : > { %p924_p8 = scmp.ne.s32.totalorder (!%p222_p3), %s1121_s12, 0 }
   0xc   : > { %p301_p7 = scmp.lt.s32.totalorder (!%p222_p3), %s297_s20, 143 }
  0x10   : > { %s1300_s13 = smov (!%p284_p5, %s1125_s13), 1  ;;  %s1302_s19 = smov (!%p288_p6, %s283_s19), 8 }
  0x11   : > { %s980_s21 = smul.u32 9, %s1300_s13  ;;  %s921_s22 = sshll.u32 %s1300_s13, 1  ;;  %v1139_v0 = vmov (!%p924_p8), 0.0  }
  0x12   : > { %s1304_s20 = smov (!%p301_p7, %s297_s20), 143  ;;  %s981_s24 = smul.u32 288, %s1300_s13  ;;  %341 = vst [vmem:[#allocation2] sm:$0xff] (!%p924_p8), %v1139_v0  ;;  %342 = vst [vmem:[#allocation2 + $0x8] sm:$0xff] (!%p924_p8), %v1139_v0 }
  0x13   : > { %s293_s23 = sadd.s32 %s980_s21, %s1302_s19  ;;  %s919_s26 = sshll.u32 %s1304_s20, 1 }
  0x14   : > { %s918_s25 = sshll.u32 %s293_s23, 2  ;;  %s308_s30 = sadd.s32 %s981_s24, %s919_s26 }
  0x15   : > { %s1198_s29 = scalar_lea.vmem %s1285_s0, %s918_s25  ;;  %s920_s4 = sshll.u32 %s308_s30, 2 }
  0x16   : > { %s1203_s7 = scalar_lea.vmem %s1287_s2, %s921_s22  ;;  %s1208_s10 = scalar_lea.vmem %s1286_s1, %s920_s4 }
  0x17   : > { %s979_s11 = sshll.u32 %s1300_s13, 4  ;;  %340 = sbr.rel (%p924_p8) target bundleno = 30 (0x1e), region = 36 }
  0x18   : > { %s1213_s21 = scalar_lea.vmem %s1288_s3, %s979_s11 }
  0x1e PF: > { %v1024_v1 = vld [vmem:[%s1208_s10 + $0x4] ss:$8 sps:$4 sm:$0xff]   ;;  %v1026_v2 = vld [vmem:[%s1208_s10] ss:$8 sps:$4 sm:$0xff]   ;;  %v1140_v3 = vmov 0   ;;  %p976_p9 = scmp.ne.s32.totalorder %s1121_s12, 2 }
  0x1f   : > { %719 = vmatprep.mubr.bf16.mxu1 %v1140_v3  ;;  %646 = vmatprep.subr.bf16.mxu0 %v1024_v1  ;;  %v1027_v4 = vld [vmem:[%s1208_s10 + $0x14] ss:$8 sps:$4 sm:$0xff]   ;;  %v1029_v5 = vld [vmem:[%s1208_s10 + $0x10] ss:$8 sps:$4 sm:$0xff]   ;;  %v1030_v6 = vld [vmem:[%s1208_s10 + $0x24] ss:$8 sps:$4 sm:$0xff]  }
  0x20   : > { %647 = vmatpush1.bf16.msra.mxu0 %v1026_v2  ;;  %v1032_v7 = vld [vmem:[%s1208_s10 + $0x20] ss:$8 sps:$4 sm:$0xff]   ;;  %v1033_v8 = vld [vmem:[%s1208_s10 + $0x34] ss:$8 sps:$4 sm:$0xff]   ;;  %v1035_v9 = vld [vmem:[%s1208_s10 + $0x30] ss:$8 sps:$4 sm:$0xff]  }
  0x21   : > { %648 = vmatprep.subr.bf16.mxu0 %v1027_v4  ;;  %v1048_v10 = vld [vmem:[%s1208_s10 + $0x104] ss:$8 sps:$4 sm:$0xff]   ;;  %v1050_v11 = vld [vmem:[%s1208_s10 + $0x100] ss:$8 sps:$4 sm:$0xff]   ;;  %v1054_v13 = vld [vmem:[%s1208_s10 + $0x114] ss:$8 sps:$4 sm:$0xff]   ;;  %v740_v4 = vlaneseq (!%p976_p9) }
  0x22   : > { %v1036_v12 = vld [vmem:[%s1208_s10 + $0x44] ss:$8 sps:$4 sm:$0xff]   ;;  %687 = vmatprep.subr.bf16.mxu1 %v1048_v10  ;;  %v1056_v14 = vld [vmem:[%s1208_s10 + $0x110] ss:$8 sps:$4 sm:$0xff]   ;;  %v1038_v15 = vld [vmem:[%s1208_s10 + $0x40] ss:$8 sps:$4 sm:$0xff]  }
  0x23   : > { %688 = vmatpush1.bf16.msra.mxu1 %v1050_v11  ;;  %v1039_v16 = vld [vmem:[%s1208_s10 + $0x54] ss:$8 sps:$4 sm:$0xff]   ;;  %v1060_v17 = vld [vmem:[%s1208_s10 + $0x124] ss:$8 sps:$4 sm:$0xff]   ;;  %v1062_v18 = vld [vmem:[%s1208_s10 + $0x120] ss:$8 sps:$4 sm:$0xff]  }
  0x24   : > { %649 = vmatpush1.bf16.msra.mxu0 %v1029_v5  ;;  %689 = vmatprep.subr.bf16.mxu1 %v1054_v13  ;;  %v1041_v19 = vld [vmem:[%s1208_s10 + $0x50] ss:$8 sps:$4 sm:$0xff]   ;;  %v1066_v20 = vld [vmem:[%s1208_s10 + $0x134] ss:$8 sps:$4 sm:$0xff]   ;;  %v1042_v21 = vld [vmem:[%s1208_s10 + $0x64] ss:$8 sps:$4 sm:$0xff]  }
  0x25   : > { %650 = vmatprep.subr.bf16.mxu0 %v1030_v6  ;;  %v1068_v22 = vld [vmem:[%s1208_s10 + $0x130] ss:$8 sps:$4 sm:$0xff]   ;;  %v1044_v23 = vld [vmem:[%s1208_s10 + $0x60] ss:$8 sps:$4 sm:$0xff]   ;;  %v1072_v24 = vld [vmem:[%s1208_s10 + $0x144] ss:$8 sps:$4 sm:$0xff]  }
  0x26   : > { %v1045_v25 = vld [vmem:[%s1208_s10 + $0x74] ss:$8 sps:$4 sm:$0xff]   ;;  %v1074_v26 = vld [vmem:[%s1208_s10 + $0x140] ss:$8 sps:$4 sm:$0xff]   ;;  %v1047_v27 = vld [vmem:[%s1208_s10 + $0x70] ss:$8 sps:$4 sm:$0xff]  }
  0x27   : > { %690 = vmatpush1.bf16.msra.mxu1 %v1056_v14  ;;  %v1078_v28 = vld [vmem:[%s1208_s10 + $0x154] ss:$8 sps:$4 sm:$0xff]   ;;  %v1051_v29 = vld [vmem:[%s1208_s10 + $0x84] ss:$8 sps:$4 sm:$0xff]   ;;  %v1080_v30 = vld [vmem:[%s1208_s10 + $0x150] ss:$8 sps:$4 sm:$0xff]  }
  0x28   : > { %651 = vmatpush1.bf16.msra.mxu0 %v1032_v7  ;;  %691 = vmatprep.subr.bf16.mxu1 %v1060_v17  ;;  %v1053_v31 = vld [vmem:[%s1208_s10 + $0x80] ss:$8 sps:$4 sm:$0xff]   ;;  %v1084_v32 = vld [vmem:[%s1208_s10 + $0x164] ss:$8 sps:$4 sm:$0xff]   ;;  %v1057_v33 = vld [vmem:[%s1208_s10 + $0x94] ss:$8 sps:$4 sm:$0xff]  }
  0x29   : > { %652 = vmatprep.subr.bf16.mxu0 %v1033_v8  ;;  %v345_v34 = vld [vmem:[%s1198_s29] sm:$0xff]  ;;  %v1059_v37 = vld [vmem:[%s1208_s10 + $0x90] ss:$8 sps:$4 sm:$0xff]   ;;  %v1090_v38 = vld [vmem:[%s1208_s10 + $0x174] ss:$8 sps:$4 sm:$0xff]   ;;  %v741_v5 = vshrl.u32 (!%p976_p9), %v740_v4, 7 }
  0x2a   : > { %v926_v35 = vcombine.high %v345_v34, %v345_v34  ;;  %v1086_v36 = vld [vmem:[%s1208_s10 + $0x160] ss:$8 sps:$4 sm:$0xff]   ;;  %v1063_v39 = vld [vmem:[%s1208_s10 + $0xa4] ss:$8 sps:$4 sm:$0xff]   ;;  %v1092_v40 = vld [vmem:[%s1208_s10 + $0x170] ss:$8 sps:$4 sm:$0xff]   ;;  %v925_v53 = vcombine.low %v345_v34, %v345_v34 }
  0x2b   : > { %692 = vmatpush1.bf16.msra.mxu1 %v1062_v18  ;;  %v1065_v41 = vld [vmem:[%s1208_s10 + $0xa0] ss:$8 sps:$4 sm:$0xff]   ;;  %v1069_v42 = vld [vmem:[%s1208_s10 + $0xb4] ss:$8 sps:$4 sm:$0xff]   ;;  %v1071_v44 = vld [vmem:[%s1208_s10 + $0xb0] ss:$8 sps:$4 sm:$0xff]  }
  0x2c   : > { %653 = vmatpush1.bf16.msra.mxu0 %v1035_v9  ;;  %693 = vmatprep.subr.bf16.mxu1 %v1066_v20  ;;  %v1096_v43 = vld [vmem:[%s1198_s29 + $0x8] ss:$0 sps:$4 sm:$0xff]   ;;  %v1075_v45 = vld [vmem:[%s1208_s10 + $0xc4] ss:$8 sps:$4 sm:$0xff]   ;;  %v1081_v47 = vld [vmem:[%s1208_s10 + $0xd4] ss:$8 sps:$4 sm:$0xff]  }
  0x2d   : > { %654 = vmatprep.subr.bf16.mxu0 %v1036_v12  ;;  %678 = vmatprep.mubr.bf16.mxu0 %v926_v35  ;;  %v1077_v46 = vld [vmem:[%s1208_s10 + $0xc0] ss:$8 sps:$4 sm:$0xff]   ;;  %v1083_v48 = vld [vmem:[%s1208_s10 + $0xd0] ss:$8 sps:$4 sm:$0xff]   ;;  %v1087_v49 = vld [vmem:[%s1208_s10 + $0xe4] ss:$8 sps:$4 sm:$0xff]  }
  0x2e   : > { %v1089_v50 = vld [vmem:[%s1208_s10 + $0xe0] ss:$8 sps:$4 sm:$0xff]   ;;  %v1093_v51 = vld [vmem:[%s1208_s10 + $0xf4] ss:$8 sps:$4 sm:$0xff]   ;;  %v1095_v52 = vld [vmem:[%s1208_s10 + $0xf0] ss:$8 sps:$4 sm:$0xff]  }
  0x2f   : > { %694 = vmatpush1.bf16.msra.mxu1 %v1068_v22  ;;  %v343_v58 = vld [vmem:[#allocation2] sm:$0xff]  ;;  %v344_v61 = vld [vmem:[#allocation2 + $0x8] sm:$0xff]  ;;  %v742_v7 = vsub.s32 (!%p976_p9), 0, %v741_v5  ;;  %v746_v8 = vsub.s32 (!%p976_p9), 1, %v741_v5 }
  0x30   : > { %655 = vmatpush1.bf16.msra.mxu0 %v1038_v15  ;;  %695 = vmatprep.subr.bf16.mxu1 %v1072_v24  ;;  %v738_v6 = vld [vmem:[%s1203_s7] sm:$0x3] (!%p976_p9) }
  0x31   : > { %656 = vmatprep.subr.bf16.mxu0 %v1039_v16  ;;  %v743_v11 = vrot.slane (!%p976_p9), %v738_v6, %v742_v7  ;;  %v747_v12 = vrot.slane (!%p976_p9), %v738_v6, %v746_v8 }
  0x33   : > { %696 = vmatpush1.bf16.msra.mxu1 %v1074_v26 }
  0x34   : > { %657 = vmatpush1.bf16.msra.mxu0 %v1041_v19  ;;  %697 = vmatprep.subr.bf16.mxu1 %v1078_v28 }
  0x35   : > { %658 = vmatprep.subr.bf16.mxu0 %v1042_v21 }
  0x37   : > { %698 = vmatpush1.bf16.msra.mxu1 %v1080_v30 }
  0x38   : > { %659 = vmatpush1.bf16.msra.mxu0 %v1044_v23  ;;  %699 = vmatprep.subr.bf16.mxu1 %v1084_v32 }
  0x39   : > { %660 = vmatprep.subr.bf16.mxu0 %v1045_v25 }
  0x3b   : > { %700 = vmatpush1.bf16.msra.mxu1 %v1086_v36 }
  0x3c   : > { %661 = vmatpush1.bf16.msra.mxu0 %v1047_v27  ;;  %701 = vmatprep.subr.bf16.mxu1 %v1090_v38 }
  0x3d   : > { %662 = vmatprep.subr.bf16.mxu0 %v1051_v29 }
  0x3f   : > { %702 = vmatpush1.bf16.msra.mxu1 %v1092_v40 }
  0x40   : > { %663 = vmatpush1.bf16.msra.mxu0 %v1053_v31 }
  0x41   : > { %664 = vmatprep.subr.bf16.mxu0 %v1057_v33 }
  0x42   : > { %720 = vmatmul.mubr.bf16.vlgmr.msra.gmra.mrb[0].mxu1 %v1096_v43 }
  0x44   : > { %665 = vmatpush1.bf16.msra.mxu0 %v1059_v37 }
  0x45   : > { %666 = vmatprep.subr.bf16.mxu0 %v1063_v39 }
  0x48   : > { %667 = vmatpush1.bf16.msra.mxu0 %v1065_v41 }
  0x49   : > { %668 = vmatprep.subr.bf16.mxu0 %v1069_v42 }
  0x4c   : > { %669 = vmatpush1.bf16.msra.mxu0 %v1071_v44 }
  0x4d   : > { %670 = vmatprep.subr.bf16.mxu0 %v1075_v45 }
  0x50   : > { %671 = vmatpush1.bf16.msra.mxu0 %v1077_v46 }
  0x51   : > { %672 = vmatprep.subr.bf16.mxu0 %v1081_v47 }
  0x54   : > { %673 = vmatpush1.bf16.msra.mxu0 %v1083_v48 }
  0x55   : > { %674 = vmatprep.subr.bf16.mxu0 %v1087_v49 }
  0x58   : > { %675 = vmatpush1.bf16.msra.mxu0 %v1089_v50 }
  0x59   : > { %676 = vmatprep.subr.bf16.mxu0 %v1093_v51 }
  0x5c   : > { %677 = vmatpush1.bf16.msra.mxu0 %v1095_v52 }
  0x5f   : > { %679 = vmatmul.mubr.bf16.vlgmr.msra.gmra.mrb[0].mxu0 %v925_v53 }
 0x115   : > { %v721_v54 = vpop.f32.mrb[0].mxu1 }
 0x116   : > { %v723_v55 = vpop.f32.mrb[1].mxu1 }
 0x117   : > { %v725_v56 = vpop.f32.mrb[2].mxu1 }
 0x118   : > { %v726_v57 = vpop.f32.mrb[3].mxu1 }
 0x132   : > { %v680_v59 = vpop.f32.mrb[0].mxu0  ;;  %735 = sbr.rel (%p976_p9) target bundleno = 325 (0x145), region = 40 }
 0x133   : > { %v722_v60 = vadd.f32 %v721_v54, %v680_v59  ;;  %v682_v62 = vpop.f32.mrb[1].mxu0 }
 0x134   : > { %v724_v63 = vadd.f32 %v723_v55, %v682_v62  ;;  %v684_v0 = vpop.f32.mrb[2].mxu0 }
 0x135   : > { %v728_v1 = vadd.f32 %v722_v60, %v343_v58  ;;  %v685_v2 = vpop.f32.mrb[3].mxu0 }
 0x136   : > { %v729_v3 = vadd.f32 %v724_v63, %v344_v61 }
 0x137   : > { %730 = vst [vmem:[#allocation2] sm:$0xff] %v728_v1 }
 0x138   : > { %731 = vst [vmem:[#allocation2 + $0x8] sm:$0xff] %v729_v3 }
 0x13e   : > { %v736_v9 = vld [vmem:[#allocation2] sm:$0xff] }
 0x13f   : > { %v737_v10 = vld [vmem:[#allocation2 + $0x8] sm:$0xff]  ;;  %v750_v13 = vadd.f32 %v743_v11, %v736_v9 }
 0x140   : > { %v751_v14 = vadd.f32 %v747_v12, %v737_v10 }
 0x141   : > { %v752_v15 = vmax.f32 %v750_v13, 0.0 }
 0x142   : > { %v753_v16 = vmax.f32 %v751_v14, 0.0 }
 0x143   : > { %754 = vst [vmem:[%s1213_s21] sm:$0xff] %v752_v15 }
 0x144   : > { %755 = vst [vmem:[%s1213_s21 + $0x8] sm:$0xff] %v753_v16 }
 0x145 PF: > { %s13_s16 = sadd.s32 1, %s1137_s16   ;;  %s1289_s12 = smov %s1129_s14 }
 0x146   : > { %p10_p10 = scmp.ge.s32.totalorder %s13_s16, 8   ;;  %s1290_s13 = smov %s1133_s15 }
 0x147   : > { %s1291_s14 = smov %s1294_s17  ;;  %s1292_s15 = smov %s1298_s18 }
 0x148   :  { %12 = sbr.rel (!%p10_p10) target bundleno = 3 (0x3), region = 76 }

// kernel: encoder_forward.31
= control target key start
LH: loop header
LB: loop body
LE: loop exit
PB: predicated region body
PF: predicated region fallthrough
CT: control target
= control target key end

     0   :  { %s770_s12 = smov 0   ;;  %s772_s13 = smov 0   ;;  %s833_s0 = inlined_call_operand.vmem [shape: bf16[2,8,128], index: 0, kind: input, shape index: {}]   ;;  %s834_s1 = inlined_call_operand.vmem [shape: bf16[2,128,256], index: 1, kind: input, shape index: {}]   ;;  %s835_s2 = inlined_call_operand.vmem [shape: f32[2,1,256], index: 2, kind: input, shape index: {}]   ;;  %s836_s3 = inlined_call_operand.vmem [shape: f32[2,8,256], index: 3, kind: output, shape index: {}]  }
   0x1   :  { %s774_s14 = smov 0  }
   0x2 LB: > { %s39_s15 = sadd.s32 1, %s743_s13  ;;  %p649_p0 = scmp.ge.s32.totalorder %s747_s14, 1  ;;  %s747_s14 = sphi %s774_s14, %s13_s14   ;;  %s743_s13 = sphi %s772_s13, %s838_s13   ;;  %s739_s12 = sphi %s770_s12, %s837_s12  }
   0x3   : > { %p41_p1 = scmp.ge.s32.totalorder %s39_s15, 2  ;;  %p217_p2 = scmp.lt.s32.totalorder %s747_s14, 3 }
   0x5   : > { %s840_s15 = smov (%p41_p1, %s39_s15), 0  ;;  %p218_p3 = pnand %p649_p0, %p217_p2 }
   0x6   : > { %p276_p4 = scmp.lt.s32.totalorder (!%p218_p3), %s739_s12, 1  ;;  %v749_v0 = vmov (!%p218_p3), 0   ;;  %v483_v18 = vlaneseq (!%p218_p3) }
   0x7   : > { %221 = sbr.rel (%p218_p3) target bundleno = 266 (0x10a), region = 32  ;;  %463 = vmatprep.mubr.bf16.mxu0 (!%p218_p3), %v749_v0 }
   0x8   : > { %v484_v19 = vshrl.u32 (!%p218_p3), %v483_v18, 7 }
   0xa   : > { %v485_v20 = vsub.s32 (!%p218_p3), 0, %v484_v19  ;;  %v489_v22 = vsub.s32 (!%p218_p3), 1, %v484_v19 }
   0xe   : > { %s842_s12 = smov (!%p276_p4, %s739_s12), 1 }
   0xf   : > { %s674_s16 = sshll.u32 %s842_s12, 7  ;;  %s650_s20 = sshll.u32 %s842_s12, 2 }
  0x10   : > { %s794_s19 = scalar_lea.vmem %s834_s1, %s674_s16  ;;  %s285_s23 = scalar_lea.vmem %s833_s0, %s650_s20 }
  0x11   : > { %v701_v1 = vld [vmem:[%s794_s19 + $0x4] ss:$8 sps:$4 sm:$0xff]   ;;  %v703_v2 = vld [vmem:[%s794_s19] ss:$8 sps:$4 sm:$0xff]   ;;  %v704_v3 = vld [vmem:[%s794_s19 + $0x14] ss:$8 sps:$4 sm:$0xff]  }
  0x12   : > { %431 = vmatprep.subr.bf16.mxu0 %v701_v1  ;;  %v706_v4 = vld [vmem:[%s794_s19 + $0x10] ss:$8 sps:$4 sm:$0xff]   ;;  %v707_v5 = vld [vmem:[%s794_s19 + $0x24] ss:$8 sps:$4 sm:$0xff]   ;;  %v709_v6 = vld [vmem:[%s794_s19 + $0x20] ss:$8 sps:$4 sm:$0xff]  }
  0x13   : > { %432 = vmatpush1.bf16.msra.mxu0 %v703_v2  ;;  %v710_v7 = vld [vmem:[%s794_s19 + $0x34] ss:$8 sps:$4 sm:$0xff]   ;;  %v712_v8 = vld [vmem:[%s794_s19 + $0x30] ss:$8 sps:$4 sm:$0xff]   ;;  %v713_v9 = vld [vmem:[%s794_s19 + $0x44] ss:$8 sps:$4 sm:$0xff]  }
  0x14   : > { %433 = vmatprep.subr.bf16.mxu0 %v704_v3  ;;  %v715_v10 = vld [vmem:[%s794_s19 + $0x40] ss:$8 sps:$4 sm:$0xff]   ;;  %v716_v11 = vld [vmem:[%s794_s19 + $0x54] ss:$8 sps:$4 sm:$0xff]   ;;  %v718_v12 = vld [vmem:[%s794_s19 + $0x50] ss:$8 sps:$4 sm:$0xff]  }
  0x15   : > { %v719_v13 = vld [vmem:[%s794_s19 + $0x64] ss:$8 sps:$4 sm:$0xff]   ;;  %v721_v14 = vld [vmem:[%s794_s19 + $0x60] ss:$8 sps:$4 sm:$0xff]   ;;  %v722_v15 = vld [vmem:[%s794_s19 + $0x74] ss:$8 sps:$4 sm:$0xff]  }
  0x16   : > { %v724_v16 = vld [vmem:[%s794_s19 + $0x70] ss:$8 sps:$4 sm:$0xff]   ;;  %v334_v17 = vld [vmem:[%s285_s23] sm:$0xf]  ;;  %s653_s24 = sshll.u32 %s842_s12, 1  ;;  %s675_s28 = sshll.u32 %s842_s12, 4 }
  0x17   : > { %434 = vmatpush1.bf16.msra.mxu0 %v706_v4  ;;  %s309_s27 = scalar_lea.vmem %s835_s2, %s653_s24  ;;  %s323_s4 = scalar_lea.vmem %s836_s3, %s675_s28 }
  0x18   : > { %435 = vmatprep.subr.bf16.mxu0 %v707_v5  ;;  %v481_v21 = vld [vmem:[%s309_s27] sm:$0x3] }
  0x19   : > { %v486_v23 = vrot.slane %v481_v21, %v485_v20  ;;  %v490_v24 = vrot.slane %v481_v21, %v489_v22 }
  0x1b   : > { %436 = vmatpush1.bf16.msra.mxu0 %v709_v6 }
  0x1c   : > { %437 = vmatprep.subr.bf16.mxu0 %v710_v7 }
  0x1f   : > { %438 = vmatpush1.bf16.msra.mxu0 %v712_v8 }
  0x20   : > { %439 = vmatprep.subr.bf16.mxu0 %v713_v9 }
  0x23   : > { %440 = vmatpush1.bf16.msra.mxu0 %v715_v10 }
  0x24   : > { %441 = vmatprep.subr.bf16.mxu0 %v716_v11 }
  0x27   : > { %442 = vmatpush1.bf16.msra.mxu0 %v718_v12 }
  0x28   : > { %443 = vmatprep.subr.bf16.mxu0 %v719_v13 }
  0x2b   : > { %444 = vmatpush1.bf16.msra.mxu0 %v721_v14 }
  0x2c   : > { %445 = vmatprep.subr.bf16.mxu0 %v722_v15 }
  0x2f   : > { %446 = vmatpush1.bf16.msra.mxu0 %v724_v16 }
  0x32   : > { %464 = vmatmul.mubr.bf16.vlgmr.msra.gmra.mrb[0].mxu0 %v334_v17 }
 0x105   : > { %v465_v25 = vpop.f32.mrb[0].mxu0 }
 0x106   : > { %v493_v26 = vadd.f32 %v486_v23, %v465_v25  ;;  %v467_v27 = vpop.f32.mrb[1].mxu0 }
 0x107   : > { %v494_v28 = vadd.f32 %v490_v24, %v467_v27  ;;  %v469_v29 = vpop.f32.mrb[2].mxu0 }
 0x108   : > { %495 = vst [vmem:[%s323_s4] sm:$0xff] %v493_v26  ;;  %v470_v30 = vpop.f32.mrb[3].mxu0 }
 0x109   : > { %496 = vst [vmem:[%s323_s4 + $0x8] sm:$0xff] %v494_v28 }
 0x10a PF: > { %s13_s14 = sadd.s32 1, %s747_s14   ;;  %s837_s12 = smov %s743_s13 }
 0x10b   : > { %p10_p5 = scmp.ge.s32.totalorder %s13_s14, 4   ;;  %s838_s13 = smov %s840_s15 }
 0x10d   :  { %12 = sbr.rel (!%p10_p5) target bundleno = 2 (0x2), region = 76 }

// kernel: encoder_forward.33
= control target key start
LH: loop header
LB: loop body
LE: loop exit
PB: predicated region body
PF: predicated region fallthrough
CT: control target
= control target key end

     0   :  { %s1737_s15 = smov 0   ;;  %s1739_s16 = smov 0   ;;  %s1923_s0 = inlined_call_operand.vmem [shape: bf16[2,8,2304], index: 0, kind: input, shape index: {}]   ;;  %s1924_s1 = inlined_call_operand.vmem [shape: bf16[2,2304,256], index: 1, kind: input, shape index: {}]   ;;  %s1925_s2 = inlined_call_operand.vmem [shape: f32[2,1,256], index: 2, kind: input, shape index: {}]   ;;  %s1926_s3 = inlined_call_operand.vmem [shape: f32[2,8,256], index: 3, kind: input, shape index: {}]   ;;  %s1927_s4 = inlined_call_operand.vmem [shape: f32[2,8,256], index: 4, kind: output, shape index: {}]  }
   0x1   :  { %s1741_s17 = smov 0   ;;  %s1743_s18 = smov 0  }
   0x2   :  { %s1745_s19 = smov 0  }
   0x3 LB: > { %s29_s20 = sadd.s32 1, %s1701_s17  ;;  %s40_s21 = sadd.s32 1, %s1705_s18  ;;  %s1709_s19 = sphi %s1745_s19, %s14_s19   ;;  %s1705_s18 = sphi %s1743_s18, %s1931_s18   ;;  %s1701_s17 = sphi %s1741_s17, %s1930_s17   ;;  %s1697_s16 = sphi %s1739_s16, %s1929_s16   ;;  %s1693_s15 = sphi %s1737_s15, %s1928_s15  }
   0x4   : > { %p30_p0 = scmp.ge.s32.totalorder %s29_s20, 3  ;;  %p1361_p1 = scmp.ge.s32.totalorder %s1709_s19, 1 }
   0x5   : > { %p269_p2 = scmp.lt.s32.totalorder %s1709_s19, 7 }
   0x6   : > { %s1933_s20 = smov (%p30_p0, %s29_s20), 0  ;;  %s1935_s21 = smov (!%p30_p0, %s40_s21), %s1705_s18 }
   0x7   : > { %p270_p3 = pnand %p1361_p1, %p269_p2  ;;  %p42_p4 = scmp.ge.s32.totalorder %s1935_s21, 2 }
   0x8   : > { %s346_s22 = smul.u32 (!%p270_p3), 6, %s1693_s15  ;;  %p347_p5 = scmp.lt.s32.totalorder (!%p270_p3), %s1697_s16, 1 }
   0x9   : > { %s1937_s21 = smov (%p42_p4, %s1935_s21), 0  ;;  %273 = sbr.rel (%p270_p3) target bundleno = 391 (0x187), region = 36 }
   0xa   : > { %s360_s23 = smul.u32 (!%p270_p3), 96, %s1693_s15  ;;  %p351_p6 = scmp.lt.s32.totalorder (!%p270_p3), %s346_s22, 17 }
   0xb   : > { %p1370_p8 = scmp.ne.s32.totalorder (!%p270_p3), %s1693_s15, 0 }
   0xc   : > { %p364_p7 = scmp.lt.s32.totalorder (!%p270_p3), %s360_s23, 287 }
  0x10   : > { %s1939_s16 = smov (!%p347_p5, %s1697_s16), 1  ;;  %s1941_s22 = smov (!%p351_p6, %s346_s22), 17 }
  0x11   : > { %s1478_s24 = smul.u32 18, %s1939_s16  ;;  %s1365_s25 = sshll.u32 %s1939_s16, 1  ;;  %v1711_v0 = vmov (!%p1370_p8), 0.0  }
  0x12   : > { %s1943_s23 = smov (!%p364_p7, %s360_s23), 287  ;;  %s1479_s27 = smul.u32 576, %s1939_s16  ;;  %417 = vst [vmem:[#allocation2] sm:$0xff] (!%p1370_p8), %v1711_v0  ;;  %418 = vst [vmem:[#allocation2 + $0x8] sm:$0xff] (!%p1370_p8), %v1711_v0 }
  0x13   : > { %s356_s26 = sadd.s32 %s1478_s24, %s1941_s22  ;;  %s1363_s29 = sshll.u32 %s1943_s23, 1 }
  0x14   : > { %s1362_s28 = sshll.u32 %s356_s26, 2  ;;  %s371_s7 = sadd.s32 %s1479_s27, %s1363_s29 }
  0x15   : > { %s1774_s6 = scalar_lea.vmem %s1923_s0, %s1362_s28  ;;  %s1364_s8 = sshll.u32 %s371_s7, 2 }
  0x16   : > { %s1779_s11 = scalar_lea.vmem %s1925_s2, %s1365_s25  ;;  %s1784_s14 = scalar_lea.vmem %s1924_s1, %s1364_s8 }
  0x17   : > { %s1476_s22 = sshll.u32 %s1939_s16, 4  ;;  %416 = sbr.rel (%p1370_p8) target bundleno = 30 (0x1e), region = 40 }
  0x18   : > { %s1789_s26 = scalar_lea.vmem %s1926_s3, %s1476_s22  ;;  %s1794_s27 = scalar_lea.vmem %s1927_s4, %s1476_s22 }
  0x1e PF: > { %v1521_v1 = vld [vmem:[%s1784_s14 + $0x4] ss:$8 sps:$4 sm:$0xff]   ;;  %v1525_v3 = vld [vmem:[%s1784_s14] ss:$8 sps:$4 sm:$0xff]   ;;  %v1527_v5 = vld [vmem:[%s1784_s14 + $0x14] ss:$8 sps:$4 sm:$0xff]  }
  0x1f   : > { %v1523_v2 = vld [vmem:[%s1784_s14 + $0x104] ss:$8 sps:$4 sm:$0xff]   ;;  %1021 = vmatprep.subr.bf16.mxu0 %v1521_v1  ;;  %v1526_v4 = vld [vmem:[%s1784_s14 + $0x100] ss:$8 sps:$4 sm:$0xff]   ;;  %v1529_v6 = vld [vmem:[%s1784_s14 + $0x114] ss:$8 sps:$4 sm:$0xff]  }
  0x20   : > { %1062 = vmatprep.subr.bf16.mxu1 %v1523_v2  ;;  %1022 = vmatpush1.bf16.msra.mxu0 %v1525_v3  ;;  %v1531_v7 = vld [vmem:[%s1784_s14 + $0x10] ss:$8 sps:$4 sm:$0xff]   ;;  %v1533_v9 = vld [vmem:[%s1784_s14 + $0x24] ss:$8 sps:$4 sm:$0xff]   ;;  %v1537_v11 = vld [vmem:[%s1784_s14 + $0x20] ss:$8 sps:$4 sm:$0xff]  }
  0x21   : > { %1063 = vmatpush1.bf16.msra.mxu1 %v1526_v4  ;;  %1023 = vmatprep.subr.bf16.mxu0 %v1527_v5  ;;  %v1532_v8 = vld [vmem:[%s1784_s14 + $0x110] ss:$8 sps:$4 sm:$0xff]   ;;  %v1535_v10 = vld [vmem:[%s1784_s14 + $0x124] ss:$8 sps:$4 sm:$0xff]   ;;  %v1538_v12 = vld [vmem:[%s1784_s14 + $0x120] ss:$8 sps:$4 sm:$0xff]  }
  0x22   : > { %1064 = vmatprep.subr.bf16.mxu1 %v1529_v6  ;;  %v1539_v13 = vld [vmem:[%s1784_s14 + $0x34] ss:$8 sps:$4 sm:$0xff]   ;;  %v1543_v15 = vld [vmem:[%s1784_s14 + $0x30] ss:$8 sps:$4 sm:$0xff]   ;;  %v1545_v17 = vld [vmem:[%s1784_s14 + $0x44] ss:$8 sps:$4 sm:$0xff]  }
  0x23   : > { %v1541_v14 = vld [vmem:[%s1784_s14 + $0x134] ss:$8 sps:$4 sm:$0xff]   ;;  %v1544_v16 = vld [vmem:[%s1784_s14 + $0x130] ss:$8 sps:$4 sm:$0xff]   ;;  %v1547_v18 = vld [vmem:[%s1784_s14 + $0x144] ss:$8 sps:$4 sm:$0xff]  }
  0x24   : > { %1024 = vmatpush1.bf16.msra.mxu0 %v1531_v7  ;;  %v1549_v19 = vld [vmem:[%s1784_s14 + $0x40] ss:$8 sps:$4 sm:$0xff]   ;;  %v1551_v21 = vld [vmem:[%s1784_s14 + $0x54] ss:$8 sps:$4 sm:$0xff]   ;;  %v1555_v23 = vld [vmem:[%s1784_s14 + $0x50] ss:$8 sps:$4 sm:$0xff]  }
  0x25   : > { %1065 = vmatpush1.bf16.msra.mxu1 %v1532_v8  ;;  %1025 = vmatprep.subr.bf16.mxu0 %v1533_v9  ;;  %v1550_v20 = vld [vmem:[%s1784_s14 + $0x140] ss:$8 sps:$4 sm:$0xff]   ;;  %v1553_v22 = vld [vmem:[%s1784_s14 + $0x154] ss:$8 sps:$4 sm:$0xff]   ;;  %v1556_v24 = vld [vmem:[%s1784_s14 + $0x150] ss:$8 sps:$4 sm:$0xff]  }
  0x26   : > { %1066 = vmatprep.subr.bf16.mxu1 %v1535_v10  ;;  %v1557_v25 = vld [vmem:[%s1784_s14 + $0x64] ss:$8 sps:$4 sm:$0xff]   ;;  %v1561_v27 = vld [vmem:[%s1784_s14 + $0x60] ss:$8 sps:$4 sm:$0xff]   ;;  %v1563_v29 = vld [vmem:[%s1784_s14 + $0x74] ss:$8 sps:$4 sm:$0xff]  }
  0x27   : > { %v1559_v26 = vld [vmem:[%s1784_s14 + $0x164] ss:$8 sps:$4 sm:$0xff]   ;;  %v1562_v28 = vld [vmem:[%s1784_s14 + $0x160] ss:$8 sps:$4 sm:$0xff]   ;;  %v1565_v30 = vld [vmem:[%s1784_s14 + $0x174] ss:$8 sps:$4 sm:$0xff]  }
  0x28   : > { %1026 = vmatpush1.bf16.msra.mxu0 %v1537_v11  ;;  %v1567_v31 = vld [vmem:[%s1784_s14 + $0x70] ss:$8 sps:$4 sm:$0xff]   ;;  %v1569_v33 = vld [vmem:[%s1784_s14 + $0x84] ss:$8 sps:$4 sm:$0xff]   ;;  %v1573_v35 = vld [vmem:[%s1784_s14 + $0x80] ss:$8 sps:$4 sm:$0xff]  }
  0x29   : > { %1067 = vmatpush1.bf16.msra.mxu1 %v1538_v12  ;;  %1027 = vmatprep.subr.bf16.mxu0 %v1539_v13  ;;  %v1568_v32 = vld [vmem:[%s1784_s14 + $0x170] ss:$8 sps:$4 sm:$0xff]   ;;  %v1571_v34 = vld [vmem:[%s1784_s14 + $0x184] ss:$8 sps:$4 sm:$0xff]   ;;  %v1574_v36 = vld [vmem:[%s1784_s14 + $0x180] ss:$8 sps:$4 sm:$0xff]  }
  0x2a   : > { %1068 = vmatprep.subr.bf16.mxu1 %v1541_v14  ;;  %v1575_v37 = vld [vmem:[%s1784_s14 + $0x94] ss:$8 sps:$4 sm:$0xff]   ;;  %v1579_v39 = vld [vmem:[%s1784_s14 + $0x90] ss:$8 sps:$4 sm:$0xff]   ;;  %v1581_v41 = vld [vmem:[%s1784_s14 + $0xa4] ss:$8 sps:$4 sm:$0xff]  }
  0x2b   : > { %v1577_v38 = vld [vmem:[%s1784_s14 + $0x194] ss:$8 sps:$4 sm:$0xff]   ;;  %v1580_v40 = vld [vmem:[%s1784_s14 + $0x190] ss:$8 sps:$4 sm:$0xff]   ;;  %v1583_v42 = vld [vmem:[%s1784_s14 + $0x1a4] ss:$8 sps:$4 sm:$0xff]  }
  0x2c   : > { %1028 = vmatpush1.bf16.msra.mxu0 %v1543_v15  ;;  %v1585_v43 = vld [vmem:[%s1784_s14 + $0xa0] ss:$8 sps:$4 sm:$0xff]   ;;  %v1587_v45 = vld [vmem:[%s1784_s14 + $0xb4] ss:$8 sps:$4 sm:$0xff]   ;;  %v1591_v50 = vld [vmem:[%s1784_s14 + $0xb0] ss:$8 sps:$4 sm:$0xff]  }
  0x2d   : > { %1069 = vmatpush1.bf16.msra.mxu1 %v1544_v16  ;;  %1029 = vmatprep.subr.bf16.mxu0 %v1545_v17  ;;  %v1586_v44 = vld [vmem:[%s1784_s14 + $0x1a0] ss:$8 sps:$4 sm:$0xff]   ;;  %v1589_v46 = vld [vmem:[%s1784_s14 + $0x1b4] ss:$8 sps:$4 sm:$0xff]   ;;  %v1592_v51 = vld [vmem:[%s1784_s14 + $0x1b0] ss:$8 sps:$4 sm:$0xff]  }
  0x2e   : > { %1070 = vmatprep.subr.bf16.mxu1 %v1547_v18  ;;  %v421_v47 = vld [vmem:[%s1774_s6] sm:$0xff]  ;;  %v422_v49 = vld [vmem:[%s1774_s6 + $0x8] sm:$0xff]  ;;  %v1599_v57 = vld [vmem:[%s1784_s14 + $0xd4] ss:$8 sps:$4 sm:$0xff]   ;;  %p1473_p9 = scmp.ne.s32.totalorder %s1693_s15, 2 }
  0x2f   : > { %v1372_v48 = vcombine.high %v421_v47, %v421_v47  ;;  %v1374_v52 = vcombine.high %v422_v49, %v422_v49  ;;  %v1593_v53 = vld [vmem:[%s1784_s14 + $0xc4] ss:$8 sps:$4 sm:$0xff]   ;;  %v1597_v55 = vld [vmem:[%s1784_s14 + $0xc0] ss:$8 sps:$4 sm:$0xff]   ;;  %v1601_v58 = vld [vmem:[%s1784_s14 + $0x1d4] ss:$8 sps:$4 sm:$0xff]   ;;  %v1371_v6 = vcombine.low %v421_v47, %v421_v47  ;;  %v1373_v7 = vcombine.low %v422_v49, %v422_v49 }
  0x30   : > { %1030 = vmatpush1.bf16.msra.mxu0 %v1549_v19  ;;  %v1595_v54 = vld [vmem:[%s1784_s14 + $0x1c4] ss:$8 sps:$4 sm:$0xff]   ;;  %v1598_v56 = vld [vmem:[%s1784_s14 + $0x1c0] ss:$8 sps:$4 sm:$0xff]   ;;  %v1603_v59 = vld [vmem:[%s1784_s14 + $0xd0] ss:$8 sps:$4 sm:$0xff]  }
  0x31   : > { %1071 = vmatpush1.bf16.msra.mxu1 %v1550_v20  ;;  %1031 = vmatprep.subr.bf16.mxu0 %v1551_v21  ;;  %v1604_v60 = vld [vmem:[%s1784_s14 + $0x1d0] ss:$8 sps:$4 sm:$0xff]   ;;  %v1605_v61 = vld [vmem:[%s1784_s14 + $0xe4] ss:$8 sps:$4 sm:$0xff]   ;;  %v1609_v63 = vld [vmem:[%s1784_s14 + $0xe0] ss:$8 sps:$4 sm:$0xff]  }
  0x32   : > { %1072 = vmatprep.subr.bf16.mxu1 %v1553_v22  ;;  %1053 = vmatprep.mubr.bf16.mxu0 %v1372_v48  ;;  %v1607_v62 = vld [vmem:[%s1784_s14 + $0x1e4] ss:$8 sps:$4 sm:$0xff]   ;;  %v1610_v0 = vld [vmem:[%s1784_s14 + $0x1e0] ss:$8 sps:$4 sm:$0xff]   ;;  %v1611_v1 = vld [vmem:[%s1784_s14 + $0xf4] ss:$8 sps:$4 sm:$0xff]  }
  0x33   : > { %1094 = vmatprep.mubr.bf16.mxu1 %v1374_v52  ;;  %v1613_v2 = vld [vmem:[%s1784_s14 + $0x1f4] ss:$8 sps:$4 sm:$0xff]   ;;  %v1615_v3 = vld [vmem:[%s1784_s14 + $0xf0] ss:$8 sps:$4 sm:$0xff]   ;;  %v1623_v5 = vld [vmem:[%s1784_s14 + $0x204] ss:$8 sps:$4 sm:$0xff]  }
  0x34   : > { %1032 = vmatpush1.bf16.msra.mxu0 %v1555_v23  ;;  %v1616_v4 = vld [vmem:[%s1784_s14 + $0x1f0] ss:$8 sps:$4 sm:$0xff]   ;;  %v1621_v8 = vld [vmem:[%s1784_s14 + $0x200] ss:$8 sps:$4 sm:$0xff]   ;;  %v1626_v10 = vld [vmem:[%s1784_s14 + $0x214] ss:$8 sps:$4 sm:$0xff]  }
  0x35   : > { %1073 = vmatpush1.bf16.msra.mxu1 %v1556_v24  ;;  %1033 = vmatprep.subr.bf16.mxu0 %v1557_v25  ;;  %v1866_v9 = vld [vmem:[%s1774_s6 + $0x10] sm:$0xff]  ;;  %v1629_v13 = vld [vmem:[%s1784_s14 + $0x224] ss:$8 sps:$4 sm:$0xff]   ;;  %v1627_v14 = vld [vmem:[%s1784_s14 + $0x220] ss:$8 sps:$4 sm:$0xff]  }
  0x36   : > { %1074 = vmatprep.subr.bf16.mxu1 %v1559_v26  ;;  %v1376_v11 = vcombine.high %v1866_v9, %v1866_v9  ;;  %v1624_v12 = vld [vmem:[%s1784_s14 + $0x210] ss:$8 sps:$4 sm:$0xff]   ;;  %v1632_v15 = vld [vmem:[%s1784_s14 + $0x234] ss:$8 sps:$4 sm:$0xff]   ;;  %v1635_v17 = vld [vmem:[%s1784_s14 + $0x244] ss:$8 sps:$4 sm:$0xff]  }
  0x37   : > { %v1630_v16 = vld [vmem:[%s1784_s14 + $0x230] ss:$8 sps:$4 sm:$0xff]   ;;  %v1633_v18 = vld [vmem:[%s1784_s14 + $0x240] ss:$8 sps:$4 sm:$0xff]   ;;  %v1638_v19 = vld [vmem:[%s1784_s14 + $0x254] ss:$8 sps:$4 sm:$0xff]  }
  0x38   : > { %1034 = vmatpush1.bf16.msra.mxu0 %v1561_v27  ;;  %v1636_v20 = vld [vmem:[%s1784_s14 + $0x250] ss:$8 sps:$4 sm:$0xff]   ;;  %v1641_v21 = vld [vmem:[%s1784_s14 + $0x264] ss:$8 sps:$4 sm:$0xff]   ;;  %v1639_v22 = vld [vmem:[%s1784_s14 + $0x260] ss:$8 sps:$4 sm:$0xff]  }
  0x39   : > { %1075 = vmatpush1.bf16.msra.mxu1 %v1562_v28  ;;  %1035 = vmatprep.subr.bf16.mxu0 %v1563_v29  ;;  %v1644_v23 = vld [vmem:[%s1784_s14 + $0x274] ss:$8 sps:$4 sm:$0xff]   ;;  %v1642_v24 = vld [vmem:[%s1784_s14 + $0x270] ss:$8 sps:$4 sm:$0xff]   ;;  %v1647_v25 = vld [vmem:[%s1784_s14 + $0x284] ss:$8 sps:$4 sm:$0xff]  }
  0x3a   : > { %1076 = vmatprep.subr.bf16.mxu1 %v1565_v30  ;;  %v1645_v26 = vld [vmem:[%s1784_s14 + $0x280] ss:$8 sps:$4 sm:$0xff]   ;;  %v1650_v27 = vld [vmem:[%s1784_s14 + $0x294] ss:$8 sps:$4 sm:$0xff]   ;;  %v1648_v28 = vld [vmem:[%s1784_s14 + $0x290] ss:$8 sps:$4 sm:$0xff]  }
  0x3b   : > { %v1653_v29 = vld [vmem:[%s1784_s14 + $0x2a4] ss:$8 sps:$4 sm:$0xff]   ;;  %v1651_v30 = vld [vmem:[%s1784_s14 + $0x2a0] ss:$8 sps:$4 sm:$0xff]  }
  0x3c   : > { %1036 = vmatpush1.bf16.msra.mxu0 %v1567_v31  ;;  %v1656_v31 = vld [vmem:[%s1784_s14 + $0x2b4] ss:$8 sps:$4 sm:$0xff]   ;;  %v419_v52 = vld [vmem:[#allocation2] sm:$0xff] }
  0x3d   : > { %1077 = vmatpush1.bf16.msra.mxu1 %v1568_v32  ;;  %1037 = vmatprep.subr.bf16.mxu0 %v1569_v33  ;;  %v1654_v32 = vld [vmem:[%s1784_s14 + $0x2b0] ss:$8 sps:$4 sm:$0xff]   ;;  %v1659_v33 = vld [vmem:[%s1784_s14 + $0x2c4] ss:$8 sps:$4 sm:$0xff]  }
  0x3e   : > { %1078 = vmatprep.subr.bf16.mxu1 %v1571_v34  ;;  %v1657_v34 = vld [vmem:[%s1784_s14 + $0x2c0] ss:$8 sps:$4 sm:$0xff]  }
  0x40   : > { %1038 = vmatpush1.bf16.msra.mxu0 %v1573_v35  ;;  %v1662_v35 = vld [vmem:[%s1784_s14 + $0x2d4] ss:$8 sps:$4 sm:$0xff]  }
  0x41   : > { %1079 = vmatpush1.bf16.msra.mxu1 %v1574_v36  ;;  %1039 = vmatprep.subr.bf16.mxu0 %v1575_v37  ;;  %v1660_v36 = vld [vmem:[%s1784_s14 + $0x2d0] ss:$8 sps:$4 sm:$0xff]   ;;  %v1665_v37 = vld [vmem:[%s1784_s14 + $0x2e4] ss:$8 sps:$4 sm:$0xff]  }
  0x42   : > { %1080 = vmatprep.subr.bf16.mxu1 %v1577_v38  ;;  %v1663_v38 = vld [vmem:[%s1784_s14 + $0x2e0] ss:$8 sps:$4 sm:$0xff]  }
  0x44   : > { %1040 = vmatpush1.bf16.msra.mxu0 %v1579_v39  ;;  %v1668_v39 = vld [vmem:[%s1784_s14 + $0x2f4] ss:$8 sps:$4 sm:$0xff]  }
  0x45   : > { %1081 = vmatpush1.bf16.msra.mxu1 %v1580_v40  ;;  %1041 = vmatprep.subr.bf16.mxu0 %v1581_v41  ;;  %v1666_v40 = vld [vmem:[%s1784_s14 + $0x2f0] ss:$8 sps:$4 sm:$0xff]   ;;  %v1375_v41 = vcombine.low %v1866_v9, %v1866_v9 }
  0x46   : > { %1082 = vmatprep.subr.bf16.mxu1 %v1583_v42 }
  0x48   : > { %1042 = vmatpush1.bf16.msra.mxu0 %v1585_v43 }
  0x49   : > { %1083 = vmatpush1.bf16.msra.mxu1 %v1586_v44  ;;  %1043 = vmatprep.subr.bf16.mxu0 %v1587_v45 }
  0x4a   : > { %1084 = vmatprep.subr.bf16.mxu1 %v1589_v46 }
  0x4c   : > { %1044 = vmatpush1.bf16.msra.mxu0 %v1591_v50 }
  0x4d   : > { %1085 = vmatpush1.bf16.msra.mxu1 %v1592_v51  ;;  %1045 = vmatprep.subr.bf16.mxu0 %v1593_v53 }
  0x4e   : > { %1086 = vmatprep.subr.bf16.mxu1 %v1595_v54 }
  0x50   : > { %1046 = vmatpush1.bf16.msra.mxu0 %v1597_v55  ;;  %v420_v55 = vld [vmem:[#allocation2 + $0x8] sm:$0xff] }
  0x51   : > { %1087 = vmatpush1.bf16.msra.mxu1 %v1598_v56  ;;  %1047 = vmatprep.subr.bf16.mxu0 %v1599_v57 }
  0x52   : > { %1088 = vmatprep.subr.bf16.mxu1 %v1601_v58 }
  0x54   : > { %1048 = vmatpush1.bf16.msra.mxu0 %v1603_v59 }
  0x55   : > { %1089 = vmatpush1.bf16.msra.mxu1 %v1604_v60  ;;  %1049 = vmatprep.subr.bf16.mxu0 %v1605_v61 }
  0x56   : > { %1090 = vmatprep.subr.bf16.mxu1 %v1607_v62  ;;  %v1156_v62 = vlaneseq (!%p1473_p9) }
  0x58   : > { %1050 = vmatpush1.bf16.msra.mxu0 %v1609_v63  ;;  %v1157_v63 = vshrl.u32 (!%p1473_p9), %v1156_v62, 7 }
  0x59   : > { %1091 = vmatpush1.bf16.msra.mxu1 %v1610_v0  ;;  %1051 = vmatprep.subr.bf16.mxu0 %v1611_v1  ;;  %v1154_v0 = vld [vmem:[%s1779_s11] sm:$0x3] (!%p1473_p9) }
  0x5a   : > { %1092 = vmatprep.subr.bf16.mxu1 %v1613_v2  ;;  %v1158_v1 = vsub.s32 (!%p1473_p9), 0, %v1157_v63  ;;  %v1162_v2 = vsub.s32 (!%p1473_p9), 1, %v1157_v63 }
  0x5c   : > { %1052 = vmatpush1.bf16.msra.mxu0 %v1615_v3 }
  0x5d   : > { %1093 = vmatpush1.bf16.msra.mxu1 %v1616_v4  ;;  %1103 = vmatprep.subr.bf16.mxu0 %v1623_v5  ;;  %v1159_v5 = vrot.slane (!%p1473_p9), %v1154_v0, %v1158_v1 }
  0x5f   : > { %1054 = vmatmul.mubr.bf16.vlgmr.msra.gmra.mrb[0].mxu0 %v1371_v6  ;;  %v1163_v6 = vrot.slane (!%p1473_p9), %v1154_v0, %v1162_v2 }
  0x60   : > { %1095 = vmatmul.mubr.bf16.vlgmr.msra.gmra.mrb[0].mxu1 %v1373_v7  ;;  %1104 = vmatpush1.bf16.msra.mxu0 %v1621_v8  ;;  %v1168_v7 = vld [vmem:[%s1789_s26] sm:$0xff] (!%p1473_p9)  ;;  %v1169_v8 = vld [vmem:[%s1789_s26 + $0x8] sm:$0xff] (!%p1473_p9) }
  0x61   : > { %1135 = vmatprep.mubr.bf16.mxu0 %v1376_v11  ;;  %1105 = vmatprep.subr.bf16.mxu0 %v1626_v10 }
  0x64   : > { %1106 = vmatpush1.bf16.msra.mxu0 %v1624_v12 }
  0x65   : > { %1107 = vmatprep.subr.bf16.mxu0 %v1629_v13 }
  0x68   : > { %1108 = vmatpush1.bf16.msra.mxu0 %v1627_v14 }
  0x69   : > { %1109 = vmatprep.subr.bf16.mxu0 %v1632_v15 }
  0x6c   : > { %1110 = vmatpush1.bf16.msra.mxu0 %v1630_v16 }
  0x6d   : > { %1111 = vmatprep.subr.bf16.mxu0 %v1635_v17 }
  0x70   : > { %1112 = vmatpush1.bf16.msra.mxu0 %v1633_v18 }
  0x71   : > { %1113 = vmatprep.subr.bf16.mxu0 %v1638_v19 }
  0x74   : > { %1114 = vmatpush1.bf16.msra.mxu0 %v1636_v20 }
  0x75   : > { %1115 = vmatprep.subr.bf16.mxu0 %v1641_v21 }
  0x78   : > { %1116 = vmatpush1.bf16.msra.mxu0 %v1639_v22 }
  0x79   : > { %1117 = vmatprep.subr.bf16.mxu0 %v1644_v23 }
  0x7c   : > { %1118 = vmatpush1.bf16.msra.mxu0 %v1642_v24 }
  0x7d   : > { %1119 = vmatprep.subr.bf16.mxu0 %v1647_v25 }
  0x80   : > { %1120 = vmatpush1.bf16.msra.mxu0 %v1645_v26 }
  0x81   : > { %1121 = vmatprep.subr.bf16.mxu0 %v1650_v27 }
  0x84   : > { %1122 = vmatpush1.bf16.msra.mxu0 %v1648_v28 }
  0x85   : > { %1123 = vmatprep.subr.bf16.mxu0 %v1653_v29 }
  0x88   : > { %1124 = vmatpush1.bf16.msra.mxu0 %v1651_v30 }
  0x89   : > { %1125 = vmatprep.subr.bf16.mxu0 %v1656_v31 }
  0x8c   : > { %1126 = vmatpush1.bf16.msra.mxu0 %v1654_v32 }
  0x8d   : > { %1127 = vmatprep.subr.bf16.mxu0 %v1659_v33 }
  0x90   : > { %1128 = vmatpush1.bf16.msra.mxu0 %v1657_v34 }
  0x91   : > { %1129 = vmatprep.subr.bf16.mxu0 %v1662_v35 }
  0x94   : > { %1130 = vmatpush1.bf16.msra.mxu0 %v1660_v36 }
  0x95   : > { %1131 = vmatprep.subr.bf16.mxu0 %v1665_v37 }
  0x98   : > { %1132 = vmatpush1.bf16.msra.mxu0 %v1663_v38 }
  0x99   : > { %1133 = vmatprep.subr.bf16.mxu0 %v1668_v39 }
  0x9c   : > { %1134 = vmatpush1.bf16.msra.mxu0 %v1666_v40 }
  0x9f   : > { %1136 = vmatmul.mubr.bf16.vlgmr.msra.gmra.mrb[4].mxu0 %v1375_v41 }
 0x132   : > { %v1055_v42 = vpop.f32.mrb[0].mxu0 }
 0x133   : > { %v1096_v43 = vpop.f32.mrb[0].mxu1  ;;  %v1057_v45 = vpop.f32.mrb[1].mxu0 }
 0x134   : > { %v1097_v44 = vadd.f32 %v1096_v43, %v1055_v42  ;;  %v1098_v46 = vpop.f32.mrb[1].mxu1  ;;  %v1059_v48 = vpop.f32.mrb[2].mxu0 }
 0x135   : > { %v1099_v47 = vadd.f32 %v1098_v46, %v1057_v45  ;;  %v1100_v49 = vpop.f32.mrb[2].mxu1  ;;  %v1060_v50 = vpop.f32.mrb[3].mxu0 }
 0x136   : > { %v1101_v51 = vpop.f32.mrb[3].mxu1 }
 0x172   : > { %v1137_v53 = vpop.f32.mrb[4].mxu0  ;;  %1151 = sbr.rel (%p1473_p9) target bundleno = 391 (0x187), region = 44 }
 0x173   : > { %v1138_v54 = vadd.f32 %v1137_v53, %v1097_v44  ;;  %v1139_v56 = vpop.f32.mrb[5].mxu0 }
 0x174   : > { %v1140_v57 = vadd.f32 %v1139_v56, %v1099_v47  ;;  %v1141_v58 = vpop.f32.mrb[6].mxu0 }
 0x175   : > { %v1144_v59 = vadd.f32 %v1138_v54, %v419_v52  ;;  %v1142_v60 = vpop.f32.mrb[7].mxu0 }
 0x176   : > { %v1145_v61 = vadd.f32 %v1140_v57, %v420_v55 }
 0x177   : > { %1146 = vst [vmem:[#allocation2] sm:$0xff] %v1144_v59 }
 0x178   : > { %1147 = vst [vmem:[#allocation2 + $0x8] sm:$0xff] %v1145_v61 }
 0x17e   : > { %v1152_v3 = vld [vmem:[#allocation2] sm:$0xff] }
 0x17f   : > { %v1153_v4 = vld [vmem:[#allocation2 + $0x8] sm:$0xff]  ;;  %v1166_v9 = vadd.f32 %v1159_v5, %v1152_v3 }
 0x180   : > { %v1167_v10 = vadd.f32 %v1163_v6, %v1153_v4 }
 0x181   : > { %v1170_v11 = vadd.f32 %v1168_v7, %v1166_v9 }
 0x182   : > { %v1171_v12 = vadd.f32 %v1169_v8, %v1167_v10 }
 0x183   : > { %v1172_v13 = vmax.f32 %v1170_v11, 0.0 }
 0x184   : > { %v1173_v14 = vmax.f32 %v1171_v12, 0.0 }
 0x185   : > { %1174 = vst [vmem:[%s1794_s27] sm:$0xff] %v1172_v13 }
 0x186   : > { %1175 = vst [vmem:[%s1794_s27 + $0x8] sm:$0xff] %v1173_v14 }
 0x187 PF: > { %s14_s19 = sadd.s32 1, %s1709_s19   ;;  %s1928_s15 = smov %s1701_s17 }
 0x188   : > { %p11_p10 = scmp.ge.s32.totalorder %s14_s19, 8   ;;  %s1929_s16 = smov %s1705_s18 }
 0x189   : > { %s1930_s17 = smov %s1933_s20  ;;  %s1931_s18 = smov %s1937_s21 }
 0x18a   :  { %13 = sbr.rel (!%p11_p10) target bundleno = 3 (0x3), region = 83 }

// kernel: encoder_forward.34
= control target key start
LH: loop header
LB: loop body
LE: loop exit
PB: predicated region body
PF: predicated region fallthrough
CT: control target
= control target key end

     0   :  { %s1624_s12 = smov 0   ;;  %s1626_s13 = smov 0   ;;  %s1803_s0 = inlined_call_operand.vmem [shape: bf16[2,8,2304], index: 0, kind: input, shape index: {}]   ;;  %s1804_s1 = inlined_call_operand.vmem [shape: bf16[2,2304,256], index: 1, kind: input, shape index: {}]   ;;  %s1805_s2 = inlined_call_operand.vmem [shape: f32[2,1,256], index: 2, kind: input, shape index: {}]   ;;  %s1806_s3 = inlined_call_operand.vmem [shape: f32[2,8,256], index: 3, kind: output, shape index: {}]  }
   0x1   :  { %s1628_s14 = smov 0   ;;  %s1630_s15 = smov 0  }
   0x2   :  { %s1632_s16 = smov 0  }
   0x3 LB: > { %s28_s17 = sadd.s32 1, %s1593_s14  ;;  %s39_s18 = sadd.s32 1, %s1597_s15  ;;  %s1601_s16 = sphi %s1632_s16, %s13_s16   ;;  %s1597_s15 = sphi %s1630_s15, %s1810_s15   ;;  %s1593_s14 = sphi %s1628_s14, %s1809_s14   ;;  %s1589_s13 = sphi %s1626_s13, %s1808_s13   ;;  %s1585_s12 = sphi %s1624_s12, %s1807_s12  }
   0x4   : > { %p29_p0 = scmp.ge.s32.totalorder %s28_s17, 3  ;;  %p1256_p1 = scmp.ge.s32.totalorder %s1601_s16, 1 }
   0x5   : > { %p221_p2 = scmp.lt.s32.totalorder %s1601_s16, 7 }
   0x6   : > { %s1812_s17 = smov (%p29_p0, %s28_s17), 0  ;;  %s1814_s18 = smov (!%p29_p0, %s39_s18), %s1597_s15 }
   0x7   : > { %p222_p3 = pnand %p1256_p1, %p221_p2  ;;  %p41_p4 = scmp.ge.s32.totalorder %s1814_s18, 2 }
   0x8   : > { %s283_s19 = smul.u32 (!%p222_p3), 6, %s1585_s12  ;;  %p284_p5 = scmp.lt.s32.totalorder (!%p222_p3), %s1589_s13, 1 }
   0x9   : > { %s1816_s18 = smov (%p41_p4, %s1814_s18), 0  ;;  %225 = sbr.rel (%p222_p3) target bundleno = 389 (0x185), region = 32 }
   0xa   : > { %s297_s20 = smul.u32 (!%p222_p3), 96, %s1585_s12  ;;  %p288_p6 = scmp.lt.s32.totalorder (!%p222_p3), %s283_s19, 17 }
   0xb   : > { %p1263_p8 = scmp.ne.s32.totalorder (!%p222_p3), %s1585_s12, 0 }
   0xc   : > { %p301_p7 = scmp.lt.s32.totalorder (!%p222_p3), %s297_s20, 287 }
  0x10   : > { %s1818_s13 = smov (!%p284_p5, %s1589_s13), 1  ;;  %s1820_s19 = smov (!%p288_p6, %s283_s19), 17 }
  0x11   : > { %s1370_s21 = smul.u32 18, %s1818_s13  ;;  %s1260_s22 = sshll.u32 %s1818_s13, 1  ;;  %v1603_v0 = vmov (!%p1263_p8), 0.0  }
  0x12   : > { %s1822_s20 = smov (!%p301_p7, %s297_s20), 287  ;;  %s1371_s24 = smul.u32 576, %s1818_s13  ;;  %340 = vst [vmem:[#allocation2] sm:$0xff] (!%p1263_p8), %v1603_v0  ;;  %341 = vst [vmem:[#allocation2 + $0x8] sm:$0xff] (!%p1263_p8), %v1603_v0 }
  0x13   : > { %s293_s23 = sadd.s32 %s1370_s21, %s1820_s19  ;;  %s1258_s26 = sshll.u32 %s1822_s20, 1 }
  0x14   : > { %s1257_s25 = sshll.u32 %s293_s23, 2  ;;  %s308_s30 = sadd.s32 %s1371_s24, %s1258_s26 }
  0x15   : > { %s1661_s29 = scalar_lea.vmem %s1803_s0, %s1257_s25  ;;  %s1259_s4 = sshll.u32 %s308_s30, 2 }
  0x16   : > { %s1666_s7 = scalar_lea.vmem %s1805_s2, %s1260_s22  ;;  %s1671_s10 = scalar_lea.vmem %s1804_s1, %s1259_s4 }
  0x17   : > { %s1369_s11 = sshll.u32 %s1818_s13, 4  ;;  %339 = sbr.rel (%p1263_p8) target bundleno = 30 (0x1e), region = 36 }
  0x18   : > { %s1676_s21 = scalar_lea.vmem %s1806_s3, %s1369_s11 }
  0x1e PF: > { %v1413_v1 = vld [vmem:[%s1671_s10 + $0x4] ss:$8 sps:$4 sm:$0xff]   ;;  %v1417_v3 = vld [vmem:[%s1671_s10] ss:$8 sps:$4 sm:$0xff]   ;;  %v1419_v5 = vld [vmem:[%s1671_s10 + $0x14] ss:$8 sps:$4 sm:$0xff]  }
  0x1f   : > { %v1415_v2 = vld [vmem:[%s1671_s10 + $0x104] ss:$8 sps:$4 sm:$0xff]   ;;  %944 = vmatprep.subr.bf16.mxu0 %v1413_v1  ;;  %v1418_v4 = vld [vmem:[%s1671_s10 + $0x100] ss:$8 sps:$4 sm:$0xff]   ;;  %v1421_v6 = vld [vmem:[%s1671_s10 + $0x114] ss:$8 sps:$4 sm:$0xff]  }
  0x20   : > { %985 = vmatprep.subr.bf16.mxu1 %v1415_v2  ;;  %945 = vmatpush1.bf16.msra.mxu0 %v1417_v3  ;;  %v1423_v7 = vld [vmem:[%s1671_s10 + $0x10] ss:$8 sps:$4 sm:$0xff]   ;;  %v1425_v9 = vld [vmem:[%s1671_s10 + $0x24] ss:$8 sps:$4 sm:$0xff]   ;;  %v1429_v11 = vld [vmem:[%s1671_s10 + $0x20] ss:$8 sps:$4 sm:$0xff]  }
  0x21   : > { %986 = vmatpush1.bf16.msra.mxu1 %v1418_v4  ;;  %946 = vmatprep.subr.bf16.mxu0 %v1419_v5  ;;  %v1424_v8 = vld [vmem:[%s1671_s10 + $0x110] ss:$8 sps:$4 sm:$0xff]   ;;  %v1427_v10 = vld [vmem:[%s1671_s10 + $0x124] ss:$8 sps:$4 sm:$0xff]   ;;  %v1430_v12 = vld [vmem:[%s1671_s10 + $0x120] ss:$8 sps:$4 sm:$0xff]  }
  0x22   : > { %987 = vmatprep.subr.bf16.mxu1 %v1421_v6  ;;  %v1431_v13 = vld [vmem:[%s1671_s10 + $0x34] ss:$8 sps:$4 sm:$0xff]   ;;  %v1435_v15 = vld [vmem:[%s1671_s10 + $0x30] ss:$8 sps:$4 sm:$0xff]   ;;  %v1437_v17 = vld [vmem:[%s1671_s10 + $0x44] ss:$8 sps:$4 sm:$0xff]  }
  0x23   : > { %v1433_v14 = vld [vmem:[%s1671_s10 + $0x134] ss:$8 sps:$4 sm:$0xff]   ;;  %v1436_v16 = vld [vmem:[%s1671_s10 + $0x130] ss:$8 sps:$4 sm:$0xff]   ;;  %v1439_v18 = vld [vmem:[%s1671_s10 + $0x144] ss:$8 sps:$4 sm:$0xff]  }
  0x24   : > { %947 = vmatpush1.bf16.msra.mxu0 %v1423_v7  ;;  %v1441_v19 = vld [vmem:[%s1671_s10 + $0x40] ss:$8 sps:$4 sm:$0xff]   ;;  %v1443_v21 = vld [vmem:[%s1671_s10 + $0x54] ss:$8 sps:$4 sm:$0xff]   ;;  %v1447_v23 = vld [vmem:[%s1671_s10 + $0x50] ss:$8 sps:$4 sm:$0xff]  }
  0x25   : > { %988 = vmatpush1.bf16.msra.mxu1 %v1424_v8  ;;  %948 = vmatprep.subr.bf16.mxu0 %v1425_v9  ;;  %v1442_v20 = vld [vmem:[%s1671_s10 + $0x140] ss:$8 sps:$4 sm:$0xff]   ;;  %v1445_v22 = vld [vmem:[%s1671_s10 + $0x154] ss:$8 sps:$4 sm:$0xff]   ;;  %v1448_v24 = vld [vmem:[%s1671_s10 + $0x150] ss:$8 sps:$4 sm:$0xff]  }
  0x26   : > { %989 = vmatprep.subr.bf16.mxu1 %v1427_v10  ;;  %v1449_v25 = vld [vmem:[%s1671_s10 + $0x64] ss:$8 sps:$4 sm:$0xff]   ;;  %v1453_v27 = vld [vmem:[%s1671_s10 + $0x60] ss:$8 sps:$4 sm:$0xff]   ;;  %v1455_v29 = vld [vmem:[%s1671_s10 + $0x74] ss:$8 sps:$4 sm:$0xff]  }
  0x27   : > { %v1451_v26 = vld [vmem:[%s1671_s10 + $0x164] ss:$8 sps:$4 sm:$0xff]   ;;  %v1454_v28 = vld [vmem:[%s1671_s10 + $0x160] ss:$8 sps:$4 sm:$0xff]   ;;  %v1457_v30 = vld [vmem:[%s1671_s10 + $0x174] ss:$8 sps:$4 sm:$0xff]  }
  0x28   : > { %949 = vmatpush1.bf16.msra.mxu0 %v1429_v11  ;;  %v1459_v31 = vld [vmem:[%s1671_s10 + $0x70] ss:$8 sps:$4 sm:$0xff]   ;;  %v1461_v33 = vld [vmem:[%s1671_s10 + $0x84] ss:$8 sps:$4 sm:$0xff]   ;;  %v1465_v35 = vld [vmem:[%s1671_s10 + $0x80] ss:$8 sps:$4 sm:$0xff]  }
  0x29   : > { %990 = vmatpush1.bf16.msra.mxu1 %v1430_v12  ;;  %950 = vmatprep.subr.bf16.mxu0 %v1431_v13  ;;  %v1460_v32 = vld [vmem:[%s1671_s10 + $0x170] ss:$8 sps:$4 sm:$0xff]   ;;  %v1463_v34 = vld [vmem:[%s1671_s10 + $0x184] ss:$8 sps:$4 sm:$0xff]   ;;  %v1466_v36 = vld [vmem:[%s1671_s10 + $0x180] ss:$8 sps:$4 sm:$0xff]  }
  0x2a   : > { %991 = vmatprep.subr.bf16.mxu1 %v1433_v14  ;;  %v1467_v37 = vld [vmem:[%s1671_s10 + $0x94] ss:$8 sps:$4 sm:$0xff]   ;;  %v1471_v39 = vld [vmem:[%s1671_s10 + $0x90] ss:$8 sps:$4 sm:$0xff]   ;;  %v1473_v41 = vld [vmem:[%s1671_s10 + $0xa4] ss:$8 sps:$4 sm:$0xff]  }
  0x2b   : > { %v1469_v38 = vld [vmem:[%s1671_s10 + $0x194] ss:$8 sps:$4 sm:$0xff]   ;;  %v1472_v40 = vld [vmem:[%s1671_s10 + $0x190] ss:$8 sps:$4 sm:$0xff]   ;;  %v1475_v42 = vld [vmem:[%s1671_s10 + $0x1a4] ss:$8 sps:$4 sm:$0xff]  }
  0x2c   : > { %951 = vmatpush1.bf16.msra.mxu0 %v1435_v15  ;;  %v1477_v43 = vld [vmem:[%s1671_s10 + $0xa0] ss:$8 sps:$4 sm:$0xff]   ;;  %v1479_v45 = vld [vmem:[%s1671_s10 + $0xb4] ss:$8 sps:$4 sm:$0xff]   ;;  %v1483_v50 = vld [vmem:[%s1671_s10 + $0xb0] ss:$8 sps:$4 sm:$0xff]  }
  0x2d   : > { %992 = vmatpush1.bf16.msra.mxu1 %v1436_v16  ;;  %952 = vmatprep.subr.bf16.mxu0 %v1437_v17  ;;  %v1478_v44 = vld [vmem:[%s1671_s10 + $0x1a0] ss:$8 sps:$4 sm:$0xff]   ;;  %v1481_v46 = vld [vmem:[%s1671_s10 + $0x1b4] ss:$8 sps:$4 sm:$0xff]   ;;  %v1484_v51 = vld [vmem:[%s1671_s10 + $0x1b0] ss:$8 sps:$4 sm:$0xff]  }
  0x2e   : > { %993 = vmatprep.subr.bf16.mxu1 %v1439_v18  ;;  %v344_v47 = vld [vmem:[%s1661_s29] sm:$0xff]  ;;  %v345_v49 = vld [vmem:[%s1661_s29 + $0x8] sm:$0xff]  ;;  %v1491_v57 = vld [vmem:[%s1671_s10 + $0xd4] ss:$8 sps:$4 sm:$0xff]   ;;  %p1366_p9 = scmp.ne.s32.totalorder %s1585_s12, 2 }
  0x2f   : > { %v1265_v48 = vcombine.high %v344_v47, %v344_v47  ;;  %v1267_v52 = vcombine.high %v345_v49, %v345_v49  ;;  %v1485_v53 = vld [vmem:[%s1671_s10 + $0xc4] ss:$8 sps:$4 sm:$0xff]   ;;  %v1489_v55 = vld [vmem:[%s1671_s10 + $0xc0] ss:$8 sps:$4 sm:$0xff]   ;;  %v1493_v58 = vld [vmem:[%s1671_s10 + $0x1d4] ss:$8 sps:$4 sm:$0xff]   ;;  %v1264_v6 = vcombine.low %v344_v47, %v344_v47  ;;  %v1266_v7 = vcombine.low %v345_v49, %v345_v49 }
  0x30   : > { %953 = vmatpush1.bf16.msra.mxu0 %v1441_v19  ;;  %v1487_v54 = vld [vmem:[%s1671_s10 + $0x1c4] ss:$8 sps:$4 sm:$0xff]   ;;  %v1490_v56 = vld [vmem:[%s1671_s10 + $0x1c0] ss:$8 sps:$4 sm:$0xff]   ;;  %v1495_v59 = vld [vmem:[%s1671_s10 + $0xd0] ss:$8 sps:$4 sm:$0xff]  }
  0x31   : > { %994 = vmatpush1.bf16.msra.mxu1 %v1442_v20  ;;  %954 = vmatprep.subr.bf16.mxu0 %v1443_v21  ;;  %v1496_v60 = vld [vmem:[%s1671_s10 + $0x1d0] ss:$8 sps:$4 sm:$0xff]   ;;  %v1497_v61 = vld [vmem:[%s1671_s10 + $0xe4] ss:$8 sps:$4 sm:$0xff]   ;;  %v1501_v63 = vld [vmem:[%s1671_s10 + $0xe0] ss:$8 sps:$4 sm:$0xff]  }
  0x32   : > { %995 = vmatprep.subr.bf16.mxu1 %v1445_v22  ;;  %976 = vmatprep.mubr.bf16.mxu0 %v1265_v48  ;;  %v1499_v62 = vld [vmem:[%s1671_s10 + $0x1e4] ss:$8 sps:$4 sm:$0xff]   ;;  %v1502_v0 = vld [vmem:[%s1671_s10 + $0x1e0] ss:$8 sps:$4 sm:$0xff]   ;;  %v1503_v1 = vld [vmem:[%s1671_s10 + $0xf4] ss:$8 sps:$4 sm:$0xff]  }
  0x33   : > { %1017 = vmatprep.mubr.bf16.mxu1 %v1267_v52  ;;  %v1505_v2 = vld [vmem:[%s1671_s10 + $0x1f4] ss:$8 sps:$4 sm:$0xff]   ;;  %v1507_v3 = vld [vmem:[%s1671_s10 + $0xf0] ss:$8 sps:$4 sm:$0xff]   ;;  %v1515_v5 = vld [vmem:[%s1671_s10 + $0x204] ss:$8 sps:$4 sm:$0xff]  }
  0x34   : > { %955 = vmatpush1.bf16.msra.mxu0 %v1447_v23  ;;  %v1508_v4 = vld [vmem:[%s1671_s10 + $0x1f0] ss:$8 sps:$4 sm:$0xff]   ;;  %v1513_v8 = vld [vmem:[%s1671_s10 + $0x200] ss:$8 sps:$4 sm:$0xff]   ;;  %v1518_v10 = vld [vmem:[%s1671_s10 + $0x214] ss:$8 sps:$4 sm:$0xff]  }
  0x35   : > { %996 = vmatpush1.bf16.msra.mxu1 %v1448_v24  ;;  %956 = vmatprep.subr.bf16.mxu0 %v1449_v25  ;;  %v1748_v9 = vld [vmem:[%s1661_s29 + $0x10] sm:$0xff]  ;;  %v1521_v13 = vld [vmem:[%s1671_s10 + $0x224] ss:$8 sps:$4 sm:$0xff]   ;;  %v1519_v14 = vld [vmem:[%s1671_s10 + $0x220] ss:$8 sps:$4 sm:$0xff]  }
  0x36   : > { %997 = vmatprep.subr.bf16.mxu1 %v1451_v26  ;;  %v1269_v11 = vcombine.high %v1748_v9, %v1748_v9  ;;  %v1516_v12 = vld [vmem:[%s1671_s10 + $0x210] ss:$8 sps:$4 sm:$0xff]   ;;  %v1524_v15 = vld [vmem:[%s1671_s10 + $0x234] ss:$8 sps:$4 sm:$0xff]   ;;  %v1527_v17 = vld [vmem:[%s1671_s10 + $0x244] ss:$8 sps:$4 sm:$0xff]  }
  0x37   : > { %v1522_v16 = vld [vmem:[%s1671_s10 + $0x230] ss:$8 sps:$4 sm:$0xff]   ;;  %v1525_v18 = vld [vmem:[%s1671_s10 + $0x240] ss:$8 sps:$4 sm:$0xff]   ;;  %v1530_v19 = vld [vmem:[%s1671_s10 + $0x254] ss:$8 sps:$4 sm:$0xff]  }
  0x38   : > { %957 = vmatpush1.bf16.msra.mxu0 %v1453_v27  ;;  %v1528_v20 = vld [vmem:[%s1671_s10 + $0x250] ss:$8 sps:$4 sm:$0xff]   ;;  %v1533_v21 = vld [vmem:[%s1671_s10 + $0x264] ss:$8 sps:$4 sm:$0xff]   ;;  %v1531_v22 = vld [vmem:[%s1671_s10 + $0x260] ss:$8 sps:$4 sm:$0xff]  }
  0x39   : > { %998 = vmatpush1.bf16.msra.mxu1 %v1454_v28  ;;  %958 = vmatprep.subr.bf16.mxu0 %v1455_v29  ;;  %v1536_v23 = vld [vmem:[%s1671_s10 + $0x274] ss:$8 sps:$4 sm:$0xff]   ;;  %v1534_v24 = vld [vmem:[%s1671_s10 + $0x270] ss:$8 sps:$4 sm:$0xff]   ;;  %v1539_v25 = vld [vmem:[%s1671_s10 + $0x284] ss:$8 sps:$4 sm:$0xff]  }
  0x3a   : > { %999 = vmatprep.subr.bf16.mxu1 %v1457_v30  ;;  %v1537_v26 = vld [vmem:[%s1671_s10 + $0x280] ss:$8 sps:$4 sm:$0xff]   ;;  %v1542_v27 = vld [vmem:[%s1671_s10 + $0x294] ss:$8 sps:$4 sm:$0xff]   ;;  %v1540_v28 = vld [vmem:[%s1671_s10 + $0x290] ss:$8 sps:$4 sm:$0xff]  }
  0x3b   : > { %v1545_v29 = vld [vmem:[%s1671_s10 + $0x2a4] ss:$8 sps:$4 sm:$0xff]   ;;  %v1543_v30 = vld [vmem:[%s1671_s10 + $0x2a0] ss:$8 sps:$4 sm:$0xff]  }
  0x3c   : > { %959 = vmatpush1.bf16.msra.mxu0 %v1459_v31  ;;  %v1548_v31 = vld [vmem:[%s1671_s10 + $0x2b4] ss:$8 sps:$4 sm:$0xff]   ;;  %v342_v52 = vld [vmem:[#allocation2] sm:$0xff] }
  0x3d   : > { %1000 = vmatpush1.bf16.msra.mxu1 %v1460_v32  ;;  %960 = vmatprep.subr.bf16.mxu0 %v1461_v33  ;;  %v1546_v32 = vld [vmem:[%s1671_s10 + $0x2b0] ss:$8 sps:$4 sm:$0xff]   ;;  %v1551_v33 = vld [vmem:[%s1671_s10 + $0x2c4] ss:$8 sps:$4 sm:$0xff]  }
  0x3e   : > { %1001 = vmatprep.subr.bf16.mxu1 %v1463_v34  ;;  %v1549_v34 = vld [vmem:[%s1671_s10 + $0x2c0] ss:$8 sps:$4 sm:$0xff]  }
  0x40   : > { %961 = vmatpush1.bf16.msra.mxu0 %v1465_v35  ;;  %v1554_v35 = vld [vmem:[%s1671_s10 + $0x2d4] ss:$8 sps:$4 sm:$0xff]  }
  0x41   : > { %1002 = vmatpush1.bf16.msra.mxu1 %v1466_v36  ;;  %962 = vmatprep.subr.bf16.mxu0 %v1467_v37  ;;  %v1552_v36 = vld [vmem:[%s1671_s10 + $0x2d0] ss:$8 sps:$4 sm:$0xff]   ;;  %v1557_v37 = vld [vmem:[%s1671_s10 + $0x2e4] ss:$8 sps:$4 sm:$0xff]  }
  0x42   : > { %1003 = vmatprep.subr.bf16.mxu1 %v1469_v38  ;;  %v1555_v38 = vld [vmem:[%s1671_s10 + $0x2e0] ss:$8 sps:$4 sm:$0xff]  }
  0x44   : > { %963 = vmatpush1.bf16.msra.mxu0 %v1471_v39  ;;  %v1560_v39 = vld [vmem:[%s1671_s10 + $0x2f4] ss:$8 sps:$4 sm:$0xff]  }
  0x45   : > { %1004 = vmatpush1.bf16.msra.mxu1 %v1472_v40  ;;  %964 = vmatprep.subr.bf16.mxu0 %v1473_v41  ;;  %v1558_v40 = vld [vmem:[%s1671_s10 + $0x2f0] ss:$8 sps:$4 sm:$0xff]   ;;  %v1268_v41 = vcombine.low %v1748_v9, %v1748_v9 }
  0x46   : > { %1005 = vmatprep.subr.bf16.mxu1 %v1475_v42 }
  0x48   : > { %965 = vmatpush1.bf16.msra.mxu0 %v1477_v43 }
  0x49   : > { %1006 = vmatpush1.bf16.msra.mxu1 %v1478_v44  ;;  %966 = vmatprep.subr.bf16.mxu0 %v1479_v45 }
  0x4a   : > { %1007 = vmatprep.subr.bf16.mxu1 %v1481_v46 }
  0x4c   : > { %967 = vmatpush1.bf16.msra.mxu0 %v1483_v50 }
  0x4d   : > { %1008 = vmatpush1.bf16.msra.mxu1 %v1484_v51  ;;  %968 = vmatprep.subr.bf16.mxu0 %v1485_v53 }
  0x4e   : > { %1009 = vmatprep.subr.bf16.mxu1 %v1487_v54 }
  0x50   : > { %969 = vmatpush1.bf16.msra.mxu0 %v1489_v55  ;;  %v343_v55 = vld [vmem:[#allocation2 + $0x8] sm:$0xff] }
  0x51   : > { %1010 = vmatpush1.bf16.msra.mxu1 %v1490_v56  ;;  %970 = vmatprep.subr.bf16.mxu0 %v1491_v57 }
  0x52   : > { %1011 = vmatprep.subr.bf16.mxu1 %v1493_v58 }
  0x54   : > { %971 = vmatpush1.bf16.msra.mxu0 %v1495_v59 }
  0x55   : > { %1012 = vmatpush1.bf16.msra.mxu1 %v1496_v60  ;;  %972 = vmatprep.subr.bf16.mxu0 %v1497_v61 }
  0x56   : > { %1013 = vmatprep.subr.bf16.mxu1 %v1499_v62  ;;  %v1079_v62 = vlaneseq (!%p1366_p9) }
  0x58   : > { %973 = vmatpush1.bf16.msra.mxu0 %v1501_v63  ;;  %v1080_v63 = vshrl.u32 (!%p1366_p9), %v1079_v62, 7 }
  0x59   : > { %1014 = vmatpush1.bf16.msra.mxu1 %v1502_v0  ;;  %974 = vmatprep.subr.bf16.mxu0 %v1503_v1  ;;  %v1077_v0 = vld [vmem:[%s1666_s7] sm:$0x3] (!%p1366_p9) }
  0x5a   : > { %1015 = vmatprep.subr.bf16.mxu1 %v1505_v2  ;;  %v1081_v1 = vsub.s32 (!%p1366_p9), 0, %v1080_v63  ;;  %v1085_v2 = vsub.s32 (!%p1366_p9), 1, %v1080_v63 }
  0x5c   : > { %975 = vmatpush1.bf16.msra.mxu0 %v1507_v3 }
  0x5d   : > { %1016 = vmatpush1.bf16.msra.mxu1 %v1508_v4  ;;  %1026 = vmatprep.subr.bf16.mxu0 %v1515_v5  ;;  %v1082_v5 = vrot.slane (!%p1366_p9), %v1077_v0, %v1081_v1 }
  0x5f   : > { %977 = vmatmul.mubr.bf16.vlgmr.msra.gmra.mrb[0].mxu0 %v1264_v6  ;;  %v1086_v6 = vrot.slane (!%p1366_p9), %v1077_v0, %v1085_v2 }
  0x60   : > { %1018 = vmatmul.mubr.bf16.vlgmr.msra.gmra.mrb[0].mxu1 %v1266_v7  ;;  %1027 = vmatpush1.bf16.msra.mxu0 %v1513_v8 }
  0x61   : > { %1058 = vmatprep.mubr.bf16.mxu0 %v1269_v11  ;;  %1028 = vmatprep.subr.bf16.mxu0 %v1518_v10 }
  0x64   : > { %1029 = vmatpush1.bf16.msra.mxu0 %v1516_v12 }
  0x65   : > { %1030 = vmatprep.subr.bf16.mxu0 %v1521_v13 }
  0x68   : > { %1031 = vmatpush1.bf16.msra.mxu0 %v1519_v14 }
  0x69   : > { %1032 = vmatprep.subr.bf16.mxu0 %v1524_v15 }
  0x6c   : > { %1033 = vmatpush1.bf16.msra.mxu0 %v1522_v16 }
  0x6d   : > { %1034 = vmatprep.subr.bf16.mxu0 %v1527_v17 }
  0x70   : > { %1035 = vmatpush1.bf16.msra.mxu0 %v1525_v18 }
  0x71   : > { %1036 = vmatprep.subr.bf16.mxu0 %v1530_v19 }
  0x74   : > { %1037 = vmatpush1.bf16.msra.mxu0 %v1528_v20 }
  0x75   : > { %1038 = vmatprep.subr.bf16.mxu0 %v1533_v21 }
  0x78   : > { %1039 = vmatpush1.bf16.msra.mxu0 %v1531_v22 }
  0x79   : > { %1040 = vmatprep.subr.bf16.mxu0 %v1536_v23 }
  0x7c   : > { %1041 = vmatpush1.bf16.msra.mxu0 %v1534_v24 }
  0x7d   : > { %1042 = vmatprep.subr.bf16.mxu0 %v1539_v25 }
  0x80   : > { %1043 = vmatpush1.bf16.msra.mxu0 %v1537_v26 }
  0x81   : > { %1044 = vmatprep.subr.bf16.mxu0 %v1542_v27 }
  0x84   : > { %1045 = vmatpush1.bf16.msra.mxu0 %v1540_v28 }
  0x85   : > { %1046 = vmatprep.subr.bf16.mxu0 %v1545_v29 }
  0x88   : > { %1047 = vmatpush1.bf16.msra.mxu0 %v1543_v30 }
  0x89   : > { %1048 = vmatprep.subr.bf16.mxu0 %v1548_v31 }
  0x8c   : > { %1049 = vmatpush1.bf16.msra.mxu0 %v1546_v32 }
  0x8d   : > { %1050 = vmatprep.subr.bf16.mxu0 %v1551_v33 }
  0x90   : > { %1051 = vmatpush1.bf16.msra.mxu0 %v1549_v34 }
  0x91   : > { %1052 = vmatprep.subr.bf16.mxu0 %v1554_v35 }
  0x94   : > { %1053 = vmatpush1.bf16.msra.mxu0 %v1552_v36 }
  0x95   : > { %1054 = vmatprep.subr.bf16.mxu0 %v1557_v37 }
  0x98   : > { %1055 = vmatpush1.bf16.msra.mxu0 %v1555_v38 }
  0x99   : > { %1056 = vmatprep.subr.bf16.mxu0 %v1560_v39 }
  0x9c   : > { %1057 = vmatpush1.bf16.msra.mxu0 %v1558_v40 }
  0x9f   : > { %1059 = vmatmul.mubr.bf16.vlgmr.msra.gmra.mrb[4].mxu0 %v1268_v41 }
 0x132   : > { %v978_v42 = vpop.f32.mrb[0].mxu0 }
 0x133   : > { %v1019_v43 = vpop.f32.mrb[0].mxu1  ;;  %v980_v45 = vpop.f32.mrb[1].mxu0 }
 0x134   : > { %v1020_v44 = vadd.f32 %v1019_v43, %v978_v42  ;;  %v1021_v46 = vpop.f32.mrb[1].mxu1  ;;  %v982_v48 = vpop.f32.mrb[2].mxu0 }
 0x135   : > { %v1022_v47 = vadd.f32 %v1021_v46, %v980_v45  ;;  %v1023_v49 = vpop.f32.mrb[2].mxu1  ;;  %v983_v50 = vpop.f32.mrb[3].mxu0 }
 0x136   : > { %v1024_v51 = vpop.f32.mrb[3].mxu1 }
 0x172   : > { %v1060_v53 = vpop.f32.mrb[4].mxu0  ;;  %1074 = sbr.rel (%p1366_p9) target bundleno = 389 (0x185), region = 40 }
 0x173   : > { %v1061_v54 = vadd.f32 %v1060_v53, %v1020_v44  ;;  %v1062_v56 = vpop.f32.mrb[5].mxu0 }
 0x174   : > { %v1063_v57 = vadd.f32 %v1062_v56, %v1022_v47  ;;  %v1064_v58 = vpop.f32.mrb[6].mxu0 }
 0x175   : > { %v1067_v59 = vadd.f32 %v1061_v54, %v342_v52  ;;  %v1065_v60 = vpop.f32.mrb[7].mxu0 }
 0x176   : > { %v1068_v61 = vadd.f32 %v1063_v57, %v343_v55 }
 0x177   : > { %1069 = vst [vmem:[#allocation2] sm:$0xff] %v1067_v59 }
 0x178   : > { %1070 = vst [vmem:[#allocation2 + $0x8] sm:$0xff] %v1068_v61 }
 0x17e   : > { %v1075_v3 = vld [vmem:[#allocation2] sm:$0xff] }
 0x17f   : > { %v1076_v4 = vld [vmem:[#allocation2 + $0x8] sm:$0xff]  ;;  %v1089_v7 = vadd.f32 %v1082_v5, %v1075_v3 }
 0x180   : > { %v1090_v8 = vadd.f32 %v1086_v6, %v1076_v4 }
 0x181   : > { %v1091_v9 = vmax.f32 %v1089_v7, 0.0 }
 0x182   : > { %v1092_v10 = vmax.f32 %v1090_v8, 0.0 }
 0x183   : > { %1093 = vst [vmem:[%s1676_s21] sm:$0xff] %v1091_v9 }
 0x184   : > { %1094 = vst [vmem:[%s1676_s21 + $0x8] sm:$0xff] %v1092_v10 }
 0x185 PF: > { %s13_s16 = sadd.s32 1, %s1601_s16   ;;  %s1807_s12 = smov %s1593_s14 }
 0x186   : > { %p10_p10 = scmp.ge.s32.totalorder %s13_s16, 8   ;;  %s1808_s13 = smov %s1597_s15 }
 0x187   : > { %s1809_s14 = smov %s1812_s17  ;;  %s1810_s15 = smov %s1816_s18 }
 0x188   :  { %12 = sbr.rel (!%p10_p10) target bundleno = 3 (0x3), region = 76 }

// kernel: encoder_forward.37
= control target key start
LH: loop header
LB: loop body
LE: loop exit
PB: predicated region body
PF: predicated region fallthrough
CT: control target
= control target key end

     0   :  { %s2532_s0 = inlined_call_operand.vmem [shape: bf16[2,8,2304], index: 0, kind: input, shape index: {}]   ;;  %s2533_s1 = inlined_call_operand.vmem [shape: bf16[2,2304,512], index: 1, kind: input, shape index: {}]   ;;  %s2534_s2 = inlined_call_operand.vmem [shape: f32[2,1,512], index: 2, kind: input, shape index: {}]   ;;  %s2535_s3 = inlined_call_operand.vmem [shape: f32[2,8,512], index: 3, kind: output, shape index: {}]  }
   0x1   :  { %2536 = sst [smem:[#allocation4_spill]] %s2533_s1 }
   0x2   :  { %s2086_s12 = smov 0   ;;  %s2088_s13 = smov 0  }
   0x3   :  { %s2090_s14 = smov 0   ;;  %s2092_s15 = smov 0  }
   0x4   :  { %s2094_s16 = smov 0   ;;  %s2096_s17 = smov 0  }
   0x5   :  { %s2098_s18 = smov 0   ;;  %s2100_s19 = smov 0  }
   0x6   :  { %s2102_s20 = smov 0  }
   0x7 LB: > { %s28_s21 = sadd.s32 1, %s2051_s17  ;;  %s31_s22 = sadd.s32 1, %s2055_s18  ;;  %s2063_s20 = sphi %s2102_s20, %s13_s20   ;;  %s2059_s19 = sphi %s2100_s19, %s2546_s19   ;;  %s2055_s18 = sphi %s2098_s18, %s2545_s18   ;;  %s2051_s17 = sphi %s2096_s17, %s2544_s17   ;;  %s2047_s16 = sphi %s2094_s16, %s2543_s16   ;;  %s2043_s15 = sphi %s2092_s15, %s2542_s15   ;;  %s2039_s14 = sphi %s2090_s14, %s2541_s14   ;;  %s2035_s13 = sphi %s2088_s13, %s2540_s13   ;;  %s2031_s12 = sphi %s2086_s12, %s2539_s12  }
   0x8   : > { %p29_p0 = scmp.ge.s32.totalorder %s28_s21, 3  ;;  %p87_p1 = scmp.ne.s32.totalorder %s2035_s13, %s2031_s12 }
   0x9   : > { %p88_p2 = scmp.eq.s32.totalorder %s2063_s20, 0  ;;  %s39_s23 = sadd.s32 1, %s2059_s19 }
   0xa   : > { %s2548_s22 = smov (!%p29_p0, %s31_s22), %s2055_s18  ;;  %s2550_s21 = smov (%p29_p0, %s28_s21), 0 }
   0xb   : > { %p33_p3 = scmp.ge.s32.totalorder %s2548_s22, 2  ;;  %p2138_p4 = por %p88_p2, %p87_p1 }
   0xc   : > { %s74_s25 = ssub.s32 %s2051_s17, %s2550_s21  ;;  %s80_s30 = sadd.s32 1, %s2035_s13 }
   0xd   : > { %s2552_s23 = smov (!%p33_p3, %s39_s23), %s2059_s19  ;;  %s2554_s22 = smov (%p33_p3, %s2548_s22), 0 }
   0xe   : > { %p41_p5 = scmp.ge.s32.totalorder %s2552_s23, 2  ;;  %s76_s26 = ssub.s32 %s2055_s18, %s2554_s22 }
   0xf   : > { %p1648_p7 = scmp.ge.s32.totalorder %s2063_s20, 12 }
  0x10   : > { %s2556_s23 = smov (%p41_p5, %s2552_s23), 0 }
  0x11   : > { %s73_s27 = ssub.s32 %s2059_s19, %s2556_s23  ;;  %171 = sbr.rel (%p1648_p7) target bundleno = 82 (0x52), region = 16 }
  0x12   : > { %s75_s28 = sor.u32 %s74_s25, %s73_s27 }
  0x13   : > { %s77_s29 = sor.u32 %s76_s26, %s75_s28 }
  0x14   : > { %p78_p6 = scmp.eq.s32.totalorder %s77_s29, 0 }
  0x16   : > { %s2157_s4 = scalar_select %p78_p6, %s2035_s13, %s80_s30  }
  0x18   : > { %191 = sbr.rel (!%p2138_p4) target bundleno = 82 (0x52), region = 24  ;;  %s193_s5 = sand.u32 (%p2138_p4), 1, %s2035_s13  }
  0x19   : > { %s1766_s6 = smul.u32 (%p2138_p4), 768, %s193_s5  ;;  %s1649_s7 = sshll.u32 (%p2138_p4), %s2055_s18, 1 }
  0x1a   : > { %s1765_s8 = smul.u32 (%p2138_p4), 384, %s2051_s17  ;;  %s2538_s1 = sld [smem:[#allocation4_spill]] (%p2138_p4) }
  0x1b   : > { %s1767_s9 = smul.u32 (%p2138_p4), 1152, %s2059_s19  ;;  %s2174_s24 = scalar_lea.vmem (%p2138_p4), [#allocation3], %s1766_s6 }
  0x1c   : > { %s199_s10 = sadd.s32 (%p2138_p4), %s1765_s8, %s1649_s7 }
  0x1d   : > { %s201_s11 = sadd.s32 (%p2138_p4), %s1767_s9, %s199_s10 }
  0x1e   : > { %s1651_s25 = sshll.u32 (%p2138_p4), %s201_s11, 2 }
  0x20   : > { %s2169_s28 = scalar_lea.vmem %s2538_s1, %s1651_s25 }
  0x21   : > { %v421_v0 = vld [vmem:[%s2169_s28] sm:$0xff]  ;;  %v423_v1 = vld [vmem:[%s2169_s28 + $0x10] sm:$0xff] }
  0x22   : > { %v425_v2 = vld [vmem:[%s2169_s28 + $0x20] sm:$0xff]  ;;  %422 = vst [vmem:[%s2174_s24] sm:$0xff] %v421_v0  ;;  %424 = vst [vmem:[%s2174_s24 + $0x8] sm:$0xff] %v423_v1  ;;  %v427_v3 = vld [vmem:[%s2169_s28 + $0x30] sm:$0xff] }
  0x23   : > { %426 = vst [vmem:[%s2174_s24 + $0x10] sm:$0xff] %v425_v2  ;;  %v429_v4 = vld [vmem:[%s2169_s28 + $0x40] sm:$0xff]  ;;  %v431_v5 = vld [vmem:[%s2169_s28 + $0x50] sm:$0xff]  ;;  %428 = vst [vmem:[%s2174_s24 + $0x18] sm:$0xff] %v427_v3 }
  0x24   : > { %430 = vst [vmem:[%s2174_s24 + $0x20] sm:$0xff] %v429_v4  ;;  %432 = vst [vmem:[%s2174_s24 + $0x28] sm:$0xff] %v431_v5  ;;  %v433_v6 = vld [vmem:[%s2169_s28 + $0x60] sm:$0xff]  ;;  %v435_v7 = vld [vmem:[%s2169_s28 + $0x70] sm:$0xff] }
  0x25   : > { %v437_v8 = vld [vmem:[%s2169_s28 + $0x80] sm:$0xff]  ;;  %434 = vst [vmem:[%s2174_s24 + $0x30] sm:$0xff] %v433_v6  ;;  %436 = vst [vmem:[%s2174_s24 + $0x38] sm:$0xff] %v435_v7  ;;  %v439_v9 = vld [vmem:[%s2169_s28 + $0x90] sm:$0xff] }
  0x26   : > { %438 = vst [vmem:[%s2174_s24 + $0x40] sm:$0xff] %v437_v8  ;;  %v441_v10 = vld [vmem:[%s2169_s28 + $0xa0] sm:$0xff]  ;;  %v443_v11 = vld [vmem:[%s2169_s28 + $0xb0] sm:$0xff]  ;;  %440 = vst [vmem:[%s2174_s24 + $0x48] sm:$0xff] %v439_v9 }
  0x27   : > { %442 = vst [vmem:[%s2174_s24 + $0x50] sm:$0xff] %v441_v10  ;;  %444 = vst [vmem:[%s2174_s24 + $0x58] sm:$0xff] %v443_v11  ;;  %v445_v12 = vld [vmem:[%s2169_s28 + $0xc0] sm:$0xff]  ;;  %v447_v13 = vld [vmem:[%s2169_s28 + $0xd0] sm:$0xff] }
  0x28   : > { %v449_v14 = vld [vmem:[%s2169_s28 + $0xe0] sm:$0xff]  ;;  %446 = vst [vmem:[%s2174_s24 + $0x60] sm:$0xff] %v445_v12  ;;  %448 = vst [vmem:[%s2174_s24 + $0x68] sm:$0xff] %v447_v13  ;;  %v451_v15 = vld [vmem:[%s2169_s28 + $0xf0] sm:$0xff] }
  0x29   : > { %450 = vst [vmem:[%s2174_s24 + $0x70] sm:$0xff] %v449_v14  ;;  %v453_v16 = vld [vmem:[%s2169_s28 + $0x100] sm:$0xff]  ;;  %v455_v17 = vld [vmem:[%s2169_s28 + $0x110] sm:$0xff]  ;;  %452 = vst [vmem:[%s2174_s24 + $0x78] sm:$0xff] %v451_v15 }
  0x2a   : > { %454 = vst [vmem:[%s2174_s24 + $0x80] sm:$0xff] %v453_v16  ;;  %456 = vst [vmem:[%s2174_s24 + $0x88] sm:$0xff] %v455_v17  ;;  %v457_v18 = vld [vmem:[%s2169_s28 + $0x120] sm:$0xff]  ;;  %v459_v19 = vld [vmem:[%s2169_s28 + $0x130] sm:$0xff] }
  0x2b   : > { %v461_v20 = vld [vmem:[%s2169_s28 + $0x140] sm:$0xff]  ;;  %458 = vst [vmem:[%s2174_s24 + $0x90] sm:$0xff] %v457_v18  ;;  %460 = vst [vmem:[%s2174_s24 + $0x98] sm:$0xff] %v459_v19  ;;  %v463_v21 = vld [vmem:[%s2169_s28 + $0x150] sm:$0xff] }
  0x2c   : > { %462 = vst [vmem:[%s2174_s24 + $0xa0] sm:$0xff] %v461_v20  ;;  %v465_v22 = vld [vmem:[%s2169_s28 + $0x160] sm:$0xff]  ;;  %v467_v23 = vld [vmem:[%s2169_s28 + $0x170] sm:$0xff]  ;;  %464 = vst [vmem:[%s2174_s24 + $0xa8] sm:$0xff] %v463_v21 }
  0x2d   : > { %466 = vst [vmem:[%s2174_s24 + $0xb0] sm:$0xff] %v465_v22  ;;  %468 = vst [vmem:[%s2174_s24 + $0xb8] sm:$0xff] %v467_v23  ;;  %v469_v24 = vld [vmem:[%s2169_s28 + $0x180] sm:$0xff]  ;;  %v471_v25 = vld [vmem:[%s2169_s28 + $0x190] sm:$0xff] }
  0x2e   : > { %v473_v26 = vld [vmem:[%s2169_s28 + $0x1a0] sm:$0xff]  ;;  %470 = vst [vmem:[%s2174_s24 + $0xc0] sm:$0xff] %v469_v24  ;;  %472 = vst [vmem:[%s2174_s24 + $0xc8] sm:$0xff] %v471_v25  ;;  %v475_v27 = vld [vmem:[%s2169_s28 + $0x1b0] sm:$0xff] }
  0x2f   : > { %474 = vst [vmem:[%s2174_s24 + $0xd0] sm:$0xff] %v473_v26  ;;  %v477_v28 = vld [vmem:[%s2169_s28 + $0x1c0] sm:$0xff]  ;;  %v479_v29 = vld [vmem:[%s2169_s28 + $0x1d0] sm:$0xff]  ;;  %476 = vst [vmem:[%s2174_s24 + $0xd8] sm:$0xff] %v475_v27 }
  0x30   : > { %478 = vst [vmem:[%s2174_s24 + $0xe0] sm:$0xff] %v477_v28  ;;  %480 = vst [vmem:[%s2174_s24 + $0xe8] sm:$0xff] %v479_v29  ;;  %v481_v30 = vld [vmem:[%s2169_s28 + $0x1e0] sm:$0xff]  ;;  %v483_v31 = vld [vmem:[%s2169_s28 + $0x1f0] sm:$0xff] }
  0x31   : > { %v485_v32 = vld [vmem:[%s2169_s28 + $0x200] sm:$0xff]  ;;  %482 = vst [vmem:[%s2174_s24 + $0xf0] sm:$0xff] %v481_v30  ;;  %484 = vst [vmem:[%s2174_s24 + $0xf8] sm:$0xff] %v483_v31  ;;  %v487_v33 = vld [vmem:[%s2169_s28 + $0x210] sm:$0xff] }
  0x32   : > { %486 = vst [vmem:[%s2174_s24 + $0x100] sm:$0xff] %v485_v32  ;;  %v489_v34 = vld [vmem:[%s2169_s28 + $0x220] sm:$0xff]  ;;  %v491_v35 = vld [vmem:[%s2169_s28 + $0x230] sm:$0xff]  ;;  %488 = vst [vmem:[%s2174_s24 + $0x108] sm:$0xff] %v487_v33 }
  0x33   : > { %490 = vst [vmem:[%s2174_s24 + $0x110] sm:$0xff] %v489_v34  ;;  %492 = vst [vmem:[%s2174_s24 + $0x118] sm:$0xff] %v491_v35  ;;  %v493_v36 = vld [vmem:[%s2169_s28 + $0x240] sm:$0xff]  ;;  %v495_v37 = vld [vmem:[%s2169_s28 + $0x250] sm:$0xff] }
  0x34   : > { %v497_v38 = vld [vmem:[%s2169_s28 + $0x260] sm:$0xff]  ;;  %494 = vst [vmem:[%s2174_s24 + $0x120] sm:$0xff] %v493_v36  ;;  %496 = vst [vmem:[%s2174_s24 + $0x128] sm:$0xff] %v495_v37  ;;  %v499_v39 = vld [vmem:[%s2169_s28 + $0x270] sm:$0xff] }
  0x35   : > { %498 = vst [vmem:[%s2174_s24 + $0x130] sm:$0xff] %v497_v38  ;;  %v501_v40 = vld [vmem:[%s2169_s28 + $0x280] sm:$0xff]  ;;  %v503_v41 = vld [vmem:[%s2169_s28 + $0x290] sm:$0xff]  ;;  %500 = vst [vmem:[%s2174_s24 + $0x138] sm:$0xff] %v499_v39 }
  0x36   : > { %502 = vst [vmem:[%s2174_s24 + $0x140] sm:$0xff] %v501_v40  ;;  %504 = vst [vmem:[%s2174_s24 + $0x148] sm:$0xff] %v503_v41  ;;  %v505_v42 = vld [vmem:[%s2169_s28 + $0x2a0] sm:$0xff]  ;;  %v507_v43 = vld [vmem:[%s2169_s28 + $0x2b0] sm:$0xff] }
  0x37   : > { %v509_v44 = vld [vmem:[%s2169_s28 + $0x2c0] sm:$0xff]  ;;  %506 = vst [vmem:[%s2174_s24 + $0x150] sm:$0xff] %v505_v42  ;;  %508 = vst [vmem:[%s2174_s24 + $0x158] sm:$0xff] %v507_v43  ;;  %v511_v45 = vld [vmem:[%s2169_s28 + $0x2d0] sm:$0xff] }
  0x38   : > { %510 = vst [vmem:[%s2174_s24 + $0x160] sm:$0xff] %v509_v44  ;;  %v513_v46 = vld [vmem:[%s2169_s28 + $0x2e0] sm:$0xff]  ;;  %v515_v47 = vld [vmem:[%s2169_s28 + $0x2f0] sm:$0xff]  ;;  %512 = vst [vmem:[%s2174_s24 + $0x168] sm:$0xff] %v511_v45 }
  0x39   : > { %514 = vst [vmem:[%s2174_s24 + $0x170] sm:$0xff] %v513_v46  ;;  %516 = vst [vmem:[%s2174_s24 + $0x178] sm:$0xff] %v515_v47  ;;  %v517_v48 = vld [vmem:[%s2169_s28 + $0x300] sm:$0xff]  ;;  %v519_v49 = vld [vmem:[%s2169_s28 + $0x310] sm:$0xff] }
  0x3a   : > { %v521_v50 = vld [vmem:[%s2169_s28 + $0x320] sm:$0xff]  ;;  %518 = vst [vmem:[%s2174_s24 + $0x180] sm:$0xff] %v517_v48  ;;  %520 = vst [vmem:[%s2174_s24 + $0x188] sm:$0xff] %v519_v49  ;;  %v523_v51 = vld [vmem:[%s2169_s28 + $0x330] sm:$0xff] }
  0x3b   : > { %522 = vst [vmem:[%s2174_s24 + $0x190] sm:$0xff] %v521_v50  ;;  %v525_v52 = vld [vmem:[%s2169_s28 + $0x340] sm:$0xff]  ;;  %v527_v53 = vld [vmem:[%s2169_s28 + $0x350] sm:$0xff]  ;;  %524 = vst [vmem:[%s2174_s24 + $0x198] sm:$0xff] %v523_v51 }
  0x3c   : > { %526 = vst [vmem:[%s2174_s24 + $0x1a0] sm:$0xff] %v525_v52  ;;  %528 = vst [vmem:[%s2174_s24 + $0x1a8] sm:$0xff] %v527_v53  ;;  %v529_v54 = vld [vmem:[%s2169_s28 + $0x360] sm:$0xff]  ;;  %v531_v55 = vld [vmem:[%s2169_s28 + $0x370] sm:$0xff] }
  0x3d   : > { %v533_v56 = vld [vmem:[%s2169_s28 + $0x380] sm:$0xff]  ;;  %530 = vst [vmem:[%s2174_s24 + $0x1b0] sm:$0xff] %v529_v54  ;;  %532 = vst [vmem:[%s2174_s24 + $0x1b8] sm:$0xff] %v531_v55  ;;  %v535_v57 = vld [vmem:[%s2169_s28 + $0x390] sm:$0xff] }
  0x3e   : > { %534 = vst [vmem:[%s2174_s24 + $0x1c0] sm:$0xff] %v533_v56  ;;  %v537_v58 = vld [vmem:[%s2169_s28 + $0x3a0] sm:$0xff]  ;;  %v539_v59 = vld [vmem:[%s2169_s28 + $0x3b0] sm:$0xff]  ;;  %536 = vst [vmem:[%s2174_s24 + $0x1c8] sm:$0xff] %v535_v57 }
  0x3f   : > { %538 = vst [vmem:[%s2174_s24 + $0x1d0] sm:$0xff] %v537_v58  ;;  %540 = vst [vmem:[%s2174_s24 + $0x1d8] sm:$0xff] %v539_v59  ;;  %v541_v60 = vld [vmem:[%s2169_s28 + $0x3c0] sm:$0xff]  ;;  %v543_v61 = vld [vmem:[%s2169_s28 + $0x3d0] sm:$0xff] }
  0x40   : > { %v545_v62 = vld [vmem:[%s2169_s28 + $0x3e0] sm:$0xff]  ;;  %542 = vst [vmem:[%s2174_s24 + $0x1e0] sm:$0xff] %v541_v60  ;;  %544 = vst [vmem:[%s2174_s24 + $0x1e8] sm:$0xff] %v543_v61  ;;  %v547_v63 = vld [vmem:[%s2169_s28 + $0x3f0] sm:$0xff] }
  0x41   : > { %546 = vst [vmem:[%s2174_s24 + $0x1f0] sm:$0xff] %v545_v62  ;;  %v549_v0 = vld [vmem:[%s2169_s28 + $0x400] sm:$0xff]  ;;  %v551_v1 = vld [vmem:[%s2169_s28 + $0x410] sm:$0xff]  ;;  %548 = vst [vmem:[%s2174_s24 + $0x1f8] sm:$0xff] %v547_v63 }
  0x42   : > { %550 = vst [vmem:[%s2174_s24 + $0x200] sm:$0xff] %v549_v0  ;;  %552 = vst [vmem:[%s2174_s24 + $0x208] sm:$0xff] %v551_v1  ;;  %v553_v2 = vld [vmem:[%s2169_s28 + $0x420] sm:$0xff]  ;;  %v555_v3 = vld [vmem:[%s2169_s28 + $0x430] sm:$0xff] }
  0x43   : > { %v557_v4 = vld [vmem:[%s2169_s28 + $0x440] sm:$0xff]  ;;  %554 = vst [vmem:[%s2174_s24 + $0x210] sm:$0xff] %v553_v2  ;;  %556 = vst [vmem:[%s2174_s24 + $0x218] sm:$0xff] %v555_v3  ;;  %v559_v5 = vld [vmem:[%s2169_s28 + $0x450] sm:$0xff] }
  0x44   : > { %558 = vst [vmem:[%s2174_s24 + $0x220] sm:$0xff] %v557_v4  ;;  %v561_v6 = vld [vmem:[%s2169_s28 + $0x460] sm:$0xff]  ;;  %v563_v7 = vld [vmem:[%s2169_s28 + $0x470] sm:$0xff]  ;;  %560 = vst [vmem:[%s2174_s24 + $0x228] sm:$0xff] %v559_v5 }
  0x45   : > { %562 = vst [vmem:[%s2174_s24 + $0x230] sm:$0xff] %v561_v6  ;;  %564 = vst [vmem:[%s2174_s24 + $0x238] sm:$0xff] %v563_v7  ;;  %v565_v8 = vld [vmem:[%s2169_s28 + $0x480] sm:$0xff]  ;;  %v567_v9 = vld [vmem:[%s2169_s28 + $0x490] sm:$0xff] }
  0x46   : > { %v569_v10 = vld [vmem:[%s2169_s28 + $0x4a0] sm:$0xff]  ;;  %566 = vst [vmem:[%s2174_s24 + $0x240] sm:$0xff] %v565_v8  ;;  %568 = vst [vmem:[%s2174_s24 + $0x248] sm:$0xff] %v567_v9  ;;  %v571_v11 = vld [vmem:[%s2169_s28 + $0x4b0] sm:$0xff] }
  0x47   : > { %570 = vst [vmem:[%s2174_s24 + $0x250] sm:$0xff] %v569_v10  ;;  %v573_v12 = vld [vmem:[%s2169_s28 + $0x4c0] sm:$0xff]  ;;  %v575_v13 = vld [vmem:[%s2169_s28 + $0x4d0] sm:$0xff]  ;;  %572 = vst [vmem:[%s2174_s24 + $0x258] sm:$0xff] %v571_v11 }
  0x48   : > { %574 = vst [vmem:[%s2174_s24 + $0x260] sm:$0xff] %v573_v12  ;;  %576 = vst [vmem:[%s2174_s24 + $0x268] sm:$0xff] %v575_v13  ;;  %v577_v14 = vld [vmem:[%s2169_s28 + $0x4e0] sm:$0xff]  ;;  %v579_v15 = vld [vmem:[%s2169_s28 + $0x4f0] sm:$0xff] }
  0x49   : > { %v581_v16 = vld [vmem:[%s2169_s28 + $0x500] sm:$0xff]  ;;  %578 = vst [vmem:[%s2174_s24 + $0x270] sm:$0xff] %v577_v14  ;;  %580 = vst [vmem:[%s2174_s24 + $0x278] sm:$0xff] %v579_v15  ;;  %v583_v17 = vld [vmem:[%s2169_s28 + $0x510] sm:$0xff] }
  0x4a   : > { %582 = vst [vmem:[%s2174_s24 + $0x280] sm:$0xff] %v581_v16  ;;  %v585_v18 = vld [vmem:[%s2169_s28 + $0x520] sm:$0xff]  ;;  %v587_v19 = vld [vmem:[%s2169_s28 + $0x530] sm:$0xff]  ;;  %584 = vst [vmem:[%s2174_s24 + $0x288] sm:$0xff] %v583_v17 }
  0x4b   : > { %586 = vst [vmem:[%s2174_s24 + $0x290] sm:$0xff] %v585_v18  ;;  %588 = vst [vmem:[%s2174_s24 + $0x298] sm:$0xff] %v587_v19  ;;  %v589_v20 = vld [vmem:[%s2169_s28 + $0x540] sm:$0xff]  ;;  %v591_v21 = vld [vmem:[%s2169_s28 + $0x550] sm:$0xff] }
  0x4c   : > { %v593_v22 = vld [vmem:[%s2169_s28 + $0x560] sm:$0xff]  ;;  %590 = vst [vmem:[%s2174_s24 + $0x2a0] sm:$0xff] %v589_v20  ;;  %592 = vst [vmem:[%s2174_s24 + $0x2a8] sm:$0xff] %v591_v21  ;;  %v595_v23 = vld [vmem:[%s2169_s28 + $0x570] sm:$0xff] }
  0x4d   : > { %594 = vst [vmem:[%s2174_s24 + $0x2b0] sm:$0xff] %v593_v22  ;;  %v597_v24 = vld [vmem:[%s2169_s28 + $0x580] sm:$0xff]  ;;  %v599_v25 = vld [vmem:[%s2169_s28 + $0x590] sm:$0xff]  ;;  %596 = vst [vmem:[%s2174_s24 + $0x2b8] sm:$0xff] %v595_v23 }
  0x4e   : > { %598 = vst [vmem:[%s2174_s24 + $0x2c0] sm:$0xff] %v597_v24  ;;  %600 = vst [vmem:[%s2174_s24 + $0x2c8] sm:$0xff] %v599_v25  ;;  %v601_v26 = vld [vmem:[%s2169_s28 + $0x5a0] sm:$0xff]  ;;  %v603_v27 = vld [vmem:[%s2169_s28 + $0x5b0] sm:$0xff] }
  0x4f   : > { %v605_v28 = vld [vmem:[%s2169_s28 + $0x5c0] sm:$0xff]  ;;  %602 = vst [vmem:[%s2174_s24 + $0x2d0] sm:$0xff] %v601_v26  ;;  %604 = vst [vmem:[%s2174_s24 + $0x2d8] sm:$0xff] %v603_v27  ;;  %v607_v29 = vld [vmem:[%s2169_s28 + $0x5d0] sm:$0xff] }
  0x50   : > { %606 = vst [vmem:[%s2174_s24 + $0x2e0] sm:$0xff] %v605_v28  ;;  %v609_v30 = vld [vmem:[%s2169_s28 + $0x5e0] sm:$0xff]  ;;  %v611_v31 = vld [vmem:[%s2169_s28 + $0x5f0] sm:$0xff]  ;;  %608 = vst [vmem:[%s2174_s24 + $0x2e8] sm:$0xff] %v607_v29 }
  0x51   : > { %610 = vst [vmem:[%s2174_s24 + $0x2f0] sm:$0xff] %v609_v30  ;;  %612 = vst [vmem:[%s2174_s24 + $0x2f8] sm:$0xff] %v611_v31 }
  0x52 PF: > { %p1652_p8 = scmp.ge.s32.totalorder %s2063_s20, 1  ;;  %p629_p9 = scmp.lt.s32.totalorder %s2063_s20, 13 }
  0x54   : > { %p630_p10 = pnand %p1652_p8, %p629_p9 }
  0x55   : > { %s636_s29 = sand.u32 (!%p630_p10), 1, %s2031_s12   ;;  %s688_s30 = smul.u32 (!%p630_p10), 6, %s2039_s14 }
  0x56   : > { %633 = sbr.rel (%p630_p10) target bundleno = 461 (0x1cd), region = 66  ;;  %p689_p11 = scmp.lt.s32.totalorder (!%p630_p10), %s2047_s16, 1 }
  0x57   : > { %s1768_s5 = smul.u32 (!%p630_p10), 768, %s636_s29  ;;  %p693_p12 = scmp.lt.s32.totalorder (!%p630_p10), %s688_s30, 17 }
  0x58   : > { %s1654_s6 = sshll.u32 (!%p630_p10), %s2043_s15, 1  ;;  %p1659_p0 = scmp.ne.s32.totalorder (!%p630_p10), %s2039_s14, 0 }
  0x59   : > { %p707_p13 = scmp.lt.s32.totalorder (!%p630_p10), %s1654_s6, 3 }
  0x5d   : > { %s2558_s16 = smov (!%p689_p11, %s2047_s16), 1  ;;  %s2560_s30 = smov (!%p693_p12, %s688_s30), 17 }
  0x5e   : > { %s1769_s7 = smul.u32 18, %s2558_s16  ;;  %s1655_s8 = sshll.u32 %s2558_s16, 2  ;;  %v2065_v32 = vmov (!%p1659_p0), 0.0  }
  0x5f   : > { %s2562_s6 = smov (!%p707_p13, %s1654_s6), 3  ;;  %730 = sbr.rel (%p1659_p0) target bundleno = 102 (0x66), region = 74 }
  0x60   : > { %s698_s9 = sadd.s32 %s1769_s7, %s2560_s30  ;;  %s2372_s11 = sadd.s32 %s1655_s8, %s2562_s6  ;;  %731 = vst [vmem:[#allocation2] sm:$0xff] (!%p1659_p0), %v2065_v32  ;;  %732 = vst [vmem:[#allocation2 + $0x8] sm:$0xff] (!%p1659_p0), %v2065_v32 }
  0x61   : > { %s1653_s10 = sshll.u32 %s698_s9, 2  ;;  %s711_s15 = scalar_lea.vmem %s2534_s2, %s2372_s11 }
  0x62   : > { %s2377_s12 = scalar_lea.vmem %s2532_s0, %s1653_s10  ;;  %s1658_s24 = sshll.u32 %s2372_s11, 3 }
  0x63   : > { %s2387_s16 = scalar_lea.vmem %s2535_s3, %s1658_s24  ;;  %s2389_s30 = scalar_lea.vmem [#allocation3], %s1768_s5 }
  0x66 PF: > { %v1843_v33 = vld [vmem:[%s2389_s30 + $0x4] ss:$8 sps:$4 sm:$0xff]   ;;  %v1847_v35 = vld [vmem:[%s2389_s30] ss:$8 sps:$4 sm:$0xff]   ;;  %v1849_v37 = vld [vmem:[%s2389_s30 + $0x14] ss:$8 sps:$4 sm:$0xff]  }
  0x67   : > { %v1845_v34 = vld [vmem:[%s2389_s30 + $0x104] ss:$8 sps:$4 sm:$0xff]   ;;  %1335 = vmatprep.subr.bf16.mxu0 %v1843_v33  ;;  %v1848_v36 = vld [vmem:[%s2389_s30 + $0x100] ss:$8 sps:$4 sm:$0xff]   ;;  %v1851_v38 = vld [vmem:[%s2389_s30 + $0x114] ss:$8 sps:$4 sm:$0xff]  }
  0x68   : > { %1376 = vmatprep.subr.bf16.mxu1 %v1845_v34  ;;  %1336 = vmatpush1.bf16.msra.mxu0 %v1847_v35  ;;  %v1853_v39 = vld [vmem:[%s2389_s30 + $0x10] ss:$8 sps:$4 sm:$0xff]   ;;  %v1855_v41 = vld [vmem:[%s2389_s30 + $0x24] ss:$8 sps:$4 sm:$0xff]   ;;  %v1859_v43 = vld [vmem:[%s2389_s30 + $0x20] ss:$8 sps:$4 sm:$0xff]  }
  0x69   : > { %1377 = vmatpush1.bf16.msra.mxu1 %v1848_v36  ;;  %1337 = vmatprep.subr.bf16.mxu0 %v1849_v37  ;;  %v1854_v40 = vld [vmem:[%s2389_s30 + $0x110] ss:$8 sps:$4 sm:$0xff]   ;;  %v1857_v42 = vld [vmem:[%s2389_s30 + $0x124] ss:$8 sps:$4 sm:$0xff]   ;;  %v1860_v44 = vld [vmem:[%s2389_s30 + $0x120] ss:$8 sps:$4 sm:$0xff]  }
  0x6a   : > { %1378 = vmatprep.subr.bf16.mxu1 %v1851_v38  ;;  %v1861_v45 = vld [vmem:[%s2389_s30 + $0x34] ss:$8 sps:$4 sm:$0xff]   ;;  %v1865_v47 = vld [vmem:[%s2389_s30 + $0x30] ss:$8 sps:$4 sm:$0xff]   ;;  %v1867_v49 = vld [vmem:[%s2389_s30 + $0x44] ss:$8 sps:$4 sm:$0xff]  }
  0x6b   : > { %v1863_v46 = vld [vmem:[%s2389_s30 + $0x134] ss:$8 sps:$4 sm:$0xff]   ;;  %v1866_v48 = vld [vmem:[%s2389_s30 + $0x130] ss:$8 sps:$4 sm:$0xff]   ;;  %v1869_v50 = vld [vmem:[%s2389_s30 + $0x144] ss:$8 sps:$4 sm:$0xff]  }
  0x6c   : > { %1338 = vmatpush1.bf16.msra.mxu0 %v1853_v39  ;;  %v1871_v51 = vld [vmem:[%s2389_s30 + $0x40] ss:$8 sps:$4 sm:$0xff]   ;;  %v1873_v53 = vld [vmem:[%s2389_s30 + $0x54] ss:$8 sps:$4 sm:$0xff]   ;;  %v1877_v55 = vld [vmem:[%s2389_s30 + $0x50] ss:$8 sps:$4 sm:$0xff]  }
  0x6d   : > { %1379 = vmatpush1.bf16.msra.mxu1 %v1854_v40  ;;  %1339 = vmatprep.subr.bf16.mxu0 %v1855_v41  ;;  %v1872_v52 = vld [vmem:[%s2389_s30 + $0x140] ss:$8 sps:$4 sm:$0xff]   ;;  %v1875_v54 = vld [vmem:[%s2389_s30 + $0x154] ss:$8 sps:$4 sm:$0xff]   ;;  %v1878_v56 = vld [vmem:[%s2389_s30 + $0x150] ss:$8 sps:$4 sm:$0xff]  }
  0x6e   : > { %1380 = vmatprep.subr.bf16.mxu1 %v1857_v42  ;;  %v1879_v57 = vld [vmem:[%s2389_s30 + $0x64] ss:$8 sps:$4 sm:$0xff]   ;;  %v1883_v59 = vld [vmem:[%s2389_s30 + $0x60] ss:$8 sps:$4 sm:$0xff]   ;;  %v1885_v61 = vld [vmem:[%s2389_s30 + $0x74] ss:$8 sps:$4 sm:$0xff]  }
  0x6f   : > { %v1881_v58 = vld [vmem:[%s2389_s30 + $0x164] ss:$8 sps:$4 sm:$0xff]   ;;  %v1884_v60 = vld [vmem:[%s2389_s30 + $0x160] ss:$8 sps:$4 sm:$0xff]   ;;  %v1887_v62 = vld [vmem:[%s2389_s30 + $0x174] ss:$8 sps:$4 sm:$0xff]  }
  0x70   : > { %1340 = vmatpush1.bf16.msra.mxu0 %v1859_v43  ;;  %v1889_v63 = vld [vmem:[%s2389_s30 + $0x70] ss:$8 sps:$4 sm:$0xff]   ;;  %v1891_v1 = vld [vmem:[%s2389_s30 + $0x84] ss:$8 sps:$4 sm:$0xff]   ;;  %v1895_v3 = vld [vmem:[%s2389_s30 + $0x80] ss:$8 sps:$4 sm:$0xff]  }
  0x71   : > { %1381 = vmatpush1.bf16.msra.mxu1 %v1860_v44  ;;  %1341 = vmatprep.subr.bf16.mxu0 %v1861_v45  ;;  %v1890_v0 = vld [vmem:[%s2389_s30 + $0x170] ss:$8 sps:$4 sm:$0xff]   ;;  %v1893_v2 = vld [vmem:[%s2389_s30 + $0x184] ss:$8 sps:$4 sm:$0xff]   ;;  %v1896_v4 = vld [vmem:[%s2389_s30 + $0x180] ss:$8 sps:$4 sm:$0xff]  }
  0x72   : > { %1382 = vmatprep.subr.bf16.mxu1 %v1863_v46  ;;  %v1897_v5 = vld [vmem:[%s2389_s30 + $0x94] ss:$8 sps:$4 sm:$0xff]   ;;  %v1901_v7 = vld [vmem:[%s2389_s30 + $0x90] ss:$8 sps:$4 sm:$0xff]   ;;  %v1903_v9 = vld [vmem:[%s2389_s30 + $0xa4] ss:$8 sps:$4 sm:$0xff]  }
  0x73   : > { %v1899_v6 = vld [vmem:[%s2389_s30 + $0x194] ss:$8 sps:$4 sm:$0xff]   ;;  %v1902_v8 = vld [vmem:[%s2389_s30 + $0x190] ss:$8 sps:$4 sm:$0xff]   ;;  %v1905_v10 = vld [vmem:[%s2389_s30 + $0x1a4] ss:$8 sps:$4 sm:$0xff]  }
  0x74   : > { %1342 = vmatpush1.bf16.msra.mxu0 %v1865_v47  ;;  %v1907_v11 = vld [vmem:[%s2389_s30 + $0xa0] ss:$8 sps:$4 sm:$0xff]   ;;  %v1909_v13 = vld [vmem:[%s2389_s30 + $0xb4] ss:$8 sps:$4 sm:$0xff]   ;;  %v1913_v18 = vld [vmem:[%s2389_s30 + $0xb0] ss:$8 sps:$4 sm:$0xff]  }
  0x75   : > { %1383 = vmatpush1.bf16.msra.mxu1 %v1866_v48  ;;  %1343 = vmatprep.subr.bf16.mxu0 %v1867_v49  ;;  %v1908_v12 = vld [vmem:[%s2389_s30 + $0x1a0] ss:$8 sps:$4 sm:$0xff]   ;;  %v1911_v14 = vld [vmem:[%s2389_s30 + $0x1b4] ss:$8 sps:$4 sm:$0xff]   ;;  %v1914_v19 = vld [vmem:[%s2389_s30 + $0x1b0] ss:$8 sps:$4 sm:$0xff]  }
  0x76   : > { %1384 = vmatprep.subr.bf16.mxu1 %v1869_v50  ;;  %v735_v15 = vld [vmem:[%s2377_s12] sm:$0xff]  ;;  %v736_v17 = vld [vmem:[%s2377_s12 + $0x8] sm:$0xff]  ;;  %v1915_v21 = vld [vmem:[%s2389_s30 + $0xc4] ss:$8 sps:$4 sm:$0xff]   ;;  %p1762_p1 = scmp.ne.s32.totalorder %s2039_s14, 2 }
  0x77   : > { %v1661_v16 = vcombine.high %v735_v15, %v735_v15  ;;  %v1663_v20 = vcombine.high %v736_v17, %v736_v17  ;;  %v1917_v22 = vld [vmem:[%s2389_s30 + $0x1c4] ss:$8 sps:$4 sm:$0xff]   ;;  %v1919_v23 = vld [vmem:[%s2389_s30 + $0xc0] ss:$8 sps:$4 sm:$0xff]   ;;  %v1921_v25 = vld [vmem:[%s2389_s30 + $0xd4] ss:$8 sps:$4 sm:$0xff]   ;;  %v1660_v38 = vcombine.low %v735_v15, %v735_v15  ;;  %v1662_v39 = vcombine.low %v736_v17, %v736_v17 }
  0x78   : > { %1344 = vmatpush1.bf16.msra.mxu0 %v1871_v51  ;;  %v1920_v24 = vld [vmem:[%s2389_s30 + $0x1c0] ss:$8 sps:$4 sm:$0xff]   ;;  %v1923_v26 = vld [vmem:[%s2389_s30 + $0x1d4] ss:$8 sps:$4 sm:$0xff]   ;;  %v1925_v27 = vld [vmem:[%s2389_s30 + $0xd0] ss:$8 sps:$4 sm:$0xff]  }
  0x79   : > { %1385 = vmatpush1.bf16.msra.mxu1 %v1872_v52  ;;  %1345 = vmatprep.subr.bf16.mxu0 %v1873_v53  ;;  %v1926_v28 = vld [vmem:[%s2389_s30 + $0x1d0] ss:$8 sps:$4 sm:$0xff]   ;;  %v1927_v29 = vld [vmem:[%s2389_s30 + $0xe4] ss:$8 sps:$4 sm:$0xff]   ;;  %v1931_v31 = vld [vmem:[%s2389_s30 + $0xe0] ss:$8 sps:$4 sm:$0xff]  }
  0x7a   : > { %1386 = vmatprep.subr.bf16.mxu1 %v1875_v54  ;;  %1367 = vmatprep.mubr.bf16.mxu0 %v1661_v16  ;;  %v1929_v30 = vld [vmem:[%s2389_s30 + $0x1e4] ss:$8 sps:$4 sm:$0xff]   ;;  %v1932_v32 = vld [vmem:[%s2389_s30 + $0x1e0] ss:$8 sps:$4 sm:$0xff]   ;;  %v1933_v33 = vld [vmem:[%s2389_s30 + $0xf4] ss:$8 sps:$4 sm:$0xff]  }
  0x7b   : > { %1408 = vmatprep.mubr.bf16.mxu1 %v1663_v20  ;;  %v1935_v34 = vld [vmem:[%s2389_s30 + $0x1f4] ss:$8 sps:$4 sm:$0xff]   ;;  %v1937_v35 = vld [vmem:[%s2389_s30 + $0xf0] ss:$8 sps:$4 sm:$0xff]   ;;  %v1945_v37 = vld [vmem:[%s2389_s30 + $0x204] ss:$8 sps:$4 sm:$0xff]  }
  0x7c   : > { %1346 = vmatpush1.bf16.msra.mxu0 %v1877_v55  ;;  %v1938_v36 = vld [vmem:[%s2389_s30 + $0x1f0] ss:$8 sps:$4 sm:$0xff]   ;;  %v1943_v40 = vld [vmem:[%s2389_s30 + $0x200] ss:$8 sps:$4 sm:$0xff]   ;;  %v1948_v42 = vld [vmem:[%s2389_s30 + $0x214] ss:$8 sps:$4 sm:$0xff]  }
  0x7d   : > { %1387 = vmatpush1.bf16.msra.mxu1 %v1878_v56  ;;  %1347 = vmatprep.subr.bf16.mxu0 %v1879_v57  ;;  %v2461_v41 = vld [vmem:[%s2377_s12 + $0x10] sm:$0xff]  ;;  %v1946_v44 = vld [vmem:[%s2389_s30 + $0x210] ss:$8 sps:$4 sm:$0xff]   ;;  %v1954_v47 = vld [vmem:[%s2389_s30 + $0x234] ss:$8 sps:$4 sm:$0xff]  }
  0x7e   : > { %1388 = vmatprep.subr.bf16.mxu1 %v1881_v58  ;;  %v1665_v43 = vcombine.high %v2461_v41, %v2461_v41  ;;  %v1951_v45 = vld [vmem:[%s2389_s30 + $0x224] ss:$8 sps:$4 sm:$0xff]   ;;  %v1949_v46 = vld [vmem:[%s2389_s30 + $0x220] ss:$8 sps:$4 sm:$0xff]   ;;  %v1952_v48 = vld [vmem:[%s2389_s30 + $0x230] ss:$8 sps:$4 sm:$0xff]  }
  0x7f   : > { %v1957_v49 = vld [vmem:[%s2389_s30 + $0x244] ss:$8 sps:$4 sm:$0xff]   ;;  %v1955_v50 = vld [vmem:[%s2389_s30 + $0x240] ss:$8 sps:$4 sm:$0xff]   ;;  %v1960_v51 = vld [vmem:[%s2389_s30 + $0x254] ss:$8 sps:$4 sm:$0xff]  }
  0x80   : > { %1348 = vmatpush1.bf16.msra.mxu0 %v1883_v59  ;;  %v1958_v52 = vld [vmem:[%s2389_s30 + $0x250] ss:$8 sps:$4 sm:$0xff]   ;;  %v1963_v53 = vld [vmem:[%s2389_s30 + $0x264] ss:$8 sps:$4 sm:$0xff]   ;;  %v1961_v54 = vld [vmem:[%s2389_s30 + $0x260] ss:$8 sps:$4 sm:$0xff]  }
  0x81   : > { %1389 = vmatpush1.bf16.msra.mxu1 %v1884_v60  ;;  %1349 = vmatprep.subr.bf16.mxu0 %v1885_v61  ;;  %v1966_v55 = vld [vmem:[%s2389_s30 + $0x274] ss:$8 sps:$4 sm:$0xff]   ;;  %v1964_v56 = vld [vmem:[%s2389_s30 + $0x270] ss:$8 sps:$4 sm:$0xff]   ;;  %v1969_v57 = vld [vmem:[%s2389_s30 + $0x284] ss:$8 sps:$4 sm:$0xff]  }
  0x82   : > { %1390 = vmatprep.subr.bf16.mxu1 %v1887_v62  ;;  %v1967_v58 = vld [vmem:[%s2389_s30 + $0x280] ss:$8 sps:$4 sm:$0xff]   ;;  %v1972_v59 = vld [vmem:[%s2389_s30 + $0x294] ss:$8 sps:$4 sm:$0xff]   ;;  %v1970_v60 = vld [vmem:[%s2389_s30 + $0x290] ss:$8 sps:$4 sm:$0xff]  }
  0x83   : > { %v1975_v61 = vld [vmem:[%s2389_s30 + $0x2a4] ss:$8 sps:$4 sm:$0xff]   ;;  %v1973_v62 = vld [vmem:[%s2389_s30 + $0x2a0] ss:$8 sps:$4 sm:$0xff]   ;;  %v733_v20 = vld [vmem:[#allocation2] sm:$0xff] }
  0x84   : > { %1350 = vmatpush1.bf16.msra.mxu0 %v1889_v63  ;;  %v1978_v63 = vld [vmem:[%s2389_s30 + $0x2b4] ss:$8 sps:$4 sm:$0xff]  }
  0x85   : > { %1391 = vmatpush1.bf16.msra.mxu1 %v1890_v0  ;;  %1351 = vmatprep.subr.bf16.mxu0 %v1891_v1  ;;  %v1976_v0 = vld [vmem:[%s2389_s30 + $0x2b0] ss:$8 sps:$4 sm:$0xff]   ;;  %v1981_v1 = vld [vmem:[%s2389_s30 + $0x2c4] ss:$8 sps:$4 sm:$0xff]  }
  0x86   : > { %1392 = vmatprep.subr.bf16.mxu1 %v1893_v2  ;;  %v1979_v2 = vld [vmem:[%s2389_s30 + $0x2c0] ss:$8 sps:$4 sm:$0xff]  }
  0x88   : > { %1352 = vmatpush1.bf16.msra.mxu0 %v1895_v3  ;;  %v1984_v3 = vld [vmem:[%s2389_s30 + $0x2d4] ss:$8 sps:$4 sm:$0xff]  }
  0x89   : > { %1393 = vmatpush1.bf16.msra.mxu1 %v1896_v4  ;;  %1353 = vmatprep.subr.bf16.mxu0 %v1897_v5  ;;  %v1982_v4 = vld [vmem:[%s2389_s30 + $0x2d0] ss:$8 sps:$4 sm:$0xff]   ;;  %v1987_v5 = vld [vmem:[%s2389_s30 + $0x2e4] ss:$8 sps:$4 sm:$0xff]  }
  0x8a   : > { %1394 = vmatprep.subr.bf16.mxu1 %v1899_v6  ;;  %v1985_v6 = vld [vmem:[%s2389_s30 + $0x2e0] ss:$8 sps:$4 sm:$0xff]  }
  0x8c   : > { %1354 = vmatpush1.bf16.msra.mxu0 %v1901_v7  ;;  %v1990_v7 = vld [vmem:[%s2389_s30 + $0x2f4] ss:$8 sps:$4 sm:$0xff]  }
  0x8d   : > { %1395 = vmatpush1.bf16.msra.mxu1 %v1902_v8  ;;  %1355 = vmatprep.subr.bf16.mxu0 %v1903_v9  ;;  %v1988_v8 = vld [vmem:[%s2389_s30 + $0x2f0] ss:$8 sps:$4 sm:$0xff]   ;;  %v1664_v9 = vcombine.low %v2461_v41, %v2461_v41 }
  0x8e   : > { %1396 = vmatprep.subr.bf16.mxu1 %v1905_v10 }
  0x90   : > { %1356 = vmatpush1.bf16.msra.mxu0 %v1907_v11 }
  0x91   : > { %1397 = vmatpush1.bf16.msra.mxu1 %v1908_v12  ;;  %1357 = vmatprep.subr.bf16.mxu0 %v1909_v13 }
  0x92   : > { %1398 = vmatprep.subr.bf16.mxu1 %v1911_v14 }
  0x94   : > { %1358 = vmatpush1.bf16.msra.mxu0 %v1913_v18 }
  0x95   : > { %1399 = vmatpush1.bf16.msra.mxu1 %v1914_v19  ;;  %1359 = vmatprep.subr.bf16.mxu0 %v1915_v21 }
  0x96   : > { %1400 = vmatprep.subr.bf16.mxu1 %v1917_v22 }
  0x98   : > { %1360 = vmatpush1.bf16.msra.mxu0 %v1919_v23  ;;  %v734_v23 = vld [vmem:[#allocation2 + $0x8] sm:$0xff] }
  0x99   : > { %1401 = vmatpush1.bf16.msra.mxu1 %v1920_v24  ;;  %1361 = vmatprep.subr.bf16.mxu0 %v1921_v25 }
  0x9a   : > { %1402 = vmatprep.subr.bf16.mxu1 %v1923_v26 }
  0x9c   : > { %1362 = vmatpush1.bf16.msra.mxu0 %v1925_v27 }
  0x9d   : > { %1403 = vmatpush1.bf16.msra.mxu1 %v1926_v28  ;;  %1363 = vmatprep.subr.bf16.mxu0 %v1927_v29 }
  0x9e   : > { %1404 = vmatprep.subr.bf16.mxu1 %v1929_v30  ;;  %v1470_v30 = vlaneseq (!%p1762_p1) }
  0xa0   : > { %1364 = vmatpush1.bf16.msra.mxu0 %v1931_v31  ;;  %v1471_v31 = vshrl.u32 (!%p1762_p1), %v1470_v30, 7 }
  0xa1   : > { %1405 = vmatpush1.bf16.msra.mxu1 %v1932_v32  ;;  %1365 = vmatprep.subr.bf16.mxu0 %v1933_v33  ;;  %v1468_v32 = vld [vmem:[%s711_s15] sm:$0x3] (!%p1762_p1) }
  0xa2   : > { %1406 = vmatprep.subr.bf16.mxu1 %v1935_v34  ;;  %v1472_v33 = vsub.s32 (!%p1762_p1), 0, %v1471_v31  ;;  %v1476_v34 = vsub.s32 (!%p1762_p1), 1, %v1471_v31 }
  0xa4   : > { %1366 = vmatpush1.bf16.msra.mxu0 %v1937_v35 }
  0xa5   : > { %1407 = vmatpush1.bf16.msra.mxu1 %v1938_v36  ;;  %1417 = vmatprep.subr.bf16.mxu0 %v1945_v37  ;;  %v1473_v37 = vrot.slane (!%p1762_p1), %v1468_v32, %v1472_v33 }
  0xa7   : > { %1368 = vmatmul.mubr.bf16.vlgmr.msra.gmra.mrb[0].mxu0 %v1660_v38  ;;  %v1477_v38 = vrot.slane (!%p1762_p1), %v1468_v32, %v1476_v34 }
  0xa8   : > { %1409 = vmatmul.mubr.bf16.vlgmr.msra.gmra.mrb[0].mxu1 %v1662_v39  ;;  %1418 = vmatpush1.bf16.msra.mxu0 %v1943_v40 }
  0xa9   : > { %1449 = vmatprep.mubr.bf16.mxu0 %v1665_v43  ;;  %1419 = vmatprep.subr.bf16.mxu0 %v1948_v42 }
  0xac   : > { %1420 = vmatpush1.bf16.msra.mxu0 %v1946_v44 }
  0xad   : > { %1421 = vmatprep.subr.bf16.mxu0 %v1951_v45 }
  0xb0   : > { %1422 = vmatpush1.bf16.msra.mxu0 %v1949_v46 }
  0xb1   : > { %1423 = vmatprep.subr.bf16.mxu0 %v1954_v47 }
  0xb4   : > { %1424 = vmatpush1.bf16.msra.mxu0 %v1952_v48 }
  0xb5   : > { %1425 = vmatprep.subr.bf16.mxu0 %v1957_v49 }
  0xb8   : > { %1426 = vmatpush1.bf16.msra.mxu0 %v1955_v50 }
  0xb9   : > { %1427 = vmatprep.subr.bf16.mxu0 %v1960_v51 }
  0xbc   : > { %1428 = vmatpush1.bf16.msra.mxu0 %v1958_v52 }
  0xbd   : > { %1429 = vmatprep.subr.bf16.mxu0 %v1963_v53 }
  0xc0   : > { %1430 = vmatpush1.bf16.msra.mxu0 %v1961_v54 }
  0xc1   : > { %1431 = vmatprep.subr.bf16.mxu0 %v1966_v55 }
  0xc4   : > { %1432 = vmatpush1.bf16.msra.mxu0 %v1964_v56 }
  0xc5   : > { %1433 = vmatprep.subr.bf16.mxu0 %v1969_v57 }
  0xc8   : > { %1434 = vmatpush1.bf16.msra.mxu0 %v1967_v58 }
  0xc9   : > { %1435 = vmatprep.subr.bf16.mxu0 %v1972_v59 }
  0xcc   : > { %1436 = vmatpush1.bf16.msra.mxu0 %v1970_v60 }
  0xcd   : > { %1437 = vmatprep.subr.bf16.mxu0 %v1975_v61 }
  0xd0   : > { %1438 = vmatpush1.bf16.msra.mxu0 %v1973_v62 }
  0xd1   : > { %1439 = vmatprep.subr.bf16.mxu0 %v1978_v63 }
  0xd4   : > { %1440 = vmatpush1.bf16.msra.mxu0 %v1976_v0 }
  0xd5   : > { %1441 = vmatprep.subr.bf16.mxu0 %v1981_v1 }
  0xd8   : > { %1442 = vmatpush1.bf16.msra.mxu0 %v1979_v2 }
  0xd9   : > { %1443 = vmatprep.subr.bf16.mxu0 %v1984_v3 }
  0xdc   : > { %1444 = vmatpush1.bf16.msra.mxu0 %v1982_v4 }
  0xdd   : > { %1445 = vmatprep.subr.bf16.mxu0 %v1987_v5 }
  0xe0   : > { %1446 = vmatpush1.bf16.msra.mxu0 %v1985_v6 }
  0xe1   : > { %1447 = vmatprep.subr.bf16.mxu0 %v1990_v7 }
  0xe4   : > { %1448 = vmatpush1.bf16.msra.mxu0 %v1988_v8 }
  0xe7   : > { %1450 = vmatmul.mubr.bf16.vlgmr.msra.gmra.mrb[4].mxu0 %v1664_v9 }
 0x17a   : > { %v1369_v10 = vpop.f32.mrb[0].mxu0 }
 0x17b   : > { %v1410_v11 = vpop.f32.mrb[0].mxu1  ;;  %v1371_v13 = vpop.f32.mrb[1].mxu0 }
 0x17c   : > { %v1411_v12 = vadd.f32 %v1410_v11, %v1369_v10  ;;  %v1412_v14 = vpop.f32.mrb[1].mxu1  ;;  %v1373_v16 = vpop.f32.mrb[2].mxu0 }
 0x17d   : > { %v1413_v15 = vadd.f32 %v1412_v14, %v1371_v13  ;;  %v1414_v17 = vpop.f32.mrb[2].mxu1  ;;  %v1374_v18 = vpop.f32.mrb[3].mxu0 }
 0x17e   : > { %v1415_v19 = vpop.f32.mrb[3].mxu1 }
 0x1ba   : > { %v1451_v21 = vpop.f32.mrb[4].mxu0  ;;  %1465 = sbr.rel (%p1762_p1) target bundleno = 461 (0x1cd), region = 78 }
 0x1bb   : > { %v1452_v22 = vadd.f32 %v1451_v21, %v1411_v12  ;;  %v1453_v24 = vpop.f32.mrb[5].mxu0 }
 0x1bc   : > { %v1454_v25 = vadd.f32 %v1453_v24, %v1413_v15  ;;  %v1455_v26 = vpop.f32.mrb[6].mxu0 }
 0x1bd   : > { %v1458_v27 = vadd.f32 %v1452_v22, %v733_v20  ;;  %v1456_v28 = vpop.f32.mrb[7].mxu0 }
 0x1be   : > { %v1459_v29 = vadd.f32 %v1454_v25, %v734_v23 }
 0x1bf   : > { %1460 = vst [vmem:[#allocation2] sm:$0xff] %v1458_v27 }
 0x1c0   : > { %1461 = vst [vmem:[#allocation2 + $0x8] sm:$0xff] %v1459_v29 }
 0x1c6   : > { %v1466_v35 = vld [vmem:[#allocation2] sm:$0xff] }
 0x1c7   : > { %v1467_v36 = vld [vmem:[#allocation2 + $0x8] sm:$0xff]  ;;  %v1480_v39 = vadd.f32 %v1473_v37, %v1466_v35 }
 0x1c8   : > { %v1481_v40 = vadd.f32 %v1477_v38, %v1467_v36 }
 0x1c9   : > { %v1482_v41 = vmax.f32 %v1480_v39, 0.0 }
 0x1ca   : > { %v1483_v42 = vmax.f32 %v1481_v40, 0.0 }
 0x1cb   : > { %1484 = vst [vmem:[%s2387_s16] sm:$0xff] %v1482_v41 }
 0x1cc   : > { %1485 = vst [vmem:[%s2387_s16 + $0x8] sm:$0xff] %v1483_v42 }
 0x1cd PF: > { %s13_s20 = sadd.s32 1, %s2063_s20   ;;  %s2539_s12 = smov %s2035_s13 }
 0x1ce   : > { %p10_p2 = scmp.ge.s32.totalorder %s13_s20, 14   ;;  %s2540_s13 = smov %s2157_s4 }
 0x1cf   : > { %s2541_s14 = smov %s2051_s17  ;;  %s2542_s15 = smov %s2055_s18 }
 0x1d0   : > { %s2543_s16 = smov %s2059_s19  ;;  %s2544_s17 = smov %s2550_s21 }
 0x1d1   : > { %s2545_s18 = smov %s2554_s22  ;;  %s2546_s19 = smov %s2556_s23 }
 0x1d2   :  { %12 = sbr.rel (!%p10_p2) target bundleno = 7 (0x7), region = 119 }

// kernel: encoder_forward.36
= control target key start
LH: loop header
LB: loop body
LE: loop exit
PB: predicated region body
PF: predicated region fallthrough
CT: control target
= control target key end

     0   :  { %s1137_s12 = smov 0   ;;  %s1139_s13 = smov 0   ;;  %s1339_s0 = inlined_call_operand.vmem [shape: bf16[2,8,256], index: 0, kind: input, shape index: {}]   ;;  %s1340_s1 = inlined_call_operand.vmem [shape: bf16[2,256,512], index: 1, kind: input, shape index: {}]   ;;  %s1341_s2 = inlined_call_operand.vmem [shape: f32[2,1,512], index: 2, kind: input, shape index: {}]   ;;  %s1342_s3 = inlined_call_operand.vmem [shape: f32[2,8,512], index: 3, kind: output, shape index: {}]  }
   0x1   :  { %s1141_s14 = smov 0   ;;  %s1143_s15 = smov 0  }
   0x2   :  { %s1145_s16 = smov 0   ;;  %s1147_s17 = smov 0  }
   0x3   :  { %s1149_s18 = smov 0  }
   0x4 LB: > { %s31_s19 = sadd.s32 1, %s1107_s16  ;;  %s39_s20 = sadd.s32 1, %s1111_s17  ;;  %s1115_s18 = sphi %s1149_s18, %s13_s18   ;;  %s1111_s17 = sphi %s1147_s17, %s1348_s17   ;;  %s1107_s16 = sphi %s1145_s16, %s1347_s16   ;;  %s1103_s15 = sphi %s1143_s15, %s1346_s15   ;;  %s1099_s14 = sphi %s1141_s14, %s1345_s14   ;;  %s1095_s13 = sphi %s1139_s13, %s1344_s13   ;;  %s1091_s12 = sphi %s1137_s12, %s1343_s12  }
   0x5   : > { %p33_p0 = scmp.ge.s32.totalorder %s31_s19, 2  ;;  %p87_p1 = scmp.ne.s32.totalorder %s1095_s13, %s1091_s12 }
   0x6   : > { %p88_p2 = scmp.eq.s32.totalorder %s1115_s18, 0  ;;  %s80_s24 = sadd.s32 1, %s1095_s13 }
   0x7   : > { %s1350_s19 = smov (%p33_p0, %s31_s19), 0  ;;  %s1352_s20 = smov (!%p33_p0, %s39_s20), %s1111_s17 }
   0x8   : > { %p89_p3 = por %p88_p2, %p87_p1  ;;  %p41_p4 = scmp.ge.s32.totalorder %s1352_s20, 2 }
   0x9   : > { %s76_s21 = ssub.s32 %s1107_s16, %s1350_s19  ;;  %p904_p6 = scmp.ge.s32.totalorder %s1115_s18, 4 }
   0xa   : > { %s1354_s20 = smov (%p41_p4, %s1352_s20), 0 }
   0xb   : > { %s73_s22 = ssub.s32 %s1111_s17, %s1354_s20  ;;  %171 = sbr.rel (%p904_p6) target bundleno = 41 (0x29), region = 16 }
   0xc   : > { %s77_s23 = sor.u32 %s76_s21, %s73_s22 }
   0xd   : > { %p78_p5 = scmp.eq.s32.totalorder %s77_s23, 0 }
   0xf   : > { %s1188_s25 = scalar_select %p78_p5, %s1095_s13, %s80_s24  }
  0x12   : > { %191 = sbr.rel (!%p89_p3) target bundleno = 41 (0x29), region = 24  ;;  %s193_s26 = sand.u32 (%p89_p3), 1, %s1095_s13  }
  0x13   : > { %s906_s27 = sshll.u32 (%p89_p3), %s1107_s16, 1  ;;  %s905_s28 = sshll.u32 (%p89_p3), %s193_s26, 8 }
  0x14   : > { %s907_s29 = sshll.u32 (%p89_p3), %s1111_s17, 7  ;;  %s1202_s8 = scalar_lea.vmem (%p89_p3), [#allocation3], %s905_s28 }
  0x15   : > { %s201_s30 = sadd.s32 (%p89_p3), %s907_s29, %s906_s27 }
  0x16   : > { %s908_s4 = sshll.u32 (%p89_p3), %s201_s30, 2 }
  0x17   : > { %s1197_s7 = scalar_lea.vmem (%p89_p3), %s1340_s1, %s908_s4 }
  0x18   : > { %v293_v0 = vld [vmem:[%s1197_s7] sm:$0xff] (%p89_p3)  ;;  %v295_v1 = vld [vmem:[%s1197_s7 + $0x10] sm:$0xff] (%p89_p3) }
  0x19   : > { %v297_v2 = vld [vmem:[%s1197_s7 + $0x20] sm:$0xff]  ;;  %294 = vst [vmem:[%s1202_s8] sm:$0xff] %v293_v0  ;;  %296 = vst [vmem:[%s1202_s8 + $0x8] sm:$0xff] %v295_v1  ;;  %v299_v3 = vld [vmem:[%s1197_s7 + $0x30] sm:$0xff] }
  0x1a   : > { %298 = vst [vmem:[%s1202_s8 + $0x10] sm:$0xff] %v297_v2  ;;  %v301_v4 = vld [vmem:[%s1197_s7 + $0x40] sm:$0xff]  ;;  %v303_v5 = vld [vmem:[%s1197_s7 + $0x50] sm:$0xff]  ;;  %300 = vst [vmem:[%s1202_s8 + $0x18] sm:$0xff] %v299_v3 }
  0x1b   : > { %302 = vst [vmem:[%s1202_s8 + $0x20] sm:$0xff] %v301_v4  ;;  %304 = vst [vmem:[%s1202_s8 + $0x28] sm:$0xff] %v303_v5  ;;  %v305_v6 = vld [vmem:[%s1197_s7 + $0x60] sm:$0xff]  ;;  %v307_v7 = vld [vmem:[%s1197_s7 + $0x70] sm:$0xff] }
  0x1c   : > { %v309_v8 = vld [vmem:[%s1197_s7 + $0x80] sm:$0xff]  ;;  %306 = vst [vmem:[%s1202_s8 + $0x30] sm:$0xff] %v305_v6  ;;  %308 = vst [vmem:[%s1202_s8 + $0x38] sm:$0xff] %v307_v7  ;;  %v311_v9 = vld [vmem:[%s1197_s7 + $0x90] sm:$0xff] }
  0x1d   : > { %310 = vst [vmem:[%s1202_s8 + $0x40] sm:$0xff] %v309_v8  ;;  %v313_v10 = vld [vmem:[%s1197_s7 + $0xa0] sm:$0xff]  ;;  %v315_v11 = vld [vmem:[%s1197_s7 + $0xb0] sm:$0xff]  ;;  %312 = vst [vmem:[%s1202_s8 + $0x48] sm:$0xff] %v311_v9 }
  0x1e   : > { %314 = vst [vmem:[%s1202_s8 + $0x50] sm:$0xff] %v313_v10  ;;  %316 = vst [vmem:[%s1202_s8 + $0x58] sm:$0xff] %v315_v11  ;;  %v317_v12 = vld [vmem:[%s1197_s7 + $0xc0] sm:$0xff]  ;;  %v319_v13 = vld [vmem:[%s1197_s7 + $0xd0] sm:$0xff] }
  0x1f   : > { %v321_v14 = vld [vmem:[%s1197_s7 + $0xe0] sm:$0xff]  ;;  %318 = vst [vmem:[%s1202_s8 + $0x60] sm:$0xff] %v317_v12  ;;  %320 = vst [vmem:[%s1202_s8 + $0x68] sm:$0xff] %v319_v13  ;;  %v323_v15 = vld [vmem:[%s1197_s7 + $0xf0] sm:$0xff] }
  0x20   : > { %322 = vst [vmem:[%s1202_s8 + $0x70] sm:$0xff] %v321_v14  ;;  %v325_v16 = vld [vmem:[%s1197_s7 + $0x100] sm:$0xff]  ;;  %v327_v17 = vld [vmem:[%s1197_s7 + $0x110] sm:$0xff]  ;;  %324 = vst [vmem:[%s1202_s8 + $0x78] sm:$0xff] %v323_v15 }
  0x21   : > { %326 = vst [vmem:[%s1202_s8 + $0x80] sm:$0xff] %v325_v16  ;;  %328 = vst [vmem:[%s1202_s8 + $0x88] sm:$0xff] %v327_v17  ;;  %v329_v18 = vld [vmem:[%s1197_s7 + $0x120] sm:$0xff]  ;;  %v331_v19 = vld [vmem:[%s1197_s7 + $0x130] sm:$0xff] }
  0x22   : > { %v333_v20 = vld [vmem:[%s1197_s7 + $0x140] sm:$0xff]  ;;  %330 = vst [vmem:[%s1202_s8 + $0x90] sm:$0xff] %v329_v18  ;;  %332 = vst [vmem:[%s1202_s8 + $0x98] sm:$0xff] %v331_v19  ;;  %v335_v21 = vld [vmem:[%s1197_s7 + $0x150] sm:$0xff] }
  0x23   : > { %334 = vst [vmem:[%s1202_s8 + $0xa0] sm:$0xff] %v333_v20  ;;  %v337_v22 = vld [vmem:[%s1197_s7 + $0x160] sm:$0xff]  ;;  %v339_v23 = vld [vmem:[%s1197_s7 + $0x170] sm:$0xff]  ;;  %336 = vst [vmem:[%s1202_s8 + $0xa8] sm:$0xff] %v335_v21 }
  0x24   : > { %338 = vst [vmem:[%s1202_s8 + $0xb0] sm:$0xff] %v337_v22  ;;  %340 = vst [vmem:[%s1202_s8 + $0xb8] sm:$0xff] %v339_v23  ;;  %v341_v24 = vld [vmem:[%s1197_s7 + $0x180] sm:$0xff]  ;;  %v343_v25 = vld [vmem:[%s1197_s7 + $0x190] sm:$0xff] }
  0x25   : > { %v345_v26 = vld [vmem:[%s1197_s7 + $0x1a0] sm:$0xff]  ;;  %342 = vst [vmem:[%s1202_s8 + $0xc0] sm:$0xff] %v341_v24  ;;  %344 = vst [vmem:[%s1202_s8 + $0xc8] sm:$0xff] %v343_v25  ;;  %v347_v27 = vld [vmem:[%s1197_s7 + $0x1b0] sm:$0xff] }
  0x26   : > { %346 = vst [vmem:[%s1202_s8 + $0xd0] sm:$0xff] %v345_v26  ;;  %v349_v28 = vld [vmem:[%s1197_s7 + $0x1c0] sm:$0xff]  ;;  %v351_v29 = vld [vmem:[%s1197_s7 + $0x1d0] sm:$0xff]  ;;  %348 = vst [vmem:[%s1202_s8 + $0xd8] sm:$0xff] %v347_v27 }
  0x27   : > { %350 = vst [vmem:[%s1202_s8 + $0xe0] sm:$0xff] %v349_v28  ;;  %352 = vst [vmem:[%s1202_s8 + $0xe8] sm:$0xff] %v351_v29  ;;  %v353_v30 = vld [vmem:[%s1197_s7 + $0x1e0] sm:$0xff]  ;;  %v355_v31 = vld [vmem:[%s1197_s7 + $0x1f0] sm:$0xff] }
  0x28   : > { %354 = vst [vmem:[%s1202_s8 + $0xf0] sm:$0xff] %v353_v30  ;;  %356 = vst [vmem:[%s1202_s8 + $0xf8] sm:$0xff] %v355_v31 }
  0x29 PF: > { %p909_p7 = scmp.ge.s32.totalorder %s1115_s18, 1  ;;  %p373_p8 = scmp.lt.s32.totalorder %s1115_s18, 5 }
  0x2b   : > { %p374_p9 = pnand %p909_p7, %p373_p8 }
  0x2c   : > { %s380_s9 = sand.u32 (!%p374_p9), 1, %s1091_s12   ;;  %p433_p10 = scmp.lt.s32.totalorder (!%p374_p9), %s1103_s15, 1  ;;  %v731_v3 = vlaneseq (!%p374_p9) }
  0x2d   : > { %377 = sbr.rel (%p374_p9) target bundleno = 328 (0x148), region = 66  ;;  %s910_s10 = sshll.u32 (!%p374_p9), %s380_s9, 8 }
  0x2e   : > { %s1268_s11 = scalar_lea.vmem (!%p374_p9), [#allocation3], %s910_s10  ;;  %s913_s24 = sshll.u32 (!%p374_p9), %s1099_s14, 1  ;;  %v732_v4 = vshrl.u32 (!%p374_p9), %v731_v3, 7 }
  0x2f   : > { %v1011_v32 = vld [vmem:[%s1268_s11 + $0x4] ss:$8 sps:$4 sm:$0xff] (!%p374_p9)   ;;  %v1013_v33 = vld [vmem:[%s1268_s11] ss:$8 sps:$4 sm:$0xff] (!%p374_p9)   ;;  %v1014_v34 = vld [vmem:[%s1268_s11 + $0x14] ss:$8 sps:$4 sm:$0xff] (!%p374_p9)  }
  0x30   : > { %679 = vmatprep.subr.bf16.mxu0 (!%p374_p9), %v1011_v32  ;;  %v1016_v35 = vld [vmem:[%s1268_s11 + $0x10] ss:$8 sps:$4 sm:$0xff] (!%p374_p9)   ;;  %v1017_v36 = vld [vmem:[%s1268_s11 + $0x24] ss:$8 sps:$4 sm:$0xff] (!%p374_p9)   ;;  %v1019_v37 = vld [vmem:[%s1268_s11 + $0x20] ss:$8 sps:$4 sm:$0xff] (!%p374_p9)  }
  0x31   : > { %680 = vmatpush1.bf16.msra.mxu0 (!%p374_p9), %v1013_v33  ;;  %v1020_v38 = vld [vmem:[%s1268_s11 + $0x34] ss:$8 sps:$4 sm:$0xff] (!%p374_p9)   ;;  %v1022_v39 = vld [vmem:[%s1268_s11 + $0x30] ss:$8 sps:$4 sm:$0xff] (!%p374_p9)   ;;  %v1023_v40 = vld [vmem:[%s1268_s11 + $0x44] ss:$8 sps:$4 sm:$0xff] (!%p374_p9)  }
  0x32   : > { %681 = vmatprep.subr.bf16.mxu0 (!%p374_p9), %v1014_v34  ;;  %v1025_v41 = vld [vmem:[%s1268_s11 + $0x40] ss:$8 sps:$4 sm:$0xff] (!%p374_p9)   ;;  %v1026_v42 = vld [vmem:[%s1268_s11 + $0x54] ss:$8 sps:$4 sm:$0xff] (!%p374_p9)   ;;  %v1028_v43 = vld [vmem:[%s1268_s11 + $0x50] ss:$8 sps:$4 sm:$0xff] (!%p374_p9)  }
  0x33   : > { %v1029_v44 = vld [vmem:[%s1268_s11 + $0x64] ss:$8 sps:$4 sm:$0xff] (!%p374_p9)   ;;  %v1031_v47 = vld [vmem:[%s1268_s11 + $0x60] ss:$8 sps:$4 sm:$0xff] (!%p374_p9)   ;;  %v1032_v48 = vld [vmem:[%s1268_s11 + $0x74] ss:$8 sps:$4 sm:$0xff] (!%p374_p9)  }
  0x34   : > { %s1356_s15 = smov (!%p433_p10, %s1103_s15), 1  ;;  %v1034_v49 = vld [vmem:[%s1268_s11 + $0x70] ss:$8 sps:$4 sm:$0xff]   ;;  %v1035_v50 = vld [vmem:[%s1268_s11 + $0x84] ss:$8 sps:$4 sm:$0xff]   ;;  %p451_p11 = scmp.lt.s32.totalorder %s913_s24, 3 }
  0x35   : > { %682 = vmatpush1.bf16.msra.mxu0 %v1016_v35  ;;  %s954_s12 = sshll.u32 %s1356_s15, 3  ;;  %v1037_v51 = vld [vmem:[%s1268_s11 + $0x80] ss:$8 sps:$4 sm:$0xff]   ;;  %v1038_v52 = vld [vmem:[%s1268_s11 + $0x94] ss:$8 sps:$4 sm:$0xff]   ;;  %s914_s26 = sshll.u32 %s1356_s15, 2 }
  0x36   : > { %683 = vmatprep.subr.bf16.mxu0 %v1017_v36  ;;  %s444_s23 = scalar_lea.vmem %s1339_s0, %s954_s12  ;;  %v1040_v53 = vld [vmem:[%s1268_s11 + $0x90] ss:$8 sps:$4 sm:$0xff]   ;;  %v1041_v54 = vld [vmem:[%s1268_s11 + $0xa4] ss:$8 sps:$4 sm:$0xff]   ;;  %v1043_v55 = vld [vmem:[%s1268_s11 + $0xa0] ss:$8 sps:$4 sm:$0xff]  }
  0x37   : > { %v479_v45 = vld [vmem:[%s444_s23] sm:$0xff]  ;;  %v1044_v56 = vld [vmem:[%s1268_s11 + $0xb4] ss:$8 sps:$4 sm:$0xff]   ;;  %v1046_v57 = vld [vmem:[%s1268_s11 + $0xb0] ss:$8 sps:$4 sm:$0xff]   ;;  %s1358_s24 = smov (!%p451_p11, %s913_s24), 3 }
  0x38   : > { %v919_v46 = vcombine.high %v479_v45, %v479_v45  ;;  %v1047_v58 = vld [vmem:[%s1268_s11 + $0xc4] ss:$8 sps:$4 sm:$0xff]   ;;  %v1049_v59 = vld [vmem:[%s1268_s11 + $0xc0] ss:$8 sps:$4 sm:$0xff]   ;;  %v1050_v60 = vld [vmem:[%s1268_s11 + $0xd4] ss:$8 sps:$4 sm:$0xff]   ;;  %v918_v2 = vcombine.low %v479_v45, %v479_v45  ;;  %s454_s27 = sadd.s32 %s914_s26, %s1358_s24 }
  0x39   : > { %684 = vmatpush1.bf16.msra.mxu0 %v1019_v37  ;;  %v1052_v61 = vld [vmem:[%s1268_s11 + $0xd0] ss:$8 sps:$4 sm:$0xff]   ;;  %v1053_v62 = vld [vmem:[%s1268_s11 + $0xe4] ss:$8 sps:$4 sm:$0xff]   ;;  %v1055_v63 = vld [vmem:[%s1268_s11 + $0xe0] ss:$8 sps:$4 sm:$0xff]   ;;  %s455_s30 = scalar_lea.vmem %s1341_s2, %s454_s27 }
  0x3a   : > { %685 = vmatprep.subr.bf16.mxu0 %v1020_v38  ;;  %711 = vmatprep.mubr.bf16.mxu0 %v919_v46  ;;  %v1056_v0 = vld [vmem:[%s1268_s11 + $0xf4] ss:$8 sps:$4 sm:$0xff]   ;;  %v1058_v1 = vld [vmem:[%s1268_s11 + $0xf0] ss:$8 sps:$4 sm:$0xff]   ;;  %v733_v5 = vsub.s32 0, %v732_v4  ;;  %v737_v7 = vsub.s32 1, %v732_v4 }
  0x3b   : > { %v729_v6 = vld [vmem:[%s455_s30] sm:$0x3]  ;;  %s917_s4 = sshll.u32 %s454_s27, 3 }
  0x3c   : > { %v734_v8 = vrot.slane %v729_v6, %v733_v5  ;;  %v738_v9 = vrot.slane %v729_v6, %v737_v7  ;;  %s469_s14 = scalar_lea.vmem %s1342_s3, %s917_s4 }
  0x3d   : > { %686 = vmatpush1.bf16.msra.mxu0 %v1022_v39 }
  0x3e   : > { %687 = vmatprep.subr.bf16.mxu0 %v1023_v40 }
  0x41   : > { %688 = vmatpush1.bf16.msra.mxu0 %v1025_v41 }
  0x42   : > { %689 = vmatprep.subr.bf16.mxu0 %v1026_v42 }
  0x45   : > { %690 = vmatpush1.bf16.msra.mxu0 %v1028_v43 }
  0x46   : > { %691 = vmatprep.subr.bf16.mxu0 %v1029_v44 }
  0x49   : > { %692 = vmatpush1.bf16.msra.mxu0 %v1031_v47 }
  0x4a   : > { %693 = vmatprep.subr.bf16.mxu0 %v1032_v48 }
  0x4d   : > { %694 = vmatpush1.bf16.msra.mxu0 %v1034_v49 }
  0x4e   : > { %695 = vmatprep.subr.bf16.mxu0 %v1035_v50 }
  0x51   : > { %696 = vmatpush1.bf16.msra.mxu0 %v1037_v51 }
  0x52   : > { %697 = vmatprep.subr.bf16.mxu0 %v1038_v52 }
  0x55   : > { %698 = vmatpush1.bf16.msra.mxu0 %v1040_v53 }
  0x56   : > { %699 = vmatprep.subr.bf16.mxu0 %v1041_v54 }
  0x59   : > { %700 = vmatpush1.bf16.msra.mxu0 %v1043_v55 }
  0x5a   : > { %701 = vmatprep.subr.bf16.mxu0 %v1044_v56 }
  0x5d   : > { %702 = vmatpush1.bf16.msra.mxu0 %v1046_v57 }
  0x5e   : > { %703 = vmatprep.subr.bf16.mxu0 %v1047_v58 }
  0x61   : > { %704 = vmatpush1.bf16.msra.mxu0 %v1049_v59 }
  0x62   : > { %705 = vmatprep.subr.bf16.mxu0 %v1050_v60 }
  0x65   : > { %706 = vmatpush1.bf16.msra.mxu0 %v1052_v61 }
  0x66   : > { %707 = vmatprep.subr.bf16.mxu0 %v1053_v62 }
  0x69   : > { %708 = vmatpush1.bf16.msra.mxu0 %v1055_v63 }
  0x6a   : > { %709 = vmatprep.subr.bf16.mxu0 %v1056_v0 }
  0x6d   : > { %710 = vmatpush1.bf16.msra.mxu0 %v1058_v1 }
  0x70   : > { %712 = vmatmul.mubr.bf16.vlgmr.msra.gmra.mrb[0].mxu0 %v918_v2 }
 0x143   : > { %v713_v10 = vpop.f32.mrb[0].mxu0 }
 0x144   : > { %v741_v11 = vadd.f32 %v734_v8, %v713_v10  ;;  %v715_v12 = vpop.f32.mrb[1].mxu0 }
 0x145   : > { %v742_v13 = vadd.f32 %v738_v9, %v715_v12  ;;  %v717_v14 = vpop.f32.mrb[2].mxu0 }
 0x146   : > { %743 = vst [vmem:[%s469_s14] sm:$0xff] %v741_v11  ;;  %v718_v15 = vpop.f32.mrb[3].mxu0 }
 0x147   : > { %744 = vst [vmem:[%s469_s14 + $0x8] sm:$0xff] %v742_v13 }
 0x148 PF: > { %s13_s18 = sadd.s32 1, %s1115_s18   ;;  %s1343_s12 = smov %s1095_s13 }
 0x149   : > { %p10_p12 = scmp.ge.s32.totalorder %s13_s18, 6   ;;  %s1344_s13 = smov %s1188_s25 }
 0x14a   : > { %s1345_s14 = smov %s1107_s16  ;;  %s1346_s15 = smov %s1111_s17 }
 0x14b   : > { %s1347_s16 = smov %s1350_s19  ;;  %s1348_s17 = smov %s1354_s20 }
 0x14c   :  { %12 = sbr.rel (!%p10_p12) target bundleno = 4 (0x4), region = 119 }

// kernel: encoder_forward.38
= control target key start
LH: loop header
LB: loop body
LE: loop exit
PB: predicated region body
PF: predicated region fallthrough
CT: control target
= control target key end

     0   :  { %s2652_s0 = inlined_call_operand.vmem [shape: bf16[2,8,4608], index: 0, kind: input, shape index: {}]   ;;  %s2653_s1 = inlined_call_operand.vmem [shape: bf16[2,4608,512], index: 1, kind: input, shape index: {}]   ;;  %s2654_s2 = inlined_call_operand.vmem [shape: f32[2,1,512], index: 2, kind: input, shape index: {}]   ;;  %s2655_s3 = inlined_call_operand.vmem [shape: f32[2,8,512], index: 3, kind: input, shape index: {}]   ;;  %s2656_s4 = inlined_call_operand.vmem [shape: f32[2,8,512], index: 4, kind: output, shape index: {}]  }
   0x1   :  { %2658 = sst [smem:[#allocation5_spill]] %s2653_s1 }
   0x2   :  { %s2199_s15 = smov 0   ;;  %s2201_s16 = smov 0  }
   0x3   :  { %s2203_s17 = smov 0   ;;  %s2205_s18 = smov 0  }
   0x4   :  { %s2207_s19 = smov 0   ;;  %s2209_s20 = smov 0  }
   0x5   :  { %s2211_s21 = smov 0   ;;  %s2213_s22 = smov 0  }
   0x6   :  { %s2215_s23 = smov 0  }
   0x7 LB: > { %s29_s24 = sadd.s32 1, %s2159_s20  ;;  %s32_s25 = sadd.s32 1, %s2163_s21  ;;  %s2171_s23 = sphi %s2215_s23, %s14_s23   ;;  %s2167_s22 = sphi %s2213_s22, %s2670_s22   ;;  %s2163_s21 = sphi %s2211_s21, %s2669_s21   ;;  %s2159_s20 = sphi %s2209_s20, %s2668_s20   ;;  %s2155_s19 = sphi %s2207_s19, %s2667_s19   ;;  %s2151_s18 = sphi %s2205_s18, %s2666_s18   ;;  %s2147_s17 = sphi %s2203_s17, %s2665_s17   ;;  %s2143_s16 = sphi %s2201_s16, %s2664_s16   ;;  %s2139_s15 = sphi %s2199_s15, %s2663_s15  }
   0x8   : > { %p30_p0 = scmp.ge.s32.totalorder %s29_s24, 6  ;;  %p88_p1 = scmp.ne.s32.totalorder %s2143_s16, %s2139_s15 }
   0x9   : > { %p89_p2 = scmp.eq.s32.totalorder %s2171_s23, 0  ;;  %s40_s26 = sadd.s32 1, %s2167_s22 }
   0xa   : > { %s2672_s25 = smov (!%p30_p0, %s32_s25), %s2163_s21  ;;  %s2674_s24 = smov (%p30_p0, %s29_s24), 0 }
   0xb   : > { %p34_p3 = scmp.ge.s32.totalorder %s2672_s25, 2  ;;  %p2251_p4 = por %p89_p2, %p88_p1 }
   0xc   : > { %s75_s28 = ssub.s32 %s2159_s20, %s2674_s24  ;;  %s81_s7 = sadd.s32 1, %s2143_s16 }
   0xd   : > { %s2676_s26 = smov (!%p34_p3, %s40_s26), %s2167_s22  ;;  %s2678_s25 = smov (%p34_p3, %s2672_s25), 0 }
   0xe   : > { %p42_p5 = scmp.ge.s32.totalorder %s2676_s26, 2  ;;  %s77_s29 = ssub.s32 %s2163_s21, %s2678_s25 }
   0xf   : > { %p1753_p7 = scmp.ge.s32.totalorder %s2171_s23, 24 }
  0x10   : > { %s2680_s26 = smov (%p42_p5, %s2676_s26), 0 }
  0x11   : > { %2660 = sst [smem:[#allocation4_spill]] %s2680_s26  ;;  %s74_s30 = ssub.s32 %s2167_s22, %s2680_s26 }
  0x12   : > { %s76_s5 = sor.u32 %s75_s28, %s74_s30  ;;  %202 = sbr.rel (%p1753_p7) target bundleno = 83 (0x53), region = 16 }
  0x13   : > { %s78_s6 = sor.u32 %s77_s29, %s76_s5 }
  0x14   : > { %p79_p6 = scmp.eq.s32.totalorder %s78_s6, 0 }
  0x16   : > { %s2270_s8 = scalar_select %p79_p6, %s2143_s16, %s81_s7  }
  0x19   : > { %222 = sbr.rel (!%p2251_p4) target bundleno = 83 (0x53), region = 24  ;;  %s224_s9 = sand.u32 (%p2251_p4), 1, %s2143_s16  }
  0x1a   : > { %s1874_s10 = smul.u32 (%p2251_p4), 768, %s224_s9  ;;  %s1754_s11 = sshll.u32 (%p2251_p4), %s2163_s21, 1 }
  0x1b   : > { %s1873_s12 = smul.u32 (%p2251_p4), 384, %s2159_s20  ;;  %s2661_s1 = sld [smem:[#allocation5_spill]] (%p2251_p4) }
  0x1c   : > { %s1875_s13 = smul.u32 (%p2251_p4), 2304, %s2167_s22  ;;  %s2287_s27 = scalar_lea.vmem (%p2251_p4), [#allocation3], %s1874_s10 }
  0x1d   : > { %s230_s14 = sadd.s32 (%p2251_p4), %s1873_s12, %s1754_s11 }
  0x1e   : > { %s232_s28 = sadd.s32 (%p2251_p4), %s1875_s13, %s230_s14 }
  0x1f   : > { %s1756_s29 = sshll.u32 (%p2251_p4), %s232_s28, 2 }
  0x21   : > { %s2282_s6 = scalar_lea.vmem %s2661_s1, %s1756_s29 }
  0x22   : > { %v452_v0 = vld [vmem:[%s2282_s6] sm:$0xff]  ;;  %v454_v1 = vld [vmem:[%s2282_s6 + $0x10] sm:$0xff] }
  0x23   : > { %v456_v2 = vld [vmem:[%s2282_s6 + $0x20] sm:$0xff]  ;;  %453 = vst [vmem:[%s2287_s27] sm:$0xff] %v452_v0  ;;  %455 = vst [vmem:[%s2287_s27 + $0x8] sm:$0xff] %v454_v1  ;;  %v458_v3 = vld [vmem:[%s2282_s6 + $0x30] sm:$0xff] }
  0x24   : > { %457 = vst [vmem:[%s2287_s27 + $0x10] sm:$0xff] %v456_v2  ;;  %v460_v4 = vld [vmem:[%s2282_s6 + $0x40] sm:$0xff]  ;;  %v462_v5 = vld [vmem:[%s2282_s6 + $0x50] sm:$0xff]  ;;  %459 = vst [vmem:[%s2287_s27 + $0x18] sm:$0xff] %v458_v3 }
  0x25   : > { %461 = vst [vmem:[%s2287_s27 + $0x20] sm:$0xff] %v460_v4  ;;  %463 = vst [vmem:[%s2287_s27 + $0x28] sm:$0xff] %v462_v5  ;;  %v464_v6 = vld [vmem:[%s2282_s6 + $0x60] sm:$0xff]  ;;  %v466_v7 = vld [vmem:[%s2282_s6 + $0x70] sm:$0xff] }
  0x26   : > { %v468_v8 = vld [vmem:[%s2282_s6 + $0x80] sm:$0xff]  ;;  %465 = vst [vmem:[%s2287_s27 + $0x30] sm:$0xff] %v464_v6  ;;  %467 = vst [vmem:[%s2287_s27 + $0x38] sm:$0xff] %v466_v7  ;;  %v470_v9 = vld [vmem:[%s2282_s6 + $0x90] sm:$0xff] }
  0x27   : > { %469 = vst [vmem:[%s2287_s27 + $0x40] sm:$0xff] %v468_v8  ;;  %v472_v10 = vld [vmem:[%s2282_s6 + $0xa0] sm:$0xff]  ;;  %v474_v11 = vld [vmem:[%s2282_s6 + $0xb0] sm:$0xff]  ;;  %471 = vst [vmem:[%s2287_s27 + $0x48] sm:$0xff] %v470_v9 }
  0x28   : > { %473 = vst [vmem:[%s2287_s27 + $0x50] sm:$0xff] %v472_v10  ;;  %475 = vst [vmem:[%s2287_s27 + $0x58] sm:$0xff] %v474_v11  ;;  %v476_v12 = vld [vmem:[%s2282_s6 + $0xc0] sm:$0xff]  ;;  %v478_v13 = vld [vmem:[%s2282_s6 + $0xd0] sm:$0xff] }
  0x29   : > { %v480_v14 = vld [vmem:[%s2282_s6 + $0xe0] sm:$0xff]  ;;  %477 = vst [vmem:[%s2287_s27 + $0x60] sm:$0xff] %v476_v12  ;;  %479 = vst [vmem:[%s2287_s27 + $0x68] sm:$0xff] %v478_v13  ;;  %v482_v15 = vld [vmem:[%s2282_s6 + $0xf0] sm:$0xff] }
  0x2a   : > { %481 = vst [vmem:[%s2287_s27 + $0x70] sm:$0xff] %v480_v14  ;;  %v484_v16 = vld [vmem:[%s2282_s6 + $0x100] sm:$0xff]  ;;  %v486_v17 = vld [vmem:[%s2282_s6 + $0x110] sm:$0xff]  ;;  %483 = vst [vmem:[%s2287_s27 + $0x78] sm:$0xff] %v482_v15 }
  0x2b   : > { %485 = vst [vmem:[%s2287_s27 + $0x80] sm:$0xff] %v484_v16  ;;  %487 = vst [vmem:[%s2287_s27 + $0x88] sm:$0xff] %v486_v17  ;;  %v488_v18 = vld [vmem:[%s2282_s6 + $0x120] sm:$0xff]  ;;  %v490_v19 = vld [vmem:[%s2282_s6 + $0x130] sm:$0xff] }
  0x2c   : > { %v492_v20 = vld [vmem:[%s2282_s6 + $0x140] sm:$0xff]  ;;  %489 = vst [vmem:[%s2287_s27 + $0x90] sm:$0xff] %v488_v18  ;;  %491 = vst [vmem:[%s2287_s27 + $0x98] sm:$0xff] %v490_v19  ;;  %v494_v21 = vld [vmem:[%s2282_s6 + $0x150] sm:$0xff] }
  0x2d   : > { %493 = vst [vmem:[%s2287_s27 + $0xa0] sm:$0xff] %v492_v20  ;;  %v496_v22 = vld [vmem:[%s2282_s6 + $0x160] sm:$0xff]  ;;  %v498_v23 = vld [vmem:[%s2282_s6 + $0x170] sm:$0xff]  ;;  %495 = vst [vmem:[%s2287_s27 + $0xa8] sm:$0xff] %v494_v21 }
  0x2e   : > { %497 = vst [vmem:[%s2287_s27 + $0xb0] sm:$0xff] %v496_v22  ;;  %499 = vst [vmem:[%s2287_s27 + $0xb8] sm:$0xff] %v498_v23  ;;  %v500_v24 = vld [vmem:[%s2282_s6 + $0x180] sm:$0xff]  ;;  %v502_v25 = vld [vmem:[%s2282_s6 + $0x190] sm:$0xff] }
  0x2f   : > { %v504_v26 = vld [vmem:[%s2282_s6 + $0x1a0] sm:$0xff]  ;;  %501 = vst [vmem:[%s2287_s27 + $0xc0] sm:$0xff] %v500_v24  ;;  %503 = vst [vmem:[%s2287_s27 + $0xc8] sm:$0xff] %v502_v25  ;;  %v506_v27 = vld [vmem:[%s2282_s6 + $0x1b0] sm:$0xff] }
  0x30   : > { %505 = vst [vmem:[%s2287_s27 + $0xd0] sm:$0xff] %v504_v26  ;;  %v508_v28 = vld [vmem:[%s2282_s6 + $0x1c0] sm:$0xff]  ;;  %v510_v29 = vld [vmem:[%s2282_s6 + $0x1d0] sm:$0xff]  ;;  %507 = vst [vmem:[%s2287_s27 + $0xd8] sm:$0xff] %v506_v27 }
  0x31   : > { %509 = vst [vmem:[%s2287_s27 + $0xe0] sm:$0xff] %v508_v28  ;;  %511 = vst [vmem:[%s2287_s27 + $0xe8] sm:$0xff] %v510_v29  ;;  %v512_v30 = vld [vmem:[%s2282_s6 + $0x1e0] sm:$0xff]  ;;  %v514_v31 = vld [vmem:[%s2282_s6 + $0x1f0] sm:$0xff] }
  0x32   : > { %v516_v32 = vld [vmem:[%s2282_s6 + $0x200] sm:$0xff]  ;;  %513 = vst [vmem:[%s2287_s27 + $0xf0] sm:$0xff] %v512_v30  ;;  %515 = vst [vmem:[%s2287_s27 + $0xf8] sm:$0xff] %v514_v31  ;;  %v518_v33 = vld [vmem:[%s2282_s6 + $0x210] sm:$0xff] }
  0x33   : > { %517 = vst [vmem:[%s2287_s27 + $0x100] sm:$0xff] %v516_v32  ;;  %v520_v34 = vld [vmem:[%s2282_s6 + $0x220] sm:$0xff]  ;;  %v522_v35 = vld [vmem:[%s2282_s6 + $0x230] sm:$0xff]  ;;  %519 = vst [vmem:[%s2287_s27 + $0x108] sm:$0xff] %v518_v33 }
  0x34   : > { %521 = vst [vmem:[%s2287_s27 + $0x110] sm:$0xff] %v520_v34  ;;  %523 = vst [vmem:[%s2287_s27 + $0x118] sm:$0xff] %v522_v35  ;;  %v524_v36 = vld [vmem:[%s2282_s6 + $0x240] sm:$0xff]  ;;  %v526_v37 = vld [vmem:[%s2282_s6 + $0x250] sm:$0xff] }
  0x35   : > { %v528_v38 = vld [vmem:[%s2282_s6 + $0x260] sm:$0xff]  ;;  %525 = vst [vmem:[%s2287_s27 + $0x120] sm:$0xff] %v524_v36  ;;  %527 = vst [vmem:[%s2287_s27 + $0x128] sm:$0xff] %v526_v37  ;;  %v530_v39 = vld [vmem:[%s2282_s6 + $0x270] sm:$0xff] }
  0x36   : > { %529 = vst [vmem:[%s2287_s27 + $0x130] sm:$0xff] %v528_v38  ;;  %v532_v40 = vld [vmem:[%s2282_s6 + $0x280] sm:$0xff]  ;;  %v534_v41 = vld [vmem:[%s2282_s6 + $0x290] sm:$0xff]  ;;  %531 = vst [vmem:[%s2287_s27 + $0x138] sm:$0xff] %v530_v39 }
  0x37   : > { %533 = vst [vmem:[%s2287_s27 + $0x140] sm:$0xff] %v532_v40  ;;  %535 = vst [vmem:[%s2287_s27 + $0x148] sm:$0xff] %v534_v41  ;;  %v536_v42 = vld [vmem:[%s2282_s6 + $0x2a0] sm:$0xff]  ;;  %v538_v43 = vld [vmem:[%s2282_s6 + $0x2b0] sm:$0xff] }
  0x38   : > { %v540_v44 = vld [vmem:[%s2282_s6 + $0x2c0] sm:$0xff]  ;;  %537 = vst [vmem:[%s2287_s27 + $0x150] sm:$0xff] %v536_v42  ;;  %539 = vst [vmem:[%s2287_s27 + $0x158] sm:$0xff] %v538_v43  ;;  %v542_v45 = vld [vmem:[%s2282_s6 + $0x2d0] sm:$0xff] }
  0x39   : > { %541 = vst [vmem:[%s2287_s27 + $0x160] sm:$0xff] %v540_v44  ;;  %v544_v46 = vld [vmem:[%s2282_s6 + $0x2e0] sm:$0xff]  ;;  %v546_v47 = vld [vmem:[%s2282_s6 + $0x2f0] sm:$0xff]  ;;  %543 = vst [vmem:[%s2287_s27 + $0x168] sm:$0xff] %v542_v45 }
  0x3a   : > { %545 = vst [vmem:[%s2287_s27 + $0x170] sm:$0xff] %v544_v46  ;;  %547 = vst [vmem:[%s2287_s27 + $0x178] sm:$0xff] %v546_v47  ;;  %v548_v48 = vld [vmem:[%s2282_s6 + $0x300] sm:$0xff]  ;;  %v550_v49 = vld [vmem:[%s2282_s6 + $0x310] sm:$0xff] }
  0x3b   : > { %v552_v50 = vld [vmem:[%s2282_s6 + $0x320] sm:$0xff]  ;;  %549 = vst [vmem:[%s2287_s27 + $0x180] sm:$0xff] %v548_v48  ;;  %551 = vst [vmem:[%s2287_s27 + $0x188] sm:$0xff] %v550_v49  ;;  %v554_v51 = vld [vmem:[%s2282_s6 + $0x330] sm:$0xff] }
  0x3c   : > { %553 = vst [vmem:[%s2287_s27 + $0x190] sm:$0xff] %v552_v50  ;;  %v556_v52 = vld [vmem:[%s2282_s6 + $0x340] sm:$0xff]  ;;  %v558_v53 = vld [vmem:[%s2282_s6 + $0x350] sm:$0xff]  ;;  %555 = vst [vmem:[%s2287_s27 + $0x198] sm:$0xff] %v554_v51 }
  0x3d   : > { %557 = vst [vmem:[%s2287_s27 + $0x1a0] sm:$0xff] %v556_v52  ;;  %559 = vst [vmem:[%s2287_s27 + $0x1a8] sm:$0xff] %v558_v53  ;;  %v560_v54 = vld [vmem:[%s2282_s6 + $0x360] sm:$0xff]  ;;  %v562_v55 = vld [vmem:[%s2282_s6 + $0x370] sm:$0xff] }
  0x3e   : > { %v564_v56 = vld [vmem:[%s2282_s6 + $0x380] sm:$0xff]  ;;  %561 = vst [vmem:[%s2287_s27 + $0x1b0] sm:$0xff] %v560_v54  ;;  %563 = vst [vmem:[%s2287_s27 + $0x1b8] sm:$0xff] %v562_v55  ;;  %v566_v57 = vld [vmem:[%s2282_s6 + $0x390] sm:$0xff] }
  0x3f   : > { %565 = vst [vmem:[%s2287_s27 + $0x1c0] sm:$0xff] %v564_v56  ;;  %v568_v58 = vld [vmem:[%s2282_s6 + $0x3a0] sm:$0xff]  ;;  %v570_v59 = vld [vmem:[%s2282_s6 + $0x3b0] sm:$0xff]  ;;  %567 = vst [vmem:[%s2287_s27 + $0x1c8] sm:$0xff] %v566_v57 }
  0x40   : > { %569 = vst [vmem:[%s2287_s27 + $0x1d0] sm:$0xff] %v568_v58  ;;  %571 = vst [vmem:[%s2287_s27 + $0x1d8] sm:$0xff] %v570_v59  ;;  %v572_v60 = vld [vmem:[%s2282_s6 + $0x3c0] sm:$0xff]  ;;  %v574_v61 = vld [vmem:[%s2282_s6 + $0x3d0] sm:$0xff] }
  0x41   : > { %v576_v62 = vld [vmem:[%s2282_s6 + $0x3e0] sm:$0xff]  ;;  %573 = vst [vmem:[%s2287_s27 + $0x1e0] sm:$0xff] %v572_v60  ;;  %575 = vst [vmem:[%s2287_s27 + $0x1e8] sm:$0xff] %v574_v61  ;;  %v578_v63 = vld [vmem:[%s2282_s6 + $0x3f0] sm:$0xff] }
  0x42   : > { %577 = vst [vmem:[%s2287_s27 + $0x1f0] sm:$0xff] %v576_v62  ;;  %v580_v0 = vld [vmem:[%s2282_s6 + $0x400] sm:$0xff]  ;;  %v582_v1 = vld [vmem:[%s2282_s6 + $0x410] sm:$0xff]  ;;  %579 = vst [vmem:[%s2287_s27 + $0x1f8] sm:$0xff] %v578_v63 }
  0x43   : > { %581 = vst [vmem:[%s2287_s27 + $0x200] sm:$0xff] %v580_v0  ;;  %583 = vst [vmem:[%s2287_s27 + $0x208] sm:$0xff] %v582_v1  ;;  %v584_v2 = vld [vmem:[%s2282_s6 + $0x420] sm:$0xff]  ;;  %v586_v3 = vld [vmem:[%s2282_s6 + $0x430] sm:$0xff] }
  0x44   : > { %v588_v4 = vld [vmem:[%s2282_s6 + $0x440] sm:$0xff]  ;;  %585 = vst [vmem:[%s2287_s27 + $0x210] sm:$0xff] %v584_v2  ;;  %587 = vst [vmem:[%s2287_s27 + $0x218] sm:$0xff] %v586_v3  ;;  %v590_v5 = vld [vmem:[%s2282_s6 + $0x450] sm:$0xff] }
  0x45   : > { %589 = vst [vmem:[%s2287_s27 + $0x220] sm:$0xff] %v588_v4  ;;  %v592_v6 = vld [vmem:[%s2282_s6 + $0x460] sm:$0xff]  ;;  %v594_v7 = vld [vmem:[%s2282_s6 + $0x470] sm:$0xff]  ;;  %591 = vst [vmem:[%s2287_s27 + $0x228] sm:$0xff] %v590_v5 }
  0x46   : > { %593 = vst [vmem:[%s2287_s27 + $0x230] sm:$0xff] %v592_v6  ;;  %595 = vst [vmem:[%s2287_s27 + $0x238] sm:$0xff] %v594_v7  ;;  %v596_v8 = vld [vmem:[%s2282_s6 + $0x480] sm:$0xff]  ;;  %v598_v9 = vld [vmem:[%s2282_s6 + $0x490] sm:$0xff] }
  0x47   : > { %v600_v10 = vld [vmem:[%s2282_s6 + $0x4a0] sm:$0xff]  ;;  %597 = vst [vmem:[%s2287_s27 + $0x240] sm:$0xff] %v596_v8  ;;  %599 = vst [vmem:[%s2287_s27 + $0x248] sm:$0xff] %v598_v9  ;;  %v602_v11 = vld [vmem:[%s2282_s6 + $0x4b0] sm:$0xff] }
  0x48   : > { %601 = vst [vmem:[%s2287_s27 + $0x250] sm:$0xff] %v600_v10  ;;  %v604_v12 = vld [vmem:[%s2282_s6 + $0x4c0] sm:$0xff]  ;;  %v606_v13 = vld [vmem:[%s2282_s6 + $0x4d0] sm:$0xff]  ;;  %603 = vst [vmem:[%s2287_s27 + $0x258] sm:$0xff] %v602_v11 }
  0x49   : > { %605 = vst [vmem:[%s2287_s27 + $0x260] sm:$0xff] %v604_v12  ;;  %607 = vst [vmem:[%s2287_s27 + $0x268] sm:$0xff] %v606_v13  ;;  %v608_v14 = vld [vmem:[%s2282_s6 + $0x4e0] sm:$0xff]  ;;  %v610_v15 = vld [vmem:[%s2282_s6 + $0x4f0] sm:$0xff] }
  0x4a   : > { %v612_v16 = vld [vmem:[%s2282_s6 + $0x500] sm:$0xff]  ;;  %609 = vst [vmem:[%s2287_s27 + $0x270] sm:$0xff] %v608_v14  ;;  %611 = vst [vmem:[%s2287_s27 + $0x278] sm:$0xff] %v610_v15  ;;  %v614_v17 = vld [vmem:[%s2282_s6 + $0x510] sm:$0xff] }
  0x4b   : > { %613 = vst [vmem:[%s2287_s27 + $0x280] sm:$0xff] %v612_v16  ;;  %v616_v18 = vld [vmem:[%s2282_s6 + $0x520] sm:$0xff]  ;;  %v618_v19 = vld [vmem:[%s2282_s6 + $0x530] sm:$0xff]  ;;  %615 = vst [vmem:[%s2287_s27 + $0x288] sm:$0xff] %v614_v17 }
  0x4c   : > { %617 = vst [vmem:[%s2287_s27 + $0x290] sm:$0xff] %v616_v18  ;;  %619 = vst [vmem:[%s2287_s27 + $0x298] sm:$0xff] %v618_v19  ;;  %v620_v20 = vld [vmem:[%s2282_s6 + $0x540] sm:$0xff]  ;;  %v622_v21 = vld [vmem:[%s2282_s6 + $0x550] sm:$0xff] }
  0x4d   : > { %v624_v22 = vld [vmem:[%s2282_s6 + $0x560] sm:$0xff]  ;;  %621 = vst [vmem:[%s2287_s27 + $0x2a0] sm:$0xff] %v620_v20  ;;  %623 = vst [vmem:[%s2287_s27 + $0x2a8] sm:$0xff] %v622_v21  ;;  %v626_v23 = vld [vmem:[%s2282_s6 + $0x570] sm:$0xff] }
  0x4e   : > { %625 = vst [vmem:[%s2287_s27 + $0x2b0] sm:$0xff] %v624_v22  ;;  %v628_v24 = vld [vmem:[%s2282_s6 + $0x580] sm:$0xff]  ;;  %v630_v25 = vld [vmem:[%s2282_s6 + $0x590] sm:$0xff]  ;;  %627 = vst [vmem:[%s2287_s27 + $0x2b8] sm:$0xff] %v626_v23 }
  0x4f   : > { %629 = vst [vmem:[%s2287_s27 + $0x2c0] sm:$0xff] %v628_v24  ;;  %631 = vst [vmem:[%s2287_s27 + $0x2c8] sm:$0xff] %v630_v25  ;;  %v632_v26 = vld [vmem:[%s2282_s6 + $0x5a0] sm:$0xff]  ;;  %v634_v27 = vld [vmem:[%s2282_s6 + $0x5b0] sm:$0xff] }
  0x50   : > { %v636_v28 = vld [vmem:[%s2282_s6 + $0x5c0] sm:$0xff]  ;;  %633 = vst [vmem:[%s2287_s27 + $0x2d0] sm:$0xff] %v632_v26  ;;  %635 = vst [vmem:[%s2287_s27 + $0x2d8] sm:$0xff] %v634_v27  ;;  %v638_v29 = vld [vmem:[%s2282_s6 + $0x5d0] sm:$0xff] }
  0x51   : > { %637 = vst [vmem:[%s2287_s27 + $0x2e0] sm:$0xff] %v636_v28  ;;  %v640_v30 = vld [vmem:[%s2282_s6 + $0x5e0] sm:$0xff]  ;;  %v642_v31 = vld [vmem:[%s2282_s6 + $0x5f0] sm:$0xff]  ;;  %639 = vst [vmem:[%s2287_s27 + $0x2e8] sm:$0xff] %v638_v29 }
  0x52   : > { %641 = vst [vmem:[%s2287_s27 + $0x2f0] sm:$0xff] %v640_v30  ;;  %643 = vst [vmem:[%s2287_s27 + $0x2f8] sm:$0xff] %v642_v31 }
  0x53 PF: > { %p1757_p8 = scmp.ge.s32.totalorder %s2171_s23, 1  ;;  %p677_p9 = scmp.lt.s32.totalorder %s2171_s23, 25 }
  0x55   : > { %p678_p10 = pnand %p1757_p8, %p677_p9 }
  0x56   : > { %s684_s7 = sand.u32 (!%p678_p10), 1, %s2139_s15   ;;  %s751_s9 = smul.u32 (!%p678_p10), 6, %s2147_s17 }
  0x57   : > { %681 = sbr.rel (%p678_p10) target bundleno = 464 (0x1d0), region = 70  ;;  %p752_p11 = scmp.lt.s32.totalorder (!%p678_p10), %s2155_s19, 1 }
  0x58   : > { %s1876_s10 = smul.u32 (!%p678_p10), 768, %s684_s7  ;;  %p756_p12 = scmp.lt.s32.totalorder (!%p678_p10), %s751_s9, 35 }
  0x59   : > { %s1759_s11 = sshll.u32 (!%p678_p10), %s2151_s18, 1  ;;  %p1767_p0 = scmp.ne.s32.totalorder (!%p678_p10), %s2147_s17, 0 }
  0x5a   : > { %p770_p13 = scmp.lt.s32.totalorder (!%p678_p10), %s1759_s11, 3 }
  0x5e   : > { %s2682_s19 = smov (!%p752_p11, %s2155_s19), 1  ;;  %s2684_s9 = smov (!%p756_p12, %s751_s9), 35 }
  0x5f   : > { %s1877_s12 = smul.u32 36, %s2682_s19  ;;  %s1760_s13 = sshll.u32 %s2682_s19, 2  ;;  %v2173_v32 = vmov (!%p1767_p0), 0.0  }
  0x60   : > { %s2686_s11 = smov (!%p770_p13, %s1759_s11), 3  ;;  %807 = sbr.rel (%p1767_p0) target bundleno = 103 (0x67), region = 78 }
  0x61   : > { %s761_s14 = sadd.s32 %s1877_s12, %s2684_s9  ;;  %s2485_s29 = sadd.s32 %s1760_s13, %s2686_s11  ;;  %808 = vst [vmem:[#allocation2] sm:$0xff] (!%p1767_p0), %v2173_v32  ;;  %809 = vst [vmem:[#allocation2 + $0x8] sm:$0xff] (!%p1767_p0), %v2173_v32 }
  0x62   : > { %s1758_s28 = sshll.u32 %s761_s14, 2  ;;  %s774_s18 = scalar_lea.vmem %s2654_s2, %s2485_s29 }
  0x63   : > { %s2490_s15 = scalar_lea.vmem %s2652_s0, %s1758_s28  ;;  %s1763_s7 = sshll.u32 %s2485_s29, 3 }
  0x64   : > { %s2500_s19 = scalar_lea.vmem %s2655_s3, %s1763_s7  ;;  %s2505_s12 = scalar_lea.vmem %s2656_s4, %s1763_s7 }
  0x65   : > { %s2507_s13 = scalar_lea.vmem [#allocation3], %s1876_s10 }
  0x67 PF: > { %v1951_v33 = vld [vmem:[%s2507_s13 + $0x4] ss:$8 sps:$4 sm:$0xff]   ;;  %v1955_v35 = vld [vmem:[%s2507_s13] ss:$8 sps:$4 sm:$0xff]   ;;  %v1957_v37 = vld [vmem:[%s2507_s13 + $0x14] ss:$8 sps:$4 sm:$0xff]  }
  0x68   : > { %v1953_v34 = vld [vmem:[%s2507_s13 + $0x104] ss:$8 sps:$4 sm:$0xff]   ;;  %1412 = vmatprep.subr.bf16.mxu0 %v1951_v33  ;;  %v1956_v36 = vld [vmem:[%s2507_s13 + $0x100] ss:$8 sps:$4 sm:$0xff]   ;;  %v1959_v38 = vld [vmem:[%s2507_s13 + $0x114] ss:$8 sps:$4 sm:$0xff]  }
  0x69   : > { %1453 = vmatprep.subr.bf16.mxu1 %v1953_v34  ;;  %1413 = vmatpush1.bf16.msra.mxu0 %v1955_v35  ;;  %v1961_v39 = vld [vmem:[%s2507_s13 + $0x10] ss:$8 sps:$4 sm:$0xff]   ;;  %v1963_v41 = vld [vmem:[%s2507_s13 + $0x24] ss:$8 sps:$4 sm:$0xff]   ;;  %v1967_v43 = vld [vmem:[%s2507_s13 + $0x20] ss:$8 sps:$4 sm:$0xff]  }
  0x6a   : > { %1454 = vmatpush1.bf16.msra.mxu1 %v1956_v36  ;;  %1414 = vmatprep.subr.bf16.mxu0 %v1957_v37  ;;  %v1962_v40 = vld [vmem:[%s2507_s13 + $0x110] ss:$8 sps:$4 sm:$0xff]   ;;  %v1965_v42 = vld [vmem:[%s2507_s13 + $0x124] ss:$8 sps:$4 sm:$0xff]   ;;  %v1968_v44 = vld [vmem:[%s2507_s13 + $0x120] ss:$8 sps:$4 sm:$0xff]  }
  0x6b   : > { %1455 = vmatprep.subr.bf16.mxu1 %v1959_v38  ;;  %v1969_v45 = vld [vmem:[%s2507_s13 + $0x34] ss:$8 sps:$4 sm:$0xff]   ;;  %v1973_v47 = vld [vmem:[%s2507_s13 + $0x30] ss:$8 sps:$4 sm:$0xff]   ;;  %v1975_v49 = vld [vmem:[%s2507_s13 + $0x44] ss:$8 sps:$4 sm:$0xff]  }
  0x6c   : > { %v1971_v46 = vld [vmem:[%s2507_s13 + $0x134] ss:$8 sps:$4 sm:$0xff]   ;;  %v1974_v48 = vld [vmem:[%s2507_s13 + $0x130] ss:$8 sps:$4 sm:$0xff]   ;;  %v1977_v50 = vld [vmem:[%s2507_s13 + $0x144] ss:$8 sps:$4 sm:$0xff]  }
  0x6d   : > { %1415 = vmatpush1.bf16.msra.mxu0 %v1961_v39  ;;  %v1979_v51 = vld [vmem:[%s2507_s13 + $0x40] ss:$8 sps:$4 sm:$0xff]   ;;  %v1981_v53 = vld [vmem:[%s2507_s13 + $0x54] ss:$8 sps:$4 sm:$0xff]   ;;  %v1985_v55 = vld [vmem:[%s2507_s13 + $0x50] ss:$8 sps:$4 sm:$0xff]  }
  0x6e   : > { %1456 = vmatpush1.bf16.msra.mxu1 %v1962_v40  ;;  %1416 = vmatprep.subr.bf16.mxu0 %v1963_v41  ;;  %v1980_v52 = vld [vmem:[%s2507_s13 + $0x140] ss:$8 sps:$4 sm:$0xff]   ;;  %v1983_v54 = vld [vmem:[%s2507_s13 + $0x154] ss:$8 sps:$4 sm:$0xff]   ;;  %v1986_v56 = vld [vmem:[%s2507_s13 + $0x150] ss:$8 sps:$4 sm:$0xff]  }
  0x6f   : > { %1457 = vmatprep.subr.bf16.mxu1 %v1965_v42  ;;  %v1987_v57 = vld [vmem:[%s2507_s13 + $0x64] ss:$8 sps:$4 sm:$0xff]   ;;  %v1991_v59 = vld [vmem:[%s2507_s13 + $0x60] ss:$8 sps:$4 sm:$0xff]   ;;  %v1993_v61 = vld [vmem:[%s2507_s13 + $0x74] ss:$8 sps:$4 sm:$0xff]  }
  0x70   : > { %v1989_v58 = vld [vmem:[%s2507_s13 + $0x164] ss:$8 sps:$4 sm:$0xff]   ;;  %v1992_v60 = vld [vmem:[%s2507_s13 + $0x160] ss:$8 sps:$4 sm:$0xff]   ;;  %v1995_v62 = vld [vmem:[%s2507_s13 + $0x174] ss:$8 sps:$4 sm:$0xff]  }
  0x71   : > { %1417 = vmatpush1.bf16.msra.mxu0 %v1967_v43  ;;  %v1997_v63 = vld [vmem:[%s2507_s13 + $0x70] ss:$8 sps:$4 sm:$0xff]   ;;  %v1999_v1 = vld [vmem:[%s2507_s13 + $0x84] ss:$8 sps:$4 sm:$0xff]   ;;  %v2003_v3 = vld [vmem:[%s2507_s13 + $0x80] ss:$8 sps:$4 sm:$0xff]  }
  0x72   : > { %1458 = vmatpush1.bf16.msra.mxu1 %v1968_v44  ;;  %1418 = vmatprep.subr.bf16.mxu0 %v1969_v45  ;;  %v1998_v0 = vld [vmem:[%s2507_s13 + $0x170] ss:$8 sps:$4 sm:$0xff]   ;;  %v2001_v2 = vld [vmem:[%s2507_s13 + $0x184] ss:$8 sps:$4 sm:$0xff]   ;;  %v2004_v4 = vld [vmem:[%s2507_s13 + $0x180] ss:$8 sps:$4 sm:$0xff]  }
  0x73   : > { %1459 = vmatprep.subr.bf16.mxu1 %v1971_v46  ;;  %v2005_v5 = vld [vmem:[%s2507_s13 + $0x94] ss:$8 sps:$4 sm:$0xff]   ;;  %v2009_v7 = vld [vmem:[%s2507_s13 + $0x90] ss:$8 sps:$4 sm:$0xff]   ;;  %v2011_v9 = vld [vmem:[%s2507_s13 + $0xa4] ss:$8 sps:$4 sm:$0xff]  }
  0x74   : > { %v2007_v6 = vld [vmem:[%s2507_s13 + $0x194] ss:$8 sps:$4 sm:$0xff]   ;;  %v2010_v8 = vld [vmem:[%s2507_s13 + $0x190] ss:$8 sps:$4 sm:$0xff]   ;;  %v2013_v10 = vld [vmem:[%s2507_s13 + $0x1a4] ss:$8 sps:$4 sm:$0xff]  }
  0x75   : > { %1419 = vmatpush1.bf16.msra.mxu0 %v1973_v47  ;;  %v2015_v11 = vld [vmem:[%s2507_s13 + $0xa0] ss:$8 sps:$4 sm:$0xff]   ;;  %v2017_v13 = vld [vmem:[%s2507_s13 + $0xb4] ss:$8 sps:$4 sm:$0xff]   ;;  %v2021_v18 = vld [vmem:[%s2507_s13 + $0xb0] ss:$8 sps:$4 sm:$0xff]  }
  0x76   : > { %1460 = vmatpush1.bf16.msra.mxu1 %v1974_v48  ;;  %1420 = vmatprep.subr.bf16.mxu0 %v1975_v49  ;;  %v2016_v12 = vld [vmem:[%s2507_s13 + $0x1a0] ss:$8 sps:$4 sm:$0xff]   ;;  %v2019_v14 = vld [vmem:[%s2507_s13 + $0x1b4] ss:$8 sps:$4 sm:$0xff]   ;;  %v2022_v19 = vld [vmem:[%s2507_s13 + $0x1b0] ss:$8 sps:$4 sm:$0xff]  }
  0x77   : > { %1461 = vmatprep.subr.bf16.mxu1 %v1977_v50  ;;  %v812_v15 = vld [vmem:[%s2490_s15] sm:$0xff]  ;;  %v813_v17 = vld [vmem:[%s2490_s15 + $0x8] sm:$0xff]  ;;  %v2023_v21 = vld [vmem:[%s2507_s13 + $0xc4] ss:$8 sps:$4 sm:$0xff]   ;;  %p1870_p1 = scmp.ne.s32.totalorder %s2147_s17, 5 }
  0x78   : > { %v1769_v16 = vcombine.high %v812_v15, %v812_v15  ;;  %v1771_v20 = vcombine.high %v813_v17, %v813_v17  ;;  %v2025_v22 = vld [vmem:[%s2507_s13 + $0x1c4] ss:$8 sps:$4 sm:$0xff]   ;;  %v2027_v23 = vld [vmem:[%s2507_s13 + $0xc0] ss:$8 sps:$4 sm:$0xff]   ;;  %v2029_v25 = vld [vmem:[%s2507_s13 + $0xd4] ss:$8 sps:$4 sm:$0xff]   ;;  %v1768_v38 = vcombine.low %v812_v15, %v812_v15  ;;  %v1770_v39 = vcombine.low %v813_v17, %v813_v17 }
  0x79   : > { %1421 = vmatpush1.bf16.msra.mxu0 %v1979_v51  ;;  %v2028_v24 = vld [vmem:[%s2507_s13 + $0x1c0] ss:$8 sps:$4 sm:$0xff]   ;;  %v2031_v26 = vld [vmem:[%s2507_s13 + $0x1d4] ss:$8 sps:$4 sm:$0xff]   ;;  %v2033_v27 = vld [vmem:[%s2507_s13 + $0xd0] ss:$8 sps:$4 sm:$0xff]  }
  0x7a   : > { %1462 = vmatpush1.bf16.msra.mxu1 %v1980_v52  ;;  %1422 = vmatprep.subr.bf16.mxu0 %v1981_v53  ;;  %v2034_v28 = vld [vmem:[%s2507_s13 + $0x1d0] ss:$8 sps:$4 sm:$0xff]   ;;  %v2035_v29 = vld [vmem:[%s2507_s13 + $0xe4] ss:$8 sps:$4 sm:$0xff]   ;;  %v2039_v31 = vld [vmem:[%s2507_s13 + $0xe0] ss:$8 sps:$4 sm:$0xff]  }
  0x7b   : > { %1463 = vmatprep.subr.bf16.mxu1 %v1983_v54  ;;  %1444 = vmatprep.mubr.bf16.mxu0 %v1769_v16  ;;  %v2037_v30 = vld [vmem:[%s2507_s13 + $0x1e4] ss:$8 sps:$4 sm:$0xff]   ;;  %v2040_v32 = vld [vmem:[%s2507_s13 + $0x1e0] ss:$8 sps:$4 sm:$0xff]   ;;  %v2041_v33 = vld [vmem:[%s2507_s13 + $0xf4] ss:$8 sps:$4 sm:$0xff]  }
  0x7c   : > { %1485 = vmatprep.mubr.bf16.mxu1 %v1771_v20  ;;  %v2043_v34 = vld [vmem:[%s2507_s13 + $0x1f4] ss:$8 sps:$4 sm:$0xff]   ;;  %v2045_v35 = vld [vmem:[%s2507_s13 + $0xf0] ss:$8 sps:$4 sm:$0xff]   ;;  %v2053_v37 = vld [vmem:[%s2507_s13 + $0x204] ss:$8 sps:$4 sm:$0xff]  }
  0x7d   : > { %1423 = vmatpush1.bf16.msra.mxu0 %v1985_v55  ;;  %v2046_v36 = vld [vmem:[%s2507_s13 + $0x1f0] ss:$8 sps:$4 sm:$0xff]   ;;  %v2051_v40 = vld [vmem:[%s2507_s13 + $0x200] ss:$8 sps:$4 sm:$0xff]   ;;  %v2056_v42 = vld [vmem:[%s2507_s13 + $0x214] ss:$8 sps:$4 sm:$0xff]  }
  0x7e   : > { %1464 = vmatpush1.bf16.msra.mxu1 %v1986_v56  ;;  %1424 = vmatprep.subr.bf16.mxu0 %v1987_v57  ;;  %v2579_v41 = vld [vmem:[%s2490_s15 + $0x10] sm:$0xff]  ;;  %v2054_v44 = vld [vmem:[%s2507_s13 + $0x210] ss:$8 sps:$4 sm:$0xff]   ;;  %v2062_v47 = vld [vmem:[%s2507_s13 + $0x234] ss:$8 sps:$4 sm:$0xff]  }
  0x7f   : > { %1465 = vmatprep.subr.bf16.mxu1 %v1989_v58  ;;  %v1773_v43 = vcombine.high %v2579_v41, %v2579_v41  ;;  %v2059_v45 = vld [vmem:[%s2507_s13 + $0x224] ss:$8 sps:$4 sm:$0xff]   ;;  %v2057_v46 = vld [vmem:[%s2507_s13 + $0x220] ss:$8 sps:$4 sm:$0xff]   ;;  %v2060_v48 = vld [vmem:[%s2507_s13 + $0x230] ss:$8 sps:$4 sm:$0xff]  }
  0x80   : > { %v2065_v49 = vld [vmem:[%s2507_s13 + $0x244] ss:$8 sps:$4 sm:$0xff]   ;;  %v2063_v50 = vld [vmem:[%s2507_s13 + $0x240] ss:$8 sps:$4 sm:$0xff]   ;;  %v2068_v51 = vld [vmem:[%s2507_s13 + $0x254] ss:$8 sps:$4 sm:$0xff]  }
  0x81   : > { %1425 = vmatpush1.bf16.msra.mxu0 %v1991_v59  ;;  %v2066_v52 = vld [vmem:[%s2507_s13 + $0x250] ss:$8 sps:$4 sm:$0xff]   ;;  %v2071_v53 = vld [vmem:[%s2507_s13 + $0x264] ss:$8 sps:$4 sm:$0xff]   ;;  %v2069_v54 = vld [vmem:[%s2507_s13 + $0x260] ss:$8 sps:$4 sm:$0xff]  }
  0x82   : > { %1466 = vmatpush1.bf16.msra.mxu1 %v1992_v60  ;;  %1426 = vmatprep.subr.bf16.mxu0 %v1993_v61  ;;  %v2074_v55 = vld [vmem:[%s2507_s13 + $0x274] ss:$8 sps:$4 sm:$0xff]   ;;  %v2072_v56 = vld [vmem:[%s2507_s13 + $0x270] ss:$8 sps:$4 sm:$0xff]   ;;  %v2077_v57 = vld [vmem:[%s2507_s13 + $0x284] ss:$8 sps:$4 sm:$0xff]  }
  0x83   : > { %1467 = vmatprep.subr.bf16.mxu1 %v1995_v62  ;;  %v2075_v58 = vld [vmem:[%s2507_s13 + $0x280] ss:$8 sps:$4 sm:$0xff]   ;;  %v2080_v59 = vld [vmem:[%s2507_s13 + $0x294] ss:$8 sps:$4 sm:$0xff]   ;;  %v2078_v60 = vld [vmem:[%s2507_s13 + $0x290] ss:$8 sps:$4 sm:$0xff]  }
  0x84   : > { %v2083_v61 = vld [vmem:[%s2507_s13 + $0x2a4] ss:$8 sps:$4 sm:$0xff]   ;;  %v2081_v62 = vld [vmem:[%s2507_s13 + $0x2a0] ss:$8 sps:$4 sm:$0xff]   ;;  %v810_v20 = vld [vmem:[#allocation2] sm:$0xff] }
  0x85   : > { %1427 = vmatpush1.bf16.msra.mxu0 %v1997_v63  ;;  %v2086_v63 = vld [vmem:[%s2507_s13 + $0x2b4] ss:$8 sps:$4 sm:$0xff]  }
  0x86   : > { %1468 = vmatpush1.bf16.msra.mxu1 %v1998_v0  ;;  %1428 = vmatprep.subr.bf16.mxu0 %v1999_v1  ;;  %v2084_v0 = vld [vmem:[%s2507_s13 + $0x2b0] ss:$8 sps:$4 sm:$0xff]   ;;  %v2089_v1 = vld [vmem:[%s2507_s13 + $0x2c4] ss:$8 sps:$4 sm:$0xff]  }
  0x87   : > { %1469 = vmatprep.subr.bf16.mxu1 %v2001_v2  ;;  %v2087_v2 = vld [vmem:[%s2507_s13 + $0x2c0] ss:$8 sps:$4 sm:$0xff]  }
  0x89   : > { %1429 = vmatpush1.bf16.msra.mxu0 %v2003_v3  ;;  %v2092_v3 = vld [vmem:[%s2507_s13 + $0x2d4] ss:$8 sps:$4 sm:$0xff]  }
  0x8a   : > { %1470 = vmatpush1.bf16.msra.mxu1 %v2004_v4  ;;  %1430 = vmatprep.subr.bf16.mxu0 %v2005_v5  ;;  %v2090_v4 = vld [vmem:[%s2507_s13 + $0x2d0] ss:$8 sps:$4 sm:$0xff]   ;;  %v2095_v5 = vld [vmem:[%s2507_s13 + $0x2e4] ss:$8 sps:$4 sm:$0xff]  }
  0x8b   : > { %1471 = vmatprep.subr.bf16.mxu1 %v2007_v6  ;;  %v2093_v6 = vld [vmem:[%s2507_s13 + $0x2e0] ss:$8 sps:$4 sm:$0xff]  }
  0x8d   : > { %1431 = vmatpush1.bf16.msra.mxu0 %v2009_v7  ;;  %v2098_v7 = vld [vmem:[%s2507_s13 + $0x2f4] ss:$8 sps:$4 sm:$0xff]  }
  0x8e   : > { %1472 = vmatpush1.bf16.msra.mxu1 %v2010_v8  ;;  %1432 = vmatprep.subr.bf16.mxu0 %v2011_v9  ;;  %v2096_v8 = vld [vmem:[%s2507_s13 + $0x2f0] ss:$8 sps:$4 sm:$0xff]   ;;  %v1772_v9 = vcombine.low %v2579_v41, %v2579_v41 }
  0x8f   : > { %1473 = vmatprep.subr.bf16.mxu1 %v2013_v10 }
  0x91   : > { %1433 = vmatpush1.bf16.msra.mxu0 %v2015_v11 }
  0x92   : > { %1474 = vmatpush1.bf16.msra.mxu1 %v2016_v12  ;;  %1434 = vmatprep.subr.bf16.mxu0 %v2017_v13 }
  0x93   : > { %1475 = vmatprep.subr.bf16.mxu1 %v2019_v14 }
  0x95   : > { %1435 = vmatpush1.bf16.msra.mxu0 %v2021_v18 }
  0x96   : > { %1476 = vmatpush1.bf16.msra.mxu1 %v2022_v19  ;;  %1436 = vmatprep.subr.bf16.mxu0 %v2023_v21 }
  0x97   : > { %1477 = vmatprep.subr.bf16.mxu1 %v2025_v22 }
  0x99   : > { %1437 = vmatpush1.bf16.msra.mxu0 %v2027_v23  ;;  %v811_v23 = vld [vmem:[#allocation2 + $0x8] sm:$0xff] }
  0x9a   : > { %1478 = vmatpush1.bf16.msra.mxu1 %v2028_v24  ;;  %1438 = vmatprep.subr.bf16.mxu0 %v2029_v25 }
  0x9b   : > { %1479 = vmatprep.subr.bf16.mxu1 %v2031_v26 }
  0x9d   : > { %1439 = vmatpush1.bf16.msra.mxu0 %v2033_v27 }
  0x9e   : > { %1480 = vmatpush1.bf16.msra.mxu1 %v2034_v28  ;;  %1440 = vmatprep.subr.bf16.mxu0 %v2035_v29 }
  0x9f   : > { %1481 = vmatprep.subr.bf16.mxu1 %v2037_v30  ;;  %v1547_v30 = vlaneseq (!%p1870_p1) }
  0xa1   : > { %1441 = vmatpush1.bf16.msra.mxu0 %v2039_v31  ;;  %v1548_v31 = vshrl.u32 (!%p1870_p1), %v1547_v30, 7 }
  0xa2   : > { %1482 = vmatpush1.bf16.msra.mxu1 %v2040_v32  ;;  %1442 = vmatprep.subr.bf16.mxu0 %v2041_v33  ;;  %v1545_v32 = vld [vmem:[%s774_s18] sm:$0x3] (!%p1870_p1) }
  0xa3   : > { %1483 = vmatprep.subr.bf16.mxu1 %v2043_v34  ;;  %v1549_v33 = vsub.s32 (!%p1870_p1), 0, %v1548_v31  ;;  %v1553_v34 = vsub.s32 (!%p1870_p1), 1, %v1548_v31 }
  0xa5   : > { %1443 = vmatpush1.bf16.msra.mxu0 %v2045_v35 }
  0xa6   : > { %1484 = vmatpush1.bf16.msra.mxu1 %v2046_v36  ;;  %1494 = vmatprep.subr.bf16.mxu0 %v2053_v37  ;;  %v1550_v37 = vrot.slane (!%p1870_p1), %v1545_v32, %v1549_v33 }
  0xa8   : > { %1445 = vmatmul.mubr.bf16.vlgmr.msra.gmra.mrb[0].mxu0 %v1768_v38  ;;  %v1554_v38 = vrot.slane (!%p1870_p1), %v1545_v32, %v1553_v34 }
  0xa9   : > { %1486 = vmatmul.mubr.bf16.vlgmr.msra.gmra.mrb[0].mxu1 %v1770_v39  ;;  %1495 = vmatpush1.bf16.msra.mxu0 %v2051_v40  ;;  %v1559_v39 = vld [vmem:[%s2500_s19] sm:$0xff] (!%p1870_p1)  ;;  %v1560_v40 = vld [vmem:[%s2500_s19 + $0x8] sm:$0xff] (!%p1870_p1) }
  0xaa   : > { %1526 = vmatprep.mubr.bf16.mxu0 %v1773_v43  ;;  %1496 = vmatprep.subr.bf16.mxu0 %v2056_v42 }
  0xad   : > { %1497 = vmatpush1.bf16.msra.mxu0 %v2054_v44 }
  0xae   : > { %1498 = vmatprep.subr.bf16.mxu0 %v2059_v45 }
  0xb1   : > { %1499 = vmatpush1.bf16.msra.mxu0 %v2057_v46 }
  0xb2   : > { %1500 = vmatprep.subr.bf16.mxu0 %v2062_v47 }
  0xb5   : > { %1501 = vmatpush1.bf16.msra.mxu0 %v2060_v48 }
  0xb6   : > { %1502 = vmatprep.subr.bf16.mxu0 %v2065_v49 }
  0xb9   : > { %1503 = vmatpush1.bf16.msra.mxu0 %v2063_v50 }
  0xba   : > { %1504 = vmatprep.subr.bf16.mxu0 %v2068_v51 }
  0xbd   : > { %1505 = vmatpush1.bf16.msra.mxu0 %v2066_v52 }
  0xbe   : > { %1506 = vmatprep.subr.bf16.mxu0 %v2071_v53 }
  0xc1   : > { %1507 = vmatpush1.bf16.msra.mxu0 %v2069_v54 }
  0xc2   : > { %1508 = vmatprep.subr.bf16.mxu0 %v2074_v55 }
  0xc5   : > { %1509 = vmatpush1.bf16.msra.mxu0 %v2072_v56 }
  0xc6   : > { %1510 = vmatprep.subr.bf16.mxu0 %v2077_v57 }
  0xc9   : > { %1511 = vmatpush1.bf16.msra.mxu0 %v2075_v58 }
  0xca   : > { %1512 = vmatprep.subr.bf16.mxu0 %v2080_v59 }
  0xcd   : > { %1513 = vmatpush1.bf16.msra.mxu0 %v2078_v60 }
  0xce   : > { %1514 = vmatprep.subr.bf16.mxu0 %v2083_v61 }
  0xd1   : > { %1515 = vmatpush1.bf16.msra.mxu0 %v2081_v62 }
  0xd2   : > { %1516 = vmatprep.subr.bf16.mxu0 %v2086_v63 }
  0xd5   : > { %1517 = vmatpush1.bf16.msra.mxu0 %v2084_v0 }
  0xd6   : > { %1518 = vmatprep.subr.bf16.mxu0 %v2089_v1 }
  0xd9   : > { %1519 = vmatpush1.bf16.msra.mxu0 %v2087_v2 }
  0xda   : > { %1520 = vmatprep.subr.bf16.mxu0 %v2092_v3 }
  0xdd   : > { %1521 = vmatpush1.bf16.msra.mxu0 %v2090_v4 }
  0xde   : > { %1522 = vmatprep.subr.bf16.mxu0 %v2095_v5 }
  0xe1   : > { %1523 = vmatpush1.bf16.msra.mxu0 %v2093_v6 }
  0xe2   : > { %1524 = vmatprep.subr.bf16.mxu0 %v2098_v7 }
  0xe5   : > { %1525 = vmatpush1.bf16.msra.mxu0 %v2096_v8 }
  0xe8   : > { %1527 = vmatmul.mubr.bf16.vlgmr.msra.gmra.mrb[4].mxu0 %v1772_v9 }
 0x17b   : > { %v1446_v10 = vpop.f32.mrb[0].mxu0 }
 0x17c   : > { %v1487_v11 = vpop.f32.mrb[0].mxu1  ;;  %v1448_v13 = vpop.f32.mrb[1].mxu0 }
 0x17d   : > { %v1488_v12 = vadd.f32 %v1487_v11, %v1446_v10  ;;  %v1489_v14 = vpop.f32.mrb[1].mxu1  ;;  %v1450_v16 = vpop.f32.mrb[2].mxu0 }
 0x17e   : > { %v1490_v15 = vadd.f32 %v1489_v14, %v1448_v13  ;;  %v1491_v17 = vpop.f32.mrb[2].mxu1  ;;  %v1451_v18 = vpop.f32.mrb[3].mxu0 }
 0x17f   : > { %v1492_v19 = vpop.f32.mrb[3].mxu1 }
 0x1bb   : > { %v1528_v21 = vpop.f32.mrb[4].mxu0  ;;  %1542 = sbr.rel (%p1870_p1) target bundleno = 464 (0x1d0), region = 82 }
 0x1bc   : > { %v1529_v22 = vadd.f32 %v1528_v21, %v1488_v12  ;;  %v1530_v24 = vpop.f32.mrb[5].mxu0 }
 0x1bd   : > { %v1531_v25 = vadd.f32 %v1530_v24, %v1490_v15  ;;  %v1532_v26 = vpop.f32.mrb[6].mxu0 }
 0x1be   : > { %v1535_v27 = vadd.f32 %v1529_v22, %v810_v20  ;;  %v1533_v28 = vpop.f32.mrb[7].mxu0 }
 0x1bf   : > { %v1536_v29 = vadd.f32 %v1531_v25, %v811_v23 }
 0x1c0   : > { %1537 = vst [vmem:[#allocation2] sm:$0xff] %v1535_v27 }
 0x1c1   : > { %1538 = vst [vmem:[#allocation2 + $0x8] sm:$0xff] %v1536_v29 }
 0x1c7   : > { %v1543_v35 = vld [vmem:[#allocation2] sm:$0xff] }
 0x1c8   : > { %v1544_v36 = vld [vmem:[#allocation2 + $0x8] sm:$0xff]  ;;  %v1557_v41 = vadd.f32 %v1550_v37, %v1543_v35 }
 0x1c9   : > { %v1558_v42 = vadd.f32 %v1554_v38, %v1544_v36 }
 0x1ca   : > { %v1561_v43 = vadd.f32 %v1559_v39, %v1557_v41 }
 0x1cb   : > { %v1562_v44 = vadd.f32 %v1560_v40, %v1558_v42 }
 0x1cc   : > { %v1563_v45 = vmax.f32 %v1561_v43, 0.0 }
 0x1cd   : > { %v1564_v46 = vmax.f32 %v1562_v44, 0.0 }
 0x1ce   : > { %1565 = vst [vmem:[%s2505_s12] sm:$0xff] %v1563_v45 }
 0x1cf   : > { %1566 = vst [vmem:[%s2505_s12 + $0x8] sm:$0xff] %v1564_v46 }
 0x1d0 PF: > { %s14_s23 = sadd.s32 1, %s2171_s23   ;;  %s2662_s10 = sld [smem:[#allocation4_spill]] }
 0x1d1   : > { %p11_p2 = scmp.ge.s32.totalorder %s14_s23, 26   ;;  %s2663_s15 = smov %s2143_s16 }
 0x1d2   : > { %s2664_s16 = smov %s2270_s8  ;;  %s2665_s17 = smov %s2159_s20 }
 0x1d3   : > { %s2666_s18 = smov %s2163_s21  ;;  %s2667_s19 = smov %s2167_s22 }
 0x1d4   : > { %s2668_s20 = smov %s2674_s24  ;;  %s2669_s21 = smov %s2678_s25 }
 0x1d5   :  { %13 = sbr.rel (!%p11_p2) target bundleno = 7 (0x7), region = 126 }
 0x1d6   : > { %s2670_s22 = smov %s2662_s10 }

// kernel: encoder_forward.39
= control target key start
LH: loop header
LB: loop body
LE: loop exit
PB: predicated region body
PF: predicated region fallthrough
CT: control target
= control target key end

     0   :  { %s2532_s0 = inlined_call_operand.vmem [shape: bf16[2,8,4608], index: 0, kind: input, shape index: {}]   ;;  %s2533_s1 = inlined_call_operand.vmem [shape: bf16[2,4608,512], index: 1, kind: input, shape index: {}]   ;;  %s2534_s2 = inlined_call_operand.vmem [shape: f32[2,1,512], index: 2, kind: input, shape index: {}]   ;;  %s2535_s3 = inlined_call_operand.vmem [shape: f32[2,8,512], index: 3, kind: output, shape index: {}]  }
   0x1   :  { %2536 = sst [smem:[#allocation4_spill]] %s2533_s1 }
   0x2   :  { %s2086_s12 = smov 0   ;;  %s2088_s13 = smov 0  }
   0x3   :  { %s2090_s14 = smov 0   ;;  %s2092_s15 = smov 0  }
   0x4   :  { %s2094_s16 = smov 0   ;;  %s2096_s17 = smov 0  }
   0x5   :  { %s2098_s18 = smov 0   ;;  %s2100_s19 = smov 0  }
   0x6   :  { %s2102_s20 = smov 0  }
   0x7 LB: > { %s28_s21 = sadd.s32 1, %s2051_s17  ;;  %s31_s22 = sadd.s32 1, %s2055_s18  ;;  %s2063_s20 = sphi %s2102_s20, %s13_s20   ;;  %s2059_s19 = sphi %s2100_s19, %s2546_s19   ;;  %s2055_s18 = sphi %s2098_s18, %s2545_s18   ;;  %s2051_s17 = sphi %s2096_s17, %s2544_s17   ;;  %s2047_s16 = sphi %s2094_s16, %s2543_s16   ;;  %s2043_s15 = sphi %s2092_s15, %s2542_s15   ;;  %s2039_s14 = sphi %s2090_s14, %s2541_s14   ;;  %s2035_s13 = sphi %s2088_s13, %s2540_s13   ;;  %s2031_s12 = sphi %s2086_s12, %s2539_s12  }
   0x8   : > { %p29_p0 = scmp.ge.s32.totalorder %s28_s21, 6  ;;  %p87_p1 = scmp.ne.s32.totalorder %s2035_s13, %s2031_s12 }
   0x9   : > { %p88_p2 = scmp.eq.s32.totalorder %s2063_s20, 0  ;;  %s39_s23 = sadd.s32 1, %s2059_s19 }
   0xa   : > { %s2548_s22 = smov (!%p29_p0, %s31_s22), %s2055_s18  ;;  %s2550_s21 = smov (%p29_p0, %s28_s21), 0 }
   0xb   : > { %p33_p3 = scmp.ge.s32.totalorder %s2548_s22, 2  ;;  %p2138_p4 = por %p88_p2, %p87_p1 }
   0xc   : > { %s74_s25 = ssub.s32 %s2051_s17, %s2550_s21  ;;  %s80_s30 = sadd.s32 1, %s2035_s13 }
   0xd   : > { %s2552_s23 = smov (!%p33_p3, %s39_s23), %s2059_s19  ;;  %s2554_s22 = smov (%p33_p3, %s2548_s22), 0 }
   0xe   : > { %p41_p5 = scmp.ge.s32.totalorder %s2552_s23, 2  ;;  %s76_s26 = ssub.s32 %s2055_s18, %s2554_s22 }
   0xf   : > { %p1648_p7 = scmp.ge.s32.totalorder %s2063_s20, 24 }
  0x10   : > { %s2556_s23 = smov (%p41_p5, %s2552_s23), 0 }
  0x11   : > { %s73_s27 = ssub.s32 %s2059_s19, %s2556_s23  ;;  %171 = sbr.rel (%p1648_p7) target bundleno = 82 (0x52), region = 16 }
  0x12   : > { %s75_s28 = sor.u32 %s74_s25, %s73_s27 }
  0x13   : > { %s77_s29 = sor.u32 %s76_s26, %s75_s28 }
  0x14   : > { %p78_p6 = scmp.eq.s32.totalorder %s77_s29, 0 }
  0x16   : > { %s2157_s4 = scalar_select %p78_p6, %s2035_s13, %s80_s30  }
  0x18   : > { %191 = sbr.rel (!%p2138_p4) target bundleno = 82 (0x52), region = 24  ;;  %s193_s5 = sand.u32 (%p2138_p4), 1, %s2035_s13  }
  0x19   : > { %s1766_s6 = smul.u32 (%p2138_p4), 768, %s193_s5  ;;  %s1649_s7 = sshll.u32 (%p2138_p4), %s2055_s18, 1 }
  0x1a   : > { %s1765_s8 = smul.u32 (%p2138_p4), 384, %s2051_s17  ;;  %s2538_s1 = sld [smem:[#allocation4_spill]] (%p2138_p4) }
  0x1b   : > { %s1767_s9 = smul.u32 (%p2138_p4), 2304, %s2059_s19  ;;  %s2174_s24 = scalar_lea.vmem (%p2138_p4), [#allocation3], %s1766_s6 }
  0x1c   : > { %s199_s10 = sadd.s32 (%p2138_p4), %s1765_s8, %s1649_s7 }
  0x1d   : > { %s201_s11 = sadd.s32 (%p2138_p4), %s1767_s9, %s199_s10 }
  0x1e   : > { %s1651_s25 = sshll.u32 (%p2138_p4), %s201_s11, 2 }
  0x20   : > { %s2169_s28 = scalar_lea.vmem %s2538_s1, %s1651_s25 }
  0x21   : > { %v421_v0 = vld [vmem:[%s2169_s28] sm:$0xff]  ;;  %v423_v1 = vld [vmem:[%s2169_s28 + $0x10] sm:$0xff] }
  0x22   : > { %v425_v2 = vld [vmem:[%s2169_s28 + $0x20] sm:$0xff]  ;;  %422 = vst [vmem:[%s2174_s24] sm:$0xff] %v421_v0  ;;  %424 = vst [vmem:[%s2174_s24 + $0x8] sm:$0xff] %v423_v1  ;;  %v427_v3 = vld [vmem:[%s2169_s28 + $0x30] sm:$0xff] }
  0x23   : > { %426 = vst [vmem:[%s2174_s24 + $0x10] sm:$0xff] %v425_v2  ;;  %v429_v4 = vld [vmem:[%s2169_s28 + $0x40] sm:$0xff]  ;;  %v431_v5 = vld [vmem:[%s2169_s28 + $0x50] sm:$0xff]  ;;  %428 = vst [vmem:[%s2174_s24 + $0x18] sm:$0xff] %v427_v3 }
  0x24   : > { %430 = vst [vmem:[%s2174_s24 + $0x20] sm:$0xff] %v429_v4  ;;  %432 = vst [vmem:[%s2174_s24 + $0x28] sm:$0xff] %v431_v5  ;;  %v433_v6 = vld [vmem:[%s2169_s28 + $0x60] sm:$0xff]  ;;  %v435_v7 = vld [vmem:[%s2169_s28 + $0x70] sm:$0xff] }
  0x25   : > { %v437_v8 = vld [vmem:[%s2169_s28 + $0x80] sm:$0xff]  ;;  %434 = vst [vmem:[%s2174_s24 + $0x30] sm:$0xff] %v433_v6  ;;  %436 = vst [vmem:[%s2174_s24 + $0x38] sm:$0xff] %v435_v7  ;;  %v439_v9 = vld [vmem:[%s2169_s28 + $0x90] sm:$0xff] }
  0x26   : > { %438 = vst [vmem:[%s2174_s24 + $0x40] sm:$0xff] %v437_v8  ;;  %v441_v10 = vld [vmem:[%s2169_s28 + $0xa0] sm:$0xff]  ;;  %v443_v11 = vld [vmem:[%s2169_s28 + $0xb0] sm:$0xff]  ;;  %440 = vst [vmem:[%s2174_s24 + $0x48] sm:$0xff] %v439_v9 }
  0x27   : > { %442 = vst [vmem:[%s2174_s24 + $0x50] sm:$0xff] %v441_v10  ;;  %444 = vst [vmem:[%s2174_s24 + $0x58] sm:$0xff] %v443_v11  ;;  %v445_v12 = vld [vmem:[%s2169_s28 + $0xc0] sm:$0xff]  ;;  %v447_v13 = vld [vmem:[%s2169_s28 + $0xd0] sm:$0xff] }
  0x28   : > { %v449_v14 = vld [vmem:[%s2169_s28 + $0xe0] sm:$0xff]  ;;  %446 = vst [vmem:[%s2174_s24 + $0x60] sm:$0xff] %v445_v12  ;;  %448 = vst [vmem:[%s2174_s24 + $0x68] sm:$0xff] %v447_v13  ;;  %v451_v15 = vld [vmem:[%s2169_s28 + $0xf0] sm:$0xff] }
  0x29   : > { %450 = vst [vmem:[%s2174_s24 + $0x70] sm:$0xff] %v449_v14  ;;  %v453_v16 = vld [vmem:[%s2169_s28 + $0x100] sm:$0xff]  ;;  %v455_v17 = vld [vmem:[%s2169_s28 + $0x110] sm:$0xff]  ;;  %452 = vst [vmem:[%s2174_s24 + $0x78] sm:$0xff] %v451_v15 }
  0x2a   : > { %454 = vst [vmem:[%s2174_s24 + $0x80] sm:$0xff] %v453_v16  ;;  %456 = vst [vmem:[%s2174_s24 + $0x88] sm:$0xff] %v455_v17  ;;  %v457_v18 = vld [vmem:[%s2169_s28 + $0x120] sm:$0xff]  ;;  %v459_v19 = vld [vmem:[%s2169_s28 + $0x130] sm:$0xff] }
  0x2b   : > { %v461_v20 = vld [vmem:[%s2169_s28 + $0x140] sm:$0xff]  ;;  %458 = vst [vmem:[%s2174_s24 + $0x90] sm:$0xff] %v457_v18  ;;  %460 = vst [vmem:[%s2174_s24 + $0x98] sm:$0xff] %v459_v19  ;;  %v463_v21 = vld [vmem:[%s2169_s28 + $0x150] sm:$0xff] }
  0x2c   : > { %462 = vst [vmem:[%s2174_s24 + $0xa0] sm:$0xff] %v461_v20  ;;  %v465_v22 = vld [vmem:[%s2169_s28 + $0x160] sm:$0xff]  ;;  %v467_v23 = vld [vmem:[%s2169_s28 + $0x170] sm:$0xff]  ;;  %464 = vst [vmem:[%s2174_s24 + $0xa8] sm:$0xff] %v463_v21 }
  0x2d   : > { %466 = vst [vmem:[%s2174_s24 + $0xb0] sm:$0xff] %v465_v22  ;;  %468 = vst [vmem:[%s2174_s24 + $0xb8] sm:$0xff] %v467_v23  ;;  %v469_v24 = vld [vmem:[%s2169_s28 + $0x180] sm:$0xff]  ;;  %v471_v25 = vld [vmem:[%s2169_s28 + $0x190] sm:$0xff] }
  0x2e   : > { %v473_v26 = vld [vmem:[%s2169_s28 + $0x1a0] sm:$0xff]  ;;  %470 = vst [vmem:[%s2174_s24 + $0xc0] sm:$0xff] %v469_v24  ;;  %472 = vst [vmem:[%s2174_s24 + $0xc8] sm:$0xff] %v471_v25  ;;  %v475_v27 = vld [vmem:[%s2169_s28 + $0x1b0] sm:$0xff] }
  0x2f   : > { %474 = vst [vmem:[%s2174_s24 + $0xd0] sm:$0xff] %v473_v26  ;;  %v477_v28 = vld [vmem:[%s2169_s28 + $0x1c0] sm:$0xff]  ;;  %v479_v29 = vld [vmem:[%s2169_s28 + $0x1d0] sm:$0xff]  ;;  %476 = vst [vmem:[%s2174_s24 + $0xd8] sm:$0xff] %v475_v27 }
  0x30   : > { %478 = vst [vmem:[%s2174_s24 + $0xe0] sm:$0xff] %v477_v28  ;;  %480 = vst [vmem:[%s2174_s24 + $0xe8] sm:$0xff] %v479_v29  ;;  %v481_v30 = vld [vmem:[%s2169_s28 + $0x1e0] sm:$0xff]  ;;  %v483_v31 = vld [vmem:[%s2169_s28 + $0x1f0] sm:$0xff] }
  0x31   : > { %v485_v32 = vld [vmem:[%s2169_s28 + $0x200] sm:$0xff]  ;;  %482 = vst [vmem:[%s2174_s24 + $0xf0] sm:$0xff] %v481_v30  ;;  %484 = vst [vmem:[%s2174_s24 + $0xf8] sm:$0xff] %v483_v31  ;;  %v487_v33 = vld [vmem:[%s2169_s28 + $0x210] sm:$0xff] }
  0x32   : > { %486 = vst [vmem:[%s2174_s24 + $0x100] sm:$0xff] %v485_v32  ;;  %v489_v34 = vld [vmem:[%s2169_s28 + $0x220] sm:$0xff]  ;;  %v491_v35 = vld [vmem:[%s2169_s28 + $0x230] sm:$0xff]  ;;  %488 = vst [vmem:[%s2174_s24 + $0x108] sm:$0xff] %v487_v33 }
  0x33   : > { %490 = vst [vmem:[%s2174_s24 + $0x110] sm:$0xff] %v489_v34  ;;  %492 = vst [vmem:[%s2174_s24 + $0x118] sm:$0xff] %v491_v35  ;;  %v493_v36 = vld [vmem:[%s2169_s28 + $0x240] sm:$0xff]  ;;  %v495_v37 = vld [vmem:[%s2169_s28 + $0x250] sm:$0xff] }
  0x34   : > { %v497_v38 = vld [vmem:[%s2169_s28 + $0x260] sm:$0xff]  ;;  %494 = vst [vmem:[%s2174_s24 + $0x120] sm:$0xff] %v493_v36  ;;  %496 = vst [vmem:[%s2174_s24 + $0x128] sm:$0xff] %v495_v37  ;;  %v499_v39 = vld [vmem:[%s2169_s28 + $0x270] sm:$0xff] }
  0x35   : > { %498 = vst [vmem:[%s2174_s24 + $0x130] sm:$0xff] %v497_v38  ;;  %v501_v40 = vld [vmem:[%s2169_s28 + $0x280] sm:$0xff]  ;;  %v503_v41 = vld [vmem:[%s2169_s28 + $0x290] sm:$0xff]  ;;  %500 = vst [vmem:[%s2174_s24 + $0x138] sm:$0xff] %v499_v39 }
  0x36   : > { %502 = vst [vmem:[%s2174_s24 + $0x140] sm:$0xff] %v501_v40  ;;  %504 = vst [vmem:[%s2174_s24 + $0x148] sm:$0xff] %v503_v41  ;;  %v505_v42 = vld [vmem:[%s2169_s28 + $0x2a0] sm:$0xff]  ;;  %v507_v43 = vld [vmem:[%s2169_s28 + $0x2b0] sm:$0xff] }
  0x37   : > { %v509_v44 = vld [vmem:[%s2169_s28 + $0x2c0] sm:$0xff]  ;;  %506 = vst [vmem:[%s2174_s24 + $0x150] sm:$0xff] %v505_v42  ;;  %508 = vst [vmem:[%s2174_s24 + $0x158] sm:$0xff] %v507_v43  ;;  %v511_v45 = vld [vmem:[%s2169_s28 + $0x2d0] sm:$0xff] }
  0x38   : > { %510 = vst [vmem:[%s2174_s24 + $0x160] sm:$0xff] %v509_v44  ;;  %v513_v46 = vld [vmem:[%s2169_s28 + $0x2e0] sm:$0xff]  ;;  %v515_v47 = vld [vmem:[%s2169_s28 + $0x2f0] sm:$0xff]  ;;  %512 = vst [vmem:[%s2174_s24 + $0x168] sm:$0xff] %v511_v45 }
  0x39   : > { %514 = vst [vmem:[%s2174_s24 + $0x170] sm:$0xff] %v513_v46  ;;  %516 = vst [vmem:[%s2174_s24 + $0x178] sm:$0xff] %v515_v47  ;;  %v517_v48 = vld [vmem:[%s2169_s28 + $0x300] sm:$0xff]  ;;  %v519_v49 = vld [vmem:[%s2169_s28 + $0x310] sm:$0xff] }
  0x3a   : > { %v521_v50 = vld [vmem:[%s2169_s28 + $0x320] sm:$0xff]  ;;  %518 = vst [vmem:[%s2174_s24 + $0x180] sm:$0xff] %v517_v48  ;;  %520 = vst [vmem:[%s2174_s24 + $0x188] sm:$0xff] %v519_v49  ;;  %v523_v51 = vld [vmem:[%s2169_s28 + $0x330] sm:$0xff] }
  0x3b   : > { %522 = vst [vmem:[%s2174_s24 + $0x190] sm:$0xff] %v521_v50  ;;  %v525_v52 = vld [vmem:[%s2169_s28 + $0x340] sm:$0xff]  ;;  %v527_v53 = vld [vmem:[%s2169_s28 + $0x350] sm:$0xff]  ;;  %524 = vst [vmem:[%s2174_s24 + $0x198] sm:$0xff] %v523_v51 }
  0x3c   : > { %526 = vst [vmem:[%s2174_s24 + $0x1a0] sm:$0xff] %v525_v52  ;;  %528 = vst [vmem:[%s2174_s24 + $0x1a8] sm:$0xff] %v527_v53  ;;  %v529_v54 = vld [vmem:[%s2169_s28 + $0x360] sm:$0xff]  ;;  %v531_v55 = vld [vmem:[%s2169_s28 + $0x370] sm:$0xff] }
  0x3d   : > { %v533_v56 = vld [vmem:[%s2169_s28 + $0x380] sm:$0xff]  ;;  %530 = vst [vmem:[%s2174_s24 + $0x1b0] sm:$0xff] %v529_v54  ;;  %532 = vst [vmem:[%s2174_s24 + $0x1b8] sm:$0xff] %v531_v55  ;;  %v535_v57 = vld [vmem:[%s2169_s28 + $0x390] sm:$0xff] }
  0x3e   : > { %534 = vst [vmem:[%s2174_s24 + $0x1c0] sm:$0xff] %v533_v56  ;;  %v537_v58 = vld [vmem:[%s2169_s28 + $0x3a0] sm:$0xff]  ;;  %v539_v59 = vld [vmem:[%s2169_s28 + $0x3b0] sm:$0xff]  ;;  %536 = vst [vmem:[%s2174_s24 + $0x1c8] sm:$0xff] %v535_v57 }
  0x3f   : > { %538 = vst [vmem:[%s2174_s24 + $0x1d0] sm:$0xff] %v537_v58  ;;  %540 = vst [vmem:[%s2174_s24 + $0x1d8] sm:$0xff] %v539_v59  ;;  %v541_v60 = vld [vmem:[%s2169_s28 + $0x3c0] sm:$0xff]  ;;  %v543_v61 = vld [vmem:[%s2169_s28 + $0x3d0] sm:$0xff] }
  0x40   : > { %v545_v62 = vld [vmem:[%s2169_s28 + $0x3e0] sm:$0xff]  ;;  %542 = vst [vmem:[%s2174_s24 + $0x1e0] sm:$0xff] %v541_v60  ;;  %544 = vst [vmem:[%s2174_s24 + $0x1e8] sm:$0xff] %v543_v61  ;;  %v547_v63 = vld [vmem:[%s2169_s28 + $0x3f0] sm:$0xff] }
  0x41   : > { %546 = vst [vmem:[%s2174_s24 + $0x1f0] sm:$0xff] %v545_v62  ;;  %v549_v0 = vld [vmem:[%s2169_s28 + $0x400] sm:$0xff]  ;;  %v551_v1 = vld [vmem:[%s2169_s28 + $0x410] sm:$0xff]  ;;  %548 = vst [vmem:[%s2174_s24 + $0x1f8] sm:$0xff] %v547_v63 }
  0x42   : > { %550 = vst [vmem:[%s2174_s24 + $0x200] sm:$0xff] %v549_v0  ;;  %552 = vst [vmem:[%s2174_s24 + $0x208] sm:$0xff] %v551_v1  ;;  %v553_v2 = vld [vmem:[%s2169_s28 + $0x420] sm:$0xff]  ;;  %v555_v3 = vld [vmem:[%s2169_s28 + $0x430] sm:$0xff] }
  0x43   : > { %v557_v4 = vld [vmem:[%s2169_s28 + $0x440] sm:$0xff]  ;;  %554 = vst [vmem:[%s2174_s24 + $0x210] sm:$0xff] %v553_v2  ;;  %556 = vst [vmem:[%s2174_s24 + $0x218] sm:$0xff] %v555_v3  ;;  %v559_v5 = vld [vmem:[%s2169_s28 + $0x450] sm:$0xff] }
  0x44   : > { %558 = vst [vmem:[%s2174_s24 + $0x220] sm:$0xff] %v557_v4  ;;  %v561_v6 = vld [vmem:[%s2169_s28 + $0x460] sm:$0xff]  ;;  %v563_v7 = vld [vmem:[%s2169_s28 + $0x470] sm:$0xff]  ;;  %560 = vst [vmem:[%s2174_s24 + $0x228] sm:$0xff] %v559_v5 }
  0x45   : > { %562 = vst [vmem:[%s2174_s24 + $0x230] sm:$0xff] %v561_v6  ;;  %564 = vst [vmem:[%s2174_s24 + $0x238] sm:$0xff] %v563_v7  ;;  %v565_v8 = vld [vmem:[%s2169_s28 + $0x480] sm:$0xff]  ;;  %v567_v9 = vld [vmem:[%s2169_s28 + $0x490] sm:$0xff] }
  0x46   : > { %v569_v10 = vld [vmem:[%s2169_s28 + $0x4a0] sm:$0xff]  ;;  %566 = vst [vmem:[%s2174_s24 + $0x240] sm:$0xff] %v565_v8  ;;  %568 = vst [vmem:[%s2174_s24 + $0x248] sm:$0xff] %v567_v9  ;;  %v571_v11 = vld [vmem:[%s2169_s28 + $0x4b0] sm:$0xff] }
  0x47   : > { %570 = vst [vmem:[%s2174_s24 + $0x250] sm:$0xff] %v569_v10  ;;  %v573_v12 = vld [vmem:[%s2169_s28 + $0x4c0] sm:$0xff]  ;;  %v575_v13 = vld [vmem:[%s2169_s28 + $0x4d0] sm:$0xff]  ;;  %572 = vst [vmem:[%s2174_s24 + $0x258] sm:$0xff] %v571_v11 }
  0x48   : > { %574 = vst [vmem:[%s2174_s24 + $0x260] sm:$0xff] %v573_v12  ;;  %576 = vst [vmem:[%s2174_s24 + $0x268] sm:$0xff] %v575_v13  ;;  %v577_v14 = vld [vmem:[%s2169_s28 + $0x4e0] sm:$0xff]  ;;  %v579_v15 = vld [vmem:[%s2169_s28 + $0x4f0] sm:$0xff] }
  0x49   : > { %v581_v16 = vld [vmem:[%s2169_s28 + $0x500] sm:$0xff]  ;;  %578 = vst [vmem:[%s2174_s24 + $0x270] sm:$0xff] %v577_v14  ;;  %580 = vst [vmem:[%s2174_s24 + $0x278] sm:$0xff] %v579_v15  ;;  %v583_v17 = vld [vmem:[%s2169_s28 + $0x510] sm:$0xff] }
  0x4a   : > { %582 = vst [vmem:[%s2174_s24 + $0x280] sm:$0xff] %v581_v16  ;;  %v585_v18 = vld [vmem:[%s2169_s28 + $0x520] sm:$0xff]  ;;  %v587_v19 = vld [vmem:[%s2169_s28 + $0x530] sm:$0xff]  ;;  %584 = vst [vmem:[%s2174_s24 + $0x288] sm:$0xff] %v583_v17 }
  0x4b   : > { %586 = vst [vmem:[%s2174_s24 + $0x290] sm:$0xff] %v585_v18  ;;  %588 = vst [vmem:[%s2174_s24 + $0x298] sm:$0xff] %v587_v19  ;;  %v589_v20 = vld [vmem:[%s2169_s28 + $0x540] sm:$0xff]  ;;  %v591_v21 = vld [vmem:[%s2169_s28 + $0x550] sm:$0xff] }
  0x4c   : > { %v593_v22 = vld [vmem:[%s2169_s28 + $0x560] sm:$0xff]  ;;  %590 = vst [vmem:[%s2174_s24 + $0x2a0] sm:$0xff] %v589_v20  ;;  %592 = vst [vmem:[%s2174_s24 + $0x2a8] sm:$0xff] %v591_v21  ;;  %v595_v23 = vld [vmem:[%s2169_s28 + $0x570] sm:$0xff] }
  0x4d   : > { %594 = vst [vmem:[%s2174_s24 + $0x2b0] sm:$0xff] %v593_v22  ;;  %v597_v24 = vld [vmem:[%s2169_s28 + $0x580] sm:$0xff]  ;;  %v599_v25 = vld [vmem:[%s2169_s28 + $0x590] sm:$0xff]  ;;  %596 = vst [vmem:[%s2174_s24 + $0x2b8] sm:$0xff] %v595_v23 }
  0x4e   : > { %598 = vst [vmem:[%s2174_s24 + $0x2c0] sm:$0xff] %v597_v24  ;;  %600 = vst [vmem:[%s2174_s24 + $0x2c8] sm:$0xff] %v599_v25  ;;  %v601_v26 = vld [vmem:[%s2169_s28 + $0x5a0] sm:$0xff]  ;;  %v603_v27 = vld [vmem:[%s2169_s28 + $0x5b0] sm:$0xff] }
  0x4f   : > { %v605_v28 = vld [vmem:[%s2169_s28 + $0x5c0] sm:$0xff]  ;;  %602 = vst [vmem:[%s2174_s24 + $0x2d0] sm:$0xff] %v601_v26  ;;  %604 = vst [vmem:[%s2174_s24 + $0x2d8] sm:$0xff] %v603_v27  ;;  %v607_v29 = vld [vmem:[%s2169_s28 + $0x5d0] sm:$0xff] }
  0x50   : > { %606 = vst [vmem:[%s2174_s24 + $0x2e0] sm:$0xff] %v605_v28  ;;  %v609_v30 = vld [vmem:[%s2169_s28 + $0x5e0] sm:$0xff]  ;;  %v611_v31 = vld [vmem:[%s2169_s28 + $0x5f0] sm:$0xff]  ;;  %608 = vst [vmem:[%s2174_s24 + $0x2e8] sm:$0xff] %v607_v29 }
  0x51   : > { %610 = vst [vmem:[%s2174_s24 + $0x2f0] sm:$0xff] %v609_v30  ;;  %612 = vst [vmem:[%s2174_s24 + $0x2f8] sm:$0xff] %v611_v31 }
  0x52 PF: > { %p1652_p8 = scmp.ge.s32.totalorder %s2063_s20, 1  ;;  %p629_p9 = scmp.lt.s32.totalorder %s2063_s20, 25 }
  0x54   : > { %p630_p10 = pnand %p1652_p8, %p629_p9 }
  0x55   : > { %s636_s29 = sand.u32 (!%p630_p10), 1, %s2031_s12   ;;  %s688_s30 = smul.u32 (!%p630_p10), 6, %s2039_s14 }
  0x56   : > { %633 = sbr.rel (%p630_p10) target bundleno = 461 (0x1cd), region = 66  ;;  %p689_p11 = scmp.lt.s32.totalorder (!%p630_p10), %s2047_s16, 1 }
  0x57   : > { %s1768_s5 = smul.u32 (!%p630_p10), 768, %s636_s29  ;;  %p693_p12 = scmp.lt.s32.totalorder (!%p630_p10), %s688_s30, 35 }
  0x58   : > { %s1654_s6 = sshll.u32 (!%p630_p10), %s2043_s15, 1  ;;  %p1659_p0 = scmp.ne.s32.totalorder (!%p630_p10), %s2039_s14, 0 }
  0x59   : > { %p707_p13 = scmp.lt.s32.totalorder (!%p630_p10), %s1654_s6, 3 }
  0x5d   : > { %s2558_s16 = smov (!%p689_p11, %s2047_s16), 1  ;;  %s2560_s30 = smov (!%p693_p12, %s688_s30), 35 }
  0x5e   : > { %s1769_s7 = smul.u32 36, %s2558_s16  ;;  %s1655_s8 = sshll.u32 %s2558_s16, 2  ;;  %v2065_v32 = vmov (!%p1659_p0), 0.0  }
  0x5f   : > { %s2562_s6 = smov (!%p707_p13, %s1654_s6), 3  ;;  %730 = sbr.rel (%p1659_p0) target bundleno = 102 (0x66), region = 74 }
  0x60   : > { %s698_s9 = sadd.s32 %s1769_s7, %s2560_s30  ;;  %s2372_s11 = sadd.s32 %s1655_s8, %s2562_s6  ;;  %731 = vst [vmem:[#allocation2] sm:$0xff] (!%p1659_p0), %v2065_v32  ;;  %732 = vst [vmem:[#allocation2 + $0x8] sm:$0xff] (!%p1659_p0), %v2065_v32 }
  0x61   : > { %s1653_s10 = sshll.u32 %s698_s9, 2  ;;  %s711_s15 = scalar_lea.vmem %s2534_s2, %s2372_s11 }
  0x62   : > { %s2377_s12 = scalar_lea.vmem %s2532_s0, %s1653_s10  ;;  %s1658_s24 = sshll.u32 %s2372_s11, 3 }
  0x63   : > { %s2387_s16 = scalar_lea.vmem %s2535_s3, %s1658_s24  ;;  %s2389_s30 = scalar_lea.vmem [#allocation3], %s1768_s5 }
  0x66 PF: > { %v1843_v33 = vld [vmem:[%s2389_s30 + $0x4] ss:$8 sps:$4 sm:$0xff]   ;;  %v1847_v35 = vld [vmem:[%s2389_s30] ss:$8 sps:$4 sm:$0xff]   ;;  %v1849_v37 = vld [vmem:[%s2389_s30 + $0x14] ss:$8 sps:$4 sm:$0xff]  }
  0x67   : > { %v1845_v34 = vld [vmem:[%s2389_s30 + $0x104] ss:$8 sps:$4 sm:$0xff]   ;;  %1335 = vmatprep.subr.bf16.mxu0 %v1843_v33  ;;  %v1848_v36 = vld [vmem:[%s2389_s30 + $0x100] ss:$8 sps:$4 sm:$0xff]   ;;  %v1851_v38 = vld [vmem:[%s2389_s30 + $0x114] ss:$8 sps:$4 sm:$0xff]  }
  0x68   : > { %1376 = vmatprep.subr.bf16.mxu1 %v1845_v34  ;;  %1336 = vmatpush1.bf16.msra.mxu0 %v1847_v35  ;;  %v1853_v39 = vld [vmem:[%s2389_s30 + $0x10] ss:$8 sps:$4 sm:$0xff]   ;;  %v1855_v41 = vld [vmem:[%s2389_s30 + $0x24] ss:$8 sps:$4 sm:$0xff]   ;;  %v1859_v43 = vld [vmem:[%s2389_s30 + $0x20] ss:$8 sps:$4 sm:$0xff]  }
  0x69   : > { %1377 = vmatpush1.bf16.msra.mxu1 %v1848_v36  ;;  %1337 = vmatprep.subr.bf16.mxu0 %v1849_v37  ;;  %v1854_v40 = vld [vmem:[%s2389_s30 + $0x110] ss:$8 sps:$4 sm:$0xff]   ;;  %v1857_v42 = vld [vmem:[%s2389_s30 + $0x124] ss:$8 sps:$4 sm:$0xff]   ;;  %v1860_v44 = vld [vmem:[%s2389_s30 + $0x120] ss:$8 sps:$4 sm:$0xff]  }
  0x6a   : > { %1378 = vmatprep.subr.bf16.mxu1 %v1851_v38  ;;  %v1861_v45 = vld [vmem:[%s2389_s30 + $0x34] ss:$8 sps:$4 sm:$0xff]   ;;  %v1865_v47 = vld [vmem:[%s2389_s30 + $0x30] ss:$8 sps:$4 sm:$0xff]   ;;  %v1867_v49 = vld [vmem:[%s2389_s30 + $0x44] ss:$8 sps:$4 sm:$0xff]  }
  0x6b   : > { %v1863_v46 = vld [vmem:[%s2389_s30 + $0x134] ss:$8 sps:$4 sm:$0xff]   ;;  %v1866_v48 = vld [vmem:[%s2389_s30 + $0x130] ss:$8 sps:$4 sm:$0xff]   ;;  %v1869_v50 = vld [vmem:[%s2389_s30 + $0x144] ss:$8 sps:$4 sm:$0xff]  }
  0x6c   : > { %1338 = vmatpush1.bf16.msra.mxu0 %v1853_v39  ;;  %v1871_v51 = vld [vmem:[%s2389_s30 + $0x40] ss:$8 sps:$4 sm:$0xff]   ;;  %v1873_v53 = vld [vmem:[%s2389_s30 + $0x54] ss:$8 sps:$4 sm:$0xff]   ;;  %v1877_v55 = vld [vmem:[%s2389_s30 + $0x50] ss:$8 sps:$4 sm:$0xff]  }
  0x6d   : > { %1379 = vmatpush1.bf16.msra.mxu1 %v1854_v40  ;;  %1339 = vmatprep.subr.bf16.mxu0 %v1855_v41  ;;  %v1872_v52 = vld [vmem:[%s2389_s30 + $0x140] ss:$8 sps:$4 sm:$0xff]   ;;  %v1875_v54 = vld [vmem:[%s2389_s30 + $0x154] ss:$8 sps:$4 sm:$0xff]   ;;  %v1878_v56 = vld [vmem:[%s2389_s30 + $0x150] ss:$8 sps:$4 sm:$0xff]  }
  0x6e   : > { %1380 = vmatprep.subr.bf16.mxu1 %v1857_v42  ;;  %v1879_v57 = vld [vmem:[%s2389_s30 + $0x64] ss:$8 sps:$4 sm:$0xff]   ;;  %v1883_v59 = vld [vmem:[%s2389_s30 + $0x60] ss:$8 sps:$4 sm:$0xff]   ;;  %v1885_v61 = vld [vmem:[%s2389_s30 + $0x74] ss:$8 sps:$4 sm:$0xff]  }
  0x6f   : > { %v1881_v58 = vld [vmem:[%s2389_s30 + $0x164] ss:$8 sps:$4 sm:$0xff]   ;;  %v1884_v60 = vld [vmem:[%s2389_s30 + $0x160] ss:$8 sps:$4 sm:$0xff]   ;;  %v1887_v62 = vld [vmem:[%s2389_s30 + $0x174] ss:$8 sps:$4 sm:$0xff]  }
  0x70   : > { %1340 = vmatpush1.bf16.msra.mxu0 %v1859_v43  ;;  %v1889_v63 = vld [vmem:[%s2389_s30 + $0x70] ss:$8 sps:$4 sm:$0xff]   ;;  %v1891_v1 = vld [vmem:[%s2389_s30 + $0x84] ss:$8 sps:$4 sm:$0xff]   ;;  %v1895_v3 = vld [vmem:[%s2389_s30 + $0x80] ss:$8 sps:$4 sm:$0xff]  }
  0x71   : > { %1381 = vmatpush1.bf16.msra.mxu1 %v1860_v44  ;;  %1341 = vmatprep.subr.bf16.mxu0 %v1861_v45  ;;  %v1890_v0 = vld [vmem:[%s2389_s30 + $0x170] ss:$8 sps:$4 sm:$0xff]   ;;  %v1893_v2 = vld [vmem:[%s2389_s30 + $0x184] ss:$8 sps:$4 sm:$0xff]   ;;  %v1896_v4 = vld [vmem:[%s2389_s30 + $0x180] ss:$8 sps:$4 sm:$0xff]  }
  0x72   : > { %1382 = vmatprep.subr.bf16.mxu1 %v1863_v46  ;;  %v1897_v5 = vld [vmem:[%s2389_s30 + $0x94] ss:$8 sps:$4 sm:$0xff]   ;;  %v1901_v7 = vld [vmem:[%s2389_s30 + $0x90] ss:$8 sps:$4 sm:$0xff]   ;;  %v1903_v9 = vld [vmem:[%s2389_s30 + $0xa4] ss:$8 sps:$4 sm:$0xff]  }
  0x73   : > { %v1899_v6 = vld [vmem:[%s2389_s30 + $0x194] ss:$8 sps:$4 sm:$0xff]   ;;  %v1902_v8 = vld [vmem:[%s2389_s30 + $0x190] ss:$8 sps:$4 sm:$0xff]   ;;  %v1905_v10 = vld [vmem:[%s2389_s30 + $0x1a4] ss:$8 sps:$4 sm:$0xff]  }
  0x74   : > { %1342 = vmatpush1.bf16.msra.mxu0 %v1865_v47  ;;  %v1907_v11 = vld [vmem:[%s2389_s30 + $0xa0] ss:$8 sps:$4 sm:$0xff]   ;;  %v1909_v13 = vld [vmem:[%s2389_s30 + $0xb4] ss:$8 sps:$4 sm:$0xff]   ;;  %v1913_v18 = vld [vmem:[%s2389_s30 + $0xb0] ss:$8 sps:$4 sm:$0xff]  }
  0x75   : > { %1383 = vmatpush1.bf16.msra.mxu1 %v1866_v48  ;;  %1343 = vmatprep.subr.bf16.mxu0 %v1867_v49  ;;  %v1908_v12 = vld [vmem:[%s2389_s30 + $0x1a0] ss:$8 sps:$4 sm:$0xff]   ;;  %v1911_v14 = vld [vmem:[%s2389_s30 + $0x1b4] ss:$8 sps:$4 sm:$0xff]   ;;  %v1914_v19 = vld [vmem:[%s2389_s30 + $0x1b0] ss:$8 sps:$4 sm:$0xff]  }
  0x76   : > { %1384 = vmatprep.subr.bf16.mxu1 %v1869_v50  ;;  %v735_v15 = vld [vmem:[%s2377_s12] sm:$0xff]  ;;  %v736_v17 = vld [vmem:[%s2377_s12 + $0x8] sm:$0xff]  ;;  %v1915_v21 = vld [vmem:[%s2389_s30 + $0xc4] ss:$8 sps:$4 sm:$0xff]   ;;  %p1762_p1 = scmp.ne.s32.totalorder %s2039_s14, 5 }
  0x77   : > { %v1661_v16 = vcombine.high %v735_v15, %v735_v15  ;;  %v1663_v20 = vcombine.high %v736_v17, %v736_v17  ;;  %v1917_v22 = vld [vmem:[%s2389_s30 + $0x1c4] ss:$8 sps:$4 sm:$0xff]   ;;  %v1919_v23 = vld [vmem:[%s2389_s30 + $0xc0] ss:$8 sps:$4 sm:$0xff]   ;;  %v1921_v25 = vld [vmem:[%s2389_s30 + $0xd4] ss:$8 sps:$4 sm:$0xff]   ;;  %v1660_v38 = vcombine.low %v735_v15, %v735_v15  ;;  %v1662_v39 = vcombine.low %v736_v17, %v736_v17 }
  0x78   : > { %1344 = vmatpush1.bf16.msra.mxu0 %v1871_v51  ;;  %v1920_v24 = vld [vmem:[%s2389_s30 + $0x1c0] ss:$8 sps:$4 sm:$0xff]   ;;  %v1923_v26 = vld [vmem:[%s2389_s30 + $0x1d4] ss:$8 sps:$4 sm:$0xff]   ;;  %v1925_v27 = vld [vmem:[%s2389_s30 + $0xd0] ss:$8 sps:$4 sm:$0xff]  }
  0x79   : > { %1385 = vmatpush1.bf16.msra.mxu1 %v1872_v52  ;;  %1345 = vmatprep.subr.bf16.mxu0 %v1873_v53  ;;  %v1926_v28 = vld [vmem:[%s2389_s30 + $0x1d0] ss:$8 sps:$4 sm:$0xff]   ;;  %v1927_v29 = vld [vmem:[%s2389_s30 + $0xe4] ss:$8 sps:$4 sm:$0xff]   ;;  %v1931_v31 = vld [vmem:[%s2389_s30 + $0xe0] ss:$8 sps:$4 sm:$0xff]  }
  0x7a   : > { %1386 = vmatprep.subr.bf16.mxu1 %v1875_v54  ;;  %1367 = vmatprep.mubr.bf16.mxu0 %v1661_v16  ;;  %v1929_v30 = vld [vmem:[%s2389_s30 + $0x1e4] ss:$8 sps:$4 sm:$0xff]   ;;  %v1932_v32 = vld [vmem:[%s2389_s30 + $0x1e0] ss:$8 sps:$4 sm:$0xff]   ;;  %v1933_v33 = vld [vmem:[%s2389_s30 + $0xf4] ss:$8 sps:$4 sm:$0xff]  }
  0x7b   : > { %1408 = vmatprep.mubr.bf16.mxu1 %v1663_v20  ;;  %v1935_v34 = vld [vmem:[%s2389_s30 + $0x1f4] ss:$8 sps:$4 sm:$0xff]   ;;  %v1937_v35 = vld [vmem:[%s2389_s30 + $0xf0] ss:$8 sps:$4 sm:$0xff]   ;;  %v1945_v37 = vld [vmem:[%s2389_s30 + $0x204] ss:$8 sps:$4 sm:$0xff]  }
  0x7c   : > { %1346 = vmatpush1.bf16.msra.mxu0 %v1877_v55  ;;  %v1938_v36 = vld [vmem:[%s2389_s30 + $0x1f0] ss:$8 sps:$4 sm:$0xff]   ;;  %v1943_v40 = vld [vmem:[%s2389_s30 + $0x200] ss:$8 sps:$4 sm:$0xff]   ;;  %v1948_v42 = vld [vmem:[%s2389_s30 + $0x214] ss:$8 sps:$4 sm:$0xff]  }
  0x7d   : > { %1387 = vmatpush1.bf16.msra.mxu1 %v1878_v56  ;;  %1347 = vmatprep.subr.bf16.mxu0 %v1879_v57  ;;  %v2461_v41 = vld [vmem:[%s2377_s12 + $0x10] sm:$0xff]  ;;  %v1946_v44 = vld [vmem:[%s2389_s30 + $0x210] ss:$8 sps:$4 sm:$0xff]   ;;  %v1954_v47 = vld [vmem:[%s2389_s30 + $0x234] ss:$8 sps:$4 sm:$0xff]  }
  0x7e   : > { %1388 = vmatprep.subr.bf16.mxu1 %v1881_v58  ;;  %v1665_v43 = vcombine.high %v2461_v41, %v2461_v41  ;;  %v1951_v45 = vld [vmem:[%s2389_s30 + $0x224] ss:$8 sps:$4 sm:$0xff]   ;;  %v1949_v46 = vld [vmem:[%s2389_s30 + $0x220] ss:$8 sps:$4 sm:$0xff]   ;;  %v1952_v48 = vld [vmem:[%s2389_s30 + $0x230] ss:$8 sps:$4 sm:$0xff]  }
  0x7f   : > { %v1957_v49 = vld [vmem:[%s2389_s30 + $0x244] ss:$8 sps:$4 sm:$0xff]   ;;  %v1955_v50 = vld [vmem:[%s2389_s30 + $0x240] ss:$8 sps:$4 sm:$0xff]   ;;  %v1960_v51 = vld [vmem:[%s2389_s30 + $0x254] ss:$8 sps:$4 sm:$0xff]  }
  0x80   : > { %1348 = vmatpush1.bf16.msra.mxu0 %v1883_v59  ;;  %v1958_v52 = vld [vmem:[%s2389_s30 + $0x250] ss:$8 sps:$4 sm:$0xff]   ;;  %v1963_v53 = vld [vmem:[%s2389_s30 + $0x264] ss:$8 sps:$4 sm:$0xff]   ;;  %v1961_v54 = vld [vmem:[%s2389_s30 + $0x260] ss:$8 sps:$4 sm:$0xff]  }
  0x81   : > { %1389 = vmatpush1.bf16.msra.mxu1 %v1884_v60  ;;  %1349 = vmatprep.subr.bf16.mxu0 %v1885_v61  ;;  %v1966_v55 = vld [vmem:[%s2389_s30 + $0x274] ss:$8 sps:$4 sm:$0xff]   ;;  %v1964_v56 = vld [vmem:[%s2389_s30 + $0x270] ss:$8 sps:$4 sm:$0xff]   ;;  %v1969_v57 = vld [vmem:[%s2389_s30 + $0x284] ss:$8 sps:$4 sm:$0xff]  }
  0x82   : > { %1390 = vmatprep.subr.bf16.mxu1 %v1887_v62  ;;  %v1967_v58 = vld [vmem:[%s2389_s30 + $0x280] ss:$8 sps:$4 sm:$0xff]   ;;  %v1972_v59 = vld [vmem:[%s2389_s30 + $0x294] ss:$8 sps:$4 sm:$0xff]   ;;  %v1970_v60 = vld [vmem:[%s2389_s30 + $0x290] ss:$8 sps:$4 sm:$0xff]  }
  0x83   : > { %v1975_v61 = vld [vmem:[%s2389_s30 + $0x2a4] ss:$8 sps:$4 sm:$0xff]   ;;  %v1973_v62 = vld [vmem:[%s2389_s30 + $0x2a0] ss:$8 sps:$4 sm:$0xff]   ;;  %v733_v20 = vld [vmem:[#allocation2] sm:$0xff] }
  0x84   : > { %1350 = vmatpush1.bf16.msra.mxu0 %v1889_v63  ;;  %v1978_v63 = vld [vmem:[%s2389_s30 + $0x2b4] ss:$8 sps:$4 sm:$0xff]  }
  0x85   : > { %1391 = vmatpush1.bf16.msra.mxu1 %v1890_v0  ;;  %1351 = vmatprep.subr.bf16.mxu0 %v1891_v1  ;;  %v1976_v0 = vld [vmem:[%s2389_s30 + $0x2b0] ss:$8 sps:$4 sm:$0xff]   ;;  %v1981_v1 = vld [vmem:[%s2389_s30 + $0x2c4] ss:$8 sps:$4 sm:$0xff]  }
  0x86   : > { %1392 = vmatprep.subr.bf16.mxu1 %v1893_v2  ;;  %v1979_v2 = vld [vmem:[%s2389_s30 + $0x2c0] ss:$8 sps:$4 sm:$0xff]  }
  0x88   : > { %1352 = vmatpush1.bf16.msra.mxu0 %v1895_v3  ;;  %v1984_v3 = vld [vmem:[%s2389_s30 + $0x2d4] ss:$8 sps:$4 sm:$0xff]  }
  0x89   : > { %1393 = vmatpush1.bf16.msra.mxu1 %v1896_v4  ;;  %1353 = vmatprep.subr.bf16.mxu0 %v1897_v5  ;;  %v1982_v4 = vld [vmem:[%s2389_s30 + $0x2d0] ss:$8 sps:$4 sm:$0xff]   ;;  %v1987_v5 = vld [vmem:[%s2389_s30 + $0x2e4] ss:$8 sps:$4 sm:$0xff]  }
  0x8a   : > { %1394 = vmatprep.subr.bf16.mxu1 %v1899_v6  ;;  %v1985_v6 = vld [vmem:[%s2389_s30 + $0x2e0] ss:$8 sps:$4 sm:$0xff]  }
  0x8c   : > { %1354 = vmatpush1.bf16.msra.mxu0 %v1901_v7  ;;  %v1990_v7 = vld [vmem:[%s2389_s30 + $0x2f4] ss:$8 sps:$4 sm:$0xff]  }
  0x8d   : > { %1395 = vmatpush1.bf16.msra.mxu1 %v1902_v8  ;;  %1355 = vmatprep.subr.bf16.mxu0 %v1903_v9  ;;  %v1988_v8 = vld [vmem:[%s2389_s30 + $0x2f0] ss:$8 sps:$4 sm:$0xff]   ;;  %v1664_v9 = vcombine.low %v2461_v41, %v2461_v41 }
  0x8e   : > { %1396 = vmatprep.subr.bf16.mxu1 %v1905_v10 }
  0x90   : > { %1356 = vmatpush1.bf16.msra.mxu0 %v1907_v11 }
  0x91   : > { %1397 = vmatpush1.bf16.msra.mxu1 %v1908_v12  ;;  %1357 = vmatprep.subr.bf16.mxu0 %v1909_v13 }
  0x92   : > { %1398 = vmatprep.subr.bf16.mxu1 %v1911_v14 }
  0x94   : > { %1358 = vmatpush1.bf16.msra.mxu0 %v1913_v18 }
  0x95   : > { %1399 = vmatpush1.bf16.msra.mxu1 %v1914_v19  ;;  %1359 = vmatprep.subr.bf16.mxu0 %v1915_v21 }
  0x96   : > { %1400 = vmatprep.subr.bf16.mxu1 %v1917_v22 }
  0x98   : > { %1360 = vmatpush1.bf16.msra.mxu0 %v1919_v23  ;;  %v734_v23 = vld [vmem:[#allocation2 + $0x8] sm:$0xff] }
  0x99   : > { %1401 = vmatpush1.bf16.msra.mxu1 %v1920_v24  ;;  %1361 = vmatprep.subr.bf16.mxu0 %v1921_v25 }
  0x9a   : > { %1402 = vmatprep.subr.bf16.mxu1 %v1923_v26 }
  0x9c   : > { %1362 = vmatpush1.bf16.msra.mxu0 %v1925_v27 }
  0x9d   : > { %1403 = vmatpush1.bf16.msra.mxu1 %v1926_v28  ;;  %1363 = vmatprep.subr.bf16.mxu0 %v1927_v29 }
  0x9e   : > { %1404 = vmatprep.subr.bf16.mxu1 %v1929_v30  ;;  %v1470_v30 = vlaneseq (!%p1762_p1) }
  0xa0   : > { %1364 = vmatpush1.bf16.msra.mxu0 %v1931_v31  ;;  %v1471_v31 = vshrl.u32 (!%p1762_p1), %v1470_v30, 7 }
  0xa1   : > { %1405 = vmatpush1.bf16.msra.mxu1 %v1932_v32  ;;  %1365 = vmatprep.subr.bf16.mxu0 %v1933_v33  ;;  %v1468_v32 = vld [vmem:[%s711_s15] sm:$0x3] (!%p1762_p1) }
  0xa2   : > { %1406 = vmatprep.subr.bf16.mxu1 %v1935_v34  ;;  %v1472_v33 = vsub.s32 (!%p1762_p1), 0, %v1471_v31  ;;  %v1476_v34 = vsub.s32 (!%p1762_p1), 1, %v1471_v31 }
  0xa4   : > { %1366 = vmatpush1.bf16.msra.mxu0 %v1937_v35 }
  0xa5   : > { %1407 = vmatpush1.bf16.msra.mxu1 %v1938_v36  ;;  %1417 = vmatprep.subr.bf16.mxu0 %v1945_v37  ;;  %v1473_v37 = vrot.slane (!%p1762_p1), %v1468_v32, %v1472_v33 }
  0xa7   : > { %1368 = vmatmul.mubr.bf16.vlgmr.msra.gmra.mrb[0].mxu0 %v1660_v38  ;;  %v1477_v38 = vrot.slane (!%p1762_p1), %v1468_v32, %v1476_v34 }
  0xa8   : > { %1409 = vmatmul.mubr.bf16.vlgmr.msra.gmra.mrb[0].mxu1 %v1662_v39  ;;  %1418 = vmatpush1.bf16.msra.mxu0 %v1943_v40 }
  0xa9   : > { %1449 = vmatprep.mubr.bf16.mxu0 %v1665_v43  ;;  %1419 = vmatprep.subr.bf16.mxu0 %v1948_v42 }
  0xac   : > { %1420 = vmatpush1.bf16.msra.mxu0 %v1946_v44 }
  0xad   : > { %1421 = vmatprep.subr.bf16.mxu0 %v1951_v45 }
  0xb0   : > { %1422 = vmatpush1.bf16.msra.mxu0 %v1949_v46 }
  0xb1   : > { %1423 = vmatprep.subr.bf16.mxu0 %v1954_v47 }
  0xb4   : > { %1424 = vmatpush1.bf16.msra.mxu0 %v1952_v48 }
  0xb5   : > { %1425 = vmatprep.subr.bf16.mxu0 %v1957_v49 }
  0xb8   : > { %1426 = vmatpush1.bf16.msra.mxu0 %v1955_v50 }
  0xb9   : > { %1427 = vmatprep.subr.bf16.mxu0 %v1960_v51 }
  0xbc   : > { %1428 = vmatpush1.bf16.msra.mxu0 %v1958_v52 }
  0xbd   : > { %1429 = vmatprep.subr.bf16.mxu0 %v1963_v53 }
  0xc0   : > { %1430 = vmatpush1.bf16.msra.mxu0 %v1961_v54 }
  0xc1   : > { %1431 = vmatprep.subr.bf16.mxu0 %v1966_v55 }
  0xc4   : > { %1432 = vmatpush1.bf16.msra.mxu0 %v1964_v56 }
  0xc5   : > { %1433 = vmatprep.subr.bf16.mxu0 %v1969_v57 }
  0xc8   : > { %1434 = vmatpush1.bf16.msra.mxu0 %v1967_v58 }
  0xc9   : > { %1435 = vmatprep.subr.bf16.mxu0 %v1972_v59 }
  0xcc   : > { %1436 = vmatpush1.bf16.msra.mxu0 %v1970_v60 }
  0xcd   : > { %1437 = vmatprep.subr.bf16.mxu0 %v1975_v61 }
  0xd0   : > { %1438 = vmatpush1.bf16.msra.mxu0 %v1973_v62 }
  0xd1   : > { %1439 = vmatprep.subr.bf16.mxu0 %v1978_v63 }
  0xd4   : > { %1440 = vmatpush1.bf16.msra.mxu0 %v1976_v0 }
  0xd5   : > { %1441 = vmatprep.subr.bf16.mxu0 %v1981_v1 }
  0xd8   : > { %1442 = vmatpush1.bf16.msra.mxu0 %v1979_v2 }
  0xd9   : > { %1443 = vmatprep.subr.bf16.mxu0 %v1984_v3 }
  0xdc   : > { %1444 = vmatpush1.bf16.msra.mxu0 %v1982_v4 }
  0xdd   : > { %1445 = vmatprep.subr.bf16.mxu0 %v1987_v5 }
  0xe0   : > { %1446 = vmatpush1.bf16.msra.mxu0 %v1985_v6 }
  0xe1   : > { %1447 = vmatprep.subr.bf16.mxu0 %v1990_v7 }
  0xe4   : > { %1448 = vmatpush1.bf16.msra.mxu0 %v1988_v8 }
  0xe7   : > { %1450 = vmatmul.mubr.bf16.vlgmr.msra.gmra.mrb[4].mxu0 %v1664_v9 }
 0x17a   : > { %v1369_v10 = vpop.f32.mrb[0].mxu0 }
 0x17b   : > { %v1410_v11 = vpop.f32.mrb[0].mxu1  ;;  %v1371_v13 = vpop.f32.mrb[1].mxu0 }
 0x17c   : > { %v1411_v12 = vadd.f32 %v1410_v11, %v1369_v10  ;;  %v1412_v14 = vpop.f32.mrb[1].mxu1  ;;  %v1373_v16 = vpop.f32.mrb[2].mxu0 }
 0x17d   : > { %v1413_v15 = vadd.f32 %v1412_v14, %v1371_v13  ;;  %v1414_v17 = vpop.f32.mrb[2].mxu1  ;;  %v1374_v18 = vpop.f32.mrb[3].mxu0 }
 0x17e   : > { %v1415_v19 = vpop.f32.mrb[3].mxu1 }
 0x1ba   : > { %v1451_v21 = vpop.f32.mrb[4].mxu0  ;;  %1465 = sbr.rel (%p1762_p1) target bundleno = 461 (0x1cd), region = 78 }
 0x1bb   : > { %v1452_v22 = vadd.f32 %v1451_v21, %v1411_v12  ;;  %v1453_v24 = vpop.f32.mrb[5].mxu0 }
 0x1bc   : > { %v1454_v25 = vadd.f32 %v1453_v24, %v1413_v15  ;;  %v1455_v26 = vpop.f32.mrb[6].mxu0 }
 0x1bd   : > { %v1458_v27 = vadd.f32 %v1452_v22, %v733_v20  ;;  %v1456_v28 = vpop.f32.mrb[7].mxu0 }
 0x1be   : > { %v1459_v29 = vadd.f32 %v1454_v25, %v734_v23 }
 0x1bf   : > { %1460 = vst [vmem:[#allocation2] sm:$0xff] %v1458_v27 }
 0x1c0   : > { %1461 = vst [vmem:[#allocation2 + $0x8] sm:$0xff] %v1459_v29 }
 0x1c6   : > { %v1466_v35 = vld [vmem:[#allocation2] sm:$0xff] }
 0x1c7   : > { %v1467_v36 = vld [vmem:[#allocation2 + $0x8] sm:$0xff]  ;;  %v1480_v39 = vadd.f32 %v1473_v37, %v1466_v35 }
 0x1c8   : > { %v1481_v40 = vadd.f32 %v1477_v38, %v1467_v36 }
 0x1c9   : > { %v1482_v41 = vmax.f32 %v1480_v39, 0.0 }
 0x1ca   : > { %v1483_v42 = vmax.f32 %v1481_v40, 0.0 }
 0x1cb   : > { %1484 = vst [vmem:[%s2387_s16] sm:$0xff] %v1482_v41 }
 0x1cc   : > { %1485 = vst [vmem:[%s2387_s16 + $0x8] sm:$0xff] %v1483_v42 }
 0x1cd PF: > { %s13_s20 = sadd.s32 1, %s2063_s20   ;;  %s2539_s12 = smov %s2035_s13 }
 0x1ce   : > { %p10_p2 = scmp.ge.s32.totalorder %s13_s20, 26   ;;  %s2540_s13 = smov %s2157_s4 }
 0x1cf   : > { %s2541_s14 = smov %s2051_s17  ;;  %s2542_s15 = smov %s2055_s18 }
 0x1d0   : > { %s2543_s16 = smov %s2059_s19  ;;  %s2544_s17 = smov %s2550_s21 }
 0x1d1   : > { %s2545_s18 = smov %s2554_s22  ;;  %s2546_s19 = smov %s2556_s23 }
 0x1d2   :  { %12 = sbr.rel (!%p10_p2) target bundleno = 7 (0x7), region = 119 }

// kernel: encoder_forward.41
= control target key start
LH: loop header
LB: loop body
LE: loop exit
PB: predicated region body
PF: predicated region fallthrough
CT: control target
= control target key end

     0   :  { %vm921_vm0 = vmmov 0   ;;  %s1452_s2 = inlined_call_operand.vmem [shape: f32[512,128], index: 2, kind: input, shape index: {}]   ;;  %s1453_s0 = inlined_call_operand.vmem [shape: f32[8,512], index: 0, kind: input, shape index: {}]   ;;  %s1454_s4 = inlined_call_operand.vmem [shape: f32[512,128], index: 4, kind: input, shape index: {}]   ;;  %s1455_s1 = inlined_call_operand.vmem [shape: f32[8,512], index: 1, kind: input, shape index: {}]   ;;  %s1456_s6 = inlined_call_operand.vmem [shape: f32[128,128], index: 6, kind: input, shape index: {}]   ;;  %s1457_s3 = inlined_call_operand.vmem [shape: f32[1,128], index: 3, kind: input, shape index: {}]   ;;  %s1458_s8 = inlined_call_operand.vmem [shape: f32[8,128], index: 8, kind: output, shape index: {0}]   ;;  %s1459_s5 = inlined_call_operand.vmem [shape: f32[1,128], index: 5, kind: input, shape index: {}]   ;;  %s1460_s9 = inlined_call_operand.vmem [shape: f32[8,128], index: 9, kind: output, shape index: {1}]   ;;  %s1461_s7 = inlined_call_operand.vmem [shape: f32[1,128], index: 7, kind: input, shape index: {}]   ;;  %s1462_s10 = inlined_call_operand.vmem [shape: f32[8,128], index: 10, kind: output, shape index: {2}]  }
   0x1   :  { %v52_v0 = vld [vmem:[%s1452_s2 + $0x80] sm:$0xff]  ;;  %v53_v1 = vld [vmem:[%s1452_s2 + $0x88] sm:$0xff]  ;;  %v54_v11 = vld [vmem:[%s1452_s2 + $0x90] sm:$0xff] }
   0x2   :  { %v36_v2 = vld [vmem:[%s1452_s2] sm:$0xff]  ;;  %v765_v3 = vpack.c.bf16 %v53_v1, %v52_v0  ;;  %v37_v4 = vld [vmem:[%s1452_s2 + $0x8] sm:$0xff]  ;;  %v55_v13 = vld [vmem:[%s1452_s2 + $0x98] sm:$0xff] }
   0x3   :  { %v84_v5 = vld [vmem:[%s1452_s2 + $0x180] sm:$0xff]  ;;  %v85_v6 = vld [vmem:[%s1452_s2 + $0x188] sm:$0xff]  ;;  %v767_v7 = vpack.c.bf16 %v37_v4, %v36_v2  ;;  %v38_v14 = vld [vmem:[%s1452_s2 + $0x10] sm:$0xff]  ;;  %v769_v16 = vpack.c.bf16 %v55_v13, %v54_v11 }
   0x4   :  { %v797_v8 = vpack.c.bf16 %v85_v6, %v84_v5  ;;  %v68_v9 = vld [vmem:[%s1452_s2 + $0x100] sm:$0xff]  ;;  %v69_v10 = vld [vmem:[%s1452_s2 + $0x108] sm:$0xff]  ;;  %766 = vmatprep.subr.bf16.mxu0 %v765_v3  ;;  %v39_v15 = vld [vmem:[%s1452_s2 + $0x18] sm:$0xff] }
   0x5   :  { %v799_v12 = vpack.c.bf16 %v69_v10, %v68_v9  ;;  %768 = vmatpush3.bf16.msra.mxu0 %v767_v7  ;;  %v771_v17 = vpack.c.bf16 %v39_v15, %v38_v14  ;;  %v86_v18 = vld [vmem:[%s1452_s2 + $0x190] sm:$0xff]  ;;  %v87_v19 = vld [vmem:[%s1452_s2 + $0x198] sm:$0xff]  ;;  %v56_v23 = vld [vmem:[%s1452_s2 + $0xa0] sm:$0xff] }
   0x6   :  { %798 = vmatprep.subr.bf16.mxu1 %v797_v8  ;;  %v70_v20 = vld [vmem:[%s1452_s2 + $0x110] sm:$0xff]  ;;  %v801_v21 = vpack.c.bf16 %v87_v19, %v86_v18  ;;  %v71_v22 = vld [vmem:[%s1452_s2 + $0x118] sm:$0xff]  ;;  %v57_v24 = vld [vmem:[%s1452_s2 + $0xa8] sm:$0xff]  ;;  %770 = vmatprep.subr.bf16.mxu0 %v769_v16 }
   0x7   :  { %800 = vmatpush3.bf16.msra.mxu1 %v799_v12  ;;  %v803_v25 = vpack.c.bf16 %v71_v22, %v70_v20  ;;  %v773_v26 = vpack.c.bf16 %v57_v24, %v56_v23  ;;  %v40_v27 = vld [vmem:[%s1452_s2 + $0x20] sm:$0xff]  ;;  %v41_v28 = vld [vmem:[%s1452_s2 + $0x28] sm:$0xff]  ;;  %v58_v35 = vld [vmem:[%s1452_s2 + $0xb0] sm:$0xff] }
   0x8   :  { %v88_v29 = vld [vmem:[%s1452_s2 + $0x1a0] sm:$0xff]  ;;  %802 = vmatprep.subr.bf16.mxu1 %v801_v21  ;;  %v89_v30 = vld [vmem:[%s1452_s2 + $0x1a8] sm:$0xff]  ;;  %v775_v33 = vpack.c.bf16 %v41_v28, %v40_v27  ;;  %v59_v36 = vld [vmem:[%s1452_s2 + $0xb8] sm:$0xff] }
   0x9   :  { %v72_v31 = vld [vmem:[%s1452_s2 + $0x120] sm:$0xff]  ;;  %v73_v32 = vld [vmem:[%s1452_s2 + $0x128] sm:$0xff]  ;;  %772 = vmatpush3.bf16.msra.mxu0 %v771_v17  ;;  %v805_v34 = vpack.c.bf16 %v89_v30, %v88_v29  ;;  %v42_v37 = vld [vmem:[%s1452_s2 + $0x30] sm:$0xff]  ;;  %v777_v39 = vpack.c.bf16 %v59_v36, %v58_v35 }
   0xa   :  { %774 = vmatprep.subr.bf16.mxu0 %v773_v26  ;;  %v807_v38 = vpack.c.bf16 %v73_v32, %v72_v31  ;;  %v43_v40 = vld [vmem:[%s1452_s2 + $0x38] sm:$0xff]  ;;  %v90_v41 = vld [vmem:[%s1452_s2 + $0x1b0] sm:$0xff]  ;;  %v60_v46 = vld [vmem:[%s1452_s2 + $0xc0] sm:$0xff] }
   0xb   :  { %804 = vmatpush3.bf16.msra.mxu1 %v803_v25  ;;  %v91_v42 = vld [vmem:[%s1452_s2 + $0x1b8] sm:$0xff]  ;;  %v74_v44 = vld [vmem:[%s1452_s2 + $0x130] sm:$0xff]  ;;  %v61_v47 = vld [vmem:[%s1452_s2 + $0xc8] sm:$0xff]  ;;  %v779_v48 = vpack.c.bf16 %v43_v40, %v42_v37 }
   0xc   :  { %806 = vmatprep.subr.bf16.mxu1 %v805_v34  ;;  %v809_v43 = vpack.c.bf16 %v91_v42, %v90_v41  ;;  %v75_v45 = vld [vmem:[%s1452_s2 + $0x138] sm:$0xff]  ;;  %v92_v49 = vld [vmem:[%s1452_s2 + $0x1c0] sm:$0xff]  ;;  %v93_v50 = vld [vmem:[%s1452_s2 + $0x1c8] sm:$0xff]  ;;  %v781_v52 = vpack.c.bf16 %v61_v47, %v60_v46 }
   0xd   :  { %776 = vmatpush3.bf16.msra.mxu0 %v775_v33  ;;  %v811_v51 = vpack.c.bf16 %v75_v45, %v74_v44  ;;  %v44_v53 = vld [vmem:[%s1452_s2 + $0x40] sm:$0xff]  ;;  %v45_v54 = vld [vmem:[%s1452_s2 + $0x48] sm:$0xff]  ;;  %v813_v56 = vpack.c.bf16 %v93_v50, %v92_v49  ;;  %v62_v58 = vld [vmem:[%s1452_s2 + $0xd0] sm:$0xff] }
   0xe   :  { %778 = vmatprep.subr.bf16.mxu0 %v777_v39  ;;  %v76_v55 = vld [vmem:[%s1452_s2 + $0x140] sm:$0xff]  ;;  %v77_v57 = vld [vmem:[%s1452_s2 + $0x148] sm:$0xff]  ;;  %v63_v59 = vld [vmem:[%s1452_s2 + $0xd8] sm:$0xff]  ;;  %v783_v62 = vpack.c.bf16 %v45_v54, %v44_v53 }
   0xf   :  { %808 = vmatpush3.bf16.msra.mxu1 %v807_v38  ;;  %v94_v60 = vld [vmem:[%s1452_s2 + $0x1d0] sm:$0xff]  ;;  %v95_v61 = vld [vmem:[%s1452_s2 + $0x1d8] sm:$0xff]  ;;  %v815_v63 = vpack.c.bf16 %v77_v57, %v76_v55  ;;  %v785_v0 = vpack.c.bf16 %v63_v59, %v62_v58  ;;  %v64_v6 = vld [vmem:[%s1452_s2 + $0xe0] sm:$0xff] }
  0x10   :  { %810 = vmatprep.subr.bf16.mxu1 %v809_v43  ;;  %v46_v1 = vld [vmem:[%s1452_s2 + $0x50] sm:$0xff]  ;;  %v47_v2 = vld [vmem:[%s1452_s2 + $0x58] sm:$0xff]  ;;  %v817_v4 = vpack.c.bf16 %v95_v61, %v94_v60  ;;  %v65_v7 = vld [vmem:[%s1452_s2 + $0xe8] sm:$0xff] }
  0x11   :  { %780 = vmatpush3.bf16.msra.mxu0 %v779_v48  ;;  %v78_v3 = vld [vmem:[%s1452_s2 + $0x150] sm:$0xff]  ;;  %v79_v5 = vld [vmem:[%s1452_s2 + $0x158] sm:$0xff]  ;;  %v96_v8 = vld [vmem:[%s1452_s2 + $0x1e0] sm:$0xff]  ;;  %v787_v10 = vpack.c.bf16 %v47_v2, %v46_v1  ;;  %v789_v14 = vpack.c.bf16 %v65_v7, %v64_v6 }
  0x12   :  { %782 = vmatprep.subr.bf16.mxu0 %v781_v52  ;;  %v97_v9 = vld [vmem:[%s1452_s2 + $0x1e8] sm:$0xff]  ;;  %v48_v11 = vld [vmem:[%s1452_s2 + $0x60] sm:$0xff]  ;;  %v819_v13 = vpack.c.bf16 %v79_v5, %v78_v3  ;;  %v66_v19 = vld [vmem:[%s1452_s2 + $0xf0] sm:$0xff] }
  0x13   :  { %812 = vmatpush3.bf16.msra.mxu1 %v811_v51  ;;  %v49_v12 = vld [vmem:[%s1452_s2 + $0x68] sm:$0xff]  ;;  %v80_v15 = vld [vmem:[%s1452_s2 + $0x160] sm:$0xff]  ;;  %v821_v18 = vpack.c.bf16 %v97_v9, %v96_v8  ;;  %v67_v20 = vld [vmem:[%s1452_s2 + $0xf8] sm:$0xff] }
  0x14   :  { %814 = vmatprep.subr.bf16.mxu1 %v813_v56  ;;  %v81_v16 = vld [vmem:[%s1452_s2 + $0x168] sm:$0xff]  ;;  %v35_v21 = vld [vmem:[%s1453_s0 + $0x18] sm:$0xff]  ;;  %v98_v22 = vld [vmem:[%s1452_s2 + $0x1f0] sm:$0xff]  ;;  %v791_v24 = vpack.c.bf16 %v49_v12, %v48_v11  ;;  %v793_v26 = vpack.c.bf16 %v67_v20, %v66_v19 }
  0x15   :  { %784 = vmatpush3.bf16.msra.mxu0 %v783_v62  ;;  %v33_v17 = vld [vmem:[%s1453_s0 + $0x8] sm:$0xff]  ;;  %v99_v23 = vld [vmem:[%s1452_s2 + $0x1f8] sm:$0xff]  ;;  %241 = vmatprep.mubr.f32.mxu1 %v35_v21  ;;  %v823_v25 = vpack.c.bf16 %v81_v16, %v80_v15  ;;  %v50_v27 = vld [vmem:[%s1452_s2 + $0x70] sm:$0xff] }
  0x16   :  { %786 = vmatprep.subr.bf16.mxu0 %v785_v0  ;;  %171 = vmatprep.mubr.f32.mxu0 %v33_v17  ;;  %v51_v28 = vld [vmem:[%s1452_s2 + $0x78] sm:$0xff]  ;;  %v82_v29 = vld [vmem:[%s1452_s2 + $0x170] sm:$0xff]  ;;  %v825_v30 = vpack.c.bf16 %v99_v23, %v98_v22  ;;  %v267_v32 = vld [vmem:[%s1454_s4 + $0x80] sm:$0xff] }
  0x17   :  { %816 = vmatpush3.bf16.msra.mxu1 %v815_v63  ;;  %v83_v31 = vld [vmem:[%s1452_s2 + $0x178] sm:$0xff]  ;;  %v268_v33 = vld [vmem:[%s1454_s4 + $0x88] sm:$0xff]  ;;  %v299_v34 = vld [vmem:[%s1454_s4 + $0x180] sm:$0xff]  ;;  %v795_v36 = vpack.c.bf16 %v51_v28, %v50_v27 }
  0x18   :  { %818 = vmatprep.subr.bf16.mxu1 %v817_v4  ;;  %v300_v35 = vld [vmem:[%s1454_s4 + $0x188] sm:$0xff]  ;;  %v827_v37 = vpack.c.bf16 %v83_v31, %v82_v29  ;;  %v829_v38 = vpack.c.bf16 %v268_v33, %v267_v32  ;;  %v251_v39 = vld [vmem:[%s1454_s4] sm:$0xff]  ;;  %v269_v44 = vld [vmem:[%s1454_s4 + $0x90] sm:$0xff] }
  0x19   :  { %788 = vmatpush3.bf16.msra.mxu0 %v787_v10  ;;  %v252_v40 = vld [vmem:[%s1454_s4 + $0x8] sm:$0xff]  ;;  %v283_v41 = vld [vmem:[%s1454_s4 + $0x100] sm:$0xff]  ;;  %v861_v42 = vpack.c.bf16 %v300_v35, %v299_v34  ;;  %v270_v45 = vld [vmem:[%s1454_s4 + $0x98] sm:$0xff] }
  0x1a   :  { %790 = vmatprep.subr.bf16.mxu0 %v789_v14  ;;  %v284_v43 = vld [vmem:[%s1454_s4 + $0x108] sm:$0xff]  ;;  %v301_v46 = vld [vmem:[%s1454_s4 + $0x190] sm:$0xff]  ;;  %v302_v47 = vld [vmem:[%s1454_s4 + $0x198] sm:$0xff]  ;;  %v831_v49 = vpack.c.bf16 %v252_v40, %v251_v39  ;;  %v833_v52 = vpack.c.bf16 %v270_v45, %v269_v44 }
  0x1b   :  { %820 = vmatpush3.bf16.msra.mxu1 %v819_v13  ;;  %v32_v48 = vld [vmem:[%s1453_s0] sm:$0xff]  ;;  %v34_v50 = vld [vmem:[%s1453_s0 + $0x10] sm:$0xff]  ;;  %v863_v51 = vpack.c.bf16 %v284_v43, %v283_v41  ;;  %v254_v54 = vld [vmem:[%s1454_s4 + $0x18] sm:$0xff]  ;;  %v865_v56 = vpack.c.bf16 %v302_v47, %v301_v46 }
  0x1c   :  { %822 = vmatprep.subr.bf16.mxu1 %v821_v18  ;;  %v253_v53 = vld [vmem:[%s1454_s4 + $0x10] sm:$0xff]  ;;  %v286_v57 = vld [vmem:[%s1454_s4 + $0x118] sm:$0xff]  ;;  %v271_v58 = vld [vmem:[%s1454_s4 + $0xa0] sm:$0xff] }
  0x1d   :  { %792 = vmatpush3.bf16.msra.mxu0 %v791_v24  ;;  %v285_v55 = vld [vmem:[%s1454_s4 + $0x110] sm:$0xff]  ;;  %v272_v59 = vld [vmem:[%s1454_s4 + $0xa8] sm:$0xff]  ;;  %v303_v60 = vld [vmem:[%s1454_s4 + $0x1a0] sm:$0xff]  ;;  %v835_v62 = vpack.c.bf16 %v254_v54, %v253_v53 }
  0x1e   :  { %794 = vmatprep.subr.bf16.mxu0 %v793_v26  ;;  %v304_v61 = vld [vmem:[%s1454_s4 + $0x1a8] sm:$0xff]  ;;  %v867_v63 = vpack.c.bf16 %v286_v57, %v285_v55  ;;  %v837_v0 = vpack.c.bf16 %v272_v59, %v271_v58  ;;  %v255_v1 = vld [vmem:[%s1454_s4 + $0x20] sm:$0xff]  ;;  %v273_v6 = vld [vmem:[%s1454_s4 + $0xb0] sm:$0xff] }
  0x1f   :  { %824 = vmatpush3.bf16.msra.mxu1 %v823_v25  ;;  %v256_v2 = vld [vmem:[%s1454_s4 + $0x28] sm:$0xff]  ;;  %v287_v3 = vld [vmem:[%s1454_s4 + $0x120] sm:$0xff]  ;;  %v869_v4 = vpack.c.bf16 %v304_v61, %v303_v60  ;;  %v274_v7 = vld [vmem:[%s1454_s4 + $0xb8] sm:$0xff] }
  0x20   :  { %826 = vmatprep.subr.bf16.mxu1 %v825_v30  ;;  %v288_v5 = vld [vmem:[%s1454_s4 + $0x128] sm:$0xff]  ;;  %v305_v8 = vld [vmem:[%s1454_s4 + $0x1b0] sm:$0xff]  ;;  %v306_v9 = vld [vmem:[%s1454_s4 + $0x1b8] sm:$0xff]  ;;  %v839_v10 = vpack.c.bf16 %v256_v2, %v255_v1  ;;  %v841_v12 = vpack.c.bf16 %v274_v7, %v273_v6 }
  0x21   :  { %796 = vmatpush3.bf16.msra.mxu0 %v795_v36  ;;  %v871_v11 = vpack.c.bf16 %v288_v5, %v287_v3  ;;  %v257_v13 = vld [vmem:[%s1454_s4 + $0x30] sm:$0xff]  ;;  %v258_v14 = vld [vmem:[%s1454_s4 + $0x38] sm:$0xff]  ;;  %v873_v16 = vpack.c.bf16 %v306_v9, %v305_v8  ;;  %v275_v18 = vld [vmem:[%s1454_s4 + $0xc0] sm:$0xff] }
  0x22   :  { %830 = vmatprep.subr.bf16.mxu0 %v829_v38  ;;  %v289_v15 = vld [vmem:[%s1454_s4 + $0x130] sm:$0xff]  ;;  %v290_v17 = vld [vmem:[%s1454_s4 + $0x138] sm:$0xff]  ;;  %v276_v19 = vld [vmem:[%s1454_s4 + $0xc8] sm:$0xff]  ;;  %v843_v22 = vpack.c.bf16 %v258_v14, %v257_v13 }
  0x23   :  { %828 = vmatpush3.bf16.msra.mxu1 %v827_v37  ;;  %v307_v20 = vld [vmem:[%s1454_s4 + $0x1c0] sm:$0xff]  ;;  %v308_v21 = vld [vmem:[%s1454_s4 + $0x1c8] sm:$0xff]  ;;  %v250_v24 = vld [vmem:[%s1455_s1 + $0x18] sm:$0xff]  ;;  %v875_v25 = vpack.c.bf16 %v290_v17, %v289_v15  ;;  %v845_v26 = vpack.c.bf16 %v276_v19, %v275_v18 }
  0x24   :  { %862 = vmatprep.subr.bf16.mxu1 %v861_v42  ;;  %172 = vmatmul.mubr.f32.vlgmr.msra.gmra.mrb[0].mxu0 %v32_v48  ;;  %v248_v23 = vld [vmem:[%s1455_s1 + $0x8] sm:$0xff]  ;;  %v259_v27 = vld [vmem:[%s1454_s4 + $0x40] sm:$0xff]  ;;  %v877_v30 = vpack.c.bf16 %v308_v21, %v307_v20  ;;  %v277_v32 = vld [vmem:[%s1454_s4 + $0xd0] sm:$0xff] }
  0x25   :  { %832 = vmatpush3.bf16.msra.mxu0 %v831_v49  ;;  %v260_v28 = vld [vmem:[%s1454_s4 + $0x48] sm:$0xff]  ;;  %v291_v29 = vld [vmem:[%s1454_s4 + $0x140] sm:$0xff]  ;;  %v278_v33 = vld [vmem:[%s1454_s4 + $0xd8] sm:$0xff]  ;;  %386 = vmatprep.mubr.f32.mxu0 %v248_v23 }
  0x26   :  { %242 = vmatmul.mubr.f32.vlgmr.msra.gmra.mrb[0].mxu1 %v34_v50  ;;  %834 = vmatprep.subr.bf16.mxu0 %v833_v52  ;;  %v292_v31 = vld [vmem:[%s1454_s4 + $0x148] sm:$0xff]  ;;  %v309_v34 = vld [vmem:[%s1454_s4 + $0x1d0] sm:$0xff]  ;;  %v310_v35 = vld [vmem:[%s1454_s4 + $0x1d8] sm:$0xff]  ;;  %v847_v36 = vpack.c.bf16 %v260_v28, %v259_v27  ;;  %v849_v38 = vpack.c.bf16 %v278_v33, %v277_v32  ;;  %v922_v33 = vmov 0.0  }
  0x27   :  { %864 = vmatpush3.bf16.msra.mxu1 %v863_v51  ;;  %456 = vmatprep.mubr.f32.mxu1 %v250_v24  ;;  %v879_v37 = vpack.c.bf16 %v292_v31, %v291_v29  ;;  %v261_v39 = vld [vmem:[%s1454_s4 + $0x50] sm:$0xff]  ;;  %v262_v40 = vld [vmem:[%s1454_s4 + $0x58] sm:$0xff]  ;;  %v881_v42 = vpack.c.bf16 %v310_v35, %v309_v34  ;;  %v279_v44 = vld [vmem:[%s1454_s4 + $0xe0] sm:$0xff] }
  0x28   :  { %866 = vmatprep.subr.bf16.mxu1 %v865_v56  ;;  %v293_v41 = vld [vmem:[%s1454_s4 + $0x150] sm:$0xff]  ;;  %v294_v43 = vld [vmem:[%s1454_s4 + $0x158] sm:$0xff]  ;;  %v280_v45 = vld [vmem:[%s1454_s4 + $0xe8] sm:$0xff]  ;;  %v851_v48 = vpack.c.bf16 %v262_v40, %v261_v39 }
  0x29   :  { %836 = vmatpush3.bf16.msra.mxu0 %v835_v62  ;;  %v311_v46 = vld [vmem:[%s1454_s4 + $0x1e0] sm:$0xff]  ;;  %v312_v47 = vld [vmem:[%s1454_s4 + $0x1e8] sm:$0xff]  ;;  %v883_v49 = vpack.c.bf16 %v294_v43, %v293_v41  ;;  %v853_v50 = vpack.c.bf16 %v280_v45, %v279_v44  ;;  %v281_v56 = vld [vmem:[%s1454_s4 + $0xf0] sm:$0xff] }
  0x2a   :  { %838 = vmatprep.subr.bf16.mxu0 %v837_v0  ;;  %v263_v51 = vld [vmem:[%s1454_s4 + $0x60] sm:$0xff]  ;;  %v264_v52 = vld [vmem:[%s1454_s4 + $0x68] sm:$0xff]  ;;  %v885_v54 = vpack.c.bf16 %v312_v47, %v311_v46  ;;  %v282_v57 = vld [vmem:[%s1454_s4 + $0xf8] sm:$0xff] }
  0x2b   :  { %868 = vmatpush3.bf16.msra.mxu1 %v867_v63  ;;  %v295_v53 = vld [vmem:[%s1454_s4 + $0x160] sm:$0xff]  ;;  %v296_v55 = vld [vmem:[%s1454_s4 + $0x168] sm:$0xff]  ;;  %v313_v58 = vld [vmem:[%s1454_s4 + $0x1f0] sm:$0xff]  ;;  %v855_v60 = vpack.c.bf16 %v264_v52, %v263_v51  ;;  %v857_v62 = vpack.c.bf16 %v282_v57, %v281_v56 }
  0x2c   :  { %870 = vmatprep.subr.bf16.mxu1 %v869_v4  ;;  %v314_v59 = vld [vmem:[%s1454_s4 + $0x1f8] sm:$0xff]  ;;  %v887_v61 = vpack.c.bf16 %v296_v55, %v295_v53  ;;  %v265_v63 = vld [vmem:[%s1454_s4 + $0x70] sm:$0xff]  ;;  %v247_v6 = vld [vmem:[%s1455_s1] sm:$0xff] }
  0x2d   :  { %840 = vmatpush3.bf16.msra.mxu0 %v839_v10  ;;  %v266_v0 = vld [vmem:[%s1454_s4 + $0x78] sm:$0xff]  ;;  %v889_v1 = vpack.c.bf16 %v314_v59, %v313_v58  ;;  %v297_v2 = vld [vmem:[%s1454_s4 + $0x170] sm:$0xff]  ;;  %v462_v8 = vld [vmem:[%s1456_s6] sm:$0xff] }
  0x2e   :  { %842 = vmatprep.subr.bf16.mxu0 %v841_v12  ;;  %v298_v3 = vld [vmem:[%s1454_s4 + $0x178] sm:$0xff]  ;;  %v859_v4 = vpack.c.bf16 %v266_v0, %v265_v63  ;;  %v249_v7 = vld [vmem:[%s1455_s1 + $0x10] sm:$0xff]  ;;  %v463_v9 = vld [vmem:[%s1456_s6 + $0x8] sm:$0xff] }
  0x2f   :  { %872 = vmatpush3.bf16.msra.mxu1 %v871_v11  ;;  %v891_v5 = vpack.c.bf16 %v298_v3, %v297_v2  ;;  %v894_v10 = vpack.c.bf16 %v463_v9, %v462_v8  ;;  %v920_v11 = vmov 0.0|0.0   ;;  %v464_v12 = vld [vmem:[%s1456_s6 + $0x10] sm:$0xff]  ;;  %v465_v13 = vld [vmem:[%s1456_s6 + $0x18] sm:$0xff]  ;;  %v466_v15 = vld [vmem:[%s1456_s6 + $0x20] sm:$0xff] }
  0x30   :  { %874 = vmatprep.subr.bf16.mxu1 %v873_v16  ;;  %v897_v14 = vpack.c.bf16 %v465_v13, %v464_v12  ;;  %v467_v16 = vld [vmem:[%s1456_s6 + $0x28] sm:$0xff]  ;;  %v468_v18 = vld [vmem:[%s1456_s6 + $0x30] sm:$0xff]  ;;  %v469_v19 = vld [vmem:[%s1456_s6 + $0x38] sm:$0xff] }
  0x31   :  { %844 = vmatpush3.bf16.msra.mxu0 %v843_v22  ;;  %v900_v17 = vpack.c.bf16 %v467_v16, %v466_v15  ;;  %v903_v20 = vpack.c.bf16 %v469_v19, %v468_v18  ;;  %v470_v21 = vld [vmem:[%s1456_s6 + $0x40] sm:$0xff]  ;;  %v471_v22 = vld [vmem:[%s1456_s6 + $0x48] sm:$0xff]  ;;  %v472_v24 = vld [vmem:[%s1456_s6 + $0x50] sm:$0xff] }
  0x32   :  { %846 = vmatprep.subr.bf16.mxu0 %v845_v26  ;;  %v906_v23 = vpack.c.bf16 %v471_v22, %v470_v21  ;;  %v474_v27 = vld [vmem:[%s1456_s6 + $0x60] sm:$0xff]  ;;  %v475_v28 = vld [vmem:[%s1456_s6 + $0x68] sm:$0xff]  ;;  %v477_v31 = vld [vmem:[%s1456_s6 + $0x78] sm:$0xff] }
  0x33   :  { %876 = vmatpush3.bf16.msra.mxu1 %v875_v25  ;;  %v473_v25 = vld [vmem:[%s1456_s6 + $0x58] sm:$0xff]  ;;  %v912_v29 = vpack.c.bf16 %v475_v28, %v474_v27  ;;  %v570_v35 = vld [vmem:[%s1457_s3] ss:$0 sm:$0xff] }
  0x34   :  { %878 = vmatprep.subr.bf16.mxu1 %v877_v30  ;;  %v909_v26 = vpack.c.bf16 %v473_v25, %v472_v24  ;;  %v476_v30 = vld [vmem:[%s1456_s6 + $0x70] sm:$0xff]  ;;  %v571_v44 = vld [vmem:[%s1459_s5] ss:$0 sm:$0xff] }
  0x35   :  { %848 = vmatpush3.bf16.msra.mxu0 %v847_v36  ;;  %v915_v32 = vpack.c.bf16 %v477_v31, %v476_v30  ;;  %v572_v52 = vld [vmem:[%s1461_s7] ss:$0 sm:$0xff] }
  0x36   :  { %850 = vmatprep.subr.bf16.mxu0 %v849_v38 }
  0x37   :  { %880 = vmatpush3.bf16.msra.mxu1 %v879_v37 }
  0x38   :  { %882 = vmatprep.subr.bf16.mxu1 %v881_v42 }
  0x39   :  { %852 = vmatpush3.bf16.msra.mxu0 %v851_v48 }
  0x3a   :  { %854 = vmatprep.subr.bf16.mxu0 %v853_v50 }
  0x3b   :  { %884 = vmatpush3.bf16.msra.mxu1 %v883_v49 }
  0x3c   :  { %886 = vmatprep.subr.bf16.mxu1 %v885_v54 }
  0x3d   :  { %856 = vmatpush3.bf16.msra.mxu0 %v855_v60 }
  0x3e   :  { %858 = vmatprep.subr.bf16.mxu0 %v857_v62 }
  0x3f   :  { %888 = vmatpush3.bf16.msra.mxu1 %v887_v61 }
  0x40   :  { %890 = vmatprep.subr.bf16.mxu1 %v889_v1 }
  0x41   :  { %860 = vmatpush3.bf16.msra.mxu0 %v859_v4 }
  0x42   :  { %893 = vmatprep.subr.bf16.mxu0 %v920_v11 }
  0x43   :  { %892 = vmatpush3.bf16.msra.mxu1 %v891_v5 }
  0x44   :  { %387 = vmatmul.mubr.f32.vlgmr.msra.gmra.mrb[2].mxu0 %v247_v6 }
  0x45   :  { %895 = vmatpush3.bf16.msra.mxu0 %v894_v10  ;;  %762 = vmatprep.mubr.msk.f32.mxu0 %vm921_vm0, %v922_v33 }
  0x46   :  { %457 = vmatmul.mubr.f32.vlgmr.msra.gmra.mrb[2].mxu1 %v249_v7  ;;  %896 = vmatprep.subr.bf16.mxu0 %v920_v11 }
  0x49   :  { %898 = vmatpush3.bf16.msra.mxu0 %v897_v14 }
  0x4a   :  { %899 = vmatprep.subr.bf16.mxu0 %v920_v11 }
  0x4d   :  { %901 = vmatpush3.bf16.msra.mxu0 %v900_v17 }
  0x4e   :  { %902 = vmatprep.subr.bf16.mxu0 %v920_v11 }
  0x51   :  { %904 = vmatpush3.bf16.msra.mxu0 %v903_v20 }
  0x52   :  { %905 = vmatprep.subr.bf16.mxu0 %v920_v11 }
  0x55   :  { %907 = vmatpush3.bf16.msra.mxu0 %v906_v23 }
  0x56   :  { %908 = vmatprep.subr.bf16.mxu0 %v920_v11 }
  0x59   :  { %910 = vmatpush3.bf16.msra.mxu0 %v909_v26 }
  0x5a   :  { %911 = vmatprep.subr.bf16.mxu0 %v920_v11 }
  0x5d   :  { %913 = vmatpush3.bf16.msra.mxu0 %v912_v29 }
  0x5e   :  { %914 = vmatprep.subr.bf16.mxu0 %v920_v11 }
  0x61   :  { %916 = vmatpush3.bf16.msra.mxu0 %v915_v32 }
  0xf7   :  { %v605_v34 = vpop.f32.mrb[0].mxu0 }
  0xf8   :  { %v606_v36 = vpop.f32.mrb[1].mxu0 }
  0xf9   :  { %v640_v37 = vpop.f32.mrb[0].mxu1  ;;  %v607_v38 = vadd.f32 %v606_v36, %v605_v34 }
  0xfa   :  { %v641_v39 = vpop.f32.mrb[1].mxu1 }
  0xfb   :  { %v642_v40 = vadd.f32 %v641_v39, %v640_v37  ;;  %v174_v41 = vadd.f32 %v607_v38, %v570_v35 }
  0xfd   :  { %v244_v42 = vadd.f32 %v642_v40, %v174_v41 }
  0xff   :  { %555 = vst [vmem:[%s1458_s8] sm:$0xff] %v244_v42 }
 0x117   :  { %v675_v43 = vpop.f32.mrb[2].mxu0 }
 0x118   :  { %v676_v45 = vpop.f32.mrb[3].mxu0 }
 0x119   :  { %v710_v46 = vpop.f32.mrb[2].mxu1  ;;  %v677_v47 = vadd.f32 %v676_v45, %v675_v43 }
 0x11a   :  { %v711_v48 = vpop.f32.mrb[3].mxu1 }
 0x11b   :  { %v712_v49 = vadd.f32 %v711_v48, %v710_v46  ;;  %v389_v50 = vadd.f32 %v677_v47, %v571_v44 }
 0x11d   :  { %v459_v51 = vadd.f32 %v712_v49, %v389_v50 }
 0x11f   :  { %556 = vst [vmem:[%s1460_s9] sm:$0xff] %v459_v51  ;;  %763 = vmatmul.mubr.f32.vlgmr.msra.gmra.mrb[4].mxu0 %v459_v51 }
 0x1f2   :  { %v551_v53 = vpop.f32.mrb[4].mxu0 }
 0x1f3   :  { %v552_v54 = vadd.f32 %v572_v52, %v551_v53  ;;  %v764_v55 = vpop.f32.mrb[5].mxu0 }
 0x1f5   :  { %557 = vst [vmem:[%s1462_s10] sm:$0xff] %v552_v54 }

</bundles_post_ra>
